<compile_context>
chip_gen: v7x
topology: tpu7x:2x2x1
jax: 0.10.0
libtpu: 0.0.40
codegen_flags: <defaults>
</compile_context>

<pallas_src>
import jax
import jax.numpy as jnp
from jax import lax
from jax.experimental import pallas as pl
from jax.experimental.pallas import tpu as pltpu


# ------------------------------ fused kernel ------------------------------- #

def _make_fused_kernel(NP, IP, hidden):
    """NP: lanes per spatial position (= 2*IP);  IP: per-image lane pad.
    Per-block lane index n = img*IP + b_local."""
    W1PRE = 12          # conv1 pre-pool output width/height
    P1 = 6              # conv1 pooled output width/height
    W2OUT = 4           # conv2 pre-pool output width/height

    def kernel(cols1_ref, w1_ref, b1_ref, w2_ref, b2_ref,
               wf1_ref, bf1_ref, wf2_ref, bf2_ref, out_ref, p1_scr):
        # -------- conv1 (3x3) + maxpool 2x2 + ReLU, chunked per pooled row --
        w1 = w1_ref[...]                                    # (32, 9)
        b1 = b1_ref[...]                                    # (32, 1)
        row = W1PRE * NP                                    # lanes per pre-pool row
        for a in range(P1):                                 # pooled row
            chunk = cols1_ref[:, 2 * a * row:(2 * a + 2) * row]           # (9, 2*row)
            y = jnp.dot(w1, chunk, preferred_element_type=jnp.float32)    # (32, 2*row)
            ym = jnp.maximum(y[:, :row], y[:, row:])        # max over the 2 pre-pool rows
            for b in range(P1):                             # pooled col
                z = jnp.maximum(ym[:, (2 * b) * NP:(2 * b + 1) * NP],
                                ym[:, (2 * b + 1) * NP:(2 * b + 2) * NP])
                p1_scr[:, (a * P1 + b) * NP:(a * P1 + b + 1) * NP] = (
                    jnp.maximum(z + b1, 0.0))

        # -------- conv2 (3x3) + maxpool 2x2 + ReLU, taps from VMEM-resident p1
        w2 = w2_ref[...]                                    # (64, 288), K = (kh, kw, ci)
        b2 = b2_ref[...]                                    # (64, 1)
        z2 = []                                             # 4 slabs (64, NP), ij = i*2 + j
        for i in range(2):                                  # pooled row
            accm = None
            for dr in range(2):                             # pre-pool row inside pool window
                r = 2 * i + dr
                rhs = jnp.concatenate(
                    [p1_scr[:, ((r + kh) * P1 + kw) * NP:
                               ((r + kh) * P1 + kw + W2OUT) * NP]
                     for kh in range(3) for kw in range(3)], axis=0)       # (288, 4*NP)
                y2 = jnp.dot(w2, rhs, preferred_element_type=jnp.float32)  # (64, 4*NP)
                accm = y2 if dr == 0 else jnp.maximum(accm, y2)
            for j in range(2):                              # pooled col
                zz = jnp.maximum(accm[:, (2 * j) * NP:(2 * j + 1) * NP],
                                 accm[:, (2 * j + 1) * NP:(2 * j + 2) * NP])
                z2.append(jnp.maximum(zz + b2, 0.0))

        # -------- fc1 + ReLU + fc2 (wf1 pre-permuted; torch cat/view absorbed)
        o1 = None
        for img in range(2):
            for ij in range(4):
                rhs = z2[ij][:, img * IP:(img + 1) * IP]                    # (64, IP)
                d = jnp.dot(wf1_ref[img, ij, :, :], rhs,
                            preferred_element_type=jnp.float32)             # (hidden, IP)
                o1 = d if o1 is None else o1 + d
        o1 = jnp.maximum(o1 + bf1_ref[...], 0.0)                            # (hidden, IP)
        out_ref[...] = (jnp.dot(wf2_ref[...], o1,
                                preferred_element_type=jnp.float32)
                        + bf2_ref[...]).astype(out_ref.dtype)               # (2, IP)

    return kernel


# ------------------------------ param re-layout ----------------------------- #

def prepare_params(p):
    """One-time re-layout of PyTorch-convention params into kernel layout."""
    hidden = p["wf1"].shape[0]
    w2p = p["w2"].transpose(0, 2, 3, 1).reshape(64, 288)          # (co, kh*3+kw, ci)->(64,288)
    wf1p = p["wf1"].reshape(hidden, 2, 64, 4).transpose(1, 3, 0, 2)   # (img, ij, hidden, co)
    return {
        "w1m": p["w1"].reshape(32, 9),  "b1": p["b1"].reshape(32, 1),
        "w2m": w2p,                     "b2": p["b2"].reshape(64, 1),
        "wf1p": wf1p,                   "bf1": p["bf1"].reshape(hidden, 1),
        "wf2": p["wf2"],                "bf2": p["bf2"].reshape(2, 1),
    }


# ------------------------------- model forward ------------------------------ #

def forward(x, kp):
    """x: (B, 2, 14, 14) float32 -> logits (B, 2).  Single fused pallas_call."""
    B = x.shape[0]
    G = 2 if B % 2 == 0 else 1            # 2 "parallel" sample blocks (v7x dual-TC)
    Bb = B // G
    IP = ((Bb + 63) // 64) * 64           # per-image lane pad inside a block
    NP = 2 * IP                           # lanes per spatial position (img0 | img1)
    hidden = kp["bf1"].shape[0]

    # ---- conv1 pre-pool im2col, built in XLA from the tiny raw input (~1.3 MB)
    # columns ordered (u, v, n) with n = img*IP + b_local innermost.
    xb = x.transpose(1, 0, 2, 3).reshape(2, G, Bb, 14, 14).transpose(1, 0, 2, 3, 4)
    xb = jnp.pad(xb, ((0, 0), (0, 0), (0, IP - Bb), (0, 0), (0, 0)))   # (G, 2, IP, 14, 14)
    xb = xb.reshape(G, NP, 14, 14)
    taps = [xb[:, :, kh:kh + 12, kw:kw + 12] for kh in range(3) for kw in range(3)]
    cols1 = jnp.stack(taps, axis=1)                                    # (G, 9, NP, 12, 12)
    cols1 = cols1.transpose(0, 1, 3, 4, 2).reshape(G, 9, 144 * NP)

    M1 = 144 * NP
    kernel = _make_fused_kernel(NP, IP, hidden)
    out = pl.pallas_call(
        kernel,
        out_shape=jax.ShapeDtypeStruct((G, 2, IP), jnp.float32),
        grid=(G,),
        in_specs=[
            pl.BlockSpec((None, 9, M1), lambda g: (g, 0, 0)),          # cols1 (per block)
            pl.BlockSpec((32, 9), lambda g: (0, 0)),                   # w1
            pl.BlockSpec((32, 1), lambda g: (0, 0)),                   # b1
            pl.BlockSpec((64, 288), lambda g: (0, 0)),                 # w2
            pl.BlockSpec((64, 1), lambda g: (0, 0)),                   # b2
            pl.BlockSpec((2, 4, hidden, 64), lambda g: (0, 0, 0, 0)),  # wf1 (permuted)
            pl.BlockSpec((hidden, 1), lambda g: (0, 0)),               # bf1
            pl.BlockSpec((2, hidden), lambda g: (0, 0)),               # wf2
            pl.BlockSpec((2, 1), lambda g: (0, 0)),                    # bf2
        ],
        out_specs=pl.BlockSpec((None, 2, IP), lambda g: (g, 0, 0)),
        scratch_shapes=[pltpu.VMEM((32, 36 * NP), jnp.float32)],       # p1 (pooled conv1 out)
        compiler_params=pltpu.CompilerParams(
            dimension_semantics=("parallel",)),
    )(cols1, kp["w1m"], kp["b1"], kp["w2m"], kp["b2"],
      kp["wf1p"], kp["bf1"], kp["wf2"], kp["bf2"])

    # (G, 2, IP) -> (B, 2): drop lane padding, samples back onto rows (2 KB fixup)
    return out[:, :, :Bb].transpose(0, 2, 1).reshape(B, 2)


# ------------------------------ reference (JAX) ----------------------------- #

def _ref_maxpool2(x):
    B, C, H, W = x.shape
    return x.reshape(B, C, H // 2, 2, W // 2, 2).max(axis=(3, 5))


def ref_forward(x, params):
    act = lambda v: jnp.maximum(v, 0.0)
    dn = ("NCHW", "OIHW", "NCHW")
    hp = lax.Precision.HIGHEST
    outs = []
    for img in range(2):
        xi = x[:, img][:, None]
        c1 = lax.conv_general_dilated(xi, params["w1"], (1, 1), "VALID",
                                      dimension_numbers=dn, precision=hp)
        c1 = c1 + params["b1"][None, :, None, None]
        p1 = act(_ref_maxpool2(c1))
        c2 = lax.conv_general_dilated(p1, params["w2"], (1, 1), "VALID",
                                      dimension_numbers=dn, precision=hp)
        c2 = c2 + params["b2"][None, :, None, None]
        outs.append(act(_ref_maxpool2(c2)))
    h = jnp.concatenate(outs, axis=1).reshape(x.shape[0], -1)
    h = act(jnp.dot(h, params["wf1"].T, precision=hp) + params["bf1"])
    return jnp.dot(h, params["wf2"].T, precision=hp) + params["bf2"]


# ----------------------------------- main ----------------------------------- #

def init_params(key, hidden):
    ks = jax.random.split(key, 8)

    def u(k, shape, fan_in):
        bound = 1.0 / (fan_in ** 0.5)
        return jax.random.uniform(k, shape, jnp.float32, -bound, bound)

    return {
        "w1": u(ks[0], (32, 1, 3, 3), 9),       "b1": u(ks[1], (32,), 9),
        "w2": u(ks[2], (64, 32, 3, 3), 288),    "b2": u(ks[3], (64,), 288),
        "wf1": u(ks[4], (hidden, 512), 512),    "bf1": u(ks[5], (hidden,), 512),
        "wf2": u(ks[6], (2, hidden), hidden),   "bf2": u(ks[7], (2,), hidden),
    }


if __name__ == "__main__":
    key = jax.random.PRNGKey(0)
    kx, kparam = jax.random.split(key)
    # The torch module hard-codes batch=100 via .view(100, 1, 14, 14).
    B, hidden = 100, 32
    x = jax.random.normal(kx, (B, 2, 14, 14), jnp.float32)
    params = init_params(kparam, hidden)
    kp = prepare_params(params)            # hoisted weight re-layout (once)

    out = jax.jit(forward)(x, kp)
    out = jax.block_until_ready(out)
    assert out.shape == (B, 2) and out.dtype == jnp.float32

    ref = ref_forward(x, params)
    err = float(jnp.max(jnp.abs(out - ref)))
    assert jnp.allclose(out, ref, atol=2e-4, rtol=2e-4), f"max abs err {err}"

    print("KERNEL_OK")
</pallas_src>

<mosaic_0001>
module attributes {stable_mosaic.version = 11 : i64} {
  func.func @kernel(%arg0: i32, %arg1: memref<1x9x18432xf32, #tpu.memory_space<vmem>>, %arg2: memref<32x9xf32, #tpu.memory_space<vmem>>, %arg3: memref<32x1xf32, #tpu.memory_space<vmem>>, %arg4: memref<64x288xf32, #tpu.memory_space<vmem>>, %arg5: memref<64x1xf32, #tpu.memory_space<vmem>>, %arg6: memref<2x4x32x64xf32, #tpu.memory_space<vmem>>, %arg7: memref<32x1xf32, #tpu.memory_space<vmem>>, %arg8: memref<2x32xf32, #tpu.memory_space<vmem>>, %arg9: memref<2x1xf32, #tpu.memory_space<vmem>>, %arg10: memref<1x2x64xf32, #tpu.memory_space<vmem>>, %arg11: memref<32x4608xf32, #tpu.memory_space<vmem>>) attributes {dimension_semantics = [#tpu.dimension_semantics<parallel>], iteration_bounds = array<i64: 2>, scalar_prefetch = 0 : i64, scratch_operands = 1 : i64, tpu.core_type = #tpu.core_type<tc>, window_params = [{transform_indices = @transform_0, window_bounds = array<i64: 1, 9, 18432>}, {pipeline_mode = #tpu.pipeline_mode<synchronous>, transform_indices = @transform_1, window_bounds = array<i64: 32, 9>}, {pipeline_mode = #tpu.pipeline_mode<synchronous>, transform_indices = @transform_2, window_bounds = array<i64: 32, 1>}, {pipeline_mode = #tpu.pipeline_mode<synchronous>, transform_indices = @transform_3, window_bounds = array<i64: 64, 288>}, {pipeline_mode = #tpu.pipeline_mode<synchronous>, transform_indices = @transform_4, window_bounds = array<i64: 64, 1>}, {pipeline_mode = #tpu.pipeline_mode<synchronous>, transform_indices = @transform_5, window_bounds = array<i64: 2, 4, 32, 64>}, {pipeline_mode = #tpu.pipeline_mode<synchronous>, transform_indices = @transform_6, window_bounds = array<i64: 32, 1>}, {pipeline_mode = #tpu.pipeline_mode<synchronous>, transform_indices = @transform_7, window_bounds = array<i64: 2, 32>}, {pipeline_mode = #tpu.pipeline_mode<synchronous>, transform_indices = @transform_8, window_bounds = array<i64: 2, 1>}, {transform_indices = @transform_9, window_bounds = array<i64: 1, 2, 64>}]} {
    %c0 = arith.constant 0 : index
    %c0_0 = arith.constant 0 : index
    %0 = vector.load %arg2[%c0, %c0_0] : memref<32x9xf32, #tpu.memory_space<vmem>>, vector<32x9xf32>
    %c0_1 = arith.constant 0 : index
    %c0_2 = arith.constant 0 : index
    %1 = vector.load %arg3[%c0_1, %c0_2] : memref<32x1xf32, #tpu.memory_space<vmem>>, vector<32x1xf32>
    %c0_3 = arith.constant 0 : index
    %c0_4 = arith.constant 0 : index
    %c0_5 = arith.constant 0 : index
    %2 = vector.load %arg1[%c0_3, %c0_4, %c0_5] : memref<1x9x18432xf32, #tpu.memory_space<vmem>>, vector<1x9x3072xf32>
    %3 = vector.shape_cast %2 : vector<1x9x3072xf32> to vector<9x3072xf32>
    %cst = arith.constant dense<0.000000e+00> : vector<32x3072xf32>
    %4 = tpu.matmul %0, %3, %cst {dimension_numbers = #tpu.dot_dimension_numbers<[1], [0], [0], [1], [0, 0, 1, 1], [], []>} : vector<32x9xf32>, vector<9x3072xf32>, vector<32x3072xf32> -> vector<32x3072xf32>
    %5 = vector.extract_strided_slice %4 {offsets = [0, 0], sizes = [32, 1536], strides = [1, 1]} : vector<32x3072xf32> to vector<32x1536xf32>
    %6 = vector.extract_strided_slice %4 {offsets = [0, 1536], sizes = [32, 1536], strides = [1, 1]} : vector<32x3072xf32> to vector<32x1536xf32>
    %7 = arith.maximumf %5, %6 : vector<32x1536xf32>
    %8 = vector.extract_strided_slice %7 {offsets = [0, 0], sizes = [32, 128], strides = [1, 1]} : vector<32x1536xf32> to vector<32x128xf32>
    %9 = vector.extract_strided_slice %7 {offsets = [0, 128], sizes = [32, 128], strides = [1, 1]} : vector<32x1536xf32> to vector<32x128xf32>
    %10 = arith.maximumf %8, %9 : vector<32x128xf32>
    %11 = vector.broadcast %1 : vector<32x1xf32> to vector<32x128xf32>
    %12 = arith.addf %10, %11 : vector<32x128xf32>
    %cst_6 = arith.constant 0.000000e+00 : f32
    %13 = vector.broadcast %cst_6 : f32 to vector<32x128xf32>
    %14 = arith.maximumf %12, %13 : vector<32x128xf32>
    %c0_7 = arith.constant 0 : index
    %c0_8 = arith.constant 0 : index
    %15 = vector.load %arg11[%c0_7, %c0_8] : memref<32x4608xf32, #tpu.memory_space<vmem>>, vector<32x128xf32>
    tpu.vector_store %arg11[%c0_7, %c0_8], %14 {strides = array<i32>} : memref<32x4608xf32, #tpu.memory_space<vmem>>, vector<32x128xf32>,
    %16 = vector.extract_strided_slice %7 {offsets = [0, 256], sizes = [32, 128], strides = [1, 1]} : vector<32x1536xf32> to vector<32x128xf32>
    %17 = vector.extract_strided_slice %7 {offsets = [0, 384], sizes = [32, 128], strides = [1, 1]} : vector<32x1536xf32> to vector<32x128xf32>
    %18 = arith.maximumf %16, %17 : vector<32x128xf32>
    %19 = vector.broadcast %1 : vector<32x1xf32> to vector<32x128xf32>
    %20 = arith.addf %18, %19 : vector<32x128xf32>
    %cst_9 = arith.constant 0.000000e+00 : f32
    %21 = vector.broadcast %cst_9 : f32 to vector<32x128xf32>
    %22 = arith.maximumf %20, %21 : vector<32x128xf32>
    %c0_10 = arith.constant 0 : index
    %c128 = arith.constant 128 : index
    %23 = vector.load %arg11[%c0_10, %c128] : memref<32x4608xf32, #tpu.memory_space<vmem>>, vector<32x128xf32>
    tpu.vector_store %arg11[%c0_10, %c128], %22 {strides = array<i32>} : memref<32x4608xf32, #tpu.memory_space<vmem>>, vector<32x128xf32>,
    %24 = vector.extract_strided_slice %7 {offsets = [0, 512], sizes = [32, 128], strides = [1, 1]} : vector<32x1536xf32> to vector<32x128xf32>
    %25 = vector.extract_strided_slice %7 {offsets = [0, 640], sizes = [32, 128], strides = [1, 1]} : vector<32x1536xf32> to vector<32x128xf32>
    %26 = arith.maximumf %24, %25 : vector<32x128xf32>
    %27 = vector.broadcast %1 : vector<32x1xf32> to vector<32x128xf32>
    %28 = arith.addf %26, %27 : vector<32x128xf32>
    %cst_11 = arith.constant 0.000000e+00 : f32
    %29 = vector.broadcast %cst_11 : f32 to vector<32x128xf32>
    %30 = arith.maximumf %28, %29 : vector<32x128xf32>
    %c0_12 = arith.constant 0 : index
    %c256 = arith.constant 256 : index
    %31 = vector.load %arg11[%c0_12, %c256] : memref<32x4608xf32, #tpu.memory_space<vmem>>, vector<32x128xf32>
    tpu.vector_store %arg11[%c0_12, %c256], %30 {strides = array<i32>} : memref<32x4608xf32, #tpu.memory_space<vmem>>, vector<32x128xf32>,
    %32 = vector.extract_strided_slice %7 {offsets = [0, 768], sizes = [32, 128], strides = [1, 1]} : vector<32x1536xf32> to vector<32x128xf32>
    %33 = vector.extract_strided_slice %7 {offsets = [0, 896], sizes = [32, 128], strides = [1, 1]} : vector<32x1536xf32> to vector<32x128xf32>
    %34 = arith.maximumf %32, %33 : vector<32x128xf32>
    %35 = vector.broadcast %1 : vector<32x1xf32> to vector<32x128xf32>
    %36 = arith.addf %34, %35 : vector<32x128xf32>
    %cst_13 = arith.constant 0.000000e+00 : f32
    %37 = vector.broadcast %cst_13 : f32 to vector<32x128xf32>
    %38 = arith.maximumf %36, %37 : vector<32x128xf32>
    %c0_14 = arith.constant 0 : index
    %c384 = arith.constant 384 : index
    %39 = vector.load %arg11[%c0_14, %c384] : memref<32x4608xf32, #tpu.memory_space<vmem>>, vector<32x128xf32>
    tpu.vector_store %arg11[%c0_14, %c384], %38 {strides = array<i32>} : memref<32x4608xf32, #tpu.memory_space<vmem>>, vector<32x128xf32>,
    %40 = vector.extract_strided_slice %7 {offsets = [0, 1024], sizes = [32, 128], strides = [1, 1]} : vector<32x1536xf32> to vector<32x128xf32>
    %41 = vector.extract_strided_slice %7 {offsets = [0, 1152], sizes = [32, 128], strides = [1, 1]} : vector<32x1536xf32> to vector<32x128xf32>
    %42 = arith.maximumf %40, %41 : vector<32x128xf32>
    %43 = vector.broadcast %1 : vector<32x1xf32> to vector<32x128xf32>
    %44 = arith.addf %42, %43 : vector<32x128xf32>
    %cst_15 = arith.constant 0.000000e+00 : f32
    %45 = vector.broadcast %cst_15 : f32 to vector<32x128xf32>
    %46 = arith.maximumf %44, %45 : vector<32x128xf32>
    %c0_16 = arith.constant 0 : index
    %c512 = arith.constant 512 : index
    %47 = vector.load %arg11[%c0_16, %c512] : memref<32x4608xf32, #tpu.memory_space<vmem>>, vector<32x128xf32>
    tpu.vector_store %arg11[%c0_16, %c512], %46 {strides = array<i32>} : memref<32x4608xf32, #tpu.memory_space<vmem>>, vector<32x128xf32>,
    %48 = vector.extract_strided_slice %7 {offsets = [0, 1280], sizes = [32, 128], strides = [1, 1]} : vector<32x1536xf32> to vector<32x128xf32>
    %49 = vector.extract_strided_slice %7 {offsets = [0, 1408], sizes = [32, 128], strides = [1, 1]} : vector<32x1536xf32> to vector<32x128xf32>
    %50 = arith.maximumf %48, %49 : vector<32x128xf32>
    %51 = vector.broadcast %1 : vector<32x1xf32> to vector<32x128xf32>
    %52 = arith.addf %50, %51 : vector<32x128xf32>
    %cst_17 = arith.constant 0.000000e+00 : f32
    %53 = vector.broadcast %cst_17 : f32 to vector<32x128xf32>
    %54 = arith.maximumf %52, %53 : vector<32x128xf32>
    %c0_18 = arith.constant 0 : index
    %c640 = arith.constant 640 : index
    %55 = vector.load %arg11[%c0_18, %c640] : memref<32x4608xf32, #tpu.memory_space<vmem>>, vector<32x128xf32>
    tpu.vector_store %arg11[%c0_18, %c640], %54 {strides = array<i32>} : memref<32x4608xf32, #tpu.memory_space<vmem>>, vector<32x128xf32>,
    %c0_19 = arith.constant 0 : index
    %c0_20 = arith.constant 0 : index
    %c3072 = arith.constant 3072 : index
    %56 = vector.load %arg1[%c0_19, %c0_20, %c3072] : memref<1x9x18432xf32, #tpu.memory_space<vmem>>, vector<1x9x3072xf32>
    %57 = vector.shape_cast %56 : vector<1x9x3072xf32> to vector<9x3072xf32>
    %cst_21 = arith.constant dense<0.000000e+00> : vector<32x3072xf32>
    %58 = tpu.matmul %0, %57, %cst_21 {dimension_numbers = #tpu.dot_dimension_numbers<[1], [0], [0], [1], [0, 0, 1, 1], [], []>} : vector<32x9xf32>, vector<9x3072xf32>, vector<32x3072xf32> -> vector<32x3072xf32>
    %59 = vector.extract_strided_slice %58 {offsets = [0, 0], sizes = [32, 1536], strides = [1, 1]} : vector<32x3072xf32> to vector<32x1536xf32>
    %60 = vector.extract_strided_slice %58 {offsets = [0, 1536], sizes = [32, 1536], strides = [1, 1]} : vector<32x3072xf32> to vector<32x1536xf32>
    %61 = arith.maximumf %59, %60 : vector<32x1536xf32>
    %62 = vector.extract_strided_slice %61 {offsets = [0, 0], sizes = [32, 128], strides = [1, 1]} : vector<32x1536xf32> to vector<32x128xf32>
    %63 = vector.extract_strided_slice %61 {offsets = [0, 128], sizes = [32, 128], strides = [1, 1]} : vector<32x1536xf32> to vector<32x128xf32>
    %64 = arith.maximumf %62, %63 : vector<32x128xf32>
    %65 = vector.broadcast %1 : vector<32x1xf32> to vector<32x128xf32>
    %66 = arith.addf %64, %65 : vector<32x128xf32>
    %cst_22 = arith.constant 0.000000e+00 : f32
    %67 = vector.broadcast %cst_22 : f32 to vector<32x128xf32>
    %68 = arith.maximumf %66, %67 : vector<32x128xf32>
    %c0_23 = arith.constant 0 : index
    %c768 = arith.constant 768 : index
    %69 = vector.load %arg11[%c0_23, %c768] : memref<32x4608xf32, #tpu.memory_space<vmem>>, vector<32x128xf32>
    tpu.vector_store %arg11[%c0_23, %c768], %68 {strides = array<i32>} : memref<32x4608xf32, #tpu.memory_space<vmem>>, vector<32x128xf32>,
    %70 = vector.extract_strided_slice %61 {offsets = [0, 256], sizes = [32, 128], strides = [1, 1]} : vector<32x1536xf32> to vector<32x128xf32>
    %71 = vector.extract_strided_slice %61 {offsets = [0, 384], sizes = [32, 128], strides = [1, 1]} : vector<32x1536xf32> to vector<32x128xf32>
    %72 = arith.maximumf %70, %71 : vector<32x128xf32>
    %73 = vector.broadcast %1 : vector<32x1xf32> to vector<32x128xf32>
    %74 = arith.addf %72, %73 : vector<32x128xf32>
    %cst_24 = arith.constant 0.000000e+00 : f32
    %75 = vector.broadcast %cst_24 : f32 to vector<32x128xf32>
    %76 = arith.maximumf %74, %75 : vector<32x128xf32>
    %c0_25 = arith.constant 0 : index
    %c896 = arith.constant 896 : index
    %77 = vector.load %arg11[%c0_25, %c896] : memref<32x4608xf32, #tpu.memory_space<vmem>>, vector<32x128xf32>
    tpu.vector_store %arg11[%c0_25, %c896], %76 {strides = array<i32>} : memref<32x4608xf32, #tpu.memory_space<vmem>>, vector<32x128xf32>,
    %78 = vector.extract_strided_slice %61 {offsets = [0, 512], sizes = [32, 128], strides = [1, 1]} : vector<32x1536xf32> to vector<32x128xf32>
    %79 = vector.extract_strided_slice %61 {offsets = [0, 640], sizes = [32, 128], strides = [1, 1]} : vector<32x1536xf32> to vector<32x128xf32>
    %80 = arith.maximumf %78, %79 : vector<32x128xf32>
    %81 = vector.broadcast %1 : vector<32x1xf32> to vector<32x128xf32>
    %82 = arith.addf %80, %81 : vector<32x128xf32>
    %cst_26 = arith.constant 0.000000e+00 : f32
    %83 = vector.broadcast %cst_26 : f32 to vector<32x128xf32>
    %84 = arith.maximumf %82, %83 : vector<32x128xf32>
    %c0_27 = arith.constant 0 : index
    %c1024 = arith.constant 1024 : index
    %85 = vector.load %arg11[%c0_27, %c1024] : memref<32x4608xf32, #tpu.memory_space<vmem>>, vector<32x128xf32>
    tpu.vector_store %arg11[%c0_27, %c1024], %84 {strides = array<i32>} : memref<32x4608xf32, #tpu.memory_space<vmem>>, vector<32x128xf32>,
    %86 = vector.extract_strided_slice %61 {offsets = [0, 768], sizes = [32, 128], strides = [1, 1]} : vector<32x1536xf32> to vector<32x128xf32>
    %87 = vector.extract_strided_slice %61 {offsets = [0, 896], sizes = [32, 128], strides = [1, 1]} : vector<32x1536xf32> to vector<32x128xf32>
    %88 = arith.maximumf %86, %87 : vector<32x128xf32>
    %89 = vector.broadcast %1 : vector<32x1xf32> to vector<32x128xf32>
    %90 = arith.addf %88, %89 : vector<32x128xf32>
    %cst_28 = arith.constant 0.000000e+00 : f32
    %91 = vector.broadcast %cst_28 : f32 to vector<32x128xf32>
    %92 = arith.maximumf %90, %91 : vector<32x128xf32>
    %c0_29 = arith.constant 0 : index
    %c1152 = arith.constant 1152 : index
    %93 = vector.load %arg11[%c0_29, %c1152] : memref<32x4608xf32, #tpu.memory_space<vmem>>, vector<32x128xf32>
    tpu.vector_store %arg11[%c0_29, %c1152], %92 {strides = array<i32>} : memref<32x4608xf32, #tpu.memory_space<vmem>>, vector<32x128xf32>,
    %94 = vector.extract_strided_slice %61 {offsets = [0, 1024], sizes = [32, 128], strides = [1, 1]} : vector<32x1536xf32> to vector<32x128xf32>
    %95 = vector.extract_strided_slice %61 {offsets = [0, 1152], sizes = [32, 128], strides = [1, 1]} : vector<32x1536xf32> to vector<32x128xf32>
    %96 = arith.maximumf %94, %95 : vector<32x128xf32>
    %97 = vector.broadcast %1 : vector<32x1xf32> to vector<32x128xf32>
    %98 = arith.addf %96, %97 : vector<32x128xf32>
    %cst_30 = arith.constant 0.000000e+00 : f32
    %99 = vector.broadcast %cst_30 : f32 to vector<32x128xf32>
    %100 = arith.maximumf %98, %99 : vector<32x128xf32>
    %c0_31 = arith.constant 0 : index
    %c1280 = arith.constant 1280 : index
    %101 = vector.load %arg11[%c0_31, %c1280] : memref<32x4608xf32, #tpu.memory_space<vmem>>, vector<32x128xf32>
    tpu.vector_store %arg11[%c0_31, %c1280], %100 {strides = array<i32>} : memref<32x4608xf32, #tpu.memory_space<vmem>>, vector<32x128xf32>,
    %102 = vector.extract_strided_slice %61 {offsets = [0, 1280], sizes = [32, 128], strides = [1, 1]} : vector<32x1536xf32> to vector<32x128xf32>
    %103 = vector.extract_strided_slice %61 {offsets = [0, 1408], sizes = [32, 128], strides = [1, 1]} : vector<32x1536xf32> to vector<32x128xf32>
    %104 = arith.maximumf %102, %103 : vector<32x128xf32>
    %105 = vector.broadcast %1 : vector<32x1xf32> to vector<32x128xf32>
    %106 = arith.addf %104, %105 : vector<32x128xf32>
    %cst_32 = arith.constant 0.000000e+00 : f32
    %107 = vector.broadcast %cst_32 : f32 to vector<32x128xf32>
    %108 = arith.maximumf %106, %107 : vector<32x128xf32>
    %c0_33 = arith.constant 0 : index
    %c1408 = arith.constant 1408 : index
    %109 = vector.load %arg11[%c0_33, %c1408] : memref<32x4608xf32, #tpu.memory_space<vmem>>, vector<32x128xf32>
    tpu.vector_store %arg11[%c0_33, %c1408], %108 {strides = array<i32>} : memref<32x4608xf32, #tpu.memory_space<vmem>>, vector<32x128xf32>,
    %c0_34 = arith.constant 0 : index
    %c0_35 = arith.constant 0 : index
    %c6144 = arith.constant 6144 : index
    %110 = vector.load %arg1[%c0_34, %c0_35, %c6144] : memref<1x9x18432xf32, #tpu.memory_space<vmem>>, vector<1x9x3072xf32>
    %111 = vector.shape_cast %110 : vector<1x9x3072xf32> to vector<9x3072xf32>
    %cst_36 = arith.constant dense<0.000000e+00> : vector<32x3072xf32>
    %112 = tpu.matmul %0, %111, %cst_36 {dimension_numbers = #tpu.dot_dimension_numbers<[1], [0], [0], [1], [0, 0, 1, 1], [], []>} : vector<32x9xf32>, vector<9x3072xf32>, vector<32x3072xf32> -> vector<32x3072xf32>
    %113 = vector.extract_strided_slice %112 {offsets = [0, 0], sizes = [32, 1536], strides = [1, 1]} : vector<32x3072xf32> to vector<32x1536xf32>
    %114 = vector.extract_strided_slice %112 {offsets = [0, 1536], sizes = [32, 1536], strides = [1, 1]} : vector<32x3072xf32> to vector<32x1536xf32>
    %115 = arith.maximumf %113, %114 : vector<32x1536xf32>
    %116 = vector.extract_strided_slice %115 {offsets = [0, 0], sizes = [32, 128], strides = [1, 1]} : vector<32x1536xf32> to vector<32x128xf32>
    %117 = vector.extract_strided_slice %115 {offsets = [0, 128], sizes = [32, 128], strides = [1, 1]} : vector<32x1536xf32> to vector<32x128xf32>
    %118 = arith.maximumf %116, %117 : vector<32x128xf32>
    %119 = vector.broadcast %1 : vector<32x1xf32> to vector<32x128xf32>
    %120 = arith.addf %118, %119 : vector<32x128xf32>
    %cst_37 = arith.constant 0.000000e+00 : f32
    %121 = vector.broadcast %cst_37 : f32 to vector<32x128xf32>
    %122 = arith.maximumf %120, %121 : vector<32x128xf32>
    %c0_38 = arith.constant 0 : index
    %c1536 = arith.constant 1536 : index
    %123 = vector.load %arg11[%c0_38, %c1536] : memref<32x4608xf32, #tpu.memory_space<vmem>>, vector<32x128xf32>
    tpu.vector_store %arg11[%c0_38, %c1536], %122 {strides = array<i32>} : memref<32x4608xf32, #tpu.memory_space<vmem>>, vector<32x128xf32>,
    %124 = vector.extract_strided_slice %115 {offsets = [0, 256], sizes = [32, 128], strides = [1, 1]} : vector<32x1536xf32> to vector<32x128xf32>
    %125 = vector.extract_strided_slice %115 {offsets = [0, 384], sizes = [32, 128], strides = [1, 1]} : vector<32x1536xf32> to vector<32x128xf32>
    %126 = arith.maximumf %124, %125 : vector<32x128xf32>
    %127 = vector.broadcast %1 : vector<32x1xf32> to vector<32x128xf32>
    %128 = arith.addf %126, %127 : vector<32x128xf32>
    %cst_39 = arith.constant 0.000000e+00 : f32
    %129 = vector.broadcast %cst_39 : f32 to vector<32x128xf32>
    %130 = arith.maximumf %128, %129 : vector<32x128xf32>
    %c0_40 = arith.constant 0 : index
    %c1664 = arith.constant 1664 : index
    %131 = vector.load %arg11[%c0_40, %c1664] : memref<32x4608xf32, #tpu.memory_space<vmem>>, vector<32x128xf32>
    tpu.vector_store %arg11[%c0_40, %c1664], %130 {strides = array<i32>} : memref<32x4608xf32, #tpu.memory_space<vmem>>, vector<32x128xf32>,
    %132 = vector.extract_strided_slice %115 {offsets = [0, 512], sizes = [32, 128], strides = [1, 1]} : vector<32x1536xf32> to vector<32x128xf32>
    %133 = vector.extract_strided_slice %115 {offsets = [0, 640], sizes = [32, 128], strides = [1, 1]} : vector<32x1536xf32> to vector<32x128xf32>
    %134 = arith.maximumf %132, %133 : vector<32x128xf32>
    %135 = vector.broadcast %1 : vector<32x1xf32> to vector<32x128xf32>
    %136 = arith.addf %134, %135 : vector<32x128xf32>
    %cst_41 = arith.constant 0.000000e+00 : f32
    %137 = vector.broadcast %cst_41 : f32 to vector<32x128xf32>
    %138 = arith.maximumf %136, %137 : vector<32x128xf32>
    %c0_42 = arith.constant 0 : index
    %c1792 = arith.constant 1792 : index
    %139 = vector.load %arg11[%c0_42, %c1792] : memref<32x4608xf32, #tpu.memory_space<vmem>>, vector<32x128xf32>
    tpu.vector_store %arg11[%c0_42, %c1792], %138 {strides = array<i32>} : memref<32x4608xf32, #tpu.memory_space<vmem>>, vector<32x128xf32>,
    %140 = vector.extract_strided_slice %115 {offsets = [0, 768], sizes = [32, 128], strides = [1, 1]} : vector<32x1536xf32> to vector<32x128xf32>
    %141 = vector.extract_strided_slice %115 {offsets = [0, 896], sizes = [32, 128], strides = [1, 1]} : vector<32x1536xf32> to vector<32x128xf32>
    %142 = arith.maximumf %140, %141 : vector<32x128xf32>
    %143 = vector.broadcast %1 : vector<32x1xf32> to vector<32x128xf32>
    %144 = arith.addf %142, %143 : vector<32x128xf32>
    %cst_43 = arith.constant 0.000000e+00 : f32
    %145 = vector.broadcast %cst_43 : f32 to vector<32x128xf32>
    %146 = arith.maximumf %144, %145 : vector<32x128xf32>
    %c0_44 = arith.constant 0 : index
    %c1920 = arith.constant 1920 : index
    %147 = vector.load %arg11[%c0_44, %c1920] : memref<32x4608xf32, #tpu.memory_space<vmem>>, vector<32x128xf32>
    tpu.vector_store %arg11[%c0_44, %c1920], %146 {strides = array<i32>} : memref<32x4608xf32, #tpu.memory_space<vmem>>, vector<32x128xf32>,
    %148 = vector.extract_strided_slice %115 {offsets = [0, 1024], sizes = [32, 128], strides = [1, 1]} : vector<32x1536xf32> to vector<32x128xf32>
    %149 = vector.extract_strided_slice %115 {offsets = [0, 1152], sizes = [32, 128], strides = [1, 1]} : vector<32x1536xf32> to vector<32x128xf32>
    %150 = arith.maximumf %148, %149 : vector<32x128xf32>
    %151 = vector.broadcast %1 : vector<32x1xf32> to vector<32x128xf32>
    %152 = arith.addf %150, %151 : vector<32x128xf32>
    %cst_45 = arith.constant 0.000000e+00 : f32
    %153 = vector.broadcast %cst_45 : f32 to vector<32x128xf32>
    %154 = arith.maximumf %152, %153 : vector<32x128xf32>
    %c0_46 = arith.constant 0 : index
    %c2048 = arith.constant 2048 : index
    %155 = vector.load %arg11[%c0_46, %c2048] : memref<32x4608xf32, #tpu.memory_space<vmem>>, vector<32x128xf32>
    tpu.vector_store %arg11[%c0_46, %c2048], %154 {strides = array<i32>} : memref<32x4608xf32, #tpu.memory_space<vmem>>, vector<32x128xf32>,
    %156 = vector.extract_strided_slice %115 {offsets = [0, 1280], sizes = [32, 128], strides = [1, 1]} : vector<32x1536xf32> to vector<32x128xf32>
    %157 = vector.extract_strided_slice %115 {offsets = [0, 1408], sizes = [32, 128], strides = [1, 1]} : vector<32x1536xf32> to vector<32x128xf32>
    %158 = arith.maximumf %156, %157 : vector<32x128xf32>
    %159 = vector.broadcast %1 : vector<32x1xf32> to vector<32x128xf32>
    %160 = arith.addf %158, %159 : vector<32x128xf32>
    %cst_47 = arith.constant 0.000000e+00 : f32
    %161 = vector.broadcast %cst_47 : f32 to vector<32x128xf32>
    %162 = arith.maximumf %160, %161 : vector<32x128xf32>
    %c0_48 = arith.constant 0 : index
    %c2176 = arith.constant 2176 : index
    %163 = vector.load %arg11[%c0_48, %c2176] : memref<32x4608xf32, #tpu.memory_space<vmem>>, vector<32x128xf32>
    tpu.vector_store %arg11[%c0_48, %c2176], %162 {strides = array<i32>} : memref<32x4608xf32, #tpu.memory_space<vmem>>, vector<32x128xf32>,
    %c0_49 = arith.constant 0 : index
    %c0_50 = arith.constant 0 : index
    %c9216 = arith.constant 9216 : index
    %164 = vector.load %arg1[%c0_49, %c0_50, %c9216] : memref<1x9x18432xf32, #tpu.memory_space<vmem>>, vector<1x9x3072xf32>
    %165 = vector.shape_cast %164 : vector<1x9x3072xf32> to vector<9x3072xf32>
    %cst_51 = arith.constant dense<0.000000e+00> : vector<32x3072xf32>
    %166 = tpu.matmul %0, %165, %cst_51 {dimension_numbers = #tpu.dot_dimension_numbers<[1], [0], [0], [1], [0, 0, 1, 1], [], []>} : vector<32x9xf32>, vector<9x3072xf32>, vector<32x3072xf32> -> vector<32x3072xf32>
    %167 = vector.extract_strided_slice %166 {offsets = [0, 0], sizes = [32, 1536], strides = [1, 1]} : vector<32x3072xf32> to vector<32x1536xf32>
    %168 = vector.extract_strided_slice %166 {offsets = [0, 1536], sizes = [32, 1536], strides = [1, 1]} : vector<32x3072xf32> to vector<32x1536xf32>
    %169 = arith.maximumf %167, %168 : vector<32x1536xf32>
    %170 = vector.extract_strided_slice %169 {offsets = [0, 0], sizes = [32, 128], strides = [1, 1]} : vector<32x1536xf32> to vector<32x128xf32>
    %171 = vector.extract_strided_slice %169 {offsets = [0, 128], sizes = [32, 128], strides = [1, 1]} : vector<32x1536xf32> to vector<32x128xf32>
    %172 = arith.maximumf %170, %171 : vector<32x128xf32>
    %173 = vector.broadcast %1 : vector<32x1xf32> to vector<32x128xf32>
    %174 = arith.addf %172, %173 : vector<32x128xf32>
    %cst_52 = arith.constant 0.000000e+00 : f32
    %175 = vector.broadcast %cst_52 : f32 to vector<32x128xf32>
    %176 = arith.maximumf %174, %175 : vector<32x128xf32>
    %c0_53 = arith.constant 0 : index
    %c2304 = arith.constant 2304 : index
    %177 = vector.load %arg11[%c0_53, %c2304] : memref<32x4608xf32, #tpu.memory_space<vmem>>, vector<32x128xf32>
    tpu.vector_store %arg11[%c0_53, %c2304], %176 {strides = array<i32>} : memref<32x4608xf32, #tpu.memory_space<vmem>>, vector<32x128xf32>,
    %178 = vector.extract_strided_slice %169 {offsets = [0, 256], sizes = [32, 128], strides = [1, 1]} : vector<32x1536xf32> to vector<32x128xf32>
    %179 = vector.extract_strided_slice %169 {offsets = [0, 384], sizes = [32, 128], strides = [1, 1]} : vector<32x1536xf32> to vector<32x128xf32>
    %180 = arith.maximumf %178, %179 : vector<32x128xf32>
    %181 = vector.broadcast %1 : vector<32x1xf32> to vector<32x128xf32>
    %182 = arith.addf %180, %181 : vector<32x128xf32>
    %cst_54 = arith.constant 0.000000e+00 : f32
    %183 = vector.broadcast %cst_54 : f32 to vector<32x128xf32>
    %184 = arith.maximumf %182, %183 : vector<32x128xf32>
    %c0_55 = arith.constant 0 : index
    %c2432 = arith.constant 2432 : index
    %185 = vector.load %arg11[%c0_55, %c2432] : memref<32x4608xf32, #tpu.memory_space<vmem>>, vector<32x128xf32>
    tpu.vector_store %arg11[%c0_55, %c2432], %184 {strides = array<i32>} : memref<32x4608xf32, #tpu.memory_space<vmem>>, vector<32x128xf32>,
    %186 = vector.extract_strided_slice %169 {offsets = [0, 512], sizes = [32, 128], strides = [1, 1]} : vector<32x1536xf32> to vector<32x128xf32>
    %187 = vector.extract_strided_slice %169 {offsets = [0, 640], sizes = [32, 128], strides = [1, 1]} : vector<32x1536xf32> to vector<32x128xf32>
    %188 = arith.maximumf %186, %187 : vector<32x128xf32>
    %189 = vector.broadcast %1 : vector<32x1xf32> to vector<32x128xf32>
    %190 = arith.addf %188, %189 : vector<32x128xf32>
    %cst_56 = arith.constant 0.000000e+00 : f32
    %191 = vector.broadcast %cst_56 : f32 to vector<32x128xf32>
    %192 = arith.maximumf %190, %191 : vector<32x128xf32>
    %c0_57 = arith.constant 0 : index
    %c2560 = arith.constant 2560 : index
    %193 = vector.load %arg11[%c0_57, %c2560] : memref<32x4608xf32, #tpu.memory_space<vmem>>, vector<32x128xf32>
    tpu.vector_store %arg11[%c0_57, %c2560], %192 {strides = array<i32>} : memref<32x4608xf32, #tpu.memory_space<vmem>>, vector<32x128xf32>,
    %194 = vector.extract_strided_slice %169 {offsets = [0, 768], sizes = [32, 128], strides = [1, 1]} : vector<32x1536xf32> to vector<32x128xf32>
    %195 = vector.extract_strided_slice %169 {offsets = [0, 896], sizes = [32, 128], strides = [1, 1]} : vector<32x1536xf32> to vector<32x128xf32>
    %196 = arith.maximumf %194, %195 : vector<32x128xf32>
    %197 = vector.broadcast %1 : vector<32x1xf32> to vector<32x128xf32>
    %198 = arith.addf %196, %197 : vector<32x128xf32>
    %cst_58 = arith.constant 0.000000e+00 : f32
    %199 = vector.broadcast %cst_58 : f32 to vector<32x128xf32>
    %200 = arith.maximumf %198, %199 : vector<32x128xf32>
    %c0_59 = arith.constant 0 : index
    %c2688 = arith.constant 2688 : index
    %201 = vector.load %arg11[%c0_59, %c2688] : memref<32x4608xf32, #tpu.memory_space<vmem>>, vector<32x128xf32>
    tpu.vector_store %arg11[%c0_59, %c2688], %200 {strides = array<i32>} : memref<32x4608xf32, #tpu.memory_space<vmem>>, vector<32x128xf32>,
    %202 = vector.extract_strided_slice %169 {offsets = [0, 1024], sizes = [32, 128], strides = [1, 1]} : vector<32x1536xf32> to vector<32x128xf32>
    %203 = vector.extract_strided_slice %169 {offsets = [0, 1152], sizes = [32, 128], strides = [1, 1]} : vector<32x1536xf32> to vector<32x128xf32>
    %204 = arith.maximumf %202, %203 : vector<32x128xf32>
    %205 = vector.broadcast %1 : vector<32x1xf32> to vector<32x128xf32>
    %206 = arith.addf %204, %205 : vector<32x128xf32>
    %cst_60 = arith.constant 0.000000e+00 : f32
    %207 = vector.broadcast %cst_60 : f32 to vector<32x128xf32>
    %208 = arith.maximumf %206, %207 : vector<32x128xf32>
    %c0_61 = arith.constant 0 : index
    %c2816 = arith.constant 2816 : index
    %209 = vector.load %arg11[%c0_61, %c2816] : memref<32x4608xf32, #tpu.memory_space<vmem>>, vector<32x128xf32>
    tpu.vector_store %arg11[%c0_61, %c2816], %208 {strides = array<i32>} : memref<32x4608xf32, #tpu.memory_space<vmem>>, vector<32x128xf32>,
    %210 = vector.extract_strided_slice %169 {offsets = [0, 1280], sizes = [32, 128], strides = [1, 1]} : vector<32x1536xf32> to vector<32x128xf32>
    %211 = vector.extract_strided_slice %169 {offsets = [0, 1408], sizes = [32, 128], strides = [1, 1]} : vector<32x1536xf32> to vector<32x128xf32>
    %212 = arith.maximumf %210, %211 : vector<32x128xf32>
    %213 = vector.broadcast %1 : vector<32x1xf32> to vector<32x128xf32>
    %214 = arith.addf %212, %213 : vector<32x128xf32>
    %cst_62 = arith.constant 0.000000e+00 : f32
    %215 = vector.broadcast %cst_62 : f32 to vector<32x128xf32>
    %216 = arith.maximumf %214, %215 : vector<32x128xf32>
    %c0_63 = arith.constant 0 : index
    %c2944 = arith.constant 2944 : index
    %217 = vector.load %arg11[%c0_63, %c2944] : memref<32x4608xf32, #tpu.memory_space<vmem>>, vector<32x128xf32>
    tpu.vector_store %arg11[%c0_63, %c2944], %216 {strides = array<i32>} : memref<32x4608xf32, #tpu.memory_space<vmem>>, vector<32x128xf32>,
    %c0_64 = arith.constant 0 : index
    %c0_65 = arith.constant 0 : index
    %c12288 = arith.constant 12288 : index
    %218 = vector.load %arg1[%c0_64, %c0_65, %c12288] : memref<1x9x18432xf32, #tpu.memory_space<vmem>>, vector<1x9x3072xf32>
    %219 = vector.shape_cast %218 : vector<1x9x3072xf32> to vector<9x3072xf32>
    %cst_66 = arith.constant dense<0.000000e+00> : vector<32x3072xf32>
    %220 = tpu.matmul %0, %219, %cst_66 {dimension_numbers = #tpu.dot_dimension_numbers<[1], [0], [0], [1], [0, 0, 1, 1], [], []>} : vector<32x9xf32>, vector<9x3072xf32>, vector<32x3072xf32> -> vector<32x3072xf32>
    %221 = vector.extract_strided_slice %220 {offsets = [0, 0], sizes = [32, 1536], strides = [1, 1]} : vector<32x3072xf32> to vector<32x1536xf32>
    %222 = vector.extract_strided_slice %220 {offsets = [0, 1536], sizes = [32, 1536], strides = [1, 1]} : vector<32x3072xf32> to vector<32x1536xf32>
    %223 = arith.maximumf %221, %222 : vector<32x1536xf32>
    %224 = vector.extract_strided_slice %223 {offsets = [0, 0], sizes = [32, 128], strides = [1, 1]} : vector<32x1536xf32> to vector<32x128xf32>
    %225 = vector.extract_strided_slice %223 {offsets = [0, 128], sizes = [32, 128], strides = [1, 1]} : vector<32x1536xf32> to vector<32x128xf32>
    %226 = arith.maximumf %224, %225 : vector<32x128xf32>
    %227 = vector.broadcast %1 : vector<32x1xf32> to vector<32x128xf32>
    %228 = arith.addf %226, %227 : vector<32x128xf32>
    %cst_67 = arith.constant 0.000000e+00 : f32
    %229 = vector.broadcast %cst_67 : f32 to vector<32x128xf32>
    %230 = arith.maximumf %228, %229 : vector<32x128xf32>
    %c0_68 = arith.constant 0 : index
    %c3072_69 = arith.constant 3072 : index
    %231 = vector.load %arg11[%c0_68, %c3072_69] : memref<32x4608xf32, #tpu.memory_space<vmem>>, vector<32x128xf32>
    tpu.vector_store %arg11[%c0_68, %c3072_69], %230 {strides = array<i32>} : memref<32x4608xf32, #tpu.memory_space<vmem>>, vector<32x128xf32>,
    %232 = vector.extract_strided_slice %223 {offsets = [0, 256], sizes = [32, 128], strides = [1, 1]} : vector<32x1536xf32> to vector<32x128xf32>
    %233 = vector.extract_strided_slice %223 {offsets = [0, 384], sizes = [32, 128], strides = [1, 1]} : vector<32x1536xf32> to vector<32x128xf32>
    %234 = arith.maximumf %232, %233 : vector<32x128xf32>
    %235 = vector.broadcast %1 : vector<32x1xf32> to vector<32x128xf32>
    %236 = arith.addf %234, %235 : vector<32x128xf32>
    %cst_70 = arith.constant 0.000000e+00 : f32
    %237 = vector.broadcast %cst_70 : f32 to vector<32x128xf32>
    %238 = arith.maximumf %236, %237 : vector<32x128xf32>
    %c0_71 = arith.constant 0 : index
    %c3200 = arith.constant 3200 : index
    %239 = vector.load %arg11[%c0_71, %c3200] : memref<32x4608xf32, #tpu.memory_space<vmem>>, vector<32x128xf32>
    tpu.vector_store %arg11[%c0_71, %c3200], %238 {strides = array<i32>} : memref<32x4608xf32, #tpu.memory_space<vmem>>, vector<32x128xf32>,
    %240 = vector.extract_strided_slice %223 {offsets = [0, 512], sizes = [32, 128], strides = [1, 1]} : vector<32x1536xf32> to vector<32x128xf32>
    %241 = vector.extract_strided_slice %223 {offsets = [0, 640], sizes = [32, 128], strides = [1, 1]} : vector<32x1536xf32> to vector<32x128xf32>
    %242 = arith.maximumf %240, %241 : vector<32x128xf32>
    %243 = vector.broadcast %1 : vector<32x1xf32> to vector<32x128xf32>
    %244 = arith.addf %242, %243 : vector<32x128xf32>
    %cst_72 = arith.constant 0.000000e+00 : f32
    %245 = vector.broadcast %cst_72 : f32 to vector<32x128xf32>
    %246 = arith.maximumf %244, %245 : vector<32x128xf32>
    %c0_73 = arith.constant 0 : index
    %c3328 = arith.constant 3328 : index
    %247 = vector.load %arg11[%c0_73, %c3328] : memref<32x4608xf32, #tpu.memory_space<vmem>>, vector<32x128xf32>
    tpu.vector_store %arg11[%c0_73, %c3328], %246 {strides = array<i32>} : memref<32x4608xf32, #tpu.memory_space<vmem>>, vector<32x128xf32>,
    %248 = vector.extract_strided_slice %223 {offsets = [0, 768], sizes = [32, 128], strides = [1, 1]} : vector<32x1536xf32> to vector<32x128xf32>
    %249 = vector.extract_strided_slice %223 {offsets = [0, 896], sizes = [32, 128], strides = [1, 1]} : vector<32x1536xf32> to vector<32x128xf32>
    %250 = arith.maximumf %248, %249 : vector<32x128xf32>
    %251 = vector.broadcast %1 : vector<32x1xf32> to vector<32x128xf32>
    %252 = arith.addf %250, %251 : vector<32x128xf32>
    %cst_74 = arith.constant 0.000000e+00 : f32
    %253 = vector.broadcast %cst_74 : f32 to vector<32x128xf32>
    %254 = arith.maximumf %252, %253 : vector<32x128xf32>
    %c0_75 = arith.constant 0 : index
    %c3456 = arith.constant 3456 : index
    %255 = vector.load %arg11[%c0_75, %c3456] : memref<32x4608xf32, #tpu.memory_space<vmem>>, vector<32x128xf32>
    tpu.vector_store %arg11[%c0_75, %c3456], %254 {strides = array<i32>} : memref<32x4608xf32, #tpu.memory_space<vmem>>, vector<32x128xf32>,
    %256 = vector.extract_strided_slice %223 {offsets = [0, 1024], sizes = [32, 128], strides = [1, 1]} : vector<32x1536xf32> to vector<32x128xf32>
    %257 = vector.extract_strided_slice %223 {offsets = [0, 1152], sizes = [32, 128], strides = [1, 1]} : vector<32x1536xf32> to vector<32x128xf32>
    %258 = arith.maximumf %256, %257 : vector<32x128xf32>
    %259 = vector.broadcast %1 : vector<32x1xf32> to vector<32x128xf32>
    %260 = arith.addf %258, %259 : vector<32x128xf32>
    %cst_76 = arith.constant 0.000000e+00 : f32
    %261 = vector.broadcast %cst_76 : f32 to vector<32x128xf32>
    %262 = arith.maximumf %260, %261 : vector<32x128xf32>
    %c0_77 = arith.constant 0 : index
    %c3584 = arith.constant 3584 : index
    %263 = vector.load %arg11[%c0_77, %c3584] : memref<32x4608xf32, #tpu.memory_space<vmem>>, vector<32x128xf32>
    tpu.vector_store %arg11[%c0_77, %c3584], %262 {strides = array<i32>} : memref<32x4608xf32, #tpu.memory_space<vmem>>, vector<32x128xf32>,
    %264 = vector.extract_strided_slice %223 {offsets = [0, 1280], sizes = [32, 128], strides = [1, 1]} : vector<32x1536xf32> to vector<32x128xf32>
    %265 = vector.extract_strided_slice %223 {offsets = [0, 1408], sizes = [32, 128], strides = [1, 1]} : vector<32x1536xf32> to vector<32x128xf32>
    %266 = arith.maximumf %264, %265 : vector<32x128xf32>
    %267 = vector.broadcast %1 : vector<32x1xf32> to vector<32x128xf32>
    %268 = arith.addf %266, %267 : vector<32x128xf32>
    %cst_78 = arith.constant 0.000000e+00 : f32
    %269 = vector.broadcast %cst_78 : f32 to vector<32x128xf32>
    %270 = arith.maximumf %268, %269 : vector<32x128xf32>
    %c0_79 = arith.constant 0 : index
    %c3712 = arith.constant 3712 : index
    %271 = vector.load %arg11[%c0_79, %c3712] : memref<32x4608xf32, #tpu.memory_space<vmem>>, vector<32x128xf32>
    tpu.vector_store %arg11[%c0_79, %c3712], %270 {strides = array<i32>} : memref<32x4608xf32, #tpu.memory_space<vmem>>, vector<32x128xf32>,
    %c0_80 = arith.constant 0 : index
    %c0_81 = arith.constant 0 : index
    %c15360 = arith.constant 15360 : index
    %272 = vector.load %arg1[%c0_80, %c0_81, %c15360] : memref<1x9x18432xf32, #tpu.memory_space<vmem>>, vector<1x9x3072xf32>
    %273 = vector.shape_cast %272 : vector<1x9x3072xf32> to vector<9x3072xf32>
    %cst_82 = arith.constant dense<0.000000e+00> : vector<32x3072xf32>
    %274 = tpu.matmul %0, %273, %cst_82 {dimension_numbers = #tpu.dot_dimension_numbers<[1], [0], [0], [1], [0, 0, 1, 1], [], []>} : vector<32x9xf32>, vector<9x3072xf32>, vector<32x3072xf32> -> vector<32x3072xf32>
    %275 = vector.extract_strided_slice %274 {offsets = [0, 0], sizes = [32, 1536], strides = [1, 1]} : vector<32x3072xf32> to vector<32x1536xf32>
    %276 = vector.extract_strided_slice %274 {offsets = [0, 1536], sizes = [32, 1536], strides = [1, 1]} : vector<32x3072xf32> to vector<32x1536xf32>
    %277 = arith.maximumf %275, %276 : vector<32x1536xf32>
    %278 = vector.extract_strided_slice %277 {offsets = [0, 0], sizes = [32, 128], strides = [1, 1]} : vector<32x1536xf32> to vector<32x128xf32>
    %279 = vector.extract_strided_slice %277 {offsets = [0, 128], sizes = [32, 128], strides = [1, 1]} : vector<32x1536xf32> to vector<32x128xf32>
    %280 = arith.maximumf %278, %279 : vector<32x128xf32>
    %281 = vector.broadcast %1 : vector<32x1xf32> to vector<32x128xf32>
    %282 = arith.addf %280, %281 : vector<32x128xf32>
    %cst_83 = arith.constant 0.000000e+00 : f32
    %283 = vector.broadcast %cst_83 : f32 to vector<32x128xf32>
    %284 = arith.maximumf %282, %283 : vector<32x128xf32>
    %c0_84 = arith.constant 0 : index
    %c3840 = arith.constant 3840 : index
    %285 = vector.load %arg11[%c0_84, %c3840] : memref<32x4608xf32, #tpu.memory_space<vmem>>, vector<32x128xf32>
    tpu.vector_store %arg11[%c0_84, %c3840], %284 {strides = array<i32>} : memref<32x4608xf32, #tpu.memory_space<vmem>>, vector<32x128xf32>,
    %286 = vector.extract_strided_slice %277 {offsets = [0, 256], sizes = [32, 128], strides = [1, 1]} : vector<32x1536xf32> to vector<32x128xf32>
    %287 = vector.extract_strided_slice %277 {offsets = [0, 384], sizes = [32, 128], strides = [1, 1]} : vector<32x1536xf32> to vector<32x128xf32>
    %288 = arith.maximumf %286, %287 : vector<32x128xf32>
    %289 = vector.broadcast %1 : vector<32x1xf32> to vector<32x128xf32>
    %290 = arith.addf %288, %289 : vector<32x128xf32>
    %cst_85 = arith.constant 0.000000e+00 : f32
    %291 = vector.broadcast %cst_85 : f32 to vector<32x128xf32>
    %292 = arith.maximumf %290, %291 : vector<32x128xf32>
    %c0_86 = arith.constant 0 : index
    %c3968 = arith.constant 3968 : index
    %293 = vector.load %arg11[%c0_86, %c3968] : memref<32x4608xf32, #tpu.memory_space<vmem>>, vector<32x128xf32>
    tpu.vector_store %arg11[%c0_86, %c3968], %292 {strides = array<i32>} : memref<32x4608xf32, #tpu.memory_space<vmem>>, vector<32x128xf32>,
    %294 = vector.extract_strided_slice %277 {offsets = [0, 512], sizes = [32, 128], strides = [1, 1]} : vector<32x1536xf32> to vector<32x128xf32>
    %295 = vector.extract_strided_slice %277 {offsets = [0, 640], sizes = [32, 128], strides = [1, 1]} : vector<32x1536xf32> to vector<32x128xf32>
    %296 = arith.maximumf %294, %295 : vector<32x128xf32>
    %297 = vector.broadcast %1 : vector<32x1xf32> to vector<32x128xf32>
    %298 = arith.addf %296, %297 : vector<32x128xf32>
    %cst_87 = arith.constant 0.000000e+00 : f32
    %299 = vector.broadcast %cst_87 : f32 to vector<32x128xf32>
    %300 = arith.maximumf %298, %299 : vector<32x128xf32>
    %c0_88 = arith.constant 0 : index
    %c4096 = arith.constant 4096 : index
    %301 = vector.load %arg11[%c0_88, %c4096] : memref<32x4608xf32, #tpu.memory_space<vmem>>, vector<32x128xf32>
    tpu.vector_store %arg11[%c0_88, %c4096], %300 {strides = array<i32>} : memref<32x4608xf32, #tpu.memory_space<vmem>>, vector<32x128xf32>,
    %302 = vector.extract_strided_slice %277 {offsets = [0, 768], sizes = [32, 128], strides = [1, 1]} : vector<32x1536xf32> to vector<32x128xf32>
    %303 = vector.extract_strided_slice %277 {offsets = [0, 896], sizes = [32, 128], strides = [1, 1]} : vector<32x1536xf32> to vector<32x128xf32>
    %304 = arith.maximumf %302, %303 : vector<32x128xf32>
    %305 = vector.broadcast %1 : vector<32x1xf32> to vector<32x128xf32>
    %306 = arith.addf %304, %305 : vector<32x128xf32>
    %cst_89 = arith.constant 0.000000e+00 : f32
    %307 = vector.broadcast %cst_89 : f32 to vector<32x128xf32>
    %308 = arith.maximumf %306, %307 : vector<32x128xf32>
    %c0_90 = arith.constant 0 : index
    %c4224 = arith.constant 4224 : index
    %309 = vector.load %arg11[%c0_90, %c4224] : memref<32x4608xf32, #tpu.memory_space<vmem>>, vector<32x128xf32>
    tpu.vector_store %arg11[%c0_90, %c4224], %308 {strides = array<i32>} : memref<32x4608xf32, #tpu.memory_space<vmem>>, vector<32x128xf32>,
    %310 = vector.extract_strided_slice %277 {offsets = [0, 1024], sizes = [32, 128], strides = [1, 1]} : vector<32x1536xf32> to vector<32x128xf32>
    %311 = vector.extract_strided_slice %277 {offsets = [0, 1152], sizes = [32, 128], strides = [1, 1]} : vector<32x1536xf32> to vector<32x128xf32>
    %312 = arith.maximumf %310, %311 : vector<32x128xf32>
    %313 = vector.broadcast %1 : vector<32x1xf32> to vector<32x128xf32>
    %314 = arith.addf %312, %313 : vector<32x128xf32>
    %cst_91 = arith.constant 0.000000e+00 : f32
    %315 = vector.broadcast %cst_91 : f32 to vector<32x128xf32>
    %316 = arith.maximumf %314, %315 : vector<32x128xf32>
    %c0_92 = arith.constant 0 : index
    %c4352 = arith.constant 4352 : index
    %317 = vector.load %arg11[%c0_92, %c4352] : memref<32x4608xf32, #tpu.memory_space<vmem>>, vector<32x128xf32>
    tpu.vector_store %arg11[%c0_92, %c4352], %316 {strides = array<i32>} : memref<32x4608xf32, #tpu.memory_space<vmem>>, vector<32x128xf32>,
    %318 = vector.extract_strided_slice %277 {offsets = [0, 1280], sizes = [32, 128], strides = [1, 1]} : vector<32x1536xf32> to vector<32x128xf32>
    %319 = vector.extract_strided_slice %277 {offsets = [0, 1408], sizes = [32, 128], strides = [1, 1]} : vector<32x1536xf32> to vector<32x128xf32>
    %320 = arith.maximumf %318, %319 : vector<32x128xf32>
    %321 = vector.broadcast %1 : vector<32x1xf32> to vector<32x128xf32>
    %322 = arith.addf %320, %321 : vector<32x128xf32>
    %cst_93 = arith.constant 0.000000e+00 : f32
    %323 = vector.broadcast %cst_93 : f32 to vector<32x128xf32>
    %324 = arith.maximumf %322, %323 : vector<32x128xf32>
    %c0_94 = arith.constant 0 : index
    %c4480 = arith.constant 4480 : index
    %325 = vector.load %arg11[%c0_94, %c4480] : memref<32x4608xf32, #tpu.memory_space<vmem>>, vector<32x128xf32>
    tpu.vector_store %arg11[%c0_94, %c4480], %324 {strides = array<i32>} : memref<32x4608xf32, #tpu.memory_space<vmem>>, vector<32x128xf32>,
    %c0_95 = arith.constant 0 : index
    %c0_96 = arith.constant 0 : index
    %326 = vector.load %arg4[%c0_95, %c0_96] : memref<64x288xf32, #tpu.memory_space<vmem>>, vector<64x288xf32>
    %c0_97 = arith.constant 0 : index
    %c0_98 = arith.constant 0 : index
    %327 = vector.load %arg5[%c0_97, %c0_98] : memref<64x1xf32, #tpu.memory_space<vmem>>, vector<64x1xf32>
    %c0_99 = arith.constant 0 : index
    %c0_100 = arith.constant 0 : index
    %328 = vector.load %arg11[%c0_99, %c0_100] : memref<32x4608xf32, #tpu.memory_space<vmem>>, vector<32x512xf32>
    %c0_101 = arith.constant 0 : index
    %c128_102 = arith.constant 128 : index
    %329 = vector.load %arg11[%c0_101, %c128_102] : memref<32x4608xf32, #tpu.memory_space<vmem>>, vector<32x512xf32>
    %c0_103 = arith.constant 0 : index
    %c256_104 = arith.constant 256 : index
    %330 = vector.load %arg11[%c0_103, %c256_104] : memref<32x4608xf32, #tpu.memory_space<vmem>>, vector<32x512xf32>
    %c0_105 = arith.constant 0 : index
    %c768_106 = arith.constant 768 : index
    %331 = vector.load %arg11[%c0_105, %c768_106] : memref<32x4608xf32, #tpu.memory_space<vmem>>, vector<32x512xf32>
    %c0_107 = arith.constant 0 : index
    %c896_108 = arith.constant 896 : index
    %332 = vector.load %arg11[%c0_107, %c896_108] : memref<32x4608xf32, #tpu.memory_space<vmem>>, vector<32x512xf32>
    %c0_109 = arith.constant 0 : index
    %c1024_110 = arith.constant 1024 : index
    %333 = vector.load %arg11[%c0_109, %c1024_110] : memref<32x4608xf32, #tpu.memory_space<vmem>>, vector<32x512xf32>
    %c0_111 = arith.constant 0 : index
    %c1536_112 = arith.constant 1536 : index
    %334 = vector.load %arg11[%c0_111, %c1536_112] : memref<32x4608xf32, #tpu.memory_space<vmem>>, vector<32x512xf32>
    %c0_113 = arith.constant 0 : index
    %c1664_114 = arith.constant 1664 : index
    %335 = vector.load %arg11[%c0_113, %c1664_114] : memref<32x4608xf32, #tpu.memory_space<vmem>>, vector<32x512xf32>
    %c0_115 = arith.constant 0 : index
    %c1792_116 = arith.constant 1792 : index
    %336 = vector.load %arg11[%c0_115, %c1792_116] : memref<32x4608xf32, #tpu.memory_space<vmem>>, vector<32x512xf32>
    %337 = tpu.concatenate %328, %329, %330, %331, %332, %333, %334, %335, %336 in 0 : vector<32x512xf32>, vector<32x512xf32>, vector<32x512xf32>, vector<32x512xf32>, vector<32x512xf32>, vector<32x512xf32>, vector<32x512xf32>, vector<32x512xf32>, vector<32x512xf32> -> vector<288x512xf32>
    %cst_117 = arith.constant dense<0.000000e+00> : vector<64x512xf32>
    %338 = tpu.matmul %326, %337, %cst_117 {dimension_numbers = #tpu.dot_dimension_numbers<[1], [0], [0], [1], [0, 0, 1, 1], [], []>} : vector<64x288xf32>, vector<288x512xf32>, vector<64x512xf32> -> vector<64x512xf32>
    %c0_118 = arith.constant 0 : index
    %c768_119 = arith.constant 768 : index
    %339 = vector.load %arg11[%c0_118, %c768_119] : memref<32x4608xf32, #tpu.memory_space<vmem>>, vector<32x512xf32>
    %c0_120 = arith.constant 0 : index
    %c896_121 = arith.constant 896 : index
    %340 = vector.load %arg11[%c0_120, %c896_121] : memref<32x4608xf32, #tpu.memory_space<vmem>>, vector<32x512xf32>
    %c0_122 = arith.constant 0 : index
    %c1024_123 = arith.constant 1024 : index
    %341 = vector.load %arg11[%c0_122, %c1024_123] : memref<32x4608xf32, #tpu.memory_space<vmem>>, vector<32x512xf32>
    %c0_124 = arith.constant 0 : index
    %c1536_125 = arith.constant 1536 : index
    %342 = vector.load %arg11[%c0_124, %c1536_125] : memref<32x4608xf32, #tpu.memory_space<vmem>>, vector<32x512xf32>
    %c0_126 = arith.constant 0 : index
    %c1664_127 = arith.constant 1664 : index
    %343 = vector.load %arg11[%c0_126, %c1664_127] : memref<32x4608xf32, #tpu.memory_space<vmem>>, vector<32x512xf32>
    %c0_128 = arith.constant 0 : index
    %c1792_129 = arith.constant 1792 : index
    %344 = vector.load %arg11[%c0_128, %c1792_129] : memref<32x4608xf32, #tpu.memory_space<vmem>>, vector<32x512xf32>
    %c0_130 = arith.constant 0 : index
    %c2304_131 = arith.constant 2304 : index
    %345 = vector.load %arg11[%c0_130, %c2304_131] : memref<32x4608xf32, #tpu.memory_space<vmem>>, vector<32x512xf32>
    %c0_132 = arith.constant 0 : index
    %c2432_133 = arith.constant 2432 : index
    %346 = vector.load %arg11[%c0_132, %c2432_133] : memref<32x4608xf32, #tpu.memory_space<vmem>>, vector<32x512xf32>
    %c0_134 = arith.constant 0 : index
    %c2560_135 = arith.constant 2560 : index
    %347 = vector.load %arg11[%c0_134, %c2560_135] : memref<32x4608xf32, #tpu.memory_space<vmem>>, vector<32x512xf32>
    %348 = tpu.concatenate %339, %340, %341, %342, %343, %344, %345, %346, %347 in 0 : vector<32x512xf32>, vector<32x512xf32>, vector<32x512xf32>, vector<32x512xf32>, vector<32x512xf32>, vector<32x512xf32>, vector<32x512xf32>, vector<32x512xf32>, vector<32x512xf32> -> vector<288x512xf32>
    %cst_136 = arith.constant dense<0.000000e+00> : vector<64x512xf32>
    %349 = tpu.matmul %326, %348, %cst_136 {dimension_numbers = #tpu.dot_dimension_numbers<[1], [0], [0], [1], [0, 0, 1, 1], [], []>} : vector<64x288xf32>, vector<288x512xf32>, vector<64x512xf32> -> vector<64x512xf32>
    %350 = arith.maximumf %338, %349 : vector<64x512xf32>
    %351 = vector.extract_strided_slice %350 {offsets = [0, 0], sizes = [64, 128], strides = [1, 1]} : vector<64x512xf32> to vector<64x128xf32>
    %352 = vector.extract_strided_slice %350 {offsets = [0, 128], sizes = [64, 128], strides = [1, 1]} : vector<64x512xf32> to vector<64x128xf32>
    %353 = arith.maximumf %351, %352 : vector<64x128xf32>
    %354 = vector.broadcast %327 : vector<64x1xf32> to vector<64x128xf32>
    %355 = arith.addf %353, %354 : vector<64x128xf32>
    %cst_137 = arith.constant 0.000000e+00 : f32
    %356 = vector.broadcast %cst_137 : f32 to vector<64x128xf32>
    %357 = arith.maximumf %355, %356 : vector<64x128xf32>
    %358 = vector.extract_strided_slice %350 {offsets = [0, 256], sizes = [64, 128], strides = [1, 1]} : vector<64x512xf32> to vector<64x128xf32>
    %359 = vector.extract_strided_slice %350 {offsets = [0, 384], sizes = [64, 128], strides = [1, 1]} : vector<64x512xf32> to vector<64x128xf32>
    %360 = arith.maximumf %358, %359 : vector<64x128xf32>
    %361 = vector.broadcast %327 : vector<64x1xf32> to vector<64x128xf32>
    %362 = arith.addf %360, %361 : vector<64x128xf32>
    %cst_138 = arith.constant 0.000000e+00 : f32
    %363 = vector.broadcast %cst_138 : f32 to vector<64x128xf32>
    %364 = arith.maximumf %362, %363 : vector<64x128xf32>
    %c0_139 = arith.constant 0 : index
    %c1536_140 = arith.constant 1536 : index
    %365 = vector.load %arg11[%c0_139, %c1536_140] : memref<32x4608xf32, #tpu.memory_space<vmem>>, vector<32x512xf32>
    %c0_141 = arith.constant 0 : index
    %c1664_142 = arith.constant 1664 : index
    %366 = vector.load %arg11[%c0_141, %c1664_142] : memref<32x4608xf32, #tpu.memory_space<vmem>>, vector<32x512xf32>
    %c0_143 = arith.constant 0 : index
    %c1792_144 = arith.constant 1792 : index
    %367 = vector.load %arg11[%c0_143, %c1792_144] : memref<32x4608xf32, #tpu.memory_space<vmem>>, vector<32x512xf32>
    %c0_145 = arith.constant 0 : index
    %c2304_146 = arith.constant 2304 : index
    %368 = vector.load %arg11[%c0_145, %c2304_146] : memref<32x4608xf32, #tpu.memory_space<vmem>>, vector<32x512xf32>
    %c0_147 = arith.constant 0 : index
    %c2432_148 = arith.constant 2432 : index
    %369 = vector.load %arg11[%c0_147, %c2432_148] : memref<32x4608xf32, #tpu.memory_space<vmem>>, vector<32x512xf32>
    %c0_149 = arith.constant 0 : index
    %c2560_150 = arith.constant 2560 : index
    %370 = vector.load %arg11[%c0_149, %c2560_150] : memref<32x4608xf32, #tpu.memory_space<vmem>>, vector<32x512xf32>
    %c0_151 = arith.constant 0 : index
    %c3072_152 = arith.constant 3072 : index
    %371 = vector.load %arg11[%c0_151, %c3072_152] : memref<32x4608xf32, #tpu.memory_space<vmem>>, vector<32x512xf32>
    %c0_153 = arith.constant 0 : index
    %c3200_154 = arith.constant 3200 : index
    %372 = vector.load %arg11[%c0_153, %c3200_154] : memref<32x4608xf32, #tpu.memory_space<vmem>>, vector<32x512xf32>
    %c0_155 = arith.constant 0 : index
    %c3328_156 = arith.constant 3328 : index
    %373 = vector.load %arg11[%c0_155, %c3328_156] : memref<32x4608xf32, #tpu.memory_space<vmem>>, vector<32x512xf32>
    %374 = tpu.concatenate %365, %366, %367, %368, %369, %370, %371, %372, %373 in 0 : vector<32x512xf32>, vector<32x512xf32>, vector<32x512xf32>, vector<32x512xf32>, vector<32x512xf32>, vector<32x512xf32>, vector<32x512xf32>, vector<32x512xf32>, vector<32x512xf32> -> vector<288x512xf32>
    %cst_157 = arith.constant dense<0.000000e+00> : vector<64x512xf32>
    %375 = tpu.matmul %326, %374, %cst_157 {dimension_numbers = #tpu.dot_dimension_numbers<[1], [0], [0], [1], [0, 0, 1, 1], [], []>} : vector<64x288xf32>, vector<288x512xf32>, vector<64x512xf32> -> vector<64x512xf32>
    %c0_158 = arith.constant 0 : index
    %c2304_159 = arith.constant 2304 : index
    %376 = vector.load %arg11[%c0_158, %c2304_159] : memref<32x4608xf32, #tpu.memory_space<vmem>>, vector<32x512xf32>
    %c0_160 = arith.constant 0 : index
    %c2432_161 = arith.constant 2432 : index
    %377 = vector.load %arg11[%c0_160, %c2432_161] : memref<32x4608xf32, #tpu.memory_space<vmem>>, vector<32x512xf32>
    %c0_162 = arith.constant 0 : index
    %c2560_163 = arith.constant 2560 : index
    %378 = vector.load %arg11[%c0_162, %c2560_163] : memref<32x4608xf32, #tpu.memory_space<vmem>>, vector<32x512xf32>
    %c0_164 = arith.constant 0 : index
    %c3072_165 = arith.constant 3072 : index
    %379 = vector.load %arg11[%c0_164, %c3072_165] : memref<32x4608xf32, #tpu.memory_space<vmem>>, vector<32x512xf32>
    %c0_166 = arith.constant 0 : index
    %c3200_167 = arith.constant 3200 : index
    %380 = vector.load %arg11[%c0_166, %c3200_167] : memref<32x4608xf32, #tpu.memory_space<vmem>>, vector<32x512xf32>
    %c0_168 = arith.constant 0 : index
    %c3328_169 = arith.constant 3328 : index
    %381 = vector.load %arg11[%c0_168, %c3328_169] : memref<32x4608xf32, #tpu.memory_space<vmem>>, vector<32x512xf32>
    %c0_170 = arith.constant 0 : index
    %c3840_171 = arith.constant 3840 : index
    %382 = vector.load %arg11[%c0_170, %c3840_171] : memref<32x4608xf32, #tpu.memory_space<vmem>>, vector<32x512xf32>
    %c0_172 = arith.constant 0 : index
    %c3968_173 = arith.constant 3968 : index
    %383 = vector.load %arg11[%c0_172, %c3968_173] : memref<32x4608xf32, #tpu.memory_space<vmem>>, vector<32x512xf32>
    %c0_174 = arith.constant 0 : index
    %c4096_175 = arith.constant 4096 : index
    %384 = vector.load %arg11[%c0_174, %c4096_175] : memref<32x4608xf32, #tpu.memory_space<vmem>>, vector<32x512xf32>
    %385 = tpu.concatenate %376, %377, %378, %379, %380, %381, %382, %383, %384 in 0 : vector<32x512xf32>, vector<32x512xf32>, vector<32x512xf32>, vector<32x512xf32>, vector<32x512xf32>, vector<32x512xf32>, vector<32x512xf32>, vector<32x512xf32>, vector<32x512xf32> -> vector<288x512xf32>
    %cst_176 = arith.constant dense<0.000000e+00> : vector<64x512xf32>
    %386 = tpu.matmul %326, %385, %cst_176 {dimension_numbers = #tpu.dot_dimension_numbers<[1], [0], [0], [1], [0, 0, 1, 1], [], []>} : vector<64x288xf32>, vector<288x512xf32>, vector<64x512xf32> -> vector<64x512xf32>
    %387 = arith.maximumf %375, %386 : vector<64x512xf32>
    %388 = vector.extract_strided_slice %387 {offsets = [0, 0], sizes = [64, 128], strides = [1, 1]} : vector<64x512xf32> to vector<64x128xf32>
    %389 = vector.extract_strided_slice %387 {offsets = [0, 128], sizes = [64, 128], strides = [1, 1]} : vector<64x512xf32> to vector<64x128xf32>
    %390 = arith.maximumf %388, %389 : vector<64x128xf32>
    %391 = vector.broadcast %327 : vector<64x1xf32> to vector<64x128xf32>
    %392 = arith.addf %390, %391 : vector<64x128xf32>
    %cst_177 = arith.constant 0.000000e+00 : f32
    %393 = vector.broadcast %cst_177 : f32 to vector<64x128xf32>
    %394 = arith.maximumf %392, %393 : vector<64x128xf32>
    %395 = vector.extract_strided_slice %387 {offsets = [0, 256], sizes = [64, 128], strides = [1, 1]} : vector<64x512xf32> to vector<64x128xf32>
    %396 = vector.extract_strided_slice %387 {offsets = [0, 384], sizes = [64, 128], strides = [1, 1]} : vector<64x512xf32> to vector<64x128xf32>
    %397 = arith.maximumf %395, %396 : vector<64x128xf32>
    %398 = vector.broadcast %327 : vector<64x1xf32> to vector<64x128xf32>
    %399 = arith.addf %397, %398 : vector<64x128xf32>
    %cst_178 = arith.constant 0.000000e+00 : f32
    %400 = vector.broadcast %cst_178 : f32 to vector<64x128xf32>
    %401 = arith.maximumf %399, %400 : vector<64x128xf32>
    %402 = vector.extract_strided_slice %357 {offsets = [0, 0], sizes = [64, 64], strides = [1, 1]} : vector<64x128xf32> to vector<64x64xf32>
    %c0_179 = arith.constant 0 : index
    %c0_180 = arith.constant 0 : index
    %c0_181 = arith.constant 0 : index
    %c0_182 = arith.constant 0 : index
    %403 = vector.load %arg6[%c0_179, %c0_180, %c0_181, %c0_182] : memref<2x4x32x64xf32, #tpu.memory_space<vmem>>, vector<1x1x32x64xf32>
    %404 = vector.shape_cast %403 : vector<1x1x32x64xf32> to vector<32x64xf32>
    %cst_183 = arith.constant dense<0.000000e+00> : vector<32x64xf32>
    %405 = tpu.matmul %404, %402, %cst_183 {dimension_numbers = #tpu.dot_dimension_numbers<[1], [0], [0], [1], [0, 0, 1, 1], [], []>} : vector<32x64xf32>, vector<64x64xf32>, vector<32x64xf32> -> vector<32x64xf32>
    %406 = vector.extract_strided_slice %364 {offsets = [0, 0], sizes = [64, 64], strides = [1, 1]} : vector<64x128xf32> to vector<64x64xf32>
    %c0_184 = arith.constant 0 : index
    %c1 = arith.constant 1 : index
    %c0_185 = arith.constant 0 : index
    %c0_186 = arith.constant 0 : index
    %407 = vector.load %arg6[%c0_184, %c1, %c0_185, %c0_186] : memref<2x4x32x64xf32, #tpu.memory_space<vmem>>, vector<1x1x32x64xf32>
    %408 = vector.shape_cast %407 : vector<1x1x32x64xf32> to vector<32x64xf32>
    %cst_187 = arith.constant dense<0.000000e+00> : vector<32x64xf32>
    %409 = tpu.matmul %408, %406, %cst_187 {dimension_numbers = #tpu.dot_dimension_numbers<[1], [0], [0], [1], [0, 0, 1, 1], [], []>} : vector<32x64xf32>, vector<64x64xf32>, vector<32x64xf32> -> vector<32x64xf32>
    %410 = arith.addf %405, %409 : vector<32x64xf32>
    %411 = vector.extract_strided_slice %394 {offsets = [0, 0], sizes = [64, 64], strides = [1, 1]} : vector<64x128xf32> to vector<64x64xf32>
    %c0_188 = arith.constant 0 : index
    %c2 = arith.constant 2 : index
    %c0_189 = arith.constant 0 : index
    %c0_190 = arith.constant 0 : index
    %412 = vector.load %arg6[%c0_188, %c2, %c0_189, %c0_190] : memref<2x4x32x64xf32, #tpu.memory_space<vmem>>, vector<1x1x32x64xf32>
    %413 = vector.shape_cast %412 : vector<1x1x32x64xf32> to vector<32x64xf32>
    %cst_191 = arith.constant dense<0.000000e+00> : vector<32x64xf32>
    %414 = tpu.matmul %413, %411, %cst_191 {dimension_numbers = #tpu.dot_dimension_numbers<[1], [0], [0], [1], [0, 0, 1, 1], [], []>} : vector<32x64xf32>, vector<64x64xf32>, vector<32x64xf32> -> vector<32x64xf32>
    %415 = arith.addf %410, %414 : vector<32x64xf32>
    %416 = vector.extract_strided_slice %401 {offsets = [0, 0], sizes = [64, 64], strides = [1, 1]} : vector<64x128xf32> to vector<64x64xf32>
    %c0_192 = arith.constant 0 : index
    %c3 = arith.constant 3 : index
    %c0_193 = arith.constant 0 : index
    %c0_194 = arith.constant 0 : index
    %417 = vector.load %arg6[%c0_192, %c3, %c0_193, %c0_194] : memref<2x4x32x64xf32, #tpu.memory_space<vmem>>, vector<1x1x32x64xf32>
    %418 = vector.shape_cast %417 : vector<1x1x32x64xf32> to vector<32x64xf32>
    %cst_195 = arith.constant dense<0.000000e+00> : vector<32x64xf32>
    %419 = tpu.matmul %418, %416, %cst_195 {dimension_numbers = #tpu.dot_dimension_numbers<[1], [0], [0], [1], [0, 0, 1, 1], [], []>} : vector<32x64xf32>, vector<64x64xf32>, vector<32x64xf32> -> vector<32x64xf32>
    %420 = arith.addf %415, %419 : vector<32x64xf32>
    %421 = vector.extract_strided_slice %357 {offsets = [0, 64], sizes = [64, 64], strides = [1, 1]} : vector<64x128xf32> to vector<64x64xf32>
    %c1_196 = arith.constant 1 : index
    %c0_197 = arith.constant 0 : index
    %c0_198 = arith.constant 0 : index
    %c0_199 = arith.constant 0 : index
    %422 = vector.load %arg6[%c1_196, %c0_197, %c0_198, %c0_199] : memref<2x4x32x64xf32, #tpu.memory_space<vmem>>, vector<1x1x32x64xf32>
    %423 = vector.shape_cast %422 : vector<1x1x32x64xf32> to vector<32x64xf32>
    %cst_200 = arith.constant dense<0.000000e+00> : vector<32x64xf32>
    %424 = tpu.matmul %423, %421, %cst_200 {dimension_numbers = #tpu.dot_dimension_numbers<[1], [0], [0], [1], [0, 0, 1, 1], [], []>} : vector<32x64xf32>, vector<64x64xf32>, vector<32x64xf32> -> vector<32x64xf32>
    %425 = arith.addf %420, %424 : vector<32x64xf32>
    %426 = vector.extract_strided_slice %364 {offsets = [0, 64], sizes = [64, 64], strides = [1, 1]} : vector<64x128xf32> to vector<64x64xf32>
    %c1_201 = arith.constant 1 : index
    %c1_202 = arith.constant 1 : index
    %c0_203 = arith.constant 0 : index
    %c0_204 = arith.constant 0 : index
    %427 = vector.load %arg6[%c1_201, %c1_202, %c0_203, %c0_204] : memref<2x4x32x64xf32, #tpu.memory_space<vmem>>, vector<1x1x32x64xf32>
    %428 = vector.shape_cast %427 : vector<1x1x32x64xf32> to vector<32x64xf32>
    %cst_205 = arith.constant dense<0.000000e+00> : vector<32x64xf32>
    %429 = tpu.matmul %428, %426, %cst_205 {dimension_numbers = #tpu.dot_dimension_numbers<[1], [0], [0], [1], [0, 0, 1, 1], [], []>} : vector<32x64xf32>, vector<64x64xf32>, vector<32x64xf32> -> vector<32x64xf32>
    %430 = arith.addf %425, %429 : vector<32x64xf32>
    %431 = vector.extract_strided_slice %394 {offsets = [0, 64], sizes = [64, 64], strides = [1, 1]} : vector<64x128xf32> to vector<64x64xf32>
    %c1_206 = arith.constant 1 : index
    %c2_207 = arith.constant 2 : index
    %c0_208 = arith.constant 0 : index
    %c0_209 = arith.constant 0 : index
    %432 = vector.load %arg6[%c1_206, %c2_207, %c0_208, %c0_209] : memref<2x4x32x64xf32, #tpu.memory_space<vmem>>, vector<1x1x32x64xf32>
    %433 = vector.shape_cast %432 : vector<1x1x32x64xf32> to vector<32x64xf32>
    %cst_210 = arith.constant dense<0.000000e+00> : vector<32x64xf32>
    %434 = tpu.matmul %433, %431, %cst_210 {dimension_numbers = #tpu.dot_dimension_numbers<[1], [0], [0], [1], [0, 0, 1, 1], [], []>} : vector<32x64xf32>, vector<64x64xf32>, vector<32x64xf32> -> vector<32x64xf32>
    %435 = arith.addf %430, %434 : vector<32x64xf32>
    %436 = vector.extract_strided_slice %401 {offsets = [0, 64], sizes = [64, 64], strides = [1, 1]} : vector<64x128xf32> to vector<64x64xf32>
    %c1_211 = arith.constant 1 : index
    %c3_212 = arith.constant 3 : index
    %c0_213 = arith.constant 0 : index
    %c0_214 = arith.constant 0 : index
    %437 = vector.load %arg6[%c1_211, %c3_212, %c0_213, %c0_214] : memref<2x4x32x64xf32, #tpu.memory_space<vmem>>, vector<1x1x32x64xf32>
    %438 = vector.shape_cast %437 : vector<1x1x32x64xf32> to vector<32x64xf32>
    %cst_215 = arith.constant dense<0.000000e+00> : vector<32x64xf32>
    %439 = tpu.matmul %438, %436, %cst_215 {dimension_numbers = #tpu.dot_dimension_numbers<[1], [0], [0], [1], [0, 0, 1, 1], [], []>} : vector<32x64xf32>, vector<64x64xf32>, vector<32x64xf32> -> vector<32x64xf32>
    %440 = arith.addf %435, %439 : vector<32x64xf32>
    %c0_216 = arith.constant 0 : index
    %c0_217 = arith.constant 0 : index
    %441 = vector.load %arg7[%c0_216, %c0_217] : memref<32x1xf32, #tpu.memory_space<vmem>>, vector<32x1xf32>
    %442 = vector.broadcast %441 : vector<32x1xf32> to vector<32x64xf32>
    %443 = arith.addf %440, %442 : vector<32x64xf32>
    %cst_218 = arith.constant 0.000000e+00 : f32
    %444 = vector.broadcast %cst_218 : f32 to vector<32x64xf32>
    %445 = arith.maximumf %443, %444 : vector<32x64xf32>
    %c0_219 = arith.constant 0 : index
    %c0_220 = arith.constant 0 : index
    %446 = vector.load %arg8[%c0_219, %c0_220] : memref<2x32xf32, #tpu.memory_space<vmem>>, vector<2x32xf32>
    %cst_221 = arith.constant dense<0.000000e+00> : vector<2x64xf32>
    %447 = tpu.matmul %446, %445, %cst_221 {dimension_numbers = #tpu.dot_dimension_numbers<[1], [0], [0], [1], [0, 0, 1, 1], [], []>} : vector<2x32xf32>, vector<32x64xf32>, vector<2x64xf32> -> vector<2x64xf32>
    %c0_222 = arith.constant 0 : index
    %c0_223 = arith.constant 0 : index
    %448 = vector.load %arg9[%c0_222, %c0_223] : memref<2x1xf32, #tpu.memory_space<vmem>>, vector<2x1xf32>
    %449 = vector.broadcast %448 : vector<2x1xf32> to vector<2x64xf32>
    %450 = arith.addf %447, %449 : vector<2x64xf32>
    %c0_224 = arith.constant 0 : index
    %c0_225 = arith.constant 0 : index
    %c0_226 = arith.constant 0 : index
    %451 = vector.load %arg10[%c0_224, %c0_225, %c0_226] : memref<1x2x64xf32, #tpu.memory_space<vmem>>, vector<1x2x64xf32>
    %452 = vector.shape_cast %451 : vector<1x2x64xf32> to vector<2x64xf32>
    %453 = vector.shape_cast %450 : vector<2x64xf32> to vector<1x2x64xf32>
    tpu.vector_store %arg10[%c0_224, %c0_225, %c0_226], %453 {strides = array<i32>} : memref<1x2x64xf32, #tpu.memory_space<vmem>>, vector<1x2x64xf32>,
    return
  }
  func.func @transform_0(%arg0: i32) -> (i32, i32, i32) {
    %c0_i32 = arith.constant 0 : i32
    %c0_i32_0 = arith.constant 0 : i32
    %c0_i32_1 = arith.constant 0 : i32
    return %arg0, %c0_i32, %c0_i32_0 : i32, i32, i32
  }
  func.func @transform_1(%arg0: i32) -> (i32, i32) {
    %c0_i32 = arith.constant 0 : i32
    %c0_i32_0 = arith.constant 0 : i32
    %c0_i32_1 = arith.constant 0 : i32
    return %c0_i32, %c0_i32_0 : i32, i32
  }
  func.func @transform_2(%arg0: i32) -> (i32, i32) {
    %c0_i32 = arith.constant 0 : i32
    %c0_i32_0 = arith.constant 0 : i32
    %c0_i32_1 = arith.constant 0 : i32
    return %c0_i32, %c0_i32_0 : i32, i32
  }
  func.func @transform_3(%arg0: i32) -> (i32, i32) {
    %c0_i32 = arith.constant 0 : i32
    %c0_i32_0 = arith.constant 0 : i32
    %c0_i32_1 = arith.constant 0 : i32
    return %c0_i32, %c0_i32_0 : i32, i32
  }
  func.func @transform_4(%arg0: i32) -> (i32, i32) {
    %c0_i32 = arith.constant 0 : i32
    %c0_i32_0 = arith.constant 0 : i32
    %c0_i32_1 = arith.constant 0 : i32
    return %c0_i32, %c0_i32_0 : i32, i32
  }
  func.func @transform_5(%arg0: i32) -> (i32, i32, i32, i32) {
    %c0_i32 = arith.constant 0 : i32
    %c0_i32_0 = arith.constant 0 : i32
    %c0_i32_1 = arith.constant 0 : i32
    %c0_i32_2 = arith.constant 0 : i32
    %c0_i32_3 = arith.constant 0 : i32
    return %c0_i32, %c0_i32_0, %c0_i32_1, %c0_i32_2 : i32, i32, i32, i32
  }
  func.func @transform_6(%arg0: i32) -> (i32, i32) {
    %c0_i32 = arith.constant 0 : i32
    %c0_i32_0 = arith.constant 0 : i32
    %c0_i32_1 = arith.constant 0 : i32
    return %c0_i32, %c0_i32_0 : i32, i32
  }
  func.func @transform_7(%arg0: i32) -> (i32, i32) {
    %c0_i32 = arith.constant 0 : i32
    %c0_i32_0 = arith.constant 0 : i32
    %c0_i32_1 = arith.constant 0 : i32
    return %c0_i32, %c0_i32_0 : i32, i32
  }
  func.func @transform_8(%arg0: i32) -> (i32, i32) {
    %c0_i32 = arith.constant 0 : i32
    %c0_i32_0 = arith.constant 0 : i32
    %c0_i32_1 = arith.constant 0 : i32
    return %c0_i32, %c0_i32_0 : i32, i32
  }
  func.func @transform_9(%arg0: i32) -> (i32, i32, i32) {
    %c0_i32 = arith.constant 0 : i32
    %c0_i32_0 = arith.constant 0 : i32
    %c0_i32_1 = arith.constant 0 : i32
    return %arg0, %c0_i32, %c0_i32_0 : i32, i32, i32
  }
}

</mosaic_0001>

<bundles_post_ra>
// kernel: forward.1
= control target key start
LH: loop header
LB: loop body
LE: loop exit
PB: predicated region body
PF: predicated region fallthrough
CT: control target
= control target key end

     0   :  { %s14072_s30 = smov 0   ;;  %s18078_s0 = inlined_call_operand.vmem [shape: f32[2,9,18432], index: 0, kind: input, shape index: {}]   ;;  %s18079_s1 = inlined_call_operand.vmem [shape: f32[32,9], index: 1, kind: input, shape index: {}]   ;;  %s18080_s2 = inlined_call_operand.vmem [shape: f32[32,1], index: 2, kind: input, shape index: {}]   ;;  %s18081_s3 = inlined_call_operand.vmem [shape: f32[64,288], index: 3, kind: input, shape index: {}]   ;;  %s18082_s4 = inlined_call_operand.vmem [shape: f32[64,1], index: 4, kind: input, shape index: {}]   ;;  %s18083_s5 = inlined_call_operand.vmem [shape: f32[2,4,32,64], index: 5, kind: input, shape index: {}]   ;;  %s18084_s6 = inlined_call_operand.vmem [shape: f32[32,1], index: 6, kind: input, shape index: {}]   ;;  %s18085_s7 = inlined_call_operand.vmem [shape: f32[2,32], index: 7, kind: input, shape index: {}]   ;;  %s18086_s8 = inlined_call_operand.vmem [shape: f32[2,1], index: 8, kind: input, shape index: {}]   ;;  %s18087_s9 = inlined_call_operand.vmem [shape: f32[2,2,64], index: 9, kind: output, shape index: {}]  }
   0x1 LB: > { %s11721_s10 = sadd.s32 4294967295, %s14014_s30   ;;  %p11725_p0 = scmp.ge.s32.totalorder %s14014_s30, 1  ;;  %s14014_s30 = sphi %s14072_s30, %s19_s30  }
   0x2   : > { %p287_p1 = scmp.lt.s32.totalorder %s14014_s30, 3 }
   0x4   : > { %p288_p2 = pnand %p11725_p0, %p287_p1 }
   0x6   : > { %291 = sbr.rel (%p288_p2) target bundleno = 1835 (0x72b), region = 56 }
   0xd   : > { %p322_p3 = scmp.lt.s32.totalorder %s11721_s10, 1  ;;  %v18091_v0 = vmov 0.0   ;;  %vm400_vm0 = vcmask 1040384   ;;  %v14017_v1 = vmov 0   ;;  %vm14018_vm1 = vmmov 1   ;;  %v14105_v14 = vld [vmem:[%s18079_s1] sm:$0xff] }
   0xe   : > { %537 = vmatprep.mubr.f32.mxu0 %v18091_v0  ;;  %804 = vmatprep.mubr.f32.mxu1 %v18091_v0  ;;  %vm14090_vm2 = vmpackc.low %vm400_vm0, %vm14018_vm1  ;;  %vm387_vm3 = vcmask 72704   ;;  %v14139_v34 = vld [vmem:[%s18079_s1 + $0x8] sm:$0xff]  ;;  %v14158_v35 = vld [vmem:[%s18079_s1 + $0x10] sm:$0xff]  ;;  %vm8469_vm4 = vcmask 261120   ;;  %s14019_s18 = smov 64   ;;  %vm10595_vm5 = vcmask 523264  }
   0xf   : > { %s18427_s10 = smov (!%p322_p3, %s11721_s10), 1  ;;  %13888 = vset.pattern.permute.xlu0 %v14017_v1  ;;  %13889 = vset.pattern.permute.xlu1 %v14017_v1  ;;  %v14169_v36 = vld [vmem:[%s18079_s1 + $0x18] sm:$0xff]  ;;  %v335_v46 = vld [vmem:[%s18080_s2] sm:$0xff]  ;;  %v336_v50 = vld [vmem:[%s18080_s2 + $0x8] sm:$0xff]  ;;  %vm14021_vm6 = vmmov 0   ;;  %vm11666_vm7 = vcmask 517120  }
  0x10   : > { %s13873_s11 = smul.u32 2304, %s18427_s10  ;;  %1595 = vperm.xlu0 %13888, %v335_v46   ;;  %v337_v51 = vld [vmem:[%s18080_s2 + $0x10] sm:$0xff]  ;;  %v338_v52 = vld [vmem:[%s18080_s2 + $0x18] sm:$0xff]  ;;  %s11727_s23 = sshll.u32 %s18427_s10, 1 }
  0x11   : > { %1605 = vperm.xlu1 %13889, %v337_v51   ;;  %s330_s26 = scalar_lea.vmem %s18087_s9, %s11727_s23 }
  0x12   : > { %s14088_s14 = scalar_lea.vmem %s18078_s0, %s13873_s11 }
  0x13   : > { %v340_v3 = vld [vmem:[%s14088_s14 + $0x8] sm:$0xff]  ;;  %v346_v5 = vld [vmem:[%s14088_s14 + $0x38] sm:$0xff]  ;;  %v339_v8 = vld [vmem:[%s14088_s14] sm:$0xff] }
  0x14   : > { %v364_v4 = vld [vmem:[%s14088_s14 + $0x488] sm:$0x1]  ;;  %v370_v7 = vld [vmem:[%s14088_s14 + $0x4b8] sm:$0x1]  ;;  %v363_v9 = vld [vmem:[%s14088_s14 + $0x480] sm:$0x1]  ;;  %1600 = vperm.xlu0 %13888, %v336_v50  }
  0x15   : > { %v12575_v6 = vpack.c.bf16 %v364_v4, %v340_v3  ;;  %v12593_v10 = vpack.c.bf16 %v370_v7, %v346_v5  ;;  %v12578_v11 = vpack.c.bf16 %v363_v9, %v339_v8  ;;  %v345_v12 = vld [vmem:[%s14088_s14 + $0x30] sm:$0xff]  ;;  %v342_v15 = vld [vmem:[%s14088_s14 + $0x18] sm:$0xff]  ;;  %v344_v27 = vld [vmem:[%s14088_s14 + $0x28] sm:$0xff]  ;;  %1610 = vperm.xlu1 %13889, %v338_v52  }
  0x16   : > { %v369_v13 = vld [vmem:[%s14088_s14 + $0x4b0] sm:$0x1]  ;;  %v366_v17 = vld [vmem:[%s14088_s14 + $0x498] sm:$0x1]  ;;  %v368_v28 = vld [vmem:[%s14088_s14 + $0x4a8] sm:$0x1] }
  0x17   : > { %12577 = vmatprep.subr.msk.bf16.mxu0 %vm14090_vm2, %v12575_v6  ;;  %v12596_v16 = vpack.c.bf16 %v369_v13, %v345_v12  ;;  %v350_v18 = vld [vmem:[%s14088_s14 + $0x58] sm:$0xff]  ;;  %12595 = vmatprep.subr.msk.bf16.mxu1 %vm14090_vm2, %v12593_v10  ;;  %v12581_v20 = vpack.c.bf16 %v366_v17, %v342_v15  ;;  %v341_v22 = vld [vmem:[%s14088_s14 + $0x10] sm:$0xff]  ;;  %v12587_v30 = vpack.c.bf16 %v368_v28, %v344_v27  ;;  %v343_v37 = vld [vmem:[%s14088_s14 + $0x20] sm:$0xff] }
  0x18   : > { %v374_v19 = vld [vmem:[%s14088_s14 + $0x4d8] sm:$0x1]  ;;  %12580 = vmatpush1.bf16.msk.msra.mxu0 %vm14090_vm2, %v12578_v11  ;;  %v365_v23 = vld [vmem:[%s14088_s14 + $0x490] sm:$0x1]  ;;  %v367_v38 = vld [vmem:[%s14088_s14 + $0x4a0] sm:$0x1] }
  0x19   : > { %v12605_v21 = vpack.c.bf16 %v374_v19, %v350_v18  ;;  %v349_v24 = vld [vmem:[%s14088_s14 + $0x50] sm:$0xff]  ;;  %12598 = vmatpush1.bf16.msk.msra.mxu1 %vm14090_vm2, %v12596_v16  ;;  %v12584_v25 = vpack.c.bf16 %v365_v23, %v341_v22  ;;  %12583 = vmatprep.subr.msk.bf16.mxu0 %vm14090_vm2, %v12581_v20  ;;  %v354_v31 = vld [vmem:[%s14088_s14 + $0x78] sm:$0xff]  ;;  %v348_v41 = vld [vmem:[%s14088_s14 + $0x48] sm:$0xff]  ;;  %v12590_v45 = vpack.c.bf16 %v367_v38, %v343_v37 }
  0x1a   : > { %v373_v26 = vld [vmem:[%s14088_s14 + $0x4d0] sm:$0x1]  ;;  %v378_v32 = vld [vmem:[%s14088_s14 + $0x4f8] sm:$0x1]  ;;  %v372_v42 = vld [vmem:[%s14088_s14 + $0x4c8] sm:$0x1] }
  0x1b   : > { %12607 = vmatprep.subr.msk.bf16.mxu1 %vm14090_vm2, %v12605_v21  ;;  %v12608_v29 = vpack.c.bf16 %v373_v26, %v349_v24  ;;  %11730 = vmatmul.mubr.msk.f32.vlgmr.msra.gmra.mrb[0].mxu0 %vm387_vm3, %v14105_v14  ;;  %v12617_v33 = vpack.c.bf16 %v378_v32, %v354_v31  ;;  %v353_v39 = vld [vmem:[%s14088_s14 + $0x70] sm:$0xff]  ;;  %v358_v43 = vld [vmem:[%s14088_s14 + $0x98] sm:$0xff]  ;;  %v12599_v48 = vpack.c.bf16 %v372_v42, %v348_v41  ;;  %v347_v53 = vld [vmem:[%s14088_s14 + $0x40] sm:$0xff] }
  0x1c   : > { %11748 = vmatmul.mubr.msk.f32.vlgmr.msra.gmra.mrb[0].mxu1 %vm387_vm3, %v14105_v14  ;;  %543 = vmatprep.mubr.f32.mxu0 %v18091_v0  ;;  %v377_v40 = vld [vmem:[%s14088_s14 + $0x4f0] sm:$0x1]  ;;  %v382_v44 = vld [vmem:[%s14088_s14 + $0x518] sm:$0x1]  ;;  %v371_v54 = vld [vmem:[%s14088_s14 + $0x4c0] sm:$0x1] }
  0x1d   : > { %810 = vmatprep.mubr.f32.mxu1 %v18091_v0  ;;  %12586 = vmatpush1.bf16.msk.msra.mxu0 %vm14090_vm2, %v12584_v25  ;;  %v12620_v47 = vpack.c.bf16 %v377_v40, %v353_v39  ;;  %v12629_v49 = vpack.c.bf16 %v382_v44, %v358_v43  ;;  %v357_v55 = vld [vmem:[%s14088_s14 + $0x90] sm:$0xff]  ;;  %v352_v57 = vld [vmem:[%s14088_s14 + $0x68] sm:$0xff]  ;;  %v362_v59 = vld [vmem:[%s14088_s14 + $0xb8] sm:$0xff]  ;;  %v12602_v61 = vpack.c.bf16 %v371_v54, %v347_v53 }
  0x1e   : > { %12610 = vmatpush1.bf16.msk.msra.mxu1 %vm14090_vm2, %v12608_v29  ;;  %12589 = vmatprep.subr.msk.bf16.mxu0 %vm14090_vm2, %v12587_v30  ;;  %v381_v56 = vld [vmem:[%s14088_s14 + $0x510] sm:$0x1]  ;;  %v376_v58 = vld [vmem:[%s14088_s14 + $0x4e8] sm:$0x1]  ;;  %v386_v60 = vld [vmem:[%s14088_s14 + $0x538] sm:$0x1] }
  0x1f   : > { %11731 = vmatmul.mubr.msk.f32.gmra.mrb[2].mxu0 %vm387_vm3, %v14139_v34  ;;  %12619 = vmatprep.subr.msk.bf16.mxu1 %vm14090_vm2, %v12617_v33  ;;  %v12632_v62 = vpack.c.bf16 %v381_v56, %v357_v55  ;;  %v12611_v63 = vpack.c.bf16 %v376_v58, %v352_v57  ;;  %v12641_v1 = vpack.c.bf16 %v386_v60, %v362_v59  ;;  %v351_v3 = vld [vmem:[%s14088_s14 + $0x60] sm:$0xff]  ;;  %v361_v5 = vld [vmem:[%s14088_s14 + $0xb0] sm:$0xff]  ;;  %v356_v7 = vld [vmem:[%s14088_s14 + $0x88] sm:$0xff] }
  0x20   : > { %11749 = vmatmul.mubr.msk.f32.gmra.mrb[2].mxu1 %vm387_vm3, %v14139_v34  ;;  %549 = vmatprep.mubr.f32.mxu0 %v18091_v0  ;;  %v375_v4 = vld [vmem:[%s14088_s14 + $0x4e0] sm:$0x1]  ;;  %v385_v6 = vld [vmem:[%s14088_s14 + $0x530] sm:$0x1]  ;;  %v380_v8 = vld [vmem:[%s14088_s14 + $0x508] sm:$0x1] }
  0x21   : > { %816 = vmatprep.mubr.f32.mxu1 %v18091_v0  ;;  %v1708_v9 = vld [vmem:[%s14088_s14 + $0xd8] sm:$0xff]  ;;  %v12614_v11 = vpack.c.bf16 %v375_v4, %v351_v3  ;;  %v12644_v12 = vpack.c.bf16 %v385_v6, %v361_v5  ;;  %v12623_v13 = vpack.c.bf16 %v380_v8, %v356_v7  ;;  %v355_v16 = vld [vmem:[%s14088_s14 + $0x80] sm:$0xff]  ;;  %v1707_v18 = vld [vmem:[%s14088_s14 + $0xd0] sm:$0xff] }
  0x22   : > { %v1732_v10 = vld [vmem:[%s14088_s14 + $0x558] sm:$0x1]  ;;  %v379_v17 = vld [vmem:[%s14088_s14 + $0x500] sm:$0x1]  ;;  %v1731_v19 = vld [vmem:[%s14088_s14 + $0x550] sm:$0x1] }
  0x23   : > { %11732 = vmatmul.mubr.msk.f32.gmra.mrb[4].mxu0 %vm387_vm3, %v14158_v35  ;;  %v12653_v15 = vpack.c.bf16 %v1732_v10, %v1708_v9  ;;  %v360_v20 = vld [vmem:[%s14088_s14 + $0xa8] sm:$0xff]  ;;  %v1712_v22 = vld [vmem:[%s14088_s14 + $0xf8] sm:$0xff]  ;;  %v12626_v24 = vpack.c.bf16 %v379_v17, %v355_v16  ;;  %v12656_v25 = vpack.c.bf16 %v1731_v19, %v1707_v18  ;;  %v359_v28 = vld [vmem:[%s14088_s14 + $0xa0] sm:$0xff] }
  0x24   : > { %11750 = vmatmul.mubr.msk.f32.gmra.mrb[4].mxu1 %vm387_vm3, %v14158_v35  ;;  %555 = vmatprep.mubr.f32.mxu0 %v18091_v0  ;;  %v384_v21 = vld [vmem:[%s14088_s14 + $0x528] sm:$0x1]  ;;  %v1736_v23 = vld [vmem:[%s14088_s14 + $0x578] sm:$0x1]  ;;  %v383_v29 = vld [vmem:[%s14088_s14 + $0x520] sm:$0x1] }
  0x25   : > { %822 = vmatprep.mubr.f32.mxu1 %v18091_v0  ;;  %v12635_v26 = vpack.c.bf16 %v384_v21, %v360_v20  ;;  %v12665_v27 = vpack.c.bf16 %v1736_v23, %v1712_v22  ;;  %v1711_v30 = vld [vmem:[%s14088_s14 + $0xf0] sm:$0xff]  ;;  %v1706_v32 = vld [vmem:[%s14088_s14 + $0xc8] sm:$0xff]  ;;  %v1716_v37 = vld [vmem:[%s14088_s14 + $0x118] sm:$0xff]  ;;  %v12638_v39 = vpack.c.bf16 %v383_v29, %v359_v28 }
  0x26   : > { %v1735_v31 = vld [vmem:[%s14088_s14 + $0x570] sm:$0x1]  ;;  %v1730_v33 = vld [vmem:[%s14088_s14 + $0x548] sm:$0x1]  ;;  %v1740_v38 = vld [vmem:[%s14088_s14 + $0x598] sm:$0x1] }
  0x27   : > { %11733 = vmatmul.mubr.msk.f32.gmra.mrb[6].mxu0 %vm387_vm3, %v14169_v36  ;;  %v12668_v40 = vpack.c.bf16 %v1735_v31, %v1711_v30  ;;  %v12647_v41 = vpack.c.bf16 %v1730_v33, %v1706_v32  ;;  %v12677_v42 = vpack.c.bf16 %v1740_v38, %v1716_v37  ;;  %v1705_v43 = vld [vmem:[%s14088_s14 + $0xc0] sm:$0xff]  ;;  %v1739_v46 = vld [vmem:[%s14088_s14 + $0x590] sm:$0x1]  ;;  %v1744_v50 = vld [vmem:[%s14088_s14 + $0x5b8] sm:$0x1] }
  0x28   : > { %11751 = vmatmul.mubr.msk.f32.gmra.mrb[6].mxu1 %vm387_vm3, %v14169_v36  ;;  %626 = vmatprep.mubr.f32.mxu0 %v18091_v0  ;;  %v1729_v44 = vld [vmem:[%s14088_s14 + $0x540] sm:$0x1]  ;;  %v1719_v57 = vld [vmem:[%s14088_s14 + $0x130] sm:$0xff]  ;;  %v1714_v59 = vld [vmem:[%s14088_s14 + $0x108] sm:$0xff] }
  0x29   : > { %982 = vmatprep.mubr.f32.mxu1 %v18091_v0  ;;  %v12650_v51 = vpack.c.bf16 %v1729_v44, %v1705_v43  ;;  %v1709_v55 = vld [vmem:[%s14088_s14 + $0xe0] sm:$0xff]  ;;  %v1743_v58 = vld [vmem:[%s14088_s14 + $0x5b0] sm:$0x1]  ;;  %v1738_v60 = vld [vmem:[%s14088_s14 + $0x588] sm:$0x1] }
  0x2a   : > { %v1733_v56 = vld [vmem:[%s14088_s14 + $0x560] sm:$0x1]  ;;  %v12671_v3 = vpack.c.bf16 %v1738_v60, %v1714_v59  ;;  %v1723_v7 = vld [vmem:[%s14088_s14 + $0x150] sm:$0xff]  ;;  %v1718_v9 = vld [vmem:[%s14088_s14 + $0x128] sm:$0xff] }
  0x2b   : > { %11736 = vmatmul.mubr.msk.f32.vlgmr.msra.gmra.mrb[8].mxu0 %vm387_vm3, %v14105_v14  ;;  %v1713_v5 = vld [vmem:[%s14088_s14 + $0x100] sm:$0xff]  ;;  %v1747_v8 = vld [vmem:[%s14088_s14 + $0x5d0] sm:$0x1]  ;;  %v1742_v10 = vld [vmem:[%s14088_s14 + $0x5a8] sm:$0x1] }
  0x2c   : > { %11760 = vmatmul.mubr.msk.f32.vlgmr.msra.gmra.mrb[8].mxu1 %vm387_vm3, %v14105_v14  ;;  %632 = vmatprep.mubr.f32.mxu0 %v18091_v0  ;;  %v1737_v6 = vld [vmem:[%s14088_s14 + $0x580] sm:$0x1]  ;;  %v12683_v16 = vpack.c.bf16 %v1742_v10, %v1718_v9  ;;  %v1727_v20 = vld [vmem:[%s14088_s14 + $0x170] sm:$0xff]  ;;  %v1722_v22 = vld [vmem:[%s14088_s14 + $0x148] sm:$0xff] }
  0x2d   : > { %988 = vmatprep.mubr.f32.mxu1 %v18091_v0  ;;  %12592 = vmatpush1.bf16.msk.msra.mxu0 %vm14090_vm2, %v12590_v45  ;;  %v1715_v45 = vld [vmem:[%s14088_s14 + $0x110] sm:$0xff]  ;;  %v1717_v18 = vld [vmem:[%s14088_s14 + $0x120] sm:$0xff]  ;;  %v1746_v23 = vld [vmem:[%s14088_s14 + $0x5c8] sm:$0x1] }
  0x2e   : > { %12622 = vmatpush1.bf16.msk.msra.mxu1 %vm14090_vm2, %v12620_v47  ;;  %12601 = vmatprep.subr.msk.bf16.mxu0 %vm14090_vm2, %v12599_v48  ;;  %v1710_v47 = vld [vmem:[%s14088_s14 + $0xe8] sm:$0xff]  ;;  %v12680_v52 = vpack.c.bf16 %v1739_v46, %v1715_v45  ;;  %v1741_v19 = vld [vmem:[%s14088_s14 + $0x5a0] sm:$0x1]  ;;  %v1751_v21 = vld [vmem:[%s14088_s14 + $0x5f0] sm:$0x1]  ;;  %v12695_v28 = vpack.c.bf16 %v1746_v23, %v1722_v22 }
  0x2f   : > { %11737 = vmatmul.mubr.msk.f32.gmra.mrb[10].mxu0 %vm387_vm3, %v14139_v34  ;;  %12631 = vmatprep.subr.msk.bf16.mxu1 %vm14090_vm2, %v12629_v49  ;;  %v1734_v48 = vld [vmem:[%s14088_s14 + $0x568] sm:$0x1]  ;;  %v1720_v49 = vld [vmem:[%s14088_s14 + $0x138] sm:$0xff]  ;;  %v1721_v30 = vld [vmem:[%s14088_s14 + $0x140] sm:$0xff] }
  0x30   : > { %11761 = vmatmul.mubr.msk.f32.gmra.mrb[10].mxu1 %vm387_vm3, %v14139_v34  ;;  %638 = vmatprep.mubr.f32.mxu0 %v18091_v0  ;;  %v12659_v53 = vpack.c.bf16 %v1734_v48, %v1710_v47  ;;  %v12689_v54 = vpack.c.bf16 %v1744_v50, %v1720_v49  ;;  %v1745_v31 = vld [vmem:[%s14088_s14 + $0x5c0] sm:$0x1]  ;;  %v3039_v32 = vld [vmem:[%s14088_s14 + $0x190] sm:$0xff]  ;;  %v1726_v37 = vld [vmem:[%s14088_s14 + $0x168] sm:$0xff] }
  0x31   : > { %994 = vmatprep.mubr.f32.mxu1 %v18091_v0  ;;  %v3063_v33 = vld [vmem:[%s14088_s14 + $0x610] sm:$0x1]  ;;  %v1750_v38 = vld [vmem:[%s14088_s14 + $0x5e8] sm:$0x1]  ;;  %v1725_v45 = vld [vmem:[%s14088_s14 + $0x160] sm:$0xff] }
  0x32   : > { %v12707_v43 = vpack.c.bf16 %v1750_v38, %v1726_v37  ;;  %v1749_v46 = vld [vmem:[%s14088_s14 + $0x5e0] sm:$0x1]  ;;  %v3043_v47 = vld [vmem:[%s14088_s14 + $0x1b0] sm:$0xff]  ;;  %v3038_v49 = vld [vmem:[%s14088_s14 + $0x188] sm:$0xff] }
  0x33   : > { %11738 = vmatmul.mubr.msk.f32.gmra.mrb[12].mxu0 %vm387_vm3, %v14158_v35  ;;  %v3067_v48 = vld [vmem:[%s14088_s14 + $0x630] sm:$0x1]  ;;  %v3062_v50 = vld [vmem:[%s14088_s14 + $0x608] sm:$0x1] }
  0x34   : > { %11762 = vmatmul.mubr.msk.f32.gmra.mrb[12].mxu1 %vm387_vm3, %v14158_v35  ;;  %644 = vmatprep.mubr.f32.mxu0 %v18091_v0  ;;  %v3047_v59 = vld [vmem:[%s14088_s14 + $0x1d0] sm:$0xff]  ;;  %v3050_v38 = vld [vmem:[%s14088_s14 + $0x1e8] sm:$0xff] }
  0x35   : > { %1000 = vmatprep.mubr.f32.mxu1 %v18091_v0  ;;  %v3071_v60 = vld [vmem:[%s14088_s14 + $0x650] sm:$0x1] }
  0x36   : > { %v3051_v9 = vld [vmem:[%s14088_s14 + $0x1f0] sm:$0xff] }
  0x37   : > { %11739 = vmatmul.mubr.msk.f32.gmra.mrb[14].mxu0 %vm387_vm3, %v14169_v36  ;;  %v3075_v10 = vld [vmem:[%s14088_s14 + $0x670] sm:$0x1] }
  0x38   : > { %11763 = vmatmul.mubr.msk.f32.gmra.mrb[14].mxu1 %vm387_vm3, %v14169_v36  ;;  %715 = vmatprep.mubr.f32.mxu0 %v18091_v0 }
  0x39   : > { %1160 = vmatprep.mubr.f32.mxu1 %v18091_v0 }
  0x3b   : > { %11742 = vmatmul.mubr.msk.f32.vlgmr.msra.gmra.mrb[16].mxu0 %vm387_vm3, %v14105_v14 }
  0x3c   : > { %11772 = vmatmul.mubr.msk.f32.vlgmr.msra.gmra.mrb[16].mxu1 %vm387_vm3, %v14105_v14  ;;  %721 = vmatprep.mubr.f32.mxu0 %v18091_v0 }
  0x3d   : > { %1166 = vmatprep.mubr.f32.mxu1 %v18091_v0  ;;  %12604 = vmatpush1.bf16.msk.msra.mxu0 %vm14090_vm2, %v12602_v61  ;;  %v1724_v61 = vld [vmem:[%s14088_s14 + $0x158] sm:$0xff] }
  0x3e   : > { %12634 = vmatpush1.bf16.msk.msra.mxu1 %vm14090_vm2, %v12632_v62  ;;  %12613 = vmatprep.subr.msk.bf16.mxu0 %vm14090_vm2, %v12611_v63  ;;  %v1748_v62 = vld [vmem:[%s14088_s14 + $0x5d8] sm:$0x1]  ;;  %v12662_v63 = vpack.c.bf16 %v1733_v56, %v1709_v55  ;;  %v12719_v55 = vpack.c.bf16 %v3062_v50, %v3038_v49 }
  0x3f   : > { %11743 = vmatmul.mubr.msk.f32.gmra.mrb[18].mxu0 %vm387_vm3, %v14139_v34  ;;  %12643 = vmatprep.subr.msk.bf16.mxu1 %vm14090_vm2, %v12641_v1  ;;  %v12692_v1 = vpack.c.bf16 %v1743_v58, %v1719_v57  ;;  %v12701_v4 = vpack.c.bf16 %v1748_v62, %v1724_v61  ;;  %v3037_v57 = vld [vmem:[%s14088_s14 + $0x180] sm:$0xff]  ;;  %v3042_v61 = vld [vmem:[%s14088_s14 + $0x1a8] sm:$0xff] }
  0x40   : > { %11773 = vmatmul.mubr.msk.f32.gmra.mrb[18].mxu1 %vm387_vm3, %v14139_v34  ;;  %727 = vmatprep.mubr.f32.mxu0 %v18091_v0  ;;  %v3061_v58 = vld [vmem:[%s14088_s14 + $0x600] sm:$0x1]  ;;  %v3066_v62 = vld [vmem:[%s14088_s14 + $0x628] sm:$0x1] }
  0x41   : > { %1172 = vmatprep.mubr.f32.mxu1 %v18091_v0 }
  0x43   : > { %11744 = vmatmul.mubr.msk.f32.gmra.mrb[20].mxu0 %vm387_vm3, %v14158_v35 }
  0x44   : > { %11774 = vmatmul.mubr.msk.f32.gmra.mrb[20].mxu1 %vm387_vm3, %v14158_v35  ;;  %733 = vmatprep.mubr.f32.mxu0 %v18091_v0 }
  0x45   : > { %1178 = vmatprep.mubr.f32.mxu1 %v18091_v0 }
  0x47   : > { %11745 = vmatmul.mubr.msk.f32.gmra.mrb[22].mxu0 %vm387_vm3, %v14169_v36 }
  0x48   : > { %11775 = vmatmul.mubr.msk.f32.gmra.mrb[22].mxu1 %vm387_vm3, %v14169_v36  ;;  %893 = vmatprep.mubr.f32.mxu0 %v18091_v0 }
  0x49   : > { %1338 = vmatprep.mubr.f32.mxu1 %v18091_v0 }
  0x4b   : > { %11754 = vmatmul.mubr.msk.f32.vlgmr.msra.gmra.mrb[24].mxu0 %vm387_vm3, %v14105_v14 }
  0x4c   : > { %11784 = vmatmul.mubr.msk.f32.vlgmr.msra.gmra.mrb[24].mxu1 %vm387_vm3, %v14105_v14  ;;  %899 = vmatprep.mubr.f32.mxu0 %v18091_v0 }
  0x4d   : > { %1344 = vmatprep.mubr.f32.mxu1 %v18091_v0  ;;  %12616 = vmatpush1.bf16.msk.msra.mxu0 %vm14090_vm2, %v12614_v11  ;;  %v1728_v11 = vld [vmem:[%s14088_s14 + $0x178] sm:$0xff] }
  0x4e   : > { %12646 = vmatpush1.bf16.msk.msra.mxu1 %vm14090_vm2, %v12644_v12  ;;  %12625 = vmatprep.subr.msk.bf16.mxu0 %vm14090_vm2, %v12623_v13  ;;  %v1752_v12 = vld [vmem:[%s14088_s14 + $0x5f8] sm:$0x1]  ;;  %v12674_v13 = vpack.c.bf16 %v1737_v6, %v1713_v5  ;;  %v12731_v5 = vpack.c.bf16 %v3066_v62, %v3042_v61 }
  0x4f   : > { %11755 = vmatmul.mubr.msk.f32.gmra.mrb[26].mxu0 %vm387_vm3, %v14139_v34  ;;  %12655 = vmatprep.subr.msk.bf16.mxu1 %vm14090_vm2, %v12653_v15  ;;  %v12704_v15 = vpack.c.bf16 %v1747_v8, %v1723_v7  ;;  %v12713_v17 = vpack.c.bf16 %v1752_v12, %v1728_v11  ;;  %v3041_v7 = vld [vmem:[%s14088_s14 + $0x1a0] sm:$0xff]  ;;  %v3046_v11 = vld [vmem:[%s14088_s14 + $0x1c8] sm:$0xff] }
  0x50   : > { %11785 = vmatmul.mubr.msk.f32.gmra.mrb[26].mxu1 %vm387_vm3, %v14139_v34  ;;  %905 = vmatprep.mubr.f32.mxu0 %v18091_v0  ;;  %v3065_v8 = vld [vmem:[%s14088_s14 + $0x620] sm:$0x1]  ;;  %v3070_v12 = vld [vmem:[%s14088_s14 + $0x648] sm:$0x1] }
  0x51   : > { %1350 = vmatprep.mubr.f32.mxu1 %v18091_v0 }
  0x53   : > { %11756 = vmatmul.mubr.msk.f32.gmra.mrb[28].mxu0 %vm387_vm3, %v14158_v35 }
  0x54   : > { %11786 = vmatmul.mubr.msk.f32.gmra.mrb[28].mxu1 %vm387_vm3, %v14158_v35  ;;  %911 = vmatprep.mubr.f32.mxu0 %v18091_v0 }
  0x55   : > { %1356 = vmatprep.mubr.f32.mxu1 %v18091_v0 }
  0x57   : > { %11757 = vmatmul.mubr.msk.f32.gmra.mrb[30].mxu0 %vm387_vm3, %v14169_v36 }
  0x58   : > { %11787 = vmatmul.mubr.msk.f32.gmra.mrb[30].mxu1 %vm387_vm3, %v14169_v36  ;;  %1071 = vmatprep.mubr.f32.mxu0 %v18091_v0 }
  0x59   : > { %1516 = vmatprep.mubr.f32.mxu1 %v18091_v0 }
  0x5b   : > { %11766 = vmatmul.mubr.msk.f32.vlgmr.msra.gmra.mrb[32].mxu0 %vm387_vm3, %v14105_v14 }
  0x5c   : > { %11796 = vmatmul.mubr.msk.f32.vlgmr.msra.gmra.mrb[32].mxu1 %vm387_vm3, %v14105_v14  ;;  %1077 = vmatprep.mubr.f32.mxu0 %v18091_v0 }
  0x5d   : > { %1522 = vmatprep.mubr.f32.mxu1 %v18091_v0  ;;  %12628 = vmatpush1.bf16.msk.msra.mxu0 %vm14090_vm2, %v12626_v24  ;;  %v3040_v24 = vld [vmem:[%s14088_s14 + $0x198] sm:$0xff] }
  0x5e   : > { %12658 = vmatpush1.bf16.msk.msra.mxu1 %vm14090_vm2, %v12656_v25  ;;  %12637 = vmatprep.subr.msk.bf16.mxu0 %vm14090_vm2, %v12635_v26  ;;  %v3064_v25 = vld [vmem:[%s14088_s14 + $0x618] sm:$0x1]  ;;  %v12686_v26 = vpack.c.bf16 %v1741_v19, %v1717_v18  ;;  %v12743_v18 = vpack.c.bf16 %v3070_v12, %v3046_v11  ;;  %v14819_v11 = vld [vmem:[%s18079_s1] sm:$0xff] }
  0x5f   : > { %11767 = vmatmul.mubr.msk.f32.gmra.mrb[34].mxu0 %vm387_vm3, %v14139_v34  ;;  %12667 = vmatprep.subr.msk.bf16.mxu1 %vm14090_vm2, %v12665_v27  ;;  %v12716_v27 = vpack.c.bf16 %v1751_v21, %v1727_v20  ;;  %v12725_v29 = vpack.c.bf16 %v3064_v25, %v3040_v24 }
  0x60   : > { %11797 = vmatmul.mubr.msk.f32.gmra.mrb[34].mxu1 %vm387_vm3, %v14139_v34  ;;  %1083 = vmatprep.mubr.f32.mxu0 %v18091_v0 }
  0x61   : > { %1528 = vmatprep.mubr.f32.mxu1 %v18091_v0 }
  0x63   : > { %11768 = vmatmul.mubr.msk.f32.gmra.mrb[36].mxu0 %vm387_vm3, %v14158_v35 }
  0x64   : > { %11798 = vmatmul.mubr.msk.f32.gmra.mrb[36].mxu1 %vm387_vm3, %v14158_v35  ;;  %1089 = vmatprep.mubr.f32.mxu0 %v18091_v0 }
  0x65   : > { %1534 = vmatprep.mubr.f32.mxu1 %v18091_v0 }
  0x67   : > { %11769 = vmatmul.mubr.msk.f32.gmra.mrb[38].mxu0 %vm387_vm3, %v14169_v36 }
  0x68   : > { %11799 = vmatmul.mubr.msk.f32.gmra.mrb[38].mxu1 %vm387_vm3, %v14169_v36  ;;  %1249 = vmatprep.mubr.f32.mxu0 %v18091_v0 }
  0x69   : > { %1978 = vmatprep.mubr.f32.mxu1 %v18091_v0 }
  0x6b   : > { %11778 = vmatmul.mubr.msk.f32.vlgmr.msra.gmra.mrb[40].mxu0 %vm387_vm3, %v14105_v14 }
  0x6c   : > { %11808 = vmatmul.mubr.msk.f32.vlgmr.msra.gmra.mrb[40].mxu1 %vm387_vm3, %v14105_v14  ;;  %1255 = vmatprep.mubr.f32.mxu0 %v18091_v0 }
  0x6d   : > { %1984 = vmatprep.mubr.f32.mxu1 %v18091_v0  ;;  %12640 = vmatpush1.bf16.msk.msra.mxu0 %vm14090_vm2, %v12638_v39  ;;  %v3044_v39 = vld [vmem:[%s14088_s14 + $0x1b8] sm:$0xff] }
  0x6e   : > { %12670 = vmatpush1.bf16.msk.msra.mxu1 %vm14090_vm2, %v12668_v40  ;;  %12649 = vmatprep.subr.msk.bf16.mxu0 %vm14090_vm2, %v12647_v41  ;;  %v3068_v40 = vld [vmem:[%s14088_s14 + $0x638] sm:$0x1]  ;;  %v12698_v41 = vpack.c.bf16 %v1745_v31, %v1721_v30  ;;  %v3079_v30 = vld [vmem:[%s14088_s14 + $0x690] sm:$0x1] }
  0x6f   : > { %11779 = vmatmul.mubr.msk.f32.gmra.mrb[42].mxu0 %vm387_vm3, %v14139_v34  ;;  %12679 = vmatprep.subr.msk.bf16.mxu1 %vm14090_vm2, %v12677_v42  ;;  %v12728_v42 = vpack.c.bf16 %v3063_v33, %v3039_v32  ;;  %v12737_v44 = vpack.c.bf16 %v3068_v40, %v3044_v39  ;;  %v3055_v33 = vld [vmem:[%s14088_s14 + $0x210] sm:$0xff]  ;;  %v3074_v39 = vld [vmem:[%s14088_s14 + $0x668] sm:$0x1] }
  0x70   : > { %11809 = vmatmul.mubr.msk.f32.gmra.mrb[42].mxu1 %vm387_vm3, %v14139_v34  ;;  %1261 = vmatprep.mubr.f32.mxu0 %v18091_v0 }
  0x71   : > { %1990 = vmatprep.mubr.f32.mxu1 %v18091_v0 }
  0x73   : > { %11780 = vmatmul.mubr.msk.f32.gmra.mrb[44].mxu0 %vm387_vm3, %v14158_v35 }
  0x74   : > { %11810 = vmatmul.mubr.msk.f32.gmra.mrb[44].mxu1 %vm387_vm3, %v14158_v35  ;;  %1267 = vmatprep.mubr.f32.mxu0 %v18091_v0 }
  0x75   : > { %1996 = vmatprep.mubr.f32.mxu1 %v18091_v0 }
  0x77   : > { %11781 = vmatmul.mubr.msk.f32.gmra.mrb[46].mxu0 %vm387_vm3, %v14169_v36 }
  0x78   : > { %11811 = vmatmul.mubr.msk.f32.gmra.mrb[46].mxu1 %vm387_vm3, %v14169_v36  ;;  %1427 = vmatprep.mubr.f32.mxu0 %v18091_v0 }
  0x79   : > { %2156 = vmatprep.mubr.f32.mxu1 %v18091_v0 }
  0x7b   : > { %11790 = vmatmul.mubr.msk.f32.vlgmr.msra.gmra.mrb[48].mxu0 %vm387_vm3, %v14105_v14 }
  0x7c   : > { %11820 = vmatmul.mubr.msk.f32.vlgmr.msra.gmra.mrb[48].mxu1 %vm387_vm3, %v14105_v14  ;;  %1433 = vmatprep.mubr.f32.mxu0 %v18091_v0 }
  0x7d   : > { %2162 = vmatprep.mubr.f32.mxu1 %v18091_v0  ;;  %12652 = vmatpush1.bf16.msk.msra.mxu0 %vm14090_vm2, %v12650_v51  ;;  %v3048_v51 = vld [vmem:[%s14088_s14 + $0x1d8] sm:$0xff] }
  0x7e   : > { %12682 = vmatpush1.bf16.msk.msra.mxu1 %vm14090_vm2, %v12680_v52  ;;  %12661 = vmatprep.subr.msk.bf16.mxu0 %vm14090_vm2, %v12659_v53  ;;  %v3072_v52 = vld [vmem:[%s14088_s14 + $0x658] sm:$0x1]  ;;  %v12710_v53 = vpack.c.bf16 %v1749_v46, %v1725_v45  ;;  %v12755_v46 = vpack.c.bf16 %v3074_v39, %v3050_v38 }
  0x7f   : > { %11791 = vmatmul.mubr.msk.f32.gmra.mrb[50].mxu0 %vm387_vm3, %v14139_v34  ;;  %12691 = vmatprep.subr.msk.bf16.mxu1 %vm14090_vm2, %v12689_v54  ;;  %v12740_v54 = vpack.c.bf16 %v3067_v48, %v3043_v47  ;;  %v12749_v56 = vpack.c.bf16 %v3072_v52, %v3048_v51 }
  0x80   : > { %11821 = vmatmul.mubr.msk.f32.gmra.mrb[50].mxu1 %vm387_vm3, %v14139_v34  ;;  %1439 = vmatprep.mubr.f32.mxu0 %v18091_v0 }
  0x81   : > { %2168 = vmatprep.mubr.f32.mxu1 %v18091_v0 }
  0x83   : > { %11792 = vmatmul.mubr.msk.f32.gmra.mrb[52].mxu0 %vm387_vm3, %v14158_v35 }
  0x84   : > { %11822 = vmatmul.mubr.msk.f32.gmra.mrb[52].mxu1 %vm387_vm3, %v14158_v35  ;;  %1445 = vmatprep.mubr.f32.mxu0 %v18091_v0 }
  0x85   : > { %2174 = vmatprep.mubr.f32.mxu1 %v18091_v0 }
  0x87   : > { %11793 = vmatmul.mubr.msk.f32.gmra.mrb[54].mxu0 %vm387_vm3, %v14169_v36 }
  0x88   : > { %11823 = vmatmul.mubr.msk.f32.gmra.mrb[54].mxu1 %vm387_vm3, %v14169_v36  ;;  %1889 = vmatprep.mubr.f32.mxu0 %v18091_v0 }
  0x89   : > { %2334 = vmatprep.mubr.f32.mxu1 %v18091_v0 }
  0x8b   : > { %11802 = vmatmul.mubr.msk.f32.vlgmr.msra.gmra.mrb[56].mxu0 %vm387_vm3, %v14105_v14 }
  0x8c   : > { %11832 = vmatmul.mubr.msk.f32.vlgmr.msra.gmra.mrb[56].mxu1 %vm387_vm3, %v14105_v14  ;;  %1895 = vmatprep.mubr.f32.mxu0 %v18091_v0 }
  0x8d   : > { %2340 = vmatprep.mubr.f32.mxu1 %v18091_v0  ;;  %12664 = vmatpush1.bf16.msk.msra.mxu0 %vm14090_vm2, %v12662_v63  ;;  %v3052_v63 = vld [vmem:[%s14088_s14 + $0x1f8] sm:$0xff] }
  0x8e   : > { %12694 = vmatpush1.bf16.msk.msra.mxu1 %vm14090_vm2, %v12692_v1  ;;  %12673 = vmatprep.subr.msk.bf16.mxu0 %vm14090_vm2, %v12671_v3  ;;  %v3076_v1 = vld [vmem:[%s14088_s14 + $0x678] sm:$0x1]  ;;  %v12722_v3 = vpack.c.bf16 %v3061_v58, %v3037_v57  ;;  %v3049_v58 = vld [vmem:[%s14088_s14 + $0x1e0] sm:$0xff] }
  0x8f   : > { %11803 = vmatmul.mubr.msk.f32.gmra.mrb[58].mxu0 %vm387_vm3, %v14139_v34  ;;  %12703 = vmatprep.subr.msk.bf16.mxu1 %vm14090_vm2, %v12701_v4  ;;  %v12752_v4 = vpack.c.bf16 %v3071_v60, %v3047_v59  ;;  %v12761_v6 = vpack.c.bf16 %v3076_v1, %v3052_v63  ;;  %v3073_v59 = vld [vmem:[%s14088_s14 + $0x660] sm:$0x1]  ;;  %v3083_v60 = vld [vmem:[%s14088_s14 + $0x6b0] sm:$0x1]  ;;  %v3078_v1 = vld [vmem:[%s14088_s14 + $0x688] sm:$0x1] }
  0x90   : > { %11833 = vmatmul.mubr.msk.f32.gmra.mrb[58].mxu1 %vm387_vm3, %v14139_v34  ;;  %1901 = vmatprep.mubr.f32.mxu0 %v18091_v0  ;;  %v3059_v63 = vld [vmem:[%s14088_s14 + $0x230] sm:$0xff] }
  0x91   : > { %2346 = vmatprep.mubr.f32.mxu1 %v18091_v0 }
  0x93   : > { %11804 = vmatmul.mubr.msk.f32.gmra.mrb[60].mxu0 %vm387_vm3, %v14158_v35 }
  0x94   : > { %11834 = vmatmul.mubr.msk.f32.gmra.mrb[60].mxu1 %vm387_vm3, %v14158_v35  ;;  %1907 = vmatprep.mubr.f32.mxu0 %v18091_v0 }
  0x95   : > { %2352 = vmatprep.mubr.f32.mxu1 %v18091_v0 }
  0x97   : > { %11805 = vmatmul.mubr.msk.f32.gmra.mrb[62].mxu0 %vm387_vm3, %v14169_v36 }
  0x98   : > { %11835 = vmatmul.mubr.msk.f32.gmra.mrb[62].mxu1 %vm387_vm3, %v14169_v36  ;;  %2067 = vmatprep.mubr.f32.mxu0 %v18091_v0 }
  0x99   : > { %2512 = vmatprep.mubr.f32.mxu1 %v18091_v0 }
  0x9b   : > { %11814 = vmatmul.mubr.msk.f32.vlgmr.msra.gmra.mrb[64].mxu0 %vm387_vm3, %v14105_v14 }
  0x9c   : > { %11844 = vmatmul.mubr.msk.f32.vlgmr.msra.gmra.mrb[64].mxu1 %vm387_vm3, %v14105_v14  ;;  %2073 = vmatprep.mubr.f32.mxu0 %v18091_v0 }
  0x9d   : > { %2518 = vmatprep.mubr.f32.mxu1 %v18091_v0  ;;  %12676 = vmatpush1.bf16.msk.msra.mxu0 %vm14090_vm2, %v12674_v13  ;;  %v3056_v13 = vld [vmem:[%s14088_s14 + $0x218] sm:$0xff] }
  0x9e   : > { %12706 = vmatpush1.bf16.msk.msra.mxu1 %vm14090_vm2, %v12704_v15  ;;  %12685 = vmatprep.subr.msk.bf16.mxu0 %vm14090_vm2, %v12683_v16  ;;  %v3080_v15 = vld [vmem:[%s14088_s14 + $0x698] sm:$0x1]  ;;  %v12734_v16 = vpack.c.bf16 %v3065_v8, %v3041_v7  ;;  %v12788_v7 = vpack.c.bf16 %v3083_v60, %v3059_v63 }
  0x9f   : > { %11815 = vmatmul.mubr.msk.f32.gmra.mrb[66].mxu0 %vm387_vm3, %v14139_v34  ;;  %12715 = vmatprep.subr.msk.bf16.mxu1 %vm14090_vm2, %v12713_v17  ;;  %v12764_v17 = vpack.c.bf16 %v3075_v10, %v3051_v9  ;;  %v12773_v19 = vpack.c.bf16 %v3080_v15, %v3056_v13  ;;  %v14884_v63 = vld [vmem:[%s18079_s1 + $0x18] sm:$0xff] }
  0xa0   : > { %11845 = vmatmul.mubr.msk.f32.gmra.mrb[66].mxu1 %vm387_vm3, %v14139_v34  ;;  %2079 = vmatprep.mubr.f32.mxu0 %v18091_v0 }
  0xa1   : > { %2524 = vmatprep.mubr.f32.mxu1 %v18091_v0 }
  0xa3   : > { %11816 = vmatmul.mubr.msk.f32.gmra.mrb[68].mxu0 %vm387_vm3, %v14158_v35 }
  0xa4   : > { %11846 = vmatmul.mubr.msk.f32.gmra.mrb[68].mxu1 %vm387_vm3, %v14158_v35  ;;  %2085 = vmatprep.mubr.f32.mxu0 %v18091_v0 }
  0xa5   : > { %2530 = vmatprep.mubr.f32.mxu1 %v18091_v0 }
  0xa7   : > { %11817 = vmatmul.mubr.msk.f32.gmra.mrb[70].mxu0 %vm387_vm3, %v14169_v36 }
  0xa8   : > { %11847 = vmatmul.mubr.msk.f32.gmra.mrb[70].mxu1 %vm387_vm3, %v14169_v36  ;;  %2245 = vmatprep.mubr.f32.mxu0 %v18091_v0 }
  0xa9   : > { %2690 = vmatprep.mubr.f32.mxu1 %v18091_v0 }
  0xab   : > { %11826 = vmatmul.mubr.msk.f32.vlgmr.msra.gmra.mrb[72].mxu0 %vm387_vm3, %v14105_v14 }
  0xac   : > { %11856 = vmatmul.mubr.msk.f32.vlgmr.msra.gmra.mrb[72].mxu1 %vm387_vm3, %v14105_v14  ;;  %2251 = vmatprep.mubr.f32.mxu0 %v18091_v0 }
  0xad   : > { %2696 = vmatprep.mubr.f32.mxu1 %v18091_v0  ;;  %12688 = vmatpush1.bf16.msk.msra.mxu0 %vm14090_vm2, %v12686_v26 }
  0xae   : > { %12718 = vmatpush1.bf16.msk.msra.mxu1 %vm14090_vm2, %v12716_v27  ;;  %12697 = vmatprep.subr.msk.bf16.mxu0 %vm14090_vm2, %v12695_v28  ;;  %v3045_v28 = vld [vmem:[%s14088_s14 + $0x1c0] sm:$0xff] }
  0xaf   : > { %11827 = vmatmul.mubr.msk.f32.gmra.mrb[74].mxu0 %vm387_vm3, %v14139_v34  ;;  %12727 = vmatprep.subr.msk.bf16.mxu1 %vm14090_vm2, %v12725_v29  ;;  %v3069_v29 = vld [vmem:[%s14088_s14 + $0x640] sm:$0x1] }
  0xb0   : > { %11857 = vmatmul.mubr.msk.f32.gmra.mrb[74].mxu1 %vm387_vm3, %v14139_v34  ;;  %2257 = vmatprep.mubr.f32.mxu0 %v18091_v0 }
  0xb1   : > { %2702 = vmatprep.mubr.f32.mxu1 %v18091_v0 }
  0xb3   : > { %11828 = vmatmul.mubr.msk.f32.gmra.mrb[76].mxu0 %vm387_vm3, %v14158_v35 }
  0xb4   : > { %11858 = vmatmul.mubr.msk.f32.gmra.mrb[76].mxu1 %vm387_vm3, %v14158_v35  ;;  %2263 = vmatprep.mubr.f32.mxu0 %v18091_v0 }
  0xb5   : > { %2708 = vmatprep.mubr.f32.mxu1 %v18091_v0 }
  0xb7   : > { %11829 = vmatmul.mubr.msk.f32.gmra.mrb[78].mxu0 %vm387_vm3, %v14169_v36 }
  0xb8   : > { %11859 = vmatmul.mubr.msk.f32.gmra.mrb[78].mxu1 %vm387_vm3, %v14169_v36  ;;  %2423 = vmatprep.mubr.f32.mxu0 %v18091_v0 }
  0xb9   : > { %2868 = vmatprep.mubr.f32.mxu1 %v18091_v0 }
  0xbb   : > { %11838 = vmatmul.mubr.msk.f32.vlgmr.msra.gmra.mrb[80].mxu0 %vm387_vm3, %v14105_v14 }
  0xbc   : > { %11868 = vmatmul.mubr.msk.f32.vlgmr.msra.gmra.mrb[80].mxu1 %vm387_vm3, %v14105_v14  ;;  %2429 = vmatprep.mubr.f32.mxu0 %v18091_v0 }
  0xbd   : > { %2874 = vmatprep.mubr.f32.mxu1 %v18091_v0  ;;  %12700 = vmatpush1.bf16.msk.msra.mxu0 %vm14090_vm2, %v12698_v41  ;;  %v3060_v41 = vld [vmem:[%s14088_s14 + $0x238] sm:$0xff] }
  0xbe   : > { %12730 = vmatpush1.bf16.msk.msra.mxu1 %vm14090_vm2, %v12728_v42  ;;  %12709 = vmatprep.subr.msk.bf16.mxu0 %vm14090_vm2, %v12707_v43  ;;  %v3084_v42 = vld [vmem:[%s14088_s14 + $0x6b8] sm:$0x1]  ;;  %v12746_v43 = vpack.c.bf16 %v3069_v29, %v3045_v28  ;;  %v14854_v29 = vpop.permute.xlu0 %1595 }
  0xbf   : > { %11839 = vmatmul.mubr.msk.f32.gmra.mrb[82].mxu0 %vm387_vm3, %v14139_v34  ;;  %12739 = vmatprep.subr.msk.bf16.mxu1 %vm14090_vm2, %v12737_v44  ;;  %v12776_v44 = vpack.c.bf16 %v3079_v30, %v3055_v33  ;;  %v12785_v49 = vpack.c.bf16 %v3084_v42, %v3060_v41  ;;  %v14862_v41 = vld [vmem:[%s18079_s1 + $0x10] sm:$0xff] }
  0xc0   : > { %11869 = vmatmul.mubr.msk.f32.gmra.mrb[82].mxu1 %vm387_vm3, %v14139_v34  ;;  %2435 = vmatprep.mubr.f32.mxu0 %v18091_v0 }
  0xc1   : > { %2880 = vmatprep.mubr.f32.mxu1 %v18091_v0 }
  0xc3   : > { %11840 = vmatmul.mubr.msk.f32.gmra.mrb[84].mxu0 %vm387_vm3, %v14158_v35 }
  0xc4   : > { %11870 = vmatmul.mubr.msk.f32.gmra.mrb[84].mxu1 %vm387_vm3, %v14158_v35  ;;  %2441 = vmatprep.mubr.f32.mxu0 %v18091_v0 }
  0xc5   : > { %2886 = vmatprep.mubr.f32.mxu1 %v18091_v0 }
  0xc7   : > { %11841 = vmatmul.mubr.msk.f32.gmra.mrb[86].mxu0 %vm387_vm3, %v14169_v36 }
  0xc8   : > { %11871 = vmatmul.mubr.msk.f32.gmra.mrb[86].mxu1 %vm387_vm3, %v14169_v36  ;;  %2601 = vmatprep.mubr.f32.mxu0 %v18091_v0 }
  0xc9   : > { %3310 = vmatprep.mubr.f32.mxu1 %v18091_v0 }
  0xcb   : > { %11850 = vmatmul.mubr.msk.f32.vlgmr.msra.gmra.mrb[88].mxu0 %vm387_vm3, %v14105_v14 }
  0xcc   : > { %11880 = vmatmul.mubr.msk.f32.vlgmr.msra.gmra.mrb[88].mxu1 %vm387_vm3, %v14105_v14  ;;  %2607 = vmatprep.mubr.f32.mxu0 %v18091_v0 }
  0xcd   : > { %3316 = vmatprep.mubr.f32.mxu1 %v18091_v0  ;;  %12712 = vmatpush1.bf16.msk.msra.mxu0 %vm14090_vm2, %v12710_v53 }
  0xce   : > { %12742 = vmatpush1.bf16.msk.msra.mxu1 %vm14090_vm2, %v12740_v54  ;;  %12721 = vmatprep.subr.msk.bf16.mxu0 %vm14090_vm2, %v12719_v55 }
  0xcf   : > { %11851 = vmatmul.mubr.msk.f32.gmra.mrb[90].mxu0 %vm387_vm3, %v14139_v34  ;;  %12751 = vmatprep.subr.msk.bf16.mxu1 %vm14090_vm2, %v12749_v56 }
  0xd0   : > { %11881 = vmatmul.mubr.msk.f32.gmra.mrb[90].mxu1 %vm387_vm3, %v14139_v34  ;;  %2613 = vmatprep.mubr.f32.mxu0 %v18091_v0 }
  0xd1   : > { %3322 = vmatprep.mubr.f32.mxu1 %v18091_v0 }
  0xd3   : > { %11852 = vmatmul.mubr.msk.f32.gmra.mrb[92].mxu0 %vm387_vm3, %v14158_v35 }
  0xd4   : > { %11882 = vmatmul.mubr.msk.f32.gmra.mrb[92].mxu1 %vm387_vm3, %v14158_v35  ;;  %2619 = vmatprep.mubr.f32.mxu0 %v18091_v0 }
  0xd5   : > { %3328 = vmatprep.mubr.f32.mxu1 %v18091_v0 }
  0xd7   : > { %11853 = vmatmul.mubr.msk.f32.gmra.mrb[94].mxu0 %vm387_vm3, %v14169_v36 }
  0xd8   : > { %11883 = vmatmul.mubr.msk.f32.gmra.mrb[94].mxu1 %vm387_vm3, %v14169_v36  ;;  %2779 = vmatprep.mubr.f32.mxu0 %v18091_v0 }
  0xd9   : > { %3488 = vmatprep.mubr.f32.mxu1 %v18091_v0 }
  0xdb   : > { %11862 = vmatmul.mubr.msk.f32.vlgmr.msra.gmra.mrb[96].mxu0 %vm387_vm3, %v14105_v14 }
  0xdc   : > { %11892 = vmatmul.mubr.msk.f32.vlgmr.msra.gmra.mrb[96].mxu1 %vm387_vm3, %v14105_v14  ;;  %2785 = vmatprep.mubr.f32.mxu0 %v18091_v0 }
  0xdd   : > { %3494 = vmatprep.mubr.f32.mxu1 %v18091_v0  ;;  %12724 = vmatpush1.bf16.msk.msra.mxu0 %vm14090_vm2, %v12722_v3 }
  0xde   : > { %12754 = vmatpush1.bf16.msk.msra.mxu1 %vm14090_vm2, %v12752_v4  ;;  %12733 = vmatprep.subr.msk.bf16.mxu0 %vm14090_vm2, %v12731_v5  ;;  %v4372_v4 = vld [vmem:[%s14088_s14 + $0x258] sm:$0xff] }
  0xdf   : > { %11863 = vmatmul.mubr.msk.f32.gmra.mrb[98].mxu0 %vm387_vm3, %v14139_v34  ;;  %12763 = vmatprep.subr.msk.bf16.mxu1 %vm14090_vm2, %v12761_v6  ;;  %v4396_v5 = vld [vmem:[%s14088_s14 + $0x6d8] sm:$0x1]  ;;  %v12758_v6 = vpack.c.bf16 %v3073_v59, %v3049_v58  ;;  %v4395_v58 = vld [vmem:[%s14088_s14 + $0x6d0] sm:$0x1] }
  0xe0   : > { %11893 = vmatmul.mubr.msk.f32.gmra.mrb[98].mxu1 %vm387_vm3, %v14139_v34  ;;  %2791 = vmatprep.mubr.f32.mxu0 %v18091_v0  ;;  %v12797_v12 = vpack.c.bf16 %v4396_v5, %v4372_v4 }
  0xe1   : > { %3500 = vmatprep.mubr.f32.mxu1 %v18091_v0 }
  0xe3   : > { %11864 = vmatmul.mubr.msk.f32.gmra.mrb[100].mxu0 %vm387_vm3, %v14158_v35 }
  0xe4   : > { %11894 = vmatmul.mubr.msk.f32.gmra.mrb[100].mxu1 %vm387_vm3, %v14158_v35  ;;  %2797 = vmatprep.mubr.f32.mxu0 %v18091_v0 }
  0xe5   : > { %3506 = vmatprep.mubr.f32.mxu1 %v18091_v0 }
  0xe7   : > { %11865 = vmatmul.mubr.msk.f32.gmra.mrb[102].mxu0 %vm387_vm3, %v14169_v36 }
  0xe8   : > { %11895 = vmatmul.mubr.msk.f32.gmra.mrb[102].mxu1 %vm387_vm3, %v14169_v36  ;;  %3221 = vmatprep.mubr.f32.mxu0 %v18091_v0 }
  0xe9   : > { %3666 = vmatprep.mubr.f32.mxu1 %v18091_v0 }
  0xeb   : > { %11874 = vmatmul.mubr.msk.f32.vlgmr.msra.gmra.mrb[104].mxu0 %vm387_vm3, %v14105_v14 }
  0xec   : > { %11904 = vmatmul.mubr.msk.f32.vlgmr.msra.gmra.mrb[104].mxu1 %vm387_vm3, %v14105_v14  ;;  %3227 = vmatprep.mubr.f32.mxu0 %v18091_v0 }
  0xed   : > { %3672 = vmatprep.mubr.f32.mxu1 %v18091_v0  ;;  %12736 = vmatpush1.bf16.msk.msra.mxu0 %vm14090_vm2, %v12734_v16 }
  0xee   : > { %12766 = vmatpush1.bf16.msk.msra.mxu1 %vm14090_vm2, %v12764_v17  ;;  %v14688_v20 = vpop.f32.mrb[0].mxu0  ;;  %12745 = vmatprep.subr.msk.bf16.mxu0 %vm14090_vm2, %v12743_v18  ;;  %v14842_v17 = vld [vmem:[%s18079_s1 + $0x8] sm:$0xff] }
  0xef   : > { %v14692_v21 = vpop.f32.mrb[0].mxu1  ;;  %11875 = vmatmul.mubr.msk.f32.gmra.mrb[106].mxu0 %vm387_vm3, %v14139_v34  ;;  %v14696_v22 = vpop.f32.mrb[1].mxu0  ;;  %12775 = vmatprep.subr.msk.bf16.mxu1 %vm14090_vm2, %v12773_v19 }
  0xf0   : > { %v14700_v23 = vpop.f32.mrb[1].mxu1  ;;  %11905 = vmatmul.mubr.msk.f32.gmra.mrb[106].mxu1 %vm387_vm3, %v14139_v34  ;;  %3233 = vmatprep.mubr.f32.mxu0 %v18091_v0 }
  0xf1   : > { %3678 = vmatprep.mubr.f32.mxu1 %v18091_v0 }
  0xf2   : > { %v14706_v24 = vpop.f32.mrb[2].mxu0 }
  0xf3   : > { %v14708_v25 = vpop.f32.mrb[2].mxu1  ;;  %11876 = vmatmul.mubr.msk.f32.gmra.mrb[108].mxu0 %vm387_vm3, %v14158_v35  ;;  %v14712_v26 = vpop.f32.mrb[3].mxu0 }
  0xf4   : > { %v14714_v27 = vpop.f32.mrb[3].mxu1  ;;  %11906 = vmatmul.mubr.msk.f32.gmra.mrb[108].mxu1 %vm387_vm3, %v14158_v35  ;;  %3239 = vmatprep.mubr.f32.mxu0 %v18091_v0 }
  0xf5   : > { %3684 = vmatprep.mubr.f32.mxu1 %v18091_v0 }
  0xf6   : > { %v14723_v31 = vpop.f32.mrb[4].mxu0 }
  0xf7   : > { %v14725_v32 = vpop.f32.mrb[4].mxu1  ;;  %11877 = vmatmul.mubr.msk.f32.gmra.mrb[110].mxu0 %vm387_vm3, %v14169_v36  ;;  %v14730_v37 = vpop.f32.mrb[5].mxu0 }
  0xf8   : > { %v14734_v40 = vpop.f32.mrb[5].mxu1  ;;  %11907 = vmatmul.mubr.msk.f32.gmra.mrb[110].mxu1 %vm387_vm3, %v14169_v36  ;;  %3399 = vmatprep.mubr.f32.mxu0 %v18091_v0 }
  0xf9   : > { %3844 = vmatprep.mubr.f32.mxu1 %v18091_v0 }
  0xfa   : > { %v14742_v45 = vpop.f32.mrb[6].mxu0 }
  0xfb   : > { %v14744_v47 = vpop.f32.mrb[6].mxu1  ;;  %11886 = vmatmul.mubr.msk.f32.vlgmr.msra.gmra.mrb[112].mxu0 %vm387_vm3, %v14105_v14  ;;  %v14748_v48 = vpop.f32.mrb[7].mxu0 }
  0xfc   : > { %v14750_v50 = vpop.f32.mrb[7].mxu1  ;;  %11916 = vmatmul.mubr.msk.f32.vlgmr.msra.gmra.mrb[112].mxu1 %vm387_vm3, %v14105_v14  ;;  %3405 = vmatprep.mubr.f32.mxu0 %v18091_v0 }
  0xfd   : > { %3850 = vmatprep.mubr.f32.mxu1 %v18091_v0  ;;  %12748 = vmatpush1.bf16.msk.msra.mxu0 %vm14090_vm2, %v12746_v43 }
  0xfe   : > { %12778 = vmatpush1.bf16.msk.msra.mxu1 %vm14090_vm2, %v12776_v44  ;;  %v14760_v51 = vpop.f32.mrb[8].mxu0  ;;  %12757 = vmatprep.subr.msk.bf16.mxu0 %vm14090_vm2, %v12755_v46 }
  0xff   : > { %v14764_v52 = vpop.f32.mrb[8].mxu1  ;;  %11887 = vmatmul.mubr.msk.f32.gmra.mrb[114].mxu0 %vm387_vm3, %v14139_v34  ;;  %v630_v14 = vpop.f32.mrb[9].mxu0  ;;  %12787 = vmatprep.subr.msk.bf16.mxu1 %vm14090_vm2, %v12785_v49 }
 0x100   : > { %v14770_v53 = vpop.f32.mrb[9].mxu1  ;;  %11917 = vmatmul.mubr.msk.f32.gmra.mrb[114].mxu1 %vm387_vm3, %v14139_v34  ;;  %3411 = vmatprep.mubr.f32.mxu0 %v18091_v0  ;;  %v14874_v49 = vpop.permute.xlu0 %1600 }
 0x101   : > { %3856 = vmatprep.mubr.f32.mxu1 %v18091_v0 }
 0x102   : > { %v14776_v54 = vpop.f32.mrb[10].mxu0 }
 0x103   : > { %v14778_v55 = vpop.f32.mrb[10].mxu1  ;;  %11888 = vmatmul.mubr.msk.f32.gmra.mrb[116].mxu0 %vm387_vm3, %v14158_v35  ;;  %v14782_v56 = vpop.f32.mrb[11].mxu0 }
 0x104   : > { %v14784_v57 = vpop.f32.mrb[11].mxu1  ;;  %11918 = vmatmul.mubr.msk.f32.gmra.mrb[116].mxu1 %vm387_vm3, %v14158_v35  ;;  %3417 = vmatprep.mubr.f32.mxu0 %v18091_v0  ;;  %v3054_v35 = vld [vmem:[%s14088_s14 + $0x208] sm:$0xff] }
 0x105   : > { %3862 = vmatprep.mubr.f32.mxu1 %v18091_v0  ;;  %v12767_v9 = vpack.c.bf16 %v3078_v1, %v3054_v35  ;;  %v3058_v35 = vld [vmem:[%s14088_s14 + $0x228] sm:$0xff] }
 0x106   : > { %v14790_v34 = vpop.f32.mrb[12].mxu0  ;;  %v3082_v1 = vld [vmem:[%s14088_s14 + $0x6a8] sm:$0x1] }
 0x107   : > { %v14795_v61 = vpop.f32.mrb[12].mxu1  ;;  %11889 = vmatmul.mubr.msk.f32.gmra.mrb[118].mxu0 %vm387_vm3, %v14169_v36  ;;  %v14799_v62 = vpop.f32.mrb[13].mxu0 }
 0x108   : > { %v14804_v3 = vpop.f32.mrb[13].mxu1  ;;  %11919 = vmatmul.mubr.msk.f32.gmra.mrb[118].mxu1 %vm387_vm3, %v14169_v36  ;;  %3577 = vmatprep.mubr.f32.mxu0 %v18091_v0 }
 0x109   : > { %4022 = vmatprep.mubr.f32.mxu1 %v18091_v0 }
 0x10a   : > { %v14812_v8 = vpop.f32.mrb[14].mxu0 }
 0x10b   : > { %v14814_v10 = vpop.f32.mrb[14].mxu1  ;;  %11898 = vmatmul.mubr.msk.f32.vlgmr.msra.gmra.mrb[120].mxu0 %vm387_vm3, %v14819_v11  ;;  %v14823_v36 = vpop.f32.mrb[15].mxu0 }
 0x10c   : > { %v14825_v13 = vpop.f32.mrb[15].mxu1  ;;  %11928 = vmatmul.mubr.msk.f32.vlgmr.msra.gmra.mrb[120].mxu1 %vm387_vm3, %v14819_v11  ;;  %3583 = vmatprep.mubr.f32.mxu0 %v18091_v0 }
 0x10d   : > { %4028 = vmatprep.mubr.f32.mxu1 %v18091_v0  ;;  %12760 = vmatpush1.bf16.msk.msra.mxu0 %vm14090_vm2, %v12758_v6 }
 0x10e   : > { %12790 = vmatpush1.bf16.msk.msra.mxu1 %vm14090_vm2, %v12788_v7  ;;  %12769 = vmatprep.subr.msk.bf16.mxu0 %vm14090_vm2, %v12767_v9  ;;  %v14837_v15 = vpop.f32.mrb[16].mxu0  ;;  %v14898_v9 = vpop.permute.xlu1 %1605 }
 0x10f   : > { %v1162_v16 = vpop.f32.mrb[16].mxu1  ;;  %11899 = vmatmul.mubr.msk.f32.gmra.mrb[122].mxu0 %vm387_vm3, %v14842_v17  ;;  %12799 = vmatprep.subr.msk.bf16.mxu1 %vm14090_vm2, %v12797_v12  ;;  %v14848_v18 = vpop.f32.mrb[17].mxu0  ;;  %v4376_v12 = vld [vmem:[%s14088_s14 + $0x278] sm:$0xff] }
 0x110   : > { %v1543_v19 = vmax.f32 %v14760_v51, %v1162_v16  ;;  %v1164_v28 = vpop.f32.mrb[17].mxu1  ;;  %11929 = vmatmul.mubr.msk.f32.gmra.mrb[122].mxu1 %vm387_vm3, %v14842_v17  ;;  %3589 = vmatprep.mubr.f32.mxu0 %v18091_v0  ;;  %v3053_v51 = vld [vmem:[%s14088_s14 + $0x200] sm:$0xff]  ;;  %v4400_v16 = vld [vmem:[%s14088_s14 + $0x6f8] sm:$0x1] }
 0x111   : > { %v1544_v30 = vmax.f32 %v630_v14, %v1164_v28  ;;  %4034 = vmatprep.mubr.f32.mxu1 %v18091_v0  ;;  %v3077_v14 = vld [vmem:[%s14088_s14 + $0x680] sm:$0x1] }
 0x112   : > { %v14857_v33 = vpop.f32.mrb[18].mxu0  ;;  %v12770_v28 = vpack.c.bf16 %v3077_v14, %v3053_v51 }
 0x113   : > { %v1625_v38 = vmax.f32 %v1543_v19, %v1544_v30  ;;  %v1168_v39 = vpop.f32.mrb[18].mxu1  ;;  %11900 = vmatmul.mubr.msk.f32.gmra.mrb[124].mxu0 %vm387_vm3, %v14862_v41  ;;  %v14866_v42 = vpop.f32.mrb[19].mxu0 }
 0x114   : > { %v1555_v43 = vmax.f32 %v14776_v54, %v1168_v39  ;;  %v1170_v44 = vpop.f32.mrb[19].mxu1  ;;  %11930 = vmatmul.mubr.msk.f32.gmra.mrb[124].mxu1 %vm387_vm3, %v14862_v41  ;;  %3595 = vmatprep.mubr.f32.mxu0 %v18091_v0  ;;  %v12779_v39 = vpack.c.bf16 %v3082_v1, %v3058_v35 }
 0x115   : > { %v1556_v46 = vmax.f32 %v14782_v56, %v1170_v44  ;;  %4040 = vmatprep.mubr.f32.mxu1 %v18091_v0  ;;  %v4371_v56 = vld [vmem:[%s14088_s14 + $0x250] sm:$0xff]  ;;  %v1629_v5 = vadd.f32 %v1625_v38, %v14854_v29 }
 0x116   : > { %v14879_v59 = vpop.f32.mrb[20].mxu0  ;;  %v12800_v38 = vpack.c.bf16 %v4395_v58, %v4371_v56  ;;  %v14921_v58 = vpop.permute.xlu1 %1610 }
 0x117   : > { %18195 = vst [vmem:[#allocation3_spill] sm:$0xff] %v14879_v59  ;;  %v1626_v54 = vmax.f32 %v1555_v43, %v1556_v46  ;;  %v1174_v60 = vpop.f32.mrb[20].mxu1  ;;  %11901 = vmatmul.mubr.msk.f32.gmra.mrb[126].mxu0 %vm387_vm3, %v14884_v63  ;;  %v14891_v4 = vpop.f32.mrb[21].mxu0  ;;  %v12809_v46 = vpack.c.bf16 %v4400_v16, %v4376_v12 }
 0x118   : > { %18196 = vst [vmem:[#allocation4_spill] sm:$0xff] %v14891_v4  ;;  %v1567_v6 = vmax.f32 %v14790_v34, %v1174_v60  ;;  %v1176_v7 = vpop.f32.mrb[21].mxu1  ;;  %11931 = vmatmul.mubr.msk.f32.gmra.mrb[126].mxu1 %vm387_vm3, %v14884_v63  ;;  %3755 = vmatprep.mubr.f32.mxu0 %v18091_v0  ;;  %v1633_v4 = vmax.f32 %v1629_v5, 0.0 }
 0x119   : > { %v1568_v19 = vmax.f32 %v14799_v62, %v1176_v7  ;;  %4200 = vmatprep.mubr.f32.mxu1 %v18091_v0  ;;  %v1630_v30 = vadd.f32 %v1626_v54, %v14874_v49 }
 0x11a   : > { %v14905_v34 = vpop.f32.mrb[22].mxu0 }
 0x11b   : > { %v1627_v43 = vmax.f32 %v1567_v6, %v1568_v19  ;;  %v1180_v44 = vpop.f32.mrb[22].mxu1  ;;  %11910 = vmatmul.mubr.msk.f32.vlgmr.msra.gmra.mrb[128].mxu0 %vm387_vm3, %v14819_v11  ;;  %v14909_v60 = vpop.f32.mrb[23].mxu0  ;;  %v1634_v59 = vmax.f32 %v1630_v30, 0.0 }
 0x11c   : > { %v1579_v62 = vmax.f32 %v14812_v8, %v1180_v44  ;;  %v1182_v7 = vpop.f32.mrb[23].mxu1  ;;  %11940 = vmatmul.mubr.msk.f32.vlgmr.msra.gmra.mrb[128].mxu1 %vm387_vm3, %v14819_v11  ;;  %3761 = vmatprep.mubr.f32.mxu0 %v18091_v0  ;;  %v3081_v44 = vld [vmem:[%s14088_s14 + $0x6a0] sm:$0x1] }
 0x11d   : > { %v1580_v51 = vmax.f32 %v14823_v36, %v1182_v7  ;;  %4206 = vmatprep.mubr.f32.mxu1 %v18091_v0  ;;  %12772 = vmatpush1.bf16.msk.msra.mxu0 %vm14090_vm2, %v12770_v28  ;;  %v14919_v14 = vpack.c.bf16 %v1634_v59, %v1633_v4  ;;  %v1631_v59 = vadd.f32 %v1627_v43, %v14898_v9  ;;  %v3057_v43 = vld [vmem:[%s14088_s14 + $0x220] sm:$0xff] }
 0x11e   : > { %12802 = vmatpush1.bf16.msk.msra.mxu1 %vm14090_vm2, %v12800_v38  ;;  %12781 = vmatprep.subr.msk.bf16.mxu0 %vm14090_vm2, %v12779_v39  ;;  %v14927_v8 = vpop.f32.mrb[24].mxu0  ;;  %v8389_v38 = vld [vmem:[%s18082_s4] sm:$0xff] }
 0x11f   : > { %18197 = vst [vmem:[#allocation5_spill] sm:$0xff] %v14919_v14  ;;  %v1628_v54 = vmax.f32 %v1579_v62, %v1580_v51  ;;  %v1340_v56 = vpop.f32.mrb[24].mxu1  ;;  %11911 = vmatmul.mubr.msk.f32.gmra.mrb[130].mxu0 %vm387_vm3, %v14842_v17  ;;  %12811 = vmatprep.subr.msk.bf16.mxu1 %vm14090_vm2, %v12809_v46  ;;  %v14933_v36 = vpop.f32.mrb[25].mxu0  ;;  %v1635_v19 = vmax.f32 %v1631_v59, 0.0  ;;  %v4375_v46 = vld [vmem:[%s14088_s14 + $0x270] sm:$0xff] }
 0x120   : > { %v1547_v35 = vmax.f32 %v14692_v21, %v1340_v56  ;;  %v1342_v1 = vpop.f32.mrb[25].mxu1  ;;  %11941 = vmatmul.mubr.msk.f32.gmra.mrb[130].mxu1 %vm387_vm3, %v14842_v17  ;;  %3767 = vmatprep.mubr.f32.mxu0 %v18091_v0  ;;  %v4399_v62 = vld [vmem:[%s14088_s14 + $0x6f0] sm:$0x1]  ;;  %v4394_v59 = vld [vmem:[%s14088_s14 + $0x6c8] sm:$0x1] }
 0x121   : > { %v1548_v4 = vmax.f32 %v14700_v23, %v1342_v1  ;;  %4212 = vmatprep.mubr.f32.mxu1 %v18091_v0  ;;  %v1632_v5 = vadd.f32 %v1628_v54, %v14921_v58  ;;  %9464 = vperm.xlu0 %13888, %v8389_v38  }
 0x122   : > { %v14943_v6 = vpop.f32.mrb[26].mxu0 }
 0x123   : > { %v1657_v12 = vmax.f32 %v1547_v35, %v1548_v4  ;;  %v1346_v16 = vpop.f32.mrb[26].mxu1  ;;  %11912 = vmatmul.mubr.msk.f32.gmra.mrb[132].mxu0 %vm387_vm3, %v14862_v41  ;;  %v14947_v21 = vpop.f32.mrb[27].mxu0  ;;  %v1636_v28 = vmax.f32 %v1632_v5, 0.0  ;;  %v4380_v35 = vld [vmem:[%s14088_s14 + $0x298] sm:$0xff] }
 0x124   : > { %v1559_v23 = vmax.f32 %v14708_v25, %v1346_v16  ;;  %v1348_v30 = vpop.f32.mrb[27].mxu1  ;;  %11942 = vmatmul.mubr.msk.f32.gmra.mrb[132].mxu1 %vm387_vm3, %v14862_v41  ;;  %3773 = vmatprep.mubr.f32.mxu0 %v18091_v0  ;;  %v4404_v16 = vld [vmem:[%s14088_s14 + $0x718] sm:$0x1] }
 0x125   : > { %v1560_v39 = vmax.f32 %v14714_v27, %v1348_v30  ;;  %4218 = vmatprep.mubr.f32.mxu1 %v18091_v0  ;;  %v14959_v25 = vpack.c.bf16 %v1636_v28, %v1635_v19  ;;  %v4370_v27 = vld [vmem:[%s14088_s14 + $0x248] sm:$0xff]  ;;  %v1661_v1 = vadd.f32 %v1657_v12, %v14854_v29  ;;  %v8391_v28 = vld [vmem:[%s18082_s4 + $0x10] sm:$0xff]  ;;  %v12812_v30 = vpack.c.bf16 %v4399_v62, %v4375_v46 }
 0x126   : > { %v14964_v7 = vpop.f32.mrb[28].mxu0  ;;  %v8390_v19 = vld [vmem:[%s18082_s4 + $0x8] sm:$0xff]  ;;  %v12791_v38 = vpack.c.bf16 %v4394_v59, %v4370_v27  ;;  %9474 = vperm.xlu0 %13888, %v8391_v28   ;;  %v12821_v14 = vpack.c.bf16 %v4404_v16, %v4380_v35  ;;  %v8393_v35 = vld [vmem:[%s18082_s4 + $0x20] sm:$0xff] }
 0x127   : > { %18198 = vst [vmem:[#allocation6_spill] sm:$0xff] %v14959_v25  ;;  %v1658_v51 = vmax.f32 %v1559_v23, %v1560_v39  ;;  %v1352_v54 = vpop.f32.mrb[28].mxu1  ;;  %11913 = vmatmul.mubr.msk.f32.gmra.mrb[134].mxu0 %vm387_vm3, %v14884_v63  ;;  %v14968_v56 = vpop.f32.mrb[29].mxu0  ;;  %9469 = vperm.xlu1 %13889, %v8390_v19  }
 0x128   : > { %18199 = vst [vmem:[#allocation7_spill] sm:$0xff] %v14968_v56  ;;  %v1571_v4 = vmax.f32 %v14725_v32, %v1352_v54  ;;  %v1354_v5 = vpop.f32.mrb[29].mxu1  ;;  %11943 = vmatmul.mubr.msk.f32.gmra.mrb[134].mxu1 %vm387_vm3, %v14884_v63  ;;  %3933 = vmatprep.mubr.f32.mxu0 %v18091_v0  ;;  %v12782_v32 = vpack.c.bf16 %v3081_v44, %v3057_v43 }
 0x129   : > { %v1572_v23 = vmax.f32 %v14734_v40, %v1354_v5  ;;  %4642 = vmatprep.mubr.f32.mxu1 %v18091_v0  ;;  %v1662_v12 = vadd.f32 %v1658_v51, %v14874_v49  ;;  %v1665_v40 = vmax.f32 %v1661_v1, 0.0 }
 0x12a   : > { %v14988_v39 = vpop.f32.mrb[30].mxu0  ;;  %9484 = vperm.xlu0 %13888, %v8393_v35  }
 0x12b   : > { %v1659_v54 = vmax.f32 %v1571_v4, %v1572_v23  ;;  %v1358_v25 = vpop.f32.mrb[30].mxu1  ;;  %11922 = vmatmul.mubr.msk.f32.vlgmr.msra.gmra.mrb[136].mxu0 %vm387_vm3, %v14819_v11  ;;  %v14992_v56 = vpop.f32.mrb[31].mxu0  ;;  %v1666_v5 = vmax.f32 %v1662_v12, 0.0 }
 0x12c   : > { %v1583_v43 = vmax.f32 %v14744_v47, %v1358_v25  ;;  %v1360_v44 = vpop.f32.mrb[31].mxu1  ;;  %11952 = vmatmul.mubr.msk.f32.vlgmr.msra.gmra.mrb[136].mxu1 %vm387_vm3, %v14819_v11  ;;  %3939 = vmatprep.mubr.f32.mxu0 %v18091_v0  ;;  %v8392_v25 = vld [vmem:[%s18082_s4 + $0x18] sm:$0xff] }
 0x12d   : > { %v1584_v46 = vmax.f32 %v14750_v50, %v1360_v44  ;;  %4648 = vmatprep.mubr.f32.mxu1 %v18091_v0  ;;  %12784 = vmatpush1.bf16.msk.msra.mxu0 %vm14090_vm2, %v12782_v32  ;;  %v15002_v62 = vpack.c.bf16 %v1666_v5, %v1665_v40  ;;  %v1663_v1 = vadd.f32 %v1659_v54, %v14898_v9  ;;  %v4369_v44 = vld [vmem:[%s14088_s14 + $0x240] sm:$0xff] }
 0x12e   : > { %12814 = vmatpush1.bf16.msk.msra.mxu1 %vm14090_vm2, %v12812_v30  ;;  %12793 = vmatprep.subr.msk.bf16.mxu0 %vm14090_vm2, %v12791_v38  ;;  %v1073_v47 = vpop.f32.mrb[32].mxu0  ;;  %v8395_v30 = vld [vmem:[%s18082_s4 + $0x30] sm:$0xff] }
 0x12f   : > { %18200 = vst [vmem:[#allocation8_spill] sm:$0xff] %v15002_v62  ;;  %v1660_v51 = vmax.f32 %v1583_v43, %v1584_v46  ;;  %v1518_v50 = vpop.f32.mrb[32].mxu1  ;;  %11923 = vmatmul.mubr.msk.f32.gmra.mrb[138].mxu0 %vm387_vm3, %v14842_v17  ;;  %12823 = vmatprep.subr.msk.bf16.mxu1 %vm14090_vm2, %v12821_v14  ;;  %v1541_v27 = vmax.f32 %v14688_v20, %v1073_v47  ;;  %v1075_v59 = vpop.f32.mrb[33].mxu0  ;;  %v1667_v38 = vmax.f32 %v1663_v1, 0.0  ;;  %v4393_v46 = vld [vmem:[%s14088_s14 + $0x6c0] sm:$0x1] }
 0x130   : > { %v1551_v4 = vmax.f32 %v14764_v52, %v1518_v50  ;;  %v1520_v16 = vpop.f32.mrb[33].mxu1  ;;  %11953 = vmatmul.mubr.msk.f32.gmra.mrb[138].mxu1 %vm387_vm3, %v14842_v17  ;;  %3945 = vmatprep.mubr.f32.mxu0 %v18091_v0  ;;  %v1542_v19 = vmax.f32 %v14696_v22, %v1075_v59  ;;  %v8394_v52 = vld [vmem:[%s18082_s4 + $0x28] sm:$0xff] }
 0x131   : > { %v1552_v14 = vmax.f32 %v14770_v53, %v1520_v16  ;;  %4654 = vmatprep.mubr.f32.mxu1 %v18091_v0  ;;  %9479 = vperm.xlu1 %13889, %v8392_v25   ;;  %v1664_v20 = vadd.f32 %v1660_v51, %v14921_v58  ;;  %v4379_v25 = vld [vmem:[%s14088_s14 + $0x290] sm:$0xff]  ;;  %v4398_v16 = vld [vmem:[%s14088_s14 + $0x6e8] sm:$0x1] }
 0x132   : > { %v1589_v28 = vmax.f32 %v1541_v27, %v1542_v19  ;;  %v1079_v23 = vpop.f32.mrb[34].mxu0  ;;  %v4403_v51 = vld [vmem:[%s14088_s14 + $0x710] sm:$0x1]  ;;  %9494 = vperm.xlu0 %13888, %v8395_v30  }
 0x133   : > { %v1689_v32 = vmax.f32 %v1551_v4, %v1552_v14  ;;  %v1524_v12 = vpop.f32.mrb[34].mxu1  ;;  %11924 = vmatmul.mubr.msk.f32.gmra.mrb[140].mxu0 %vm387_vm3, %v14862_v41  ;;  %v1553_v22 = vmax.f32 %v14706_v24, %v1079_v23  ;;  %v1081_v53 = vpop.f32.mrb[35].mxu0  ;;  %v1668_v54 = vmax.f32 %v1664_v20, 0.0  ;;  %v4374_v4 = vld [vmem:[%s14088_s14 + $0x268] sm:$0xff] }
 0x134   : > { %v1563_v40 = vmax.f32 %v14778_v55, %v1524_v12  ;;  %v1526_v5 = vpop.f32.mrb[35].mxu1  ;;  %11954 = vmatmul.mubr.msk.f32.gmra.mrb[140].mxu1 %vm387_vm3, %v14862_v41  ;;  %3951 = vmatprep.mubr.f32.mxu0 %v18091_v0  ;;  %v1554_v43 = vmax.f32 %v14712_v26, %v1081_v53  ;;  %v1613_v47 = vadd.f32 %v14854_v29, %v1589_v28  ;;  %v8396_v26 = vld [vmem:[%s18082_s4 + $0x38] sm:$0xff] }
 0x135   : > { %v1564_v24 = vmax.f32 %v14784_v57, %v1526_v5  ;;  %4660 = vmatprep.mubr.f32.mxu1 %v18091_v0  ;;  %9489 = vperm.xlu1 %13889, %v8394_v52   ;;  %v15047_v55 = vpack.c.bf16 %v1668_v54, %v1667_v38  ;;  %v1693_v19 = vadd.f32 %v1689_v32, %v14854_v29  ;;  %v4384_v52 = vld [vmem:[%s14088_s14 + $0x2b8] sm:$0xff] }
 0x136   : > { %v1590_v50 = vmax.f32 %v1553_v22, %v1554_v43  ;;  %v1085_v27 = vpop.f32.mrb[36].mxu0  ;;  %v4408_v12 = vld [vmem:[%s14088_s14 + $0x738] sm:$0x1]  ;;  %v12794_v22 = vpack.c.bf16 %v4393_v46, %v4369_v44  ;;  %v12824_v32 = vpack.c.bf16 %v4403_v51, %v4379_v25  ;;  %v1617_v53 = vmax.f32 %v1613_v47, 0.0 }
 0x137   : > { %18201 = vst [vmem:[#allocation9_spill] sm:$0xff] %v15047_v55  ;;  %v1690_v57 = vmax.f32 %v1563_v40, %v1564_v24  ;;  %v1530_v59 = vpop.f32.mrb[36].mxu1  ;;  %11925 = vmatmul.mubr.msk.f32.gmra.mrb[142].mxu0 %vm387_vm3, %v14884_v63  ;;  %v1565_v35 = vmax.f32 %v14723_v31, %v1085_v27  ;;  %v1087_v1 = vpop.f32.mrb[37].mxu0  ;;  %v12803_v54 = vpack.c.bf16 %v4398_v16, %v4374_v4  ;;  %v5708_v55 = vld [vmem:[%s14088_s14 + $0x338] sm:$0xff] }
 0x138   : > { %v1575_v14 = vmax.f32 %v14795_v61, %v1530_v59  ;;  %v1532_v20 = vpop.f32.mrb[37].mxu1  ;;  %11955 = vmatmul.mubr.msk.f32.gmra.mrb[142].mxu1 %vm387_vm3, %v14884_v63  ;;  %4111 = vmatprep.mubr.f32.mxu0 %v18091_v0  ;;  %v1614_v28 = vadd.f32 %v14874_v49, %v1590_v50  ;;  %v1566_v23 = vmax.f32 %v14730_v37, %v1087_v1  ;;  %v1697_v50 = vmax.f32 %v1693_v19, 0.0 }
 0x139   : > { %v1576_v31 = vmax.f32 %v14804_v3, %v1532_v20  ;;  %4820 = vmatprep.mubr.f32.mxu1 %v18091_v0  ;;  %9499 = vperm.xlu1 %13889, %v8396_v26   ;;  %v1694_v40 = vadd.f32 %v1690_v57, %v14874_v49  ;;  %v12833_v24 = vpack.c.bf16 %v4408_v12, %v4384_v52 }
 0x13a   : > { %v1618_v61 = vmax.f32 %v1614_v28, 0.0  ;;  %v1591_v30 = vmax.f32 %v1565_v35, %v1566_v23  ;;  %v1091_v38 = vpop.f32.mrb[38].mxu0 }
 0x13b   : > { %v1691_v5 = vmax.f32 %v1575_v14, %v1576_v31  ;;  %v1536_v43 = vpop.f32.mrb[38].mxu1  ;;  %11934 = vmatmul.mubr.msk.f32.vlgmr.msra.gmra.mrb[144].mxu0 %vm387_vm3, %v14819_v11  ;;  %v1577_v37 = vmax.f32 %v14742_v45, %v1091_v38  ;;  %v1093_v3 = vpop.f32.mrb[39].mxu0  ;;  %v1698_v51 = vmax.f32 %v1694_v40, 0.0  ;;  %v4373_v38 = vld [vmem:[%s14088_s14 + $0x260] sm:$0xff]  ;;  %v4407_v40 = vld [vmem:[%s14088_s14 + $0x730] sm:$0x1] }
 0x13c   : > { %v1587_v44 = vmax.f32 %v14814_v10, %v1536_v43  ;;  %v1538_v46 = vpop.f32.mrb[39].mxu1  ;;  %11964 = vmatmul.mubr.msk.f32.vlgmr.msra.gmra.mrb[144].mxu1 %vm387_vm3, %v14819_v11  ;;  %4117 = vmatprep.mubr.f32.mxu0 %v18091_v0  ;;  %v1615_v47 = vadd.f32 %v14898_v9, %v1591_v30  ;;  %v1578_v25 = vmax.f32 %v14748_v48, %v1093_v3  ;;  %v4378_v3 = vld [vmem:[%s14088_s14 + $0x288] sm:$0xff] }
 0x13d   : > { %v1588_v27 = vmax.f32 %v14825_v13, %v1538_v46  ;;  %4826 = vmatprep.mubr.f32.mxu1 %v18091_v0  ;;  %12796 = vmatpush1.bf16.msk.msra.mxu0 %vm14090_vm2, %v12794_v22  ;;  %v15084_v45 = vpack.c.bf16 %v1618_v61, %v1617_v53  ;;  %v15090_v57 = vpack.c.bf16 %v1698_v51, %v1697_v50  ;;  %v18206_v50 = vld [vmem:[#allocation3_spill] sm:$0xff]  ;;  %v4412_v51 = vld [vmem:[%s14088_s14 + $0x758] sm:$0x1] }
 0x13e   : > { %12826 = vmatpush1.bf16.msk.msra.mxu1 %vm14090_vm2, %v12824_v32  ;;  %v1592_v10 = vmax.f32 %v1577_v37, %v1578_v25  ;;  %12805 = vmatprep.subr.msk.bf16.mxu0 %vm14090_vm2, %v12803_v54  ;;  %v1251_v26 = vpop.f32.mrb[40].mxu0  ;;  %v1695_v1 = vadd.f32 %v1691_v5, %v14898_v9  ;;  %v1619_v16 = vmax.f32 %v1615_v47, 0.0  ;;  %v4397_v54 = vld [vmem:[%s14088_s14 + $0x6e0] sm:$0x1]  ;;  %v4388_v25 = vld [vmem:[%s14088_s14 + $0x2d8] sm:$0xff] }
 0x13f   : > { %18202 = vst [vmem:[#allocation10_spill] sm:$0xff] %v15084_v45  ;;  %18203 = vst [vmem:[#allocation11_spill] sm:$0xff] %v15090_v57  ;;  %v1692_v48 = vmax.f32 %v1587_v44, %v1588_v27  ;;  %v15092_v59 = vpop.f32.mrb[40].mxu1  ;;  %11935 = vmatmul.mubr.msk.f32.gmra.mrb[146].mxu0 %vm387_vm3, %v14842_v17  ;;  %12835 = vmatprep.subr.msk.bf16.mxu1 %vm14090_vm2, %v12833_v24  ;;  %v1545_v13 = vmax.f32 %v14837_v15, %v1251_v26  ;;  %v1253_v35 = vpop.f32.mrb[41].mxu0  ;;  %v4402_v24 = vld [vmem:[%s14088_s14 + $0x708] sm:$0x1] }
 0x140   : > { %v15100_v4 = vpop.f32.mrb[41].mxu1  ;;  %11965 = vmatmul.mubr.msk.f32.gmra.mrb[146].mxu1 %vm387_vm3, %v14842_v17  ;;  %4123 = vmatprep.mubr.f32.mxu0 %v18091_v0  ;;  %v1616_v19 = vadd.f32 %v14921_v58, %v1592_v10  ;;  %v1546_v14 = vmax.f32 %v14848_v18, %v1253_v35  ;;  %v1699_v22 = vmax.f32 %v1695_v1, 0.0  ;;  %v18207_v27 = vld [vmem:[#allocation4_spill] sm:$0xff]  ;;  %v12815_v1 = vpack.c.bf16 %v4402_v24, %v4378_v3 }
 0x141   : > { %4832 = vmatprep.mubr.f32.mxu1 %v18091_v0  ;;  %v1696_v20 = vadd.f32 %v1692_v48, %v14921_v58  ;;  %v4390_v57 = vld [vmem:[%s14088_s14 + $0x2e8] sm:$0xff] }
 0x142   : > { %v1620_v15 = vmax.f32 %v1616_v19, 0.0  ;;  %v1641_v28 = vmax.f32 %v1545_v13, %v1546_v14  ;;  %v1257_v23 = vpop.f32.mrb[42].mxu0  ;;  %v12806_v13 = vpack.c.bf16 %v4397_v54, %v4373_v38 }
 0x143   : > { %v15109_v52 = vpop.f32.mrb[42].mxu1  ;;  %11936 = vmatmul.mubr.msk.f32.gmra.mrb[148].mxu0 %vm387_vm3, %v14862_v41  ;;  %v1557_v12 = vmax.f32 %v14857_v33, %v1257_v23  ;;  %v1259_v31 = vpop.f32.mrb[43].mxu0  ;;  %v1700_v18 = vmax.f32 %v1696_v20, 0.0 }
 0x144   : > { %v15114_v32 = vpop.f32.mrb[43].mxu1  ;;  %11966 = vmatmul.mubr.msk.f32.gmra.mrb[148].mxu1 %vm387_vm3, %v14862_v41  ;;  %4129 = vmatprep.mubr.f32.mxu0 %v18091_v0  ;;  %v1558_v53 = vmax.f32 %v14866_v42, %v1259_v31  ;;  %v15120_v61 = vpack.c.bf16 %v1620_v15, %v1619_v16  ;;  %v1645_v30 = vadd.f32 %v1641_v28, %v14854_v29  ;;  %v4383_v42 = vld [vmem:[%s14088_s14 + $0x2b0] sm:$0xff] }
 0x145   : > { %4838 = vmatprep.mubr.f32.mxu1 %v18091_v0  ;;  %v15124_v33 = vpack.c.bf16 %v1700_v18, %v1699_v22  ;;  %v12836_v35 = vpack.c.bf16 %v4407_v40, %v4383_v42  ;;  %v12845_v15 = vpack.c.bf16 %v4412_v51, %v4388_v25 }
 0x146   : > { %18204 = vst [vmem:[#allocation12_spill] sm:$0xff] %v15120_v61  ;;  %v1642_v5 = vmax.f32 %v1557_v12, %v1558_v53  ;;  %v1263_v43 = vpop.f32.mrb[44].mxu0  ;;  %v1649_v48 = vmax.f32 %v1645_v30, 0.0 }
 0x147   : > { %18205 = vst [vmem:[#allocation13_spill] sm:$0xff] %v15124_v33  ;;  %v15129_v37 = vpop.f32.mrb[44].mxu1  ;;  %11937 = vmatmul.mubr.msk.f32.gmra.mrb[150].mxu0 %vm387_vm3, %v14884_v63  ;;  %v1569_v44 = vmax.f32 %v18206_v50, %v1263_v43  ;;  %v1265_v46 = vpop.f32.mrb[45].mxu0  ;;  %v5703_v33 = vld [vmem:[%s14088_s14 + $0x310] sm:$0xff] }
 0x148   : > { %v15137_v47 = vpop.f32.mrb[45].mxu1  ;;  %11967 = vmatmul.mubr.msk.f32.gmra.mrb[150].mxu1 %vm387_vm3, %v14884_v63  ;;  %4553 = vmatprep.mubr.f32.mxu0 %v18091_v0  ;;  %v1570_v10 = vmax.f32 %v18207_v27, %v1265_v46  ;;  %v1646_v26 = vadd.f32 %v1642_v5, %v14874_v49  ;;  %v4401_v27 = vld [vmem:[%s14088_s14 + $0x700] sm:$0x1] }
 0x149   : > { %4998 = vmatprep.mubr.f32.mxu1 %v18091_v0 }
 0x14a   : > { %v1643_v16 = vmax.f32 %v1569_v44, %v1570_v10  ;;  %v1269_v19 = vpop.f32.mrb[46].mxu0  ;;  %v1650_v14 = vmax.f32 %v1646_v26, 0.0  ;;  %v4411_v10 = vld [vmem:[%s14088_s14 + $0x750] sm:$0x1] }
 0x14b   : > { %v15147_v20 = vpop.f32.mrb[46].mxu1  ;;  %11946 = vmatmul.mubr.msk.f32.vlgmr.msra.gmra.mrb[152].mxu0 %vm387_vm3, %v14819_v11  ;;  %v1581_v28 = vmax.f32 %v14905_v34, %v1269_v19  ;;  %v1271_v23 = vpop.f32.mrb[47].mxu0 }
 0x14c   : > { %v15152_v12 = vpop.f32.mrb[47].mxu1  ;;  %11976 = vmatmul.mubr.msk.f32.vlgmr.msra.gmra.mrb[152].mxu1 %vm387_vm3, %v14819_v11  ;;  %4559 = vmatprep.mubr.f32.mxu0 %v18091_v0  ;;  %v1582_v31 = vmax.f32 %v14909_v60, %v1271_v23  ;;  %v15158_v22 = vpack.c.bf16 %v1650_v14, %v1649_v48  ;;  %v1647_v18 = vadd.f32 %v1643_v16, %v14898_v9  ;;  %v18210_v23 = vld [vmem:[#allocation7_spill] sm:$0xff] }
 0x14d   : > { %5004 = vmatprep.mubr.f32.mxu1 %v18091_v0  ;;  %12808 = vmatpush1.bf16.msk.msra.mxu0 %vm14090_vm2, %v12806_v13 }
 0x14e   : > { %18208 = vst [vmem:[#allocation3_spill] sm:$0xff] %v15158_v22  ;;  %12838 = vmatpush1.bf16.msk.msra.mxu1 %vm14090_vm2, %v12836_v35  ;;  %12817 = vmatprep.subr.msk.bf16.mxu0 %vm14090_vm2, %v12815_v1  ;;  %v1644_v34 = vmax.f32 %v1581_v28, %v1582_v31  ;;  %v1429_v53 = vpop.f32.mrb[48].mxu0  ;;  %v1651_v43 = vmax.f32 %v1647_v18, 0.0  ;;  %v4387_v35 = vld [vmem:[%s14088_s14 + $0x2d0] sm:$0xff]  ;;  %v4406_v1 = vld [vmem:[%s14088_s14 + $0x728] sm:$0x1] }
 0x14f   : > { %v15168_v30 = vpop.f32.mrb[48].mxu1  ;;  %11947 = vmatmul.mubr.msk.f32.gmra.mrb[154].mxu0 %vm387_vm3, %v14842_v17  ;;  %12847 = vmatprep.subr.msk.bf16.mxu1 %vm14090_vm2, %v12845_v15  ;;  %v1549_v60 = vmax.f32 %v14927_v8, %v1429_v53  ;;  %v1431_v38 = vpop.f32.mrb[49].mxu0  ;;  %v4392_v15 = vld [vmem:[%s14088_s14 + $0x2f8] sm:$0xff] }
 0x150   : > { %v15175_v54 = vpop.f32.mrb[49].mxu1  ;;  %11977 = vmatmul.mubr.msk.f32.gmra.mrb[154].mxu1 %vm387_vm3, %v14842_v17  ;;  %4565 = vmatprep.mubr.f32.mxu0 %v18091_v0  ;;  %v1550_v40 = vmax.f32 %v14933_v36, %v1431_v38  ;;  %v1648_v5 = vadd.f32 %v1644_v34, %v14921_v58  ;;  %v4416_v28 = vld [vmem:[%s14088_s14 + $0x778] sm:$0x1] }
 0x151   : > { %5010 = vmatprep.mubr.f32.mxu1 %v18091_v0 }
 0x152   : > { %v1673_v42 = vmax.f32 %v1549_v60, %v1550_v40  ;;  %v1435_v8 = vpop.f32.mrb[50].mxu0  ;;  %v1652_v3 = vmax.f32 %v1648_v5, 0.0  ;;  %v12848_v60 = vpack.c.bf16 %v4411_v10, %v4387_v35 }
 0x153   : > { %v15183_v24 = vpop.f32.mrb[50].mxu1  ;;  %11948 = vmatmul.mubr.msk.f32.gmra.mrb[156].mxu0 %vm387_vm3, %v14862_v41  ;;  %v1561_v50 = vmax.f32 %v14943_v6, %v1435_v8  ;;  %v1437_v36 = vpop.f32.mrb[51].mxu0  ;;  %v4377_v6 = vld [vmem:[%s14088_s14 + $0x280] sm:$0xff] }
 0x154   : > { %v15188_v44 = vpop.f32.mrb[51].mxu1  ;;  %11978 = vmatmul.mubr.msk.f32.gmra.mrb[156].mxu1 %vm387_vm3, %v14862_v41  ;;  %4571 = vmatprep.mubr.f32.mxu0 %v18091_v0  ;;  %v1562_v46 = vmax.f32 %v14947_v21, %v1437_v36  ;;  %v15194_v25 = vpack.c.bf16 %v1652_v3, %v1651_v43  ;;  %v1677_v51 = vadd.f32 %v1673_v42, %v14854_v29  ;;  %v4382_v21 = vld [vmem:[%s14088_s14 + $0x2a8] sm:$0xff] }
 0x155   : > { %5016 = vmatprep.mubr.f32.mxu1 %v18091_v0  ;;  %v12818_v53 = vpack.c.bf16 %v4401_v27, %v4377_v6  ;;  %v12857_v42 = vpack.c.bf16 %v4416_v28, %v4392_v15  ;;  %v4381_v28 = vld [vmem:[%s14088_s14 + $0x2a0] sm:$0xff] }
 0x156   : > { %18209 = vst [vmem:[#allocation4_spill] sm:$0xff] %v15194_v25  ;;  %v1674_v26 = vmax.f32 %v1561_v50, %v1562_v46  ;;  %v1441_v48 = vpop.f32.mrb[52].mxu0  ;;  %v1681_v34 = vmax.f32 %v1677_v51, 0.0 }
 0x157   : > { %v15201_v13 = vpop.f32.mrb[52].mxu1  ;;  %11949 = vmatmul.mubr.msk.f32.gmra.mrb[158].mxu0 %vm387_vm3, %v14884_v63  ;;  %v1573_v16 = vmax.f32 %v14964_v7, %v1441_v48  ;;  %v1443_v19 = vpop.f32.mrb[53].mxu0  ;;  %v12827_v7 = vpack.c.bf16 %v4406_v1, %v4382_v21 }
 0x158   : > { %v15209_v14 = vpop.f32.mrb[53].mxu1  ;;  %11979 = vmatmul.mubr.msk.f32.gmra.mrb[158].mxu1 %vm387_vm3, %v14884_v63  ;;  %4731 = vmatprep.mubr.f32.mxu0 %v18091_v0  ;;  %v1574_v31 = vmax.f32 %v18210_v23, %v1443_v19  ;;  %v1678_v18 = vadd.f32 %v1674_v26, %v14874_v49  ;;  %v4405_v23 = vld [vmem:[%s14088_s14 + $0x720] sm:$0x1] }
 0x159   : > { %5176 = vmatprep.mubr.f32.mxu1 %v18091_v0 }
 0x15a   : > { %v1675_v38 = vmax.f32 %v1573_v16, %v1574_v31  ;;  %v1447_v40 = vpop.f32.mrb[54].mxu0  ;;  %v1682_v5 = vmax.f32 %v1678_v18, 0.0  ;;  %v4415_v31 = vld [vmem:[%s14088_s14 + $0x770] sm:$0x1] }
 0x15b   : > { %v15219_v43 = vpop.f32.mrb[54].mxu1  ;;  %11958 = vmatmul.mubr.msk.f32.vlgmr.msra.gmra.mrb[160].mxu0 %vm387_vm3, %v14819_v11  ;;  %v1585_v8 = vmax.f32 %v14988_v39, %v1447_v40  ;;  %v1449_v3 = vpop.f32.mrb[55].mxu0 }
 0x15c   : > { %v15224_v50 = vpop.f32.mrb[55].mxu1  ;;  %11988 = vmatmul.mubr.msk.f32.vlgmr.msra.gmra.mrb[160].mxu1 %vm387_vm3, %v14819_v11  ;;  %4737 = vmatprep.mubr.f32.mxu0 %v18091_v0  ;;  %v1586_v36 = vmax.f32 %v14992_v56, %v1449_v3  ;;  %v15230_v46 = vpack.c.bf16 %v1682_v5, %v1681_v34  ;;  %v1679_v51 = vadd.f32 %v1675_v38, %v14898_v9  ;;  %v5704_v5 = vld [vmem:[%s14088_s14 + $0x318] sm:$0xff] }
 0x15d   : > { %5182 = vmatprep.mubr.f32.mxu1 %v18091_v0  ;;  %12820 = vmatpush1.bf16.msk.msra.mxu0 %vm14090_vm2, %v12818_v53  ;;  %v4391_v53 = vld [vmem:[%s14088_s14 + $0x2f0] sm:$0xff] }
 0x15e   : > { %18211 = vst [vmem:[#allocation7_spill] sm:$0xff] %v15230_v46  ;;  %12850 = vmatpush1.bf16.msk.msra.mxu1 %vm14090_vm2, %v12848_v60  ;;  %12829 = vmatprep.subr.msk.bf16.mxu0 %vm14090_vm2, %v12827_v7  ;;  %v1676_v39 = vmax.f32 %v1585_v8, %v1586_v36  ;;  %v15240_v6 = vpop.f32.mrb[56].mxu0  ;;  %v1683_v48 = vmax.f32 %v1679_v51, 0.0  ;;  %v4386_v60 = vld [vmem:[%s14088_s14 + $0x2c8] sm:$0xff]  ;;  %v12830_v8 = vpack.c.bf16 %v4405_v23, %v4381_v28  ;;  %v18216_v46 = vmov 0.0  }
 0x15f   : > { %v15242_v27 = vpop.f32.mrb[56].mxu1  ;;  %11959 = vmatmul.mubr.msk.f32.gmra.mrb[162].mxu0 %vm387_vm3, %v14842_v17  ;;  %12859 = vmatprep.subr.msk.bf16.mxu1 %vm14090_vm2, %v12857_v42  ;;  %v15248_v56 = vpop.f32.mrb[57].mxu0  ;;  %v4410_v7 = vld [vmem:[%s14088_s14 + $0x748] sm:$0x1]  ;;  %v5728_v42 = vld [vmem:[%s14088_s14 + $0x798] sm:$0x1]  ;;  %v12860_v3 = vpack.c.bf16 %v4415_v31, %v4391_v53 }
 0x160   : > { %v15250_v10 = vpop.f32.mrb[57].mxu1  ;;  %11989 = vmatmul.mubr.msk.f32.gmra.mrb[162].mxu1 %vm387_vm3, %v14842_v17  ;;  %4743 = vmatprep.mubr.f32.mxu0 %v18091_v0  ;;  %v1680_v26 = vadd.f32 %v1676_v39, %v14921_v58  ;;  %v12839_v36 = vpack.c.bf16 %v4410_v7, %v4386_v60 }
 0x161   : > { %5188 = vmatprep.mubr.f32.mxu1 %v18091_v0 }
 0x162   : > { %v15257_v35 = vpop.f32.mrb[58].mxu0  ;;  %v1684_v21 = vmax.f32 %v1680_v26, 0.0  ;;  %v12869_v26 = vpack.c.bf16 %v5728_v42, %v5704_v5 }
 0x163   : > { %v15259_v1 = vpop.f32.mrb[58].mxu1  ;;  %11960 = vmatmul.mubr.msk.f32.gmra.mrb[164].mxu0 %vm387_vm3, %v14862_v41  ;;  %v15263_v16 = vpop.f32.mrb[59].mxu0 }
 0x164   : > { %v15265_v19 = vpop.f32.mrb[59].mxu1  ;;  %11990 = vmatmul.mubr.msk.f32.gmra.mrb[164].mxu1 %vm387_vm3, %v14862_v41  ;;  %4749 = vmatprep.mubr.f32.mxu0 %v18091_v0  ;;  %v15270_v15 = vpack.c.bf16 %v1684_v21, %v1683_v48 }
 0x165   : > { %5194 = vmatprep.mubr.f32.mxu1 %v18091_v0 }
 0x166   : > { %18212 = vst [vmem:[#allocation14_spill] sm:$0xff] %v15270_v15  ;;  %v15276_v18 = vpop.f32.mrb[60].mxu0  ;;  %v4414_v15 = vld [vmem:[%s14088_s14 + $0x768] sm:$0x1] }
 0x167   : > { %v15278_v34 = vpop.f32.mrb[60].mxu1  ;;  %11961 = vmatmul.mubr.msk.f32.gmra.mrb[166].mxu0 %vm387_vm3, %v14884_v63  ;;  %v15285_v38 = vpop.f32.mrb[61].mxu0  ;;  %v12851_v22 = vpack.c.bf16 %v4414_v15, %v4390_v57 }
 0x168   : > { %v15287_v40 = vpop.f32.mrb[61].mxu1  ;;  %11991 = vmatmul.mubr.msk.f32.gmra.mrb[166].mxu1 %vm387_vm3, %v14884_v63  ;;  %4909 = vmatprep.mubr.f32.mxu0 %v18091_v0 }
 0x169   : > { %5354 = vmatprep.mubr.f32.mxu1 %v18091_v0 }
 0x16a   : > { %v15295_v51 = vpop.f32.mrb[62].mxu0 }
 0x16b   : > { %v15297_v39 = vpop.f32.mrb[62].mxu1  ;;  %11970 = vmatmul.mubr.msk.f32.vlgmr.msra.gmra.mrb[168].mxu0 %vm387_vm3, %v14819_v11  ;;  %v15301_v48 = vpop.f32.mrb[63].mxu0 }
 0x16c   : > { %v15303_v21 = vpop.f32.mrb[63].mxu1  ;;  %12000 = vmatmul.mubr.msk.f32.vlgmr.msra.gmra.mrb[168].mxu1 %vm387_vm3, %v14819_v11  ;;  %4915 = vmatprep.mubr.f32.mxu0 %v18091_v0 }
 0x16d   : > { %5360 = vmatprep.mubr.f32.mxu1 %v18091_v0  ;;  %12832 = vmatpush1.bf16.msk.msra.mxu0 %vm14090_vm2, %v12830_v8 }
 0x16e   : > { %12862 = vmatpush1.bf16.msk.msra.mxu1 %vm14090_vm2, %v12860_v3  ;;  %12841 = vmatprep.subr.msk.bf16.mxu0 %vm14090_vm2, %v12839_v36  ;;  %v15315_v28 = vpop.f32.mrb[64].mxu0 }
 0x16f   : > { %v2514_v23 = vpop.f32.mrb[64].mxu1  ;;  %11971 = vmatmul.mubr.msk.f32.gmra.mrb[170].mxu0 %vm387_vm3, %v14842_v17  ;;  %12871 = vmatprep.subr.msk.bf16.mxu1 %vm14090_vm2, %v12869_v26  ;;  %v15321_v31 = vpop.f32.mrb[65].mxu0  ;;  %v4385_v26 = vld [vmem:[%s14088_s14 + $0x2c0] sm:$0xff] }
 0x170   : > { %v2895_v53 = vmax.f32 %v15092_v59, %v2514_v23  ;;  %v2516_v60 = vpop.f32.mrb[65].mxu1  ;;  %12001 = vmatmul.mubr.msk.f32.gmra.mrb[170].mxu1 %vm387_vm3, %v14842_v17  ;;  %4921 = vmatprep.mubr.f32.mxu0 %v18091_v0  ;;  %v4409_v23 = vld [vmem:[%s14088_s14 + $0x740] sm:$0x1] }
 0x171   : > { %v2896_v7 = vmax.f32 %v15100_v4, %v2516_v60  ;;  %5366 = vmatprep.mubr.f32.mxu1 %v18091_v0  ;;  %v12842_v62 = vpack.c.bf16 %v4409_v23, %v4385_v26 }
 0x172   : > { %v15329_v5 = vpop.f32.mrb[66].mxu0 }
 0x173   : > { %v2957_v42 = vmax.f32 %v2895_v53, %v2896_v7  ;;  %v2520_v8 = vpop.f32.mrb[66].mxu1  ;;  %11972 = vmatmul.mubr.msk.f32.gmra.mrb[172].mxu0 %vm387_vm3, %v14862_v41  ;;  %v15333_v59 = vpop.f32.mrb[67].mxu0  ;;  %v5727_v53 = vld [vmem:[%s14088_s14 + $0x790] sm:$0x1] }
 0x174   : > { %18213 = vst [vmem:[#allocation15_spill] sm:$0xff] %v15333_v59  ;;  %v2907_v3 = vmax.f32 %v15109_v52, %v2520_v8  ;;  %v2522_v36 = vpop.f32.mrb[67].mxu1  ;;  %12002 = vmatmul.mubr.msk.f32.gmra.mrb[172].mxu1 %vm387_vm3, %v14862_v41  ;;  %4927 = vmatprep.mubr.f32.mxu0 %v18091_v0  ;;  %v12872_v25 = vpack.c.bf16 %v5727_v53, %v5703_v33 }
 0x175   : > { %v2908_v4 = vmax.f32 %v15114_v32, %v2522_v36  ;;  %5372 = vmatprep.mubr.f32.mxu1 %v18091_v0  ;;  %v2961_v52 = vadd.f32 %v2957_v42, %v14854_v29  ;;  %v5732_v42 = vld [vmem:[%s14088_s14 + $0x7b8] sm:$0x1] }
 0x176   : > { %v15344_v60 = vpop.f32.mrb[68].mxu0  ;;  %v12881_v45 = vpack.c.bf16 %v5732_v42, %v5708_v55  ;;  %v5731_v42 = vld [vmem:[%s14088_s14 + $0x7b0] sm:$0x1] }
 0x177   : > { %18214 = vst [vmem:[#allocation16_spill] sm:$0xff] %v15344_v60  ;;  %v2958_v7 = vmax.f32 %v2907_v3, %v2908_v4  ;;  %v2526_v8 = vpop.f32.mrb[68].mxu1  ;;  %11973 = vmatmul.mubr.msk.f32.gmra.mrb[174].mxu0 %vm387_vm3, %v14884_v63  ;;  %v15352_v32 = vpop.f32.mrb[69].mxu0  ;;  %v2965_v60 = vmax.f32 %v2961_v52, 0.0 }
 0x178   : > { %18215 = vst [vmem:[#allocation17_spill] sm:$0xff] %v15352_v32  ;;  %v2919_v36 = vmax.f32 %v15129_v37, %v2526_v8  ;;  %v2528_v0 = vpop.f32.mrb[69].mxu1  ;;  %12003 = vmatmul.mubr.msk.f32.gmra.mrb[174].mxu1 %vm387_vm3, %v14884_v63  ;;  %5087 = vmatprep.mubr.f32.mxu0 %v18216_v46 }
 0x179   : > { %v2962_v3 = vadd.f32 %v2958_v7, %v14874_v49  ;;  %v2920_v4 = vmax.f32 %v15137_v47, %v2528_v0  ;;  %5532 = vmatprep.mubr.f32.mxu1 %v18216_v46 }
 0x17a   : > { %v15363_v61 = vpop.f32.mrb[70].mxu0 }
 0x17b   : > { %v2959_v37 = vmax.f32 %v2919_v36, %v2920_v4  ;;  %v2532_v8 = vpop.f32.mrb[70].mxu1  ;;  %11982 = vmatmul.mubr.msk.f32.vlgmr.msra.gmra.mrb[176].mxu0 %vm387_vm3, %v14819_v11  ;;  %v15367_v32 = vpop.f32.mrb[71].mxu0  ;;  %v2966_v59 = vmax.f32 %v2962_v3, 0.0  ;;  %v4413_v36 = vld [vmem:[%s14088_s14 + $0x760] sm:$0x1] }
 0x17c   : > { %v2931_v7 = vmax.f32 %v15147_v20, %v2532_v8  ;;  %v2534_v0 = vpop.f32.mrb[71].mxu1  ;;  %12012 = vmatmul.mubr.msk.f32.vlgmr.msra.gmra.mrb[176].mxu1 %vm387_vm3, %v14819_v11  ;;  %5093 = vmatprep.mubr.f32.mxu0 %v18216_v46 }
 0x17d   : > { %v2932_v57 = vmax.f32 %v15152_v12, %v2534_v0  ;;  %5538 = vmatprep.mubr.f32.mxu1 %v18216_v46  ;;  %12844 = vmatpush1.bf16.msk.msra.mxu0 %vm14090_vm2, %v12842_v62  ;;  %v15377_v55 = vpack.c.bf16 %v2966_v59, %v2965_v60  ;;  %v2963_v11 = vadd.f32 %v2959_v37, %v14898_v9  ;;  %v15409_v60 = vld [vmem:[%s18079_s1 + $0x10] sm:$0xff]  ;;  %v5726_v0 = vld [vmem:[%s14088_s14 + $0x788] sm:$0x1] }
 0x17e   : > { %12874 = vmatpush1.bf16.msk.msra.mxu1 %vm14090_vm2, %v12872_v25  ;;  %12853 = vmatprep.subr.msk.bf16.mxu0 %vm14090_vm2, %v12851_v22  ;;  %v15383_v33 = vpop.f32.mrb[72].mxu0 }
 0x17f   : > { %18217 = vst [vmem:[#allocation18_spill] sm:$0xff] %v15377_v55  ;;  %v2960_v47 = vmax.f32 %v2931_v7, %v2932_v57  ;;  %v2692_v20 = vpop.f32.mrb[72].mxu1  ;;  %11983 = vmatmul.mubr.msk.f32.gmra.mrb[178].mxu0 %vm387_vm3, %v14842_v17  ;;  %12883 = vmatprep.subr.msk.bf16.mxu1 %vm14090_vm2, %v12881_v45  ;;  %v15390_v62 = vpop.f32.mrb[73].mxu0  ;;  %v5707_v7 = vld [vmem:[%s14088_s14 + $0x330] sm:$0xff] }
 0x180   : > { %v2899_v12 = vmax.f32 %v15168_v30, %v2692_v20  ;;  %v2694_v25 = vpop.f32.mrb[73].mxu1  ;;  %12013 = vmatmul.mubr.msk.f32.gmra.mrb[178].mxu1 %vm387_vm3, %v14842_v17  ;;  %5099 = vmatprep.mubr.f32.mxu0 %v18216_v46  ;;  %v2967_v17 = vmax.f32 %v2963_v11, 0.0  ;;  %v15435_v20 = vld [vmem:[%s18079_s1 + $0x18] sm:$0xff] }
 0x181   : > { %v2964_v22 = vadd.f32 %v2960_v47, %v14921_v58  ;;  %v2900_v15 = vmax.f32 %v15175_v54, %v2694_v25  ;;  %5544 = vmatprep.mubr.f32.mxu1 %v18216_v46 }
 0x182   : > { %v15399_v59 = vpop.f32.mrb[74].mxu0 }
 0x183   : > { %v2989_v45 = vmax.f32 %v2899_v12, %v2900_v15  ;;  %v2698_v26 = vpop.f32.mrb[74].mxu1  ;;  %11984 = vmatmul.mubr.msk.f32.gmra.mrb[180].mxu0 %vm387_vm3, %v14862_v41  ;;  %v15403_v30 = vpop.f32.mrb[75].mxu0  ;;  %v2968_v23 = vmax.f32 %v2964_v22, 0.0  ;;  %v5712_v12 = vld [vmem:[%s14088_s14 + $0x358] sm:$0xff]  ;;  %v12884_v15 = vpack.c.bf16 %v5731_v42, %v5707_v7 }
 0x184   : > { %v2911_v53 = vmax.f32 %v15183_v24, %v2698_v26  ;;  %v2700_v54 = vpop.f32.mrb[75].mxu1  ;;  %12014 = vmatmul.mubr.msk.f32.gmra.mrb[180].mxu1 %vm387_vm3, %v15409_v60  ;;  %5105 = vmatprep.mubr.f32.mxu0 %v18216_v46  ;;  %v4389_v24 = vld [vmem:[%s14088_s14 + $0x2e0] sm:$0xff] }
 0x185   : > { %v2912_v41 = vmax.f32 %v15188_v44, %v2700_v54  ;;  %5550 = vmatprep.mubr.f32.mxu1 %v18216_v46  ;;  %v15416_v52 = vpack.c.bf16 %v2968_v23, %v2967_v17  ;;  %v2993_v4 = vadd.f32 %v2989_v45, %v14854_v29  ;;  %v5702_v44 = vld [vmem:[%s14088_s14 + $0x308] sm:$0xff] }
 0x186   : > { %v15421_v3 = vpop.f32.mrb[76].mxu0  ;;  %v12863_v45 = vpack.c.bf16 %v5726_v0, %v5702_v44 }
 0x187   : > { %18218 = vst [vmem:[#allocation19_spill] sm:$0xff] %v15416_v52  ;;  %v2990_v37 = vmax.f32 %v2911_v53, %v2912_v41  ;;  %v2704_v8 = vpop.f32.mrb[76].mxu1  ;;  %11985 = vmatmul.mubr.msk.f32.gmra.mrb[182].mxu0 %vm387_vm3, %v14884_v63  ;;  %v15429_v57 = vpop.f32.mrb[77].mxu0  ;;  %v5736_v63 = vld [vmem:[%s14088_s14 + $0x7d8] sm:$0x1]  ;;  %v2997_v17 = vmax.f32 %v2993_v4, 0.0 }
 0x188   : > { %v2923_v11 = vmax.f32 %v15201_v13, %v2704_v8  ;;  %v2706_v47 = vpop.f32.mrb[77].mxu1  ;;  %12015 = vmatmul.mubr.msk.f32.gmra.mrb[182].mxu1 %vm387_vm3, %v15435_v20  ;;  %5265 = vmatprep.mubr.f32.mxu0 %v18216_v46  ;;  %v12854_v13 = vpack.c.bf16 %v4413_v36, %v4389_v24  ;;  %v15450_v41 = vld [vmem:[%s18079_s1] sm:$0xff] }
 0x189   : > { %v2994_v25 = vadd.f32 %v2990_v37, %v14874_v49  ;;  %v2924_v22 = vmax.f32 %v15209_v14, %v2706_v47  ;;  %5974 = vmatprep.mubr.f32.mxu1 %v18216_v46  ;;  %v12893_v14 = vpack.c.bf16 %v5736_v63, %v5712_v12 }
 0x18a   : > { %v15445_v26 = vpop.f32.mrb[78].mxu0 }
 0x18b   : > { %v2998_v23 = vmax.f32 %v2994_v25, 0.0  ;;  %v2991_v53 = vmax.f32 %v2923_v11, %v2924_v22  ;;  %v2710_v54 = vpop.f32.mrb[78].mxu1  ;;  %11994 = vmatmul.mubr.msk.f32.vlgmr.msra.gmra.mrb[184].mxu0 %vm387_vm3, %v15450_v41  ;;  %v15454_v37 = vpop.f32.mrb[79].mxu0 }
 0x18c   : > { %v2935_v24 = vmax.f32 %v15219_v43, %v2710_v54  ;;  %v2712_v36 = vpop.f32.mrb[79].mxu1  ;;  %12024 = vmatmul.mubr.msk.f32.vlgmr.msra.gmra.mrb[184].mxu1 %vm387_vm3, %v15450_v41  ;;  %5271 = vmatprep.mubr.f32.mxu0 %v18216_v46  ;;  %v5701_v54 = vld [vmem:[%s14088_s14 + $0x300] sm:$0xff] }
 0x18d   : > { %v15460_v42 = vpack.c.bf16 %v2998_v23, %v2997_v17  ;;  %v2936_v4 = vmax.f32 %v15224_v50, %v2712_v36  ;;  %5980 = vmatprep.mubr.f32.mxu1 %v18216_v46  ;;  %12856 = vmatpush1.bf16.msk.msra.mxu0 %vm14090_vm2, %v12854_v13  ;;  %v2995_v8 = vadd.f32 %v2991_v53, %v14898_v9  ;;  %v15474_v50 = vld [vmem:[%s18079_s1 + $0x8] sm:$0xff] }
 0x18e   : > { %12886 = vmatpush1.bf16.msk.msra.mxu1 %vm14090_vm2, %v12884_v15  ;;  %12865 = vmatprep.subr.msk.bf16.mxu0 %vm14090_vm2, %v12863_v45  ;;  %v2425_v43 = vpop.f32.mrb[80].mxu0 }
 0x18f   : > { %18219 = vst [vmem:[#allocation20_spill] sm:$0xff] %v15460_v42  ;;  %v2992_v7 = vmax.f32 %v2935_v24, %v2936_v4  ;;  %v2870_v44 = vpop.f32.mrb[80].mxu1  ;;  %11995 = vmatmul.mubr.msk.f32.gmra.mrb[186].mxu0 %vm387_vm3, %v15474_v50  ;;  %12895 = vmatprep.subr.msk.bf16.mxu1 %vm14090_vm2, %v12893_v14  ;;  %v2893_v0 = vmax.f32 %v15240_v6, %v2425_v43  ;;  %v2427_v11 = vpop.f32.mrb[81].mxu0  ;;  %v2999_v15 = vmax.f32 %v2995_v8, 0.0  ;;  %v5725_v14 = vld [vmem:[%s14088_s14 + $0x780] sm:$0x1] }
 0x190   : > { %v2903_v47 = vmax.f32 %v15242_v27, %v2870_v44  ;;  %v2872_v12 = vpop.f32.mrb[81].mxu1  ;;  %12025 = vmatmul.mubr.msk.f32.gmra.mrb[186].mxu1 %vm387_vm3, %v15474_v50  ;;  %5277 = vmatprep.mubr.f32.mxu0 %v18216_v46  ;;  %v2894_v63 = vmax.f32 %v15248_v56, %v2427_v11  ;;  %v5711_v4 = vld [vmem:[%s14088_s14 + $0x350] sm:$0xff]  ;;  %v5730_v8 = vld [vmem:[%s14088_s14 + $0x7a8] sm:$0x1] }
 0x191   : > { %v2996_v25 = vadd.f32 %v2992_v7, %v14921_v58  ;;  %v2904_v22 = vmax.f32 %v15250_v10, %v2872_v12  ;;  %5986 = vmatprep.mubr.f32.mxu1 %v18216_v46  ;;  %v5735_v43 = vld [vmem:[%s14088_s14 + $0x7d0] sm:$0x1]  ;;  %v5716_v12 = vld [vmem:[%s14088_s14 + $0x378] sm:$0xff] }
 0x192   : > { %v2941_v6 = vmax.f32 %v2893_v0, %v2894_v63  ;;  %v2431_v13 = vpop.f32.mrb[82].mxu0  ;;  %v5740_v63 = vld [vmem:[%s14088_s14 + $0x7f8] sm:$0x1] }
 0x193   : > { %v3000_v27 = vmax.f32 %v2996_v25, 0.0  ;;  %v3021_v45 = vmax.f32 %v2903_v47, %v2904_v22  ;;  %v2876_v17 = vpop.f32.mrb[82].mxu1  ;;  %11996 = vmatmul.mubr.msk.f32.gmra.mrb[188].mxu0 %vm387_vm3, %v15409_v60  ;;  %v2905_v56 = vmax.f32 %v15257_v35, %v2431_v13  ;;  %v2433_v23 = vpop.f32.mrb[83].mxu0  ;;  %v5706_v47 = vld [vmem:[%s14088_s14 + $0x328] sm:$0xff] }
 0x194   : > { %v2915_v10 = vmax.f32 %v15259_v1, %v2876_v17  ;;  %v2878_v53 = vpop.f32.mrb[83].mxu1  ;;  %12026 = vmatmul.mubr.msk.f32.gmra.mrb[188].mxu1 %vm387_vm3, %v15409_v60  ;;  %5283 = vmatprep.mubr.f32.mxu0 %v18216_v46  ;;  %v2906_v24 = vmax.f32 %v15263_v16, %v2433_v23  ;;  %v2945_v1 = vadd.f32 %v2941_v6, %v14854_v29 }
 0x195   : > { %v15499_v36 = vpack.c.bf16 %v3000_v27, %v2999_v15  ;;  %v2916_v35 = vmax.f32 %v15265_v19, %v2878_v53  ;;  %5992 = vmatprep.mubr.f32.mxu1 %v18216_v46  ;;  %v12866_v16 = vpack.c.bf16 %v5725_v14, %v5701_v54  ;;  %v3025_v22 = vadd.f32 %v3021_v45, %v14854_v29 }
 0x196   : > { %v2942_v7 = vmax.f32 %v2905_v56, %v2906_v24  ;;  %v2437_v44 = vpop.f32.mrb[84].mxu0  ;;  %v2949_v56 = vmax.f32 %v2945_v1, 0.0  ;;  %v12875_v23 = vpack.c.bf16 %v5730_v8, %v5706_v47 }
 0x197   : > { %18220 = vst [vmem:[#allocation21_spill] sm:$0xff] %v15499_v36  ;;  %v3022_v0 = vmax.f32 %v2915_v10, %v2916_v35  ;;  %v2882_v11 = vpop.f32.mrb[84].mxu1  ;;  %11997 = vmatmul.mubr.msk.f32.gmra.mrb[190].mxu0 %vm387_vm3, %v15435_v20  ;;  %v2917_v19 = vmax.f32 %v15276_v18, %v2437_v44  ;;  %v2439_v25 = vpop.f32.mrb[85].mxu0  ;;  %v12896_v18 = vpack.c.bf16 %v5735_v43, %v5711_v4  ;;  %v5746_v36 = vld [vmem:[%s14088_s14 + $0x828] sm:$0x1] }
 0x198   : > { %v2927_v6 = vmax.f32 %v15278_v34, %v2882_v11  ;;  %v2884_v13 = vpop.f32.mrb[85].mxu1  ;;  %12027 = vmatmul.mubr.msk.f32.gmra.mrb[190].mxu1 %vm387_vm3, %v15435_v20  ;;  %5443 = vmatprep.mubr.f32.mxu0 %v18216_v46  ;;  %v2946_v15 = vadd.f32 %v2942_v7, %v14874_v49  ;;  %v2918_v27 = vmax.f32 %v15285_v38, %v2439_v25 }
 0x199   : > { %v2928_v17 = vmax.f32 %v15287_v40, %v2884_v13  ;;  %6152 = vmatprep.mubr.f32.mxu1 %v18216_v46  ;;  %v3026_v45 = vadd.f32 %v3022_v0, %v14874_v49  ;;  %v12905_v34 = vpack.c.bf16 %v5740_v63, %v5716_v12  ;;  %v3029_v40 = vmax.f32 %v3025_v22, 0.0 }
 0x19a   : > { %v2943_v10 = vmax.f32 %v2917_v19, %v2918_v27  ;;  %v2443_v53 = vpop.f32.mrb[86].mxu0  ;;  %v2950_v54 = vmax.f32 %v2946_v15, 0.0 }
 0x19b   : > { %v3023_v14 = vmax.f32 %v2927_v6, %v2928_v17  ;;  %v2888_v24 = vpop.f32.mrb[86].mxu1  ;;  %12006 = vmatmul.mubr.msk.f32.vlgmr.msra.gmra.mrb[192].mxu0 %vm387_vm3, %v15450_v41  ;;  %v2929_v38 = vmax.f32 %v15295_v51, %v2443_v53  ;;  %v2445_v35 = vpop.f32.mrb[87].mxu0  ;;  %v3030_v7 = vmax.f32 %v3026_v45, 0.0 }
 0x19c   : > { %v2939_v4 = vmax.f32 %v15297_v39, %v2888_v24  ;;  %v2890_v1 = vpop.f32.mrb[87].mxu1  ;;  %12036 = vmatmul.mubr.msk.f32.vlgmr.msra.gmra.mrb[192].mxu1 %vm387_vm3, %v15450_v41  ;;  %5449 = vmatprep.mubr.f32.mxu0 %v18216_v46  ;;  %v2947_v43 = vadd.f32 %v2943_v10, %v14898_v9  ;;  %v2930_v8 = vmax.f32 %v15301_v48, %v2445_v35  ;;  %v5739_v24 = vld [vmem:[%s14088_s14 + $0x7f0] sm:$0x1] }
 0x19d   : > { %v2940_v44 = vmax.f32 %v15303_v21, %v2890_v1  ;;  %6158 = vmatprep.mubr.f32.mxu1 %v18216_v46  ;;  %12868 = vmatpush1.bf16.msk.msra.mxu0 %vm14090_vm2, %v12866_v16  ;;  %v15536_v51 = vpack.c.bf16 %v2950_v54, %v2949_v56  ;;  %v15538_v39 = vpack.c.bf16 %v3030_v7, %v3029_v40  ;;  %v5705_v54 = vld [vmem:[%s14088_s14 + $0x320] sm:$0xff]  ;;  %v5715_v7 = vld [vmem:[%s14088_s14 + $0x370] sm:$0xff]  ;;  %v5734_v1 = vld [vmem:[%s14088_s14 + $0x7c8] sm:$0x1] }
 0x19e   : > { %12898 = vmatpush1.bf16.msk.msra.mxu1 %vm14090_vm2, %v12896_v18  ;;  %12877 = vmatprep.subr.msk.bf16.mxu0 %vm14090_vm2, %v12875_v23  ;;  %v2944_v0 = vmax.f32 %v2929_v38, %v2930_v8  ;;  %v2603_v11 = vpop.f32.mrb[88].mxu0  ;;  %v3027_v12 = vadd.f32 %v3023_v14, %v14898_v9  ;;  %v2951_v22 = vmax.f32 %v2947_v43, 0.0  ;;  %v5729_v14 = vld [vmem:[%s14088_s14 + $0x7a0] sm:$0x1]  ;;  %v18226_v43 = vld [vmem:[#allocation16_spill] sm:$0xff] }
 0x19f   : > { %18221 = vst [vmem:[#allocation22_spill] sm:$0xff] %v15536_v51  ;;  %18222 = vst [vmem:[#allocation23_spill] sm:$0xff] %v15538_v39  ;;  %v3024_v48 = vmax.f32 %v2939_v4, %v2940_v44  ;;  %v15544_v47 = vpop.f32.mrb[88].mxu1  ;;  %12007 = vmatmul.mubr.msk.f32.gmra.mrb[194].mxu0 %vm387_vm3, %v15474_v50  ;;  %12907 = vmatprep.subr.msk.bf16.mxu1 %vm14090_vm2, %v12905_v34  ;;  %v2897_v21 = vmax.f32 %v15315_v28, %v2603_v11  ;;  %v2605_v16 = vpop.f32.mrb[89].mxu0  ;;  %v18223_v34 = vld [vmem:[#allocation15_spill] sm:$0xff]  ;;  %v5710_v4 = vld [vmem:[%s14088_s14 + $0x348] sm:$0xff] }
 0x1a0   : > { %v15552_v63 = vpop.f32.mrb[89].mxu1  ;;  %12037 = vmatmul.mubr.msk.f32.gmra.mrb[194].mxu1 %vm387_vm3, %v15474_v50  ;;  %5455 = vmatprep.mubr.f32.mxu0 %v18216_v46  ;;  %v2948_v19 = vadd.f32 %v2944_v0, %v14921_v58  ;;  %v2898_v25 = vmax.f32 %v15321_v31, %v2605_v16  ;;  %v3031_v31 = vmax.f32 %v3027_v12, 0.0  ;;  %v5720_v11 = vld [vmem:[%s14088_s14 + $0x398] sm:$0xff]  ;;  %v18227_v12 = vld [vmem:[#allocation17_spill] sm:$0xff] }
 0x1a1   : > { %6164 = vmatprep.mubr.f32.mxu1 %v18216_v46  ;;  %v3028_v6 = vadd.f32 %v3024_v48, %v14921_v58  ;;  %v5744_v48 = vld [vmem:[%s14088_s14 + $0x818] sm:$0x1] }
 0x1a2   : > { %v2973_v28 = vmax.f32 %v2897_v21, %v2898_v25  ;;  %v2609_v13 = vpop.f32.mrb[90].mxu0  ;;  %v2952_v15 = vmax.f32 %v2948_v19, 0.0  ;;  %v12878_v25 = vpack.c.bf16 %v5729_v14, %v5705_v54 }
 0x1a3   : > { %v15561_v27 = vpop.f32.mrb[90].mxu1  ;;  %12008 = vmatmul.mubr.msk.f32.gmra.mrb[196].mxu0 %vm387_vm3, %v15409_v60  ;;  %v2909_v17 = vmax.f32 %v15329_v5, %v2609_v13  ;;  %v2611_v18 = vpop.f32.mrb[91].mxu0  ;;  %v3032_v56 = vmax.f32 %v3028_v6, 0.0  ;;  %v12887_v6 = vpack.c.bf16 %v5734_v1, %v5710_v4 }
 0x1a4   : > { %v15566_v45 = vpop.f32.mrb[91].mxu1  ;;  %12038 = vmatmul.mubr.msk.f32.gmra.mrb[196].mxu1 %vm387_vm3, %v15409_v60  ;;  %5461 = vmatprep.mubr.f32.mxu0 %v18216_v46  ;;  %v2977_v23 = vadd.f32 %v2973_v28, %v14854_v29  ;;  %v2910_v10 = vmax.f32 %v18223_v34, %v2611_v18  ;;  %v15573_v53 = vpack.c.bf16 %v2952_v15, %v2951_v22 }
 0x1a5   : > { %6170 = vmatprep.mubr.f32.mxu1 %v18216_v46  ;;  %v15576_v5 = vpack.c.bf16 %v3032_v56, %v3031_v31  ;;  %v12908_v22 = vpack.c.bf16 %v5739_v24, %v5715_v7  ;;  %v12917_v18 = vpack.c.bf16 %v5744_v48, %v5720_v11 }
 0x1a6   : > { %18224 = vst [vmem:[#allocation15_spill] sm:$0xff] %v15573_v53  ;;  %v2974_v38 = vmax.f32 %v2909_v17, %v2910_v10  ;;  %v2615_v35 = vpop.f32.mrb[92].mxu0  ;;  %v2981_v21 = vmax.f32 %v2977_v23, 0.0 }
 0x1a7   : > { %18225 = vst [vmem:[#allocation24_spill] sm:$0xff] %v15576_v5  ;;  %v15581_v40 = vpop.f32.mrb[92].mxu1  ;;  %12009 = vmatmul.mubr.msk.f32.gmra.mrb[198].mxu0 %vm387_vm3, %v15435_v20  ;;  %v2921_v8 = vmax.f32 %v18226_v43, %v2615_v35  ;;  %v2617_v44 = vpop.f32.mrb[93].mxu0 }
 0x1a8   : > { %v15589_v0 = vpop.f32.mrb[93].mxu1  ;;  %12039 = vmatmul.mubr.msk.f32.gmra.mrb[198].mxu1 %vm387_vm3, %v15435_v20  ;;  %5885 = vmatprep.mubr.f32.mxu0 %v18216_v46  ;;  %v2978_v16 = vadd.f32 %v2974_v38, %v14874_v49  ;;  %v2922_v19 = vmax.f32 %v18227_v12, %v2617_v44 }
 0x1a9   : > { %6330 = vmatprep.mubr.f32.mxu1 %v18216_v46 }
 0x1aa   : > { %v2982_v28 = vmax.f32 %v2978_v16, 0.0  ;;  %v2975_v13 = vmax.f32 %v2921_v8, %v2922_v19  ;;  %v2621_v15 = vpop.f32.mrb[94].mxu0  ;;  %v5733_v19 = vld [vmem:[%s14088_s14 + $0x7c0] sm:$0x1] }
 0x1ab   : > { %v15599_v17 = vpop.f32.mrb[94].mxu1  ;;  %12018 = vmatmul.mubr.msk.f32.vlgmr.msra.gmra.mrb[200].mxu0 %vm387_vm3, %v15450_v41  ;;  %v2933_v31 = vmax.f32 %v15363_v61, %v2621_v15  ;;  %v2623_v56 = vpop.f32.mrb[95].mxu0  ;;  %v5714_v15 = vld [vmem:[%s14088_s14 + $0x368] sm:$0xff] }
 0x1ac   : > { %v15604_v23 = vpop.f32.mrb[95].mxu1  ;;  %12048 = vmatmul.mubr.msk.f32.vlgmr.msra.gmra.mrb[200].mxu1 %vm387_vm3, %v15450_v41  ;;  %5891 = vmatprep.mubr.f32.mxu0 %v18216_v46  ;;  %v15609_v34 = vpack.c.bf16 %v2982_v28, %v2981_v21  ;;  %v2979_v10 = vadd.f32 %v2975_v13, %v14898_v9  ;;  %v2934_v54 = vmax.f32 %v15367_v32, %v2623_v56  ;;  %v5719_v13 = vld [vmem:[%s14088_s14 + $0x390] sm:$0xff] }
 0x1ad   : > { %6336 = vmatprep.mubr.f32.mxu1 %v18216_v46  ;;  %12880 = vmatpush1.bf16.msk.msra.mxu0 %vm14090_vm2, %v12878_v25  ;;  %v5743_v25 = vld [vmem:[%s14088_s14 + $0x810] sm:$0x1] }
 0x1ae   : > { %18228 = vst [vmem:[#allocation16_spill] sm:$0xff] %v15609_v34  ;;  %12910 = vmatpush1.bf16.msk.msra.mxu1 %vm14090_vm2, %v12908_v22  ;;  %12889 = vmatprep.subr.msk.bf16.mxu0 %vm14090_vm2, %v12887_v6  ;;  %v2976_v61 = vmax.f32 %v2933_v31, %v2934_v54  ;;  %v2781_v14 = vpop.f32.mrb[96].mxu0  ;;  %v2983_v7 = vmax.f32 %v2979_v10, 0.0  ;;  %v5724_v10 = vld [vmem:[%s14088_s14 + $0x3b8] sm:$0xff] }
 0x1af   : > { %v15620_v24 = vpop.f32.mrb[96].mxu1  ;;  %12019 = vmatmul.mubr.msk.f32.gmra.mrb[202].mxu0 %vm387_vm3, %v15474_v50  ;;  %12919 = vmatprep.subr.msk.bf16.mxu1 %vm14090_vm2, %v12917_v18  ;;  %v2901_v32 = vmax.f32 %v15383_v33, %v2781_v14  ;;  %v2783_v38 = vpop.f32.mrb[97].mxu0  ;;  %v5738_v18 = vld [vmem:[%s14088_s14 + $0x7e8] sm:$0x1]  ;;  %v5748_v54 = vld [vmem:[%s14088_s14 + $0x838] sm:$0x1] }
 0x1b0   : > { %v15627_v35 = vpop.f32.mrb[97].mxu1  ;;  %12049 = vmatmul.mubr.msk.f32.gmra.mrb[202].mxu1 %vm387_vm3, %v15474_v50  ;;  %5897 = vmatprep.mubr.f32.mxu0 %v18216_v46  ;;  %v2980_v4 = vadd.f32 %v2976_v61, %v14921_v58  ;;  %v2902_v1 = vmax.f32 %v15390_v62, %v2783_v38 }
 0x1b1   : > { %6342 = vmatprep.mubr.f32.mxu1 %v18216_v46 }
 0x1b2   : > { %v2984_v43 = vmax.f32 %v2980_v4, 0.0  ;;  %v3005_v33 = vmax.f32 %v2901_v32, %v2902_v1  ;;  %v2787_v8 = vpop.f32.mrb[98].mxu0 }
 0x1b3   : > { %v15635_v44 = vpop.f32.mrb[98].mxu1  ;;  %12020 = vmatmul.mubr.msk.f32.gmra.mrb[204].mxu0 %vm387_vm3, %v15409_v60  ;;  %v2913_v11 = vmax.f32 %v15399_v59, %v2787_v8  ;;  %v2789_v48 = vpop.f32.mrb[99].mxu0  ;;  %v5709_v59 = vld [vmem:[%s14088_s14 + $0x340] sm:$0xff]  ;;  %v12929_v8 = vpack.c.bf16 %v5748_v54, %v5724_v10 }
 0x1b4   : > { %v15640_v21 = vpop.f32.mrb[99].mxu1  ;;  %12050 = vmatmul.mubr.msk.f32.gmra.mrb[204].mxu1 %vm387_vm3, %v15409_v60  ;;  %5903 = vmatprep.mubr.f32.mxu0 %v18216_v46  ;;  %v15645_v62 = vpack.c.bf16 %v2984_v43, %v2983_v7  ;;  %v3009_v16 = vadd.f32 %v3005_v33, %v14854_v29  ;;  %v2914_v12 = vmax.f32 %v15403_v30, %v2789_v48 }
 0x1b5   : > { %6348 = vmatprep.mubr.f32.mxu1 %v18216_v46  ;;  %v12890_v38 = vpack.c.bf16 %v5733_v19, %v5709_v59  ;;  %v12920_v7 = vpack.c.bf16 %v5743_v25, %v5719_v13 }
 0x1b6   : > { %18229 = vst [vmem:[#allocation17_spill] sm:$0xff] %v15645_v62  ;;  %v3006_v22 = vmax.f32 %v2913_v11, %v2914_v12  ;;  %v2793_v6 = vpop.f32.mrb[100].mxu0  ;;  %v3013_v32 = vmax.f32 %v3009_v16, 0.0  ;;  %v7040_v62 = vld [vmem:[%s14088_s14 + $0x3f8] sm:$0xff] }
 0x1b7   : > { %v15653_v28 = vpop.f32.mrb[100].mxu1  ;;  %12021 = vmatmul.mubr.msk.f32.gmra.mrb[206].mxu0 %vm387_vm3, %v15435_v20  ;;  %v2925_v31 = vmax.f32 %v15421_v3, %v2793_v6  ;;  %v2795_v30 = vpop.f32.mrb[101].mxu0  ;;  %v12899_v3 = vpack.c.bf16 %v5738_v18, %v5714_v15 }
 0x1b8   : > { %v15661_v56 = vpop.f32.mrb[101].mxu1  ;;  %12051 = vmatmul.mubr.msk.f32.gmra.mrb[206].mxu1 %vm387_vm3, %v15435_v20  ;;  %6063 = vmatprep.mubr.f32.mxu0 %v18216_v46  ;;  %v3010_v61 = vadd.f32 %v3006_v22, %v14874_v49  ;;  %v2926_v14 = vmax.f32 %v15429_v57, %v2795_v30 }
 0x1b9   : > { %6508 = vmatprep.mubr.f32.mxu1 %v18216_v46 }
 0x1ba   : > { %v3007_v4 = vmax.f32 %v2925_v31, %v2926_v14  ;;  %v2799_v1 = vpop.f32.mrb[102].mxu0  ;;  %v3014_v43 = vmax.f32 %v3010_v61, 0.0  ;;  %v5713_v61 = vld [vmem:[%s14088_s14 + $0x360] sm:$0xff] }
 0x1bb   : > { %v15671_v33 = vpop.f32.mrb[102].mxu1  ;;  %12030 = vmatmul.mubr.msk.f32.vlgmr.msra.gmra.mrb[208].mxu0 %vm387_vm3, %v15450_v41  ;;  %v2937_v11 = vmax.f32 %v15445_v26, %v2799_v1  ;;  %v2801_v48 = vpop.f32.mrb[103].mxu0  ;;  %v5737_v14 = vld [vmem:[%s14088_s14 + $0x7e0] sm:$0x1]  ;;  %v5742_v1 = vld [vmem:[%s14088_s14 + $0x808] sm:$0x1] }
 0x1bc   : > { %v15676_v12 = vpop.f32.mrb[103].mxu1  ;;  %12060 = vmatmul.mubr.msk.f32.vlgmr.msra.gmra.mrb[208].mxu1 %vm387_vm3, %v15450_v41  ;;  %6069 = vmatprep.mubr.f32.mxu0 %v18216_v46  ;;  %v3011_v57 = vadd.f32 %v3007_v4, %v14898_v9  ;;  %v2938_v16 = vmax.f32 %v15454_v37, %v2801_v48  ;;  %v15683_v59 = vpack.c.bf16 %v3014_v43, %v3013_v32  ;;  %v5747_v32 = vld [vmem:[%s14088_s14 + $0x830] sm:$0x1]  ;;  %v5718_v4 = vld [vmem:[%s14088_s14 + $0x388] sm:$0xff]  ;;  %v7060_v48 = vld [vmem:[%s14088_s14 + $0x858] sm:$0x1] }
 0x1bd   : > { %6514 = vmatprep.mubr.f32.mxu1 %v18216_v46  ;;  %12892 = vmatpush1.bf16.msk.msra.mxu0 %vm14090_vm2, %v12890_v38 }
 0x1be   : > { %18230 = vst [vmem:[#allocation25_spill] sm:$0xff] %v15683_v59  ;;  %12922 = vmatpush1.bf16.msk.msra.mxu1 %vm14090_vm2, %v12920_v7  ;;  %12901 = vmatprep.subr.msk.bf16.mxu0 %vm14090_vm2, %v12899_v3  ;;  %v3008_v26 = vmax.f32 %v2937_v11, %v2938_v16  ;;  %v15692_v19 = vpop.f32.mrb[104].mxu0  ;;  %v3015_v13 = vmax.f32 %v3011_v57, 0.0  ;;  %v5723_v3 = vld [vmem:[%s14088_s14 + $0x3b0] sm:$0xff]  ;;  %v7036_v11 = vld [vmem:[%s14088_s14 + $0x3d8] sm:$0xff]  ;;  %v12902_v57 = vpack.c.bf16 %v5737_v14, %v5713_v61  ;;  %v5722_v59 = vld [vmem:[%s14088_s14 + $0x3a8] sm:$0xff] }
 0x1bf   : > { %v15694_v25 = vpop.f32.mrb[104].mxu1  ;;  %12031 = vmatmul.mubr.msk.f32.gmra.mrb[210].mxu0 %vm387_vm3, %v15474_v50  ;;  %12931 = vmatprep.subr.msk.bf16.mxu1 %vm14090_vm2, %v12929_v8  ;;  %v15700_v37 = vpop.f32.mrb[105].mxu0  ;;  %v12932_v16 = vpack.c.bf16 %v5747_v32, %v5723_v3  ;;  %v12923_v52 = vpack.c.bf16 %v5746_v36, %v5722_v59 }
 0x1c0   : > { %v15702_v22 = vpop.f32.mrb[105].mxu1  ;;  %12061 = vmatmul.mubr.msk.f32.gmra.mrb[210].mxu1 %vm387_vm3, %v15474_v50  ;;  %6075 = vmatprep.mubr.f32.mxu0 %v18216_v46  ;;  %v3012_v6 = vadd.f32 %v3008_v26, %v14921_v58  ;;  %v12911_v26 = vpack.c.bf16 %v5742_v1, %v5718_v4 }
 0x1c1   : > { %6520 = vmatprep.mubr.f32.mxu1 %v18216_v46 }
 0x1c2   : > { %v15709_v15 = vpop.f32.mrb[106].mxu0  ;;  %v3016_v18 = vmax.f32 %v3012_v6, 0.0 }
 0x1c3   : > { %v15711_v31 = vpop.f32.mrb[106].mxu1  ;;  %12032 = vmatmul.mubr.msk.f32.gmra.mrb[212].mxu0 %vm387_vm3, %v15409_v60  ;;  %v15715_v30 = vpop.f32.mrb[107].mxu0 }
 0x1c4   : > { %v15717_v10 = vpop.f32.mrb[107].mxu1  ;;  %12062 = vmatmul.mubr.msk.f32.gmra.mrb[212].mxu1 %vm387_vm3, %v15409_v60  ;;  %6081 = vmatprep.mubr.f32.mxu0 %v18216_v46  ;;  %v15722_v54 = vpack.c.bf16 %v3016_v18, %v3015_v13  ;;  %v12941_v18 = vpack.c.bf16 %v7060_v48, %v7036_v11 }
 0x1c5   : > { %6526 = vmatprep.mubr.f32.mxu1 %v18216_v46 }
 0x1c6   : > { %18231 = vst [vmem:[#allocation26_spill] sm:$0xff] %v15722_v54  ;;  %v15728_v38 = vpop.f32.mrb[108].mxu0  ;;  %v7035_v54 = vld [vmem:[%s14088_s14 + $0x3d0] sm:$0xff] }
 0x1c7   : > { %v15730_v7 = vpop.f32.mrb[108].mxu1  ;;  %12033 = vmatmul.mubr.msk.f32.gmra.mrb[214].mxu0 %vm387_vm3, %v15435_v20  ;;  %v15737_v43 = vpop.f32.mrb[109].mxu0 }
 0x1c8   : > { %v15739_v8 = vpop.f32.mrb[109].mxu1  ;;  %12063 = vmatmul.mubr.msk.f32.gmra.mrb[214].mxu1 %vm387_vm3, %v15435_v20  ;;  %6241 = vmatprep.mubr.f32.mxu0 %v18216_v46 }
 0x1c9   : > { %6686 = vmatprep.mubr.f32.mxu1 %v18216_v46 }
 0x1ca   : > { %v15747_v6 = vpop.f32.mrb[110].mxu0 }
 0x1cb   : > { %v15749_v13 = vpop.f32.mrb[110].mxu1  ;;  %12042 = vmatmul.mubr.msk.f32.vlgmr.msra.gmra.mrb[216].mxu0 %vm387_vm3, %v15450_v41  ;;  %v15753_v5 = vpop.f32.mrb[111].mxu0 }
 0x1cc   : > { %v15755_v39 = vpop.f32.mrb[111].mxu1  ;;  %12072 = vmatmul.mubr.msk.f32.vlgmr.msra.gmra.mrb[216].mxu1 %vm387_vm3, %v15450_v41  ;;  %6247 = vmatprep.mubr.f32.mxu0 %v18216_v46 }
 0x1cd   : > { %6692 = vmatprep.mubr.f32.mxu1 %v18216_v46  ;;  %12904 = vmatpush1.bf16.msk.msra.mxu0 %vm14090_vm2, %v12902_v57 }
 0x1ce   : > { %12934 = vmatpush1.bf16.msk.msra.mxu1 %vm14090_vm2, %v12932_v16  ;;  %12913 = vmatprep.subr.msk.bf16.mxu0 %vm14090_vm2, %v12911_v26  ;;  %v15767_v61 = vpop.f32.mrb[112].mxu0 }
 0x1cf   : > { %v3846_v14 = vpop.f32.mrb[112].mxu1  ;;  %12043 = vmatmul.mubr.msk.f32.gmra.mrb[218].mxu0 %vm387_vm3, %v15474_v50  ;;  %12943 = vmatprep.subr.msk.bf16.mxu1 %vm14090_vm2, %v12941_v18  ;;  %v15773_v32 = vpop.f32.mrb[113].mxu0  ;;  %v5717_v18 = vld [vmem:[%s14088_s14 + $0x380] sm:$0xff] }
 0x1d0   : > { %v4227_v3 = vmax.f32 %v15544_v47, %v3846_v14  ;;  %v3848_v4 = vpop.f32.mrb[113].mxu1  ;;  %12073 = vmatmul.mubr.msk.f32.gmra.mrb[218].mxu1 %vm387_vm3, %v15474_v50  ;;  %6253 = vmatprep.mubr.f32.mxu0 %v18216_v46  ;;  %v5741_v14 = vld [vmem:[%s14088_s14 + $0x800] sm:$0x1] }
 0x1d1   : > { %v4228_v1 = vmax.f32 %v15552_v63, %v3848_v4  ;;  %6698 = vmatprep.mubr.f32.mxu1 %v18216_v46  ;;  %v12914_v34 = vpack.c.bf16 %v5741_v14, %v5717_v18 }
 0x1d2   : > { %v15781_v11 = vpop.f32.mrb[114].mxu0 }
 0x1d3   : > { %v4289_v48 = vmax.f32 %v4227_v3, %v4228_v1  ;;  %v3852_v57 = vpop.f32.mrb[114].mxu1  ;;  %12044 = vmatmul.mubr.msk.f32.gmra.mrb[220].mxu0 %vm387_vm3, %v15409_v60  ;;  %v15785_v47 = vpop.f32.mrb[115].mxu0  ;;  %v7059_v3 = vld [vmem:[%s14088_s14 + $0x850] sm:$0x1] }
 0x1d4   : > { %18232 = vst [vmem:[#allocation27_spill] sm:$0xff] %v15785_v47  ;;  %v4239_v16 = vmax.f32 %v15561_v27, %v3852_v57  ;;  %v3854_v26 = vpop.f32.mrb[115].mxu1  ;;  %12074 = vmatmul.mubr.msk.f32.gmra.mrb[220].mxu1 %vm387_vm3, %v15409_v60  ;;  %6259 = vmatprep.mubr.f32.mxu0 %v18216_v46  ;;  %v12944_v53 = vpack.c.bf16 %v7059_v3, %v7035_v54 }
 0x1d5   : > { %v4240_v63 = vmax.f32 %v15566_v45, %v3854_v26  ;;  %6704 = vmatprep.mubr.f32.mxu1 %v18216_v46  ;;  %v4293_v27 = vadd.f32 %v4289_v48, %v14854_v29  ;;  %v7064_v48 = vld [vmem:[%s14088_s14 + $0x878] sm:$0x1] }
 0x1d6   : > { %v15796_v4 = vpop.f32.mrb[116].mxu0 }
 0x1d7   : > { %18233 = vst [vmem:[#allocation28_spill] sm:$0xff] %v15796_v4  ;;  %v4290_v1 = vmax.f32 %v4239_v16, %v4240_v63  ;;  %v3858_v57 = vpop.f32.mrb[116].mxu1  ;;  %12045 = vmatmul.mubr.msk.f32.gmra.mrb[222].mxu0 %vm387_vm3, %v15435_v20  ;;  %v15804_v45 = vpop.f32.mrb[117].mxu0  ;;  %v12953_v4 = vpack.c.bf16 %v7064_v48, %v7040_v62 }
 0x1d8   : > { %18234 = vst [vmem:[#allocation29_spill] sm:$0xff] %v15804_v45  ;;  %v4251_v26 = vmax.f32 %v15581_v40, %v3858_v57  ;;  %v3860_v42 = vpop.f32.mrb[117].mxu1  ;;  %12075 = vmatmul.mubr.msk.f32.gmra.mrb[222].mxu1 %vm387_vm3, %v15435_v20  ;;  %6419 = vmatprep.mubr.f32.mxu0 %v18216_v46  ;;  %v4297_v40 = vmax.f32 %v4293_v27, 0.0 }
 0x1d9   : > { %v4294_v16 = vadd.f32 %v4290_v1, %v14874_v49  ;;  %v4252_v63 = vmax.f32 %v15589_v0, %v3860_v42  ;;  %6864 = vmatprep.mubr.f32.mxu1 %v18216_v46 }
 0x1da   : > { %v15815_v51 = vpop.f32.mrb[118].mxu0 }
 0x1db   : > { %v4298_v57 = vmax.f32 %v4294_v16, 0.0  ;;  %v4291_v55 = vmax.f32 %v4251_v26, %v4252_v63  ;;  %v3864_v45 = vpop.f32.mrb[118].mxu1  ;;  %12054 = vmatmul.mubr.msk.f32.vlgmr.msra.gmra.mrb[224].mxu0 %vm387_vm3, %v15450_v41  ;;  %v15819_v47 = vpop.f32.mrb[119].mxu0  ;;  %v5721_v16 = vld [vmem:[%s14088_s14 + $0x3a0] sm:$0xff] }
 0x1dc   : > { %v4263_v1 = vmax.f32 %v15599_v17, %v3864_v45  ;;  %v3866_v42 = vpop.f32.mrb[119].mxu1  ;;  %12084 = vmatmul.mubr.msk.f32.vlgmr.msra.gmra.mrb[224].mxu1 %vm387_vm3, %v15450_v41  ;;  %6425 = vmatprep.mubr.f32.mxu0 %v18216_v46  ;;  %v5745_v63 = vld [vmem:[%s14088_s14 + $0x820] sm:$0x1] }
 0x1dd   : > { %v15825_v36 = vpack.c.bf16 %v4298_v57, %v4297_v40  ;;  %v4264_v0 = vmax.f32 %v15604_v23, %v3866_v42  ;;  %6870 = vmatprep.mubr.f32.mxu1 %v18216_v46  ;;  %12916 = vmatpush1.bf16.msk.msra.mxu0 %vm14090_vm2, %v12914_v34  ;;  %v4295_v62 = vadd.f32 %v4291_v55, %v14898_v9  ;;  %v7063_v40 = vld [vmem:[%s14088_s14 + $0x870] sm:$0x1] }
 0x1de   : > { %12946 = vmatpush1.bf16.msk.msra.mxu1 %vm14090_vm2, %v12944_v53  ;;  %12925 = vmatprep.subr.msk.bf16.mxu0 %vm14090_vm2, %v12923_v52  ;;  %v15835_v17 = vpop.f32.mrb[120].mxu0 }
 0x1df   : > { %18235 = vst [vmem:[#allocation30_spill] sm:$0xff] %v15825_v36  ;;  %v4292_v59 = vmax.f32 %v4263_v1, %v4264_v0  ;;  %v4024_v54 = vpop.f32.mrb[120].mxu1  ;;  %12055 = vmatmul.mubr.msk.f32.gmra.mrb[226].mxu0 %vm387_vm3, %v15474_v50  ;;  %12955 = vmatprep.subr.msk.bf16.mxu1 %vm14090_vm2, %v12953_v4  ;;  %v15842_v23 = vpop.f32.mrb[121].mxu0  ;;  %v4299_v14 = vmax.f32 %v4295_v62, 0.0  ;;  %v7039_v0 = vld [vmem:[%s14088_s14 + $0x3f0] sm:$0xff]  ;;  %v7034_v62 = vld [vmem:[%s14088_s14 + $0x3c8] sm:$0xff] }
 0x1e0   : > { %v4231_v34 = vmax.f32 %v15620_v24, %v4024_v54  ;;  %v4026_v53 = vpop.f32.mrb[121].mxu1  ;;  %12085 = vmatmul.mubr.msk.f32.gmra.mrb[226].mxu1 %vm387_vm3, %v15474_v50  ;;  %6431 = vmatprep.mubr.f32.mxu0 %v18216_v46 }
 0x1e1   : > { %v4296_v55 = vadd.f32 %v4292_v59, %v14921_v58  ;;  %v4232_v52 = vmax.f32 %v15627_v35, %v4026_v53  ;;  %6876 = vmatprep.mubr.f32.mxu1 %v18216_v46  ;;  %v7058_v59 = vld [vmem:[%s14088_s14 + $0x848] sm:$0x1]  ;;  %v7044_v53 = vld [vmem:[%s14088_s14 + $0x418] sm:$0xff] }
 0x1e2   : > { %v15851_v18 = vpop.f32.mrb[122].mxu0 }
 0x1e3   : > { %v4300_v3 = vmax.f32 %v4296_v55, 0.0  ;;  %v4321_v24 = vmax.f32 %v4231_v34, %v4232_v52  ;;  %v4030_v4 = vpop.f32.mrb[122].mxu1  ;;  %12056 = vmatmul.mubr.msk.f32.gmra.mrb[228].mxu0 %vm387_vm3, %v15409_v60  ;;  %v15855_v27 = vpop.f32.mrb[123].mxu0  ;;  %v7068_v55 = vld [vmem:[%s14088_s14 + $0x898] sm:$0x1] }
 0x1e4   : > { %v4243_v45 = vmax.f32 %v15635_v44, %v4030_v4  ;;  %v4032_v35 = vpop.f32.mrb[123].mxu1  ;;  %12086 = vmatmul.mubr.msk.f32.gmra.mrb[228].mxu1 %vm387_vm3, %v15409_v60  ;;  %6437 = vmatprep.mubr.f32.mxu0 %v18216_v46  ;;  %v12935_v4 = vpack.c.bf16 %v7058_v59, %v7034_v62 }
 0x1e5   : > { %v15861_v26 = vpack.c.bf16 %v4300_v3, %v4299_v14  ;;  %v4244_v48 = vmax.f32 %v15640_v21, %v4032_v35  ;;  %6882 = vmatprep.mubr.f32.mxu1 %v18216_v46  ;;  %v4325_v57 = vadd.f32 %v4321_v24, %v14854_v29  ;;  %v12926_v3 = vpack.c.bf16 %v5745_v63, %v5721_v16 }
 0x1e6   : > { %v15868_v44 = vpop.f32.mrb[124].mxu0  ;;  %v12956_v24 = vpack.c.bf16 %v7063_v40, %v7039_v0 }
 0x1e7   : > { %18236 = vst [vmem:[#allocation31_spill] sm:$0xff] %v15861_v26  ;;  %v4322_v1 = vmax.f32 %v4243_v45, %v4244_v48  ;;  %v4036_v42 = vpop.f32.mrb[124].mxu1  ;;  %12057 = vmatmul.mubr.msk.f32.gmra.mrb[230].mxu0 %vm387_vm3, %v15435_v20  ;;  %v15876_v21 = vpop.f32.mrb[125].mxu0  ;;  %v12965_v26 = vpack.c.bf16 %v7068_v55, %v7044_v53 }
 0x1e8   : > { %v4255_v54 = vmax.f32 %v15653_v28, %v4036_v42  ;;  %v4038_v34 = vpop.f32.mrb[125].mxu1  ;;  %12087 = vmatmul.mubr.msk.f32.gmra.mrb[230].mxu1 %vm387_vm3, %v15435_v20  ;;  %6597 = vmatprep.mubr.f32.mxu0 %v18216_v46  ;;  %v4329_v28 = vmax.f32 %v4325_v57, 0.0 }
 0x1e9   : > { %v4326_v52 = vadd.f32 %v4322_v1, %v14874_v49  ;;  %v4256_v14 = vmax.f32 %v15661_v56, %v4038_v34  ;;  %7306 = vmatprep.mubr.f32.mxu1 %v18216_v46 }
 0x1ea   : > { %v15887_v45 = vpop.f32.mrb[126].mxu0 }
 0x1eb   : > { %v4330_v35 = vmax.f32 %v4326_v52, 0.0  ;;  %v4323_v48 = vmax.f32 %v4255_v54, %v4256_v14  ;;  %v4042_v42 = vpop.f32.mrb[126].mxu1  ;;  %12066 = vmatmul.mubr.msk.f32.vlgmr.msra.gmra.mrb[232].mxu0 %vm387_vm3, %v15450_v41  ;;  %v15891_v36 = vpop.f32.mrb[127].mxu0 }
 0x1ec   : > { %v4267_v1 = vmax.f32 %v15671_v33, %v4042_v42  ;;  %v4044_v56 = vpop.f32.mrb[127].mxu1  ;;  %12096 = vmatmul.mubr.msk.f32.vlgmr.msra.gmra.mrb[232].mxu1 %vm387_vm3, %v15450_v41  ;;  %6603 = vmatprep.mubr.f32.mxu0 %v18216_v46  ;;  %v7057_v42 = vld [vmem:[%s14088_s14 + $0x840] sm:$0x1] }
 0x1ed   : > { %v15897_v16 = vpack.c.bf16 %v4330_v35, %v4329_v28  ;;  %v4268_v63 = vmax.f32 %v15676_v12, %v4044_v56  ;;  %7312 = vmatprep.mubr.f32.mxu1 %v18216_v46  ;;  %12928 = vmatpush1.bf16.msk.msra.mxu0 %vm14090_vm2, %v12926_v3  ;;  %v4327_v40 = vadd.f32 %v4323_v48, %v14898_v9 }
 0x1ee   : > { %12958 = vmatpush1.bf16.msk.msra.mxu1 %vm14090_vm2, %v12956_v24  ;;  %12937 = vmatprep.subr.msk.bf16.mxu0 %vm14090_vm2, %v12935_v4  ;;  %v3757_v33 = vpop.f32.mrb[128].mxu0 }
 0x1ef   : > { %v4324_v57 = vmax.f32 %v4267_v1, %v4268_v63  ;;  %v4202_v0 = vpop.f32.mrb[128].mxu1  ;;  %12067 = vmatmul.mubr.msk.f32.gmra.mrb[234].mxu0 %vm387_vm3, %v15474_v50  ;;  %12967 = vmatprep.subr.msk.bf16.mxu1 %vm14090_vm2, %v12965_v26  ;;  %v4225_v12 = vmax.f32 %v15692_v19, %v3757_v33  ;;  %v3759_v62 = vpop.f32.mrb[129].mxu0  ;;  %v4331_v19 = vmax.f32 %v4327_v40, 0.0  ;;  %v7067_v1 = vld [vmem:[%s14088_s14 + $0x890] sm:$0x1] }
 0x1f0   : > { %v4235_v59 = vmax.f32 %v15694_v25, %v4202_v0  ;;  %v4204_v54 = vpop.f32.mrb[129].mxu1  ;;  %12097 = vmatmul.mubr.msk.f32.gmra.mrb[234].mxu1 %vm387_vm3, %v15474_v50  ;;  %6609 = vmatprep.mubr.f32.mxu0 %v18216_v46  ;;  %v4226_v34 = vmax.f32 %v15700_v37, %v3759_v62  ;;  %v7062_v0 = vld [vmem:[%s14088_s14 + $0x868] sm:$0x1] }
 0x1f1   : > { %v4328_v53 = vadd.f32 %v4324_v57, %v14921_v58  ;;  %v4236_v55 = vmax.f32 %v15702_v22, %v4204_v54  ;;  %7318 = vmatprep.mubr.f32.mxu1 %v18216_v46  ;;  %v7038_v57 = vld [vmem:[%s14088_s14 + $0x3e8] sm:$0xff]  ;;  %v7048_v54 = vld [vmem:[%s14088_s14 + $0x438] sm:$0xff] }
 0x1f2   : > { %v4273_v26 = vmax.f32 %v4225_v12, %v4226_v34  ;;  %v3763_v52 = vpop.f32.mrb[130].mxu0  ;;  %v7072_v34 = vld [vmem:[%s14088_s14 + $0x8b8] sm:$0x1] }
 0x1f3   : > { %v4332_v14 = vmax.f32 %v4328_v53, 0.0  ;;  %v4353_v25 = vmax.f32 %v4235_v59, %v4236_v55  ;;  %v4208_v3 = vpop.f32.mrb[130].mxu1  ;;  %12068 = vmatmul.mubr.msk.f32.gmra.mrb[236].mxu0 %vm387_vm3, %v15409_v60  ;;  %v4237_v37 = vmax.f32 %v15709_v15, %v3763_v52  ;;  %v3765_v24 = vpop.f32.mrb[131].mxu0 }
 0x1f4   : > { %v4247_v4 = vmax.f32 %v15711_v31, %v4208_v3  ;;  %v4210_v22 = vpop.f32.mrb[131].mxu1  ;;  %12098 = vmatmul.mubr.msk.f32.gmra.mrb[236].mxu1 %vm387_vm3, %v15409_v60  ;;  %6615 = vmatprep.mubr.f32.mxu0 %v18216_v46  ;;  %v4277_v28 = vadd.f32 %v4273_v26, %v14854_v29  ;;  %v4238_v35 = vmax.f32 %v15715_v30, %v3765_v24  ;;  %v7033_v31 = vld [vmem:[%s14088_s14 + $0x3c0] sm:$0xff]  ;;  %v7043_v30 = vld [vmem:[%s14088_s14 + $0x410] sm:$0xff] }
 0x1f5   : > { %v15930_v48 = vpack.c.bf16 %v4332_v14, %v4331_v19  ;;  %v4248_v15 = vmax.f32 %v15717_v10, %v4210_v22  ;;  %7324 = vmatprep.mubr.f32.mxu1 %v18216_v46  ;;  %v4357_v63 = vadd.f32 %v4353_v25, %v14854_v29  ;;  %v12968_v19 = vpack.c.bf16 %v7067_v1, %v7043_v30  ;;  %v15989_v30 = vld [vmem:[%s18079_s1 + $0x8] sm:$0xff] }
 0x1f6   : > { %v4274_v60 = vmax.f32 %v4237_v37, %v4238_v35  ;;  %v3769_v56 = vpop.f32.mrb[132].mxu0  ;;  %v4281_v53 = vmax.f32 %v4277_v28, 0.0  ;;  %v12947_v14 = vpack.c.bf16 %v7062_v0, %v7038_v57  ;;  %v12977_v22 = vpack.c.bf16 %v7072_v34, %v7048_v54 }
 0x1f7   : > { %v4354_v33 = vmax.f32 %v4247_v4, %v4248_v15  ;;  %v4214_v40 = vpop.f32.mrb[132].mxu1  ;;  %12069 = vmatmul.mubr.msk.f32.gmra.mrb[238].mxu0 %vm387_vm3, %v15435_v20  ;;  %v4249_v10 = vmax.f32 %v15728_v38, %v3769_v56  ;;  %v3771_v12 = vpop.f32.mrb[133].mxu0  ;;  %v4361_v35 = vmax.f32 %v4357_v63, 0.0 }
 0x1f8   : > { %v4259_v62 = vmax.f32 %v15730_v7, %v4214_v40  ;;  %v4216_v59 = vpop.f32.mrb[133].mxu1  ;;  %12099 = vmatmul.mubr.msk.f32.gmra.mrb[238].mxu1 %vm387_vm3, %v15435_v20  ;;  %6775 = vmatprep.mubr.f32.mxu0 %v18216_v46  ;;  %v4278_v55 = vadd.f32 %v4274_v60, %v14874_v49  ;;  %v4250_v26 = vmax.f32 %v15737_v43, %v3771_v12 }
 0x1f9   : > { %v4358_v52 = vadd.f32 %v4354_v33, %v14874_v49  ;;  %v4260_v38 = vmax.f32 %v15739_v8, %v4216_v59  ;;  %7484 = vmatprep.mubr.f32.mxu1 %v18216_v46  ;;  %v12938_v7 = vpack.c.bf16 %v7057_v42, %v7033_v31 }
 0x1fa   : > { %v4282_v25 = vmax.f32 %v4278_v55, 0.0  ;;  %v4275_v20 = vmax.f32 %v4249_v10, %v4250_v26  ;;  %v3775_v3 = vpop.f32.mrb[134].mxu0 }
 0x1fb   : > { %v4362_v37 = vmax.f32 %v4358_v52, 0.0  ;;  %v4355_v24 = vmax.f32 %v4259_v62, %v4260_v38  ;;  %v4220_v4 = vpop.f32.mrb[134].mxu1  ;;  %12078 = vmatmul.mubr.msk.f32.vlgmr.msra.gmra.mrb[240].mxu0 %vm387_vm3, %v15450_v41  ;;  %v4261_v43 = vmax.f32 %v15747_v6, %v3775_v3  ;;  %v3777_v28 = vpop.f32.mrb[135].mxu0  ;;  %v18239_v38 = vld [vmem:[#allocation27_spill] sm:$0xff] }
 0x1fc   : > { %v4271_v8 = vmax.f32 %v15749_v13, %v4220_v4  ;;  %v4222_v15 = vpop.f32.mrb[135].mxu1  ;;  %12108 = vmatmul.mubr.msk.f32.vlgmr.msra.gmra.mrb[240].mxu1 %vm387_vm3, %v15450_v41  ;;  %6781 = vmatprep.mubr.f32.mxu0 %v18216_v46  ;;  %v15962_v31 = vpack.c.bf16 %v4282_v25, %v4281_v53  ;;  %v4279_v6 = vadd.f32 %v4275_v20, %v14898_v9  ;;  %v7061_v25 = vld [vmem:[%s14088_s14 + $0x860] sm:$0x1]  ;;  %v7071_v20 = vld [vmem:[%s14088_s14 + $0x8b0] sm:$0x1]  ;;  %v16028_v4 = vld [vmem:[%s18079_s1 + $0x18] sm:$0xff] }
 0x1fd   : > { %v4272_v42 = vmax.f32 %v15755_v39, %v4222_v15  ;;  %7490 = vmatprep.mubr.f32.mxu1 %v18216_v46  ;;  %12940 = vmatpush1.bf16.msk.msra.mxu0 %vm14090_vm2, %v12938_v7  ;;  %v4262_v1 = vmax.f32 %v15753_v5, %v3777_v28  ;;  %v4359_v13 = vadd.f32 %v4355_v24, %v14898_v9  ;;  %v7066_v15 = vld [vmem:[%s14088_s14 + $0x888] sm:$0x1] }
 0x1fe   : > { %18237 = vst [vmem:[#allocation32_spill] sm:$0xff] %v15962_v31  ;;  %12970 = vmatpush1.bf16.msk.msra.mxu1 %vm14090_vm2, %v12968_v19  ;;  %12949 = vmatprep.subr.msk.bf16.mxu0 %vm14090_vm2, %v12947_v14  ;;  %v3935_v41 = vpop.f32.mrb[136].mxu0  ;;  %v15975_v60 = vpack.c.bf16 %v4362_v37, %v4361_v35  ;;  %v7037_v14 = vld [vmem:[%s14088_s14 + $0x3e0] sm:$0xff] }
 0x1ff   : > { %v4356_v39 = vmax.f32 %v4271_v8, %v4272_v42  ;;  %v15977_v56 = vpop.f32.mrb[136].mxu1  ;;  %12079 = vmatmul.mubr.msk.f32.gmra.mrb[242].mxu0 %vm387_vm3, %v15474_v50  ;;  %12979 = vmatprep.subr.msk.bf16.mxu1 %vm14090_vm2, %v12977_v22  ;;  %v4276_v5 = vmax.f32 %v4261_v43, %v4262_v1  ;;  %v4229_v63 = vmax.f32 %v15767_v61, %v3935_v41  ;;  %v3937_v33 = vpop.f32.mrb[137].mxu0  ;;  %v4283_v61 = vmax.f32 %v4279_v6, 0.0  ;;  %v7047_v22 = vld [vmem:[%s14088_s14 + $0x430] sm:$0xff]  ;;  %v18242_v43 = vld [vmem:[#allocation28_spill] sm:$0xff] }
 0x200   : > { %18238 = vst [vmem:[#allocation33_spill] sm:$0xff] %v15975_v60  ;;  %v15984_v40 = vpop.f32.mrb[137].mxu1  ;;  %12109 = vmatmul.mubr.msk.f32.gmra.mrb[242].mxu1 %vm387_vm3, %v15989_v30  ;;  %6787 = vmatprep.mubr.f32.mxu0 %v18216_v46  ;;  %v4230_v50 = vmax.f32 %v15773_v32, %v3937_v33  ;;  %v4363_v62 = vmax.f32 %v4359_v13, 0.0  ;;  %v16003_v32 = vld [vmem:[%s18079_s1 + $0x10] sm:$0xff]  ;;  %v7042_v8 = vld [vmem:[%s14088_s14 + $0x408] sm:$0xff]  ;;  %v12980_v33 = vpack.c.bf16 %v7071_v20, %v7047_v22 }
 0x201   : > { %v4360_v57 = vadd.f32 %v4356_v39, %v14921_v58  ;;  %7496 = vmatprep.mubr.f32.mxu1 %v18216_v46  ;;  %v4280_v0 = vadd.f32 %v4276_v5, %v14921_v58  ;;  %v18243_v13 = vld [vmem:[#allocation29_spill] sm:$0xff]  ;;  %v7052_v39 = vld [vmem:[%s14088_s14 + $0x458] sm:$0xff] }
 0x202   : > { %v4305_v10 = vmax.f32 %v4229_v63, %v4230_v50  ;;  %v3941_v12 = vpop.f32.mrb[138].mxu0  ;;  %v7076_v5 = vld [vmem:[%s14088_s14 + $0x8d8] sm:$0x1]  ;;  %v12950_v63 = vpack.c.bf16 %v7061_v25, %v7037_v14 }
 0x203   : > { %v4364_v59 = vmax.f32 %v4360_v57, 0.0  ;;  %v15998_v54 = vpop.f32.mrb[138].mxu1  ;;  %12080 = vmatmul.mubr.msk.f32.gmra.mrb[244].mxu0 %vm387_vm3, %v16003_v32  ;;  %v4284_v34 = vmax.f32 %v4280_v0, 0.0  ;;  %v4241_v53 = vmax.f32 %v15781_v11, %v3941_v12  ;;  %v3943_v55 = vpop.f32.mrb[139].mxu0  ;;  %v12959_v0 = vpack.c.bf16 %v7066_v15, %v7042_v8  ;;  %v16051_v12 = vld [vmem:[%s18079_s1] sm:$0xff] }
 0x204   : > { %v16008_v26 = vpop.f32.mrb[139].mxu1  ;;  %12110 = vmatmul.mubr.msk.f32.gmra.mrb[244].mxu1 %vm387_vm3, %v16003_v32  ;;  %6793 = vmatprep.mubr.f32.mxu0 %v18216_v46  ;;  %v4309_v52 = vadd.f32 %v4305_v10, %v14854_v29  ;;  %v4242_v7 = vmax.f32 %v18239_v38, %v3943_v55 }
 0x205   : > { %7502 = vmatprep.mubr.f32.mxu1 %v18216_v46  ;;  %v16016_v19 = vpack.c.bf16 %v4284_v34, %v4283_v61  ;;  %v16018_v11 = vpack.c.bf16 %v4364_v59, %v4363_v62  ;;  %v12989_v59 = vpack.c.bf16 %v7076_v5, %v7052_v39  ;;  %v7065_v39 = vld [vmem:[%s14088_s14 + $0x880] sm:$0x1] }
 0x206   : > { %v4306_v3 = vmax.f32 %v4241_v53, %v4242_v7  ;;  %v3947_v37 = vpop.f32.mrb[140].mxu0  ;;  %v4313_v6 = vmax.f32 %v4309_v52, 0.0 }
 0x207   : > { %18240 = vst [vmem:[#allocation27_spill] sm:$0xff] %v16016_v19  ;;  %18241 = vst [vmem:[#allocation34_spill] sm:$0xff] %v16018_v11  ;;  %v16023_v24 = vpop.f32.mrb[140].mxu1  ;;  %12081 = vmatmul.mubr.msk.f32.gmra.mrb[246].mxu0 %vm387_vm3, %v16028_v4  ;;  %v4253_v28 = vmax.f32 %v18242_v43, %v3947_v37  ;;  %v3949_v35 = vpop.f32.mrb[141].mxu0  ;;  %v7073_v11 = vld [vmem:[%s14088_s14 + $0x8c0] sm:$0x1] }
 0x208   : > { %v16036_v42 = vpop.f32.mrb[141].mxu1  ;;  %12111 = vmatmul.mubr.msk.f32.gmra.mrb[246].mxu1 %vm387_vm3, %v16028_v4  ;;  %7217 = vmatprep.mubr.f32.mxu0 %v18216_v46  ;;  %v4310_v1 = vadd.f32 %v4306_v3, %v14874_v49  ;;  %v4254_v41 = vmax.f32 %v18243_v13, %v3949_v35 }
 0x209   : > { %7662 = vmatprep.mubr.f32.mxu1 %v18216_v46 }
 0x20a   : > { %v4314_v50 = vmax.f32 %v4310_v1, 0.0  ;;  %v4307_v57 = vmax.f32 %v4253_v28, %v4254_v41  ;;  %v3953_v61 = vpop.f32.mrb[142].mxu0  ;;  %v7075_v41 = vld [vmem:[%s14088_s14 + $0x8d0] sm:$0x1] }
 0x20b   : > { %v16046_v10 = vpop.f32.mrb[142].mxu1  ;;  %12090 = vmatmul.mubr.msk.f32.vlgmr.msra.gmra.mrb[248].mxu0 %vm387_vm3, %v16051_v12  ;;  %v4265_v62 = vmax.f32 %v15815_v51, %v3953_v61  ;;  %v3955_v34 = vpop.f32.mrb[143].mxu0  ;;  %v7080_v61 = vld [vmem:[%s14088_s14 + $0x8f8] sm:$0x1] }
 0x20c   : > { %v16056_v53 = vpop.f32.mrb[143].mxu1  ;;  %12120 = vmatmul.mubr.msk.f32.vlgmr.msra.gmra.mrb[248].mxu1 %vm387_vm3, %v16051_v12  ;;  %7223 = vmatprep.mubr.f32.mxu0 %v18216_v46  ;;  %v16061_v55 = vpack.c.bf16 %v4314_v50, %v4313_v6  ;;  %v4311_v52 = vadd.f32 %v4307_v57, %v14898_v9  ;;  %v4266_v38 = vmax.f32 %v15819_v47, %v3955_v34  ;;  %v7041_v50 = vld [vmem:[%s14088_s14 + $0x400] sm:$0xff]  ;;  %v7056_v57 = vld [vmem:[%s14088_s14 + $0x478] sm:$0xff] }
 0x20d   : > { %7668 = vmatprep.mubr.f32.mxu1 %v18216_v46  ;;  %12952 = vmatpush1.bf16.msk.msra.mxu0 %vm14090_vm2, %v12950_v63 }
 0x20e   : > { %18244 = vst [vmem:[#allocation28_spill] sm:$0xff] %v16061_v55  ;;  %12982 = vmatpush1.bf16.msk.msra.mxu1 %vm14090_vm2, %v12980_v33  ;;  %v4308_v51 = vmax.f32 %v4265_v62, %v4266_v38  ;;  %12961 = vmatprep.subr.msk.bf16.mxu0 %vm14090_vm2, %v12959_v0  ;;  %v4113_v7 = vpop.f32.mrb[144].mxu0  ;;  %v4315_v3 = vmax.f32 %v4311_v52, 0.0  ;;  %v7046_v38 = vld [vmem:[%s14088_s14 + $0x428] sm:$0xff] }
 0x20f   : > { %v16072_v14 = vpop.f32.mrb[144].mxu1  ;;  %12091 = vmatmul.mubr.msk.f32.gmra.mrb[250].mxu0 %vm387_vm3, %v15989_v30  ;;  %12991 = vmatprep.subr.msk.bf16.mxu1 %vm14090_vm2, %v12989_v59  ;;  %v4233_v47 = vmax.f32 %v15835_v17, %v4113_v7  ;;  %v4115_v25 = vpop.f32.mrb[145].mxu0 }
 0x210   : > { %v16079_v20 = vpop.f32.mrb[145].mxu1  ;;  %12121 = vmatmul.mubr.msk.f32.gmra.mrb[250].mxu1 %vm387_vm3, %v15989_v30  ;;  %7229 = vmatprep.mubr.f32.mxu0 %v18216_v46  ;;  %v4312_v37 = vadd.f32 %v4308_v51, %v14921_v58  ;;  %v4234_v22 = vmax.f32 %v15842_v23, %v4115_v25  ;;  %v7070_v51 = vld [vmem:[%s14088_s14 + $0x8a8] sm:$0x1] }
 0x211   : > { %7674 = vmatprep.mubr.f32.mxu1 %v18216_v46 }
 0x212   : > { %v4316_v43 = vmax.f32 %v4312_v37, 0.0  ;;  %v4337_v17 = vmax.f32 %v4233_v47, %v4234_v22  ;;  %v4119_v28 = vpop.f32.mrb[146].mxu0  ;;  %v12962_v47 = vpack.c.bf16 %v7065_v39, %v7041_v50 }
 0x213   : > { %v16087_v35 = vpop.f32.mrb[146].mxu1  ;;  %12092 = vmatmul.mubr.msk.f32.gmra.mrb[252].mxu0 %vm387_vm3, %v16003_v32  ;;  %v4245_v8 = vmax.f32 %v15851_v18, %v4119_v28  ;;  %v4121_v15 = vpop.f32.mrb[147].mxu0  ;;  %v7051_v18 = vld [vmem:[%s14088_s14 + $0x450] sm:$0xff]  ;;  %v12971_v28 = vpack.c.bf16 %v7070_v51, %v7046_v38  ;;  %v7045_v51 = vld [vmem:[%s14088_s14 + $0x420] sm:$0xff] }
 0x214   : > { %v16092_v6 = vpop.f32.mrb[147].mxu1  ;;  %12122 = vmatmul.mubr.msk.f32.gmra.mrb[252].mxu1 %vm387_vm3, %v16003_v32  ;;  %7235 = vmatprep.mubr.f32.mxu0 %v18216_v46  ;;  %v16097_v23 = vpack.c.bf16 %v4316_v43, %v4315_v3  ;;  %v4341_v1 = vadd.f32 %v4337_v17, %v14854_v29  ;;  %v4246_v13 = vmax.f32 %v15855_v27, %v4121_v15 }
 0x215   : > { %7680 = vmatprep.mubr.f32.mxu1 %v18216_v46  ;;  %v12992_v7 = vpack.c.bf16 %v7075_v41, %v7051_v18 }
 0x216   : > { %18245 = vst [vmem:[#allocation29_spill] sm:$0xff] %v16097_v23  ;;  %v4338_v5 = vmax.f32 %v4245_v8, %v4246_v13  ;;  %v4125_v63 = vpop.f32.mrb[148].mxu0  ;;  %v4345_v59 = vmax.f32 %v4341_v1, 0.0 }
 0x217   : > { %v16105_v33 = vpop.f32.mrb[148].mxu1  ;;  %12093 = vmatmul.mubr.msk.f32.gmra.mrb[254].mxu0 %vm387_vm3, %v16028_v4  ;;  %v4257_v0 = vmax.f32 %v15868_v44, %v4125_v63  ;;  %v4127_v27 = vpop.f32.mrb[149].mxu0  ;;  %v13001_v44 = vpack.c.bf16 %v7080_v61, %v7056_v57 }
 0x218   : > { %v16113_v62 = vpop.f32.mrb[149].mxu1  ;;  %12123 = vmatmul.mubr.msk.f32.gmra.mrb[254].mxu1 %vm387_vm3, %v16028_v4  ;;  %7395 = vmatprep.mubr.f32.mxu0 %v18216_v46  ;;  %v4342_v34 = vadd.f32 %v4338_v5, %v14874_v49  ;;  %v4258_v52 = vmax.f32 %v15876_v21, %v4127_v27 }
 0x219   : > { %7840 = vmatprep.mubr.f32.mxu1 %v18216_v46 }
 0x21a   : > { %v4346_v25 = vmax.f32 %v4342_v34, 0.0  ;;  %v4339_v3 = vmax.f32 %v4257_v0, %v4258_v52  ;;  %v4131_v37 = vpop.f32.mrb[150].mxu0  ;;  %v7079_v34 = vld [vmem:[%s14088_s14 + $0x8f0] sm:$0x1] }
 0x21b   : > { %v16123_v22 = vpop.f32.mrb[150].mxu1  ;;  %12102 = vmatmul.mubr.msk.f32.vlgmr.msra.gmra.mrb[0].mxu0 %vm387_vm3, %v16051_v12  ;;  %v4269_v43 = vmax.f32 %v15887_v45, %v4131_v37  ;;  %v4133_v17 = vpop.f32.mrb[151].mxu0 }
 0x21c   : > { %v16128_v21 = vpop.f32.mrb[151].mxu1  ;;  %12132 = vmatmul.mubr.msk.f32.vlgmr.msra.gmra.mrb[0].mxu1 %vm387_vm3, %v16051_v12  ;;  %7401 = vmatprep.mubr.f32.mxu0 %v18216_v46  ;;  %v16133_v8 = vpack.c.bf16 %v4346_v25, %v4345_v59  ;;  %v4343_v15 = vadd.f32 %v4339_v3, %v14898_v9  ;;  %v4270_v1 = vmax.f32 %v15891_v36, %v4133_v17  ;;  %v7055_v59 = vld [vmem:[%s14088_s14 + $0x470] sm:$0xff]  ;;  %v7050_v25 = vld [vmem:[%s14088_s14 + $0x448] sm:$0xff] }
 0x21d   : > { %7846 = vmatprep.mubr.f32.mxu1 %v18216_v46  ;;  %12994 = vmatpush1.bf16.msk.msra.mxu1 %vm14090_vm2, %v12992_v7  ;;  %v7069_v7 = vld [vmem:[%s14088_s14 + $0x8a0] sm:$0x1]  ;;  %v7074_v3 = vld [vmem:[%s14088_s14 + $0x8c8] sm:$0x1]  ;;  %v13004_v37 = vpack.c.bf16 %v7079_v34, %v7055_v59 }
 0x21e   : > { %18246 = vst [vmem:[#allocation35_spill] sm:$0xff] %v16133_v8  ;;  %12964 = vmatpush1.bf16.msk.msra.mxu0 %vm14090_vm2, %v12962_v47  ;;  %13003 = vmatprep.subr.msk.bf16.mxu1 %vm14090_vm2, %v13001_v44  ;;  %v4340_v45 = vmax.f32 %v4269_v43, %v4270_v1  ;;  %v16144_v13 = vpop.f32.mrb[152].mxu0  ;;  %v4347_v39 = vmax.f32 %v4343_v15, 0.0  ;;  %v12974_v43 = vpack.c.bf16 %v7069_v7, %v7045_v51 }
 0x21f   : > { %v16146_v18 = vpop.f32.mrb[152].mxu1  ;;  %12103 = vmatmul.mubr.msk.f32.gmra.mrb[2].mxu0 %vm387_vm3, %v15989_v30  ;;  %v16150_v36 = vpop.f32.mrb[153].mxu0  ;;  %12973 = vmatprep.subr.msk.bf16.mxu0 %vm14090_vm2, %v12971_v28  ;;  %v12983_v1 = vpack.c.bf16 %v7074_v3, %v7050_v25 }
 0x220   : > { %v16154_v41 = vpop.f32.mrb[153].mxu1  ;;  %12133 = vmatmul.mubr.msk.f32.gmra.mrb[2].mxu1 %vm387_vm3, %v15989_v30  ;;  %7407 = vmatprep.mubr.f32.mxu0 %v18216_v46  ;;  %v4344_v5 = vadd.f32 %v4340_v45, %v14921_v58 }
 0x221   : > { %7852 = vmatprep.mubr.f32.mxu1 %v18216_v46 }
 0x222   : > { %v4348_v63 = vmax.f32 %v4344_v5, 0.0  ;;  %v16161_v50 = vpop.f32.mrb[154].mxu0 }
 0x223   : > { %v16163_v57 = vpop.f32.mrb[154].mxu1  ;;  %12104 = vmatmul.mubr.msk.f32.gmra.mrb[4].mxu0 %vm387_vm3, %v16003_v32  ;;  %v16167_v61 = vpop.f32.mrb[155].mxu0 }
 0x224   : > { %v16169_v0 = vpop.f32.mrb[155].mxu1  ;;  %12134 = vmatmul.mubr.msk.f32.gmra.mrb[4].mxu1 %vm387_vm3, %v16003_v32  ;;  %7413 = vmatprep.mubr.f32.mxu0 %v18216_v46  ;;  %v16174_v27 = vpack.c.bf16 %v4348_v63, %v4347_v39  ;;  %v18248_v39 = vld [vmem:[#allocation5_spill] sm:$0xff] }
 0x225   : > { %7858 = vmatprep.mubr.f32.mxu1 %v18216_v46 }
 0x226   : > { %18247 = vst [vmem:[#allocation36_spill] sm:$0xff] %v16174_v27  ;;  %v16179_v52 = vpop.f32.mrb[156].mxu0 }
 0x227   : > { %v16181_v38 = vpop.f32.mrb[156].mxu1  ;;  %12105 = vmatmul.mubr.msk.f32.gmra.mrb[6].mxu0 %vm387_vm3, %v16028_v4  ;;  %v16187_v47 = vpop.f32.mrb[157].mxu0 }
 0x228   : > { %v16189_v44 = vpop.f32.mrb[157].mxu1  ;;  %12135 = vmatmul.mubr.msk.f32.gmra.mrb[6].mxu1 %vm387_vm3, %v16028_v4  ;;  %7573 = vmatprep.mubr.f32.mxu0 %v18216_v46 }
 0x229   : > { %8018 = vmatprep.mubr.f32.mxu1 %v18216_v46 }
 0x22a   : > { %v16197_v17 = vpop.f32.mrb[158].mxu0 }
 0x22b   : > { %v16199_v28 = vpop.f32.mrb[158].mxu1  ;;  %12114 = vmatmul.mubr.msk.f32.vlgmr.msra.gmra.mrb[8].mxu0 %vm387_vm3, %v16051_v12  ;;  %v16203_v15 = vpop.f32.mrb[159].mxu0 }
 0x22c   : > { %v16205_v45 = vpop.f32.mrb[159].mxu1  ;;  %12144 = vmatmul.mubr.msk.f32.vlgmr.msra.gmra.mrb[8].mxu1 %vm387_vm3, %v16051_v12  ;;  %7579 = vmatprep.mubr.f32.mxu0 %v18216_v46 }
 0x22d   : > { %13006 = vmatpush1.bf16.msk.msra.mxu1 %vm14090_vm2, %v13004_v37  ;;  %8024 = vmatprep.mubr.f32.mxu1 %v18216_v46 }
 0x22e   : > { %13008 = vmatprep.subr.bf16.mxu1 %v18248_v39  ;;  %12976 = vmatpush1.bf16.msk.msra.mxu0 %vm14090_vm2, %v12974_v43  ;;  %v16216_v5 = vpop.f32.mrb[160].mxu0 }
 0x22f   : > { %v5178_v63 = vpop.f32.mrb[160].mxu1  ;;  %12115 = vmatmul.mubr.msk.f32.gmra.mrb[10].mxu0 %vm387_vm3, %v15989_v30  ;;  %v16220_v59 = vpop.f32.mrb[161].mxu0  ;;  %12985 = vmatprep.subr.msk.bf16.mxu0 %vm14090_vm2, %v12983_v1 }
 0x230   : > { %v5559_v34 = vmax.f32 %v15977_v56, %v5178_v63  ;;  %v5180_v51 = vpop.f32.mrb[161].mxu1  ;;  %12145 = vmatmul.mubr.msk.f32.gmra.mrb[10].mxu1 %vm387_vm3, %v15989_v30  ;;  %7585 = vmatprep.mubr.f32.mxu0 %v18216_v46 }
 0x231   : > { %v5560_v7 = vmax.f32 %v15984_v40, %v5180_v51  ;;  %8030 = vmatprep.mubr.f32.mxu1 %v18216_v46 }
 0x232   : > { %v16230_v25 = vpop.f32.mrb[162].mxu0 }
 0x233   : > { %v5621_v3 = vmax.f32 %v5559_v34, %v5560_v7  ;;  %v5184_v37 = vpop.f32.mrb[162].mxu1  ;;  %12116 = vmatmul.mubr.msk.f32.gmra.mrb[12].mxu0 %vm387_vm3, %v16003_v32  ;;  %v16234_v56 = vpop.f32.mrb[163].mxu0 }
 0x234   : > { %18249 = vst [vmem:[#allocation5_spill] sm:$0xff] %v16234_v56  ;;  %v5571_v43 = vmax.f32 %v15998_v54, %v5184_v37  ;;  %v5186_v1 = vpop.f32.mrb[163].mxu1  ;;  %12146 = vmatmul.mubr.msk.f32.gmra.mrb[12].mxu1 %vm387_vm3, %v16003_v32  ;;  %7591 = vmatprep.mubr.f32.mxu0 %v18216_v46  ;;  %v7049_v37 = vld [vmem:[%s14088_s14 + $0x440] sm:$0xff] }
 0x235   : > { %v5572_v40 = vmax.f32 %v16008_v26, %v5186_v1  ;;  %8036 = vmatprep.mubr.f32.mxu1 %v18216_v46  ;;  %v5625_v34 = vadd.f32 %v5621_v3, %v14854_v29  ;;  %v7054_v26 = vld [vmem:[%s14088_s14 + $0x468] sm:$0xff]  ;;  %v12986_v8 = vpack.c.bf16 %v7073_v11, %v7049_v37 }
 0x236   : > { %v16242_v63 = vpop.f32.mrb[164].mxu0  ;;  %v7078_v1 = vld [vmem:[%s14088_s14 + $0x8e8] sm:$0x1] }
 0x237   : > { %18250 = vst [vmem:[#allocation37_spill] sm:$0xff] %v16242_v63  ;;  %v5622_v51 = vmax.f32 %v5571_v43, %v5572_v40  ;;  %v5190_v7 = vpop.f32.mrb[164].mxu1  ;;  %12117 = vmatmul.mubr.msk.f32.gmra.mrb[14].mxu0 %vm387_vm3, %v16028_v4  ;;  %v16247_v54 = vpop.f32.mrb[165].mxu0  ;;  %v5629_v19 = vmax.f32 %v5625_v34, 0.0  ;;  %v12995_v63 = vpack.c.bf16 %v7078_v1, %v7054_v26  ;;  %v18254_v1 = vld [vmem:[#allocation12_spill] sm:$0xff] }
 0x238   : > { %18251 = vst [vmem:[#allocation38_spill] sm:$0xff] %v16247_v54  ;;  %v5583_v60 = vmax.f32 %v16023_v24, %v5190_v7  ;;  %v5192_v27 = vpop.f32.mrb[165].mxu1  ;;  %12147 = vmatmul.mubr.msk.f32.gmra.mrb[14].mxu1 %vm387_vm3, %v16028_v4  ;;  %7751 = vmatprep.mubr.f32.mxu0 %v18216_v46 }
 0x239   : > { %v5626_v3 = vadd.f32 %v5622_v51, %v14874_v49  ;;  %v5584_v43 = vmax.f32 %v16036_v42, %v5192_v27  ;;  %8196 = vmatprep.mubr.f32.mxu1 %v18216_v46  ;;  %v18253_v27 = vld [vmem:[#allocation6_spill] sm:$0xff] }
 0x23a   : > { %v16260_v40 = vpop.f32.mrb[166].mxu0 }
 0x23b   : > { %v5630_v31 = vmax.f32 %v5626_v3, 0.0  ;;  %v5623_v24 = vmax.f32 %v5583_v60, %v5584_v43  ;;  %v5196_v7 = vpop.f32.mrb[166].mxu1  ;;  %12126 = vmatmul.mubr.msk.f32.vlgmr.msra.gmra.mrb[16].mxu0 %vm387_vm3, %v16051_v12  ;;  %v16264_v54 = vpop.f32.mrb[167].mxu0  ;;  %v18252_v60 = vld [vmem:[#allocation10_spill] sm:$0xff]  ;;  %v18255_v3 = vld [vmem:[#allocation3_spill] sm:$0xff] }
 0x23c   : > { %v5595_v56 = vmax.f32 %v16046_v10, %v5196_v7  ;;  %v5198_v51 = vpop.f32.mrb[167].mxu1  ;;  %12156 = vmatmul.mubr.msk.f32.vlgmr.msra.gmra.mrb[16].mxu1 %vm387_vm3, %v16051_v12  ;;  %7757 = vmatprep.mubr.f32.mxu0 %v18216_v46 }
 0x23d   : > { %v16270_v42 = vpack.c.bf16 %v5630_v31, %v5629_v19  ;;  %v5596_v11 = vmax.f32 %v16056_v53, %v5198_v51  ;;  %13010 = vmatpush1.bf16.msra.mxu1 %v18252_v60  ;;  %8202 = vmatprep.mubr.f32.mxu1 %v18216_v46  ;;  %v5627_v10 = vadd.f32 %v5623_v24, %v14898_v9 }
 0x23e   : > { %13012 = vmatprep.subr.bf16.mxu1 %v18253_v27  ;;  %v16276_v34 = vpop.f32.mrb[168].mxu0  ;;  %12988 = vmatpush1.bf16.msk.msra.mxu0 %vm14090_vm2, %v12986_v8 }
 0x23f   : > { %v5624_v37 = vmax.f32 %v5595_v56, %v5596_v11  ;;  %v5356_v26 = vpop.f32.mrb[168].mxu1  ;;  %12127 = vmatmul.mubr.msk.f32.gmra.mrb[18].mxu0 %vm387_vm3, %v15989_v30  ;;  %v16283_v31 = vpop.f32.mrb[169].mxu0  ;;  %12997 = vmatprep.subr.msk.bf16.mxu0 %vm14090_vm2, %v12995_v63 }
 0x240   : > { %v5563_v19 = vmax.f32 %v16072_v14, %v5356_v26  ;;  %v5358_v53 = vpop.f32.mrb[169].mxu1  ;;  %12157 = vmatmul.mubr.msk.f32.gmra.mrb[18].mxu1 %vm387_vm3, %v15989_v30  ;;  %7763 = vmatprep.mubr.f32.mxu0 %v18216_v46  ;;  %v5631_v14 = vmax.f32 %v5627_v10, 0.0  ;;  %v7077_v26 = vld [vmem:[%s14088_s14 + $0x8e0] sm:$0x1] }
 0x241   : > { %v5628_v8 = vadd.f32 %v5624_v37, %v14921_v58  ;;  %v5564_v56 = vmax.f32 %v16079_v20, %v5358_v53  ;;  %13014 = vmatpush1.bf16.msra.mxu1 %v18254_v1  ;;  %8208 = vmatprep.mubr.f32.mxu1 %v18216_v46  ;;  %v7053_v37 = vld [vmem:[%s14088_s14 + $0x460] sm:$0xff] }
 0x242   : > { %13016 = vmatprep.subr.bf16.mxu1 %v18255_v3  ;;  %v16296_v63 = vpop.f32.mrb[170].mxu0 }
 0x243   : > { %v5632_v43 = vmax.f32 %v5628_v8, 0.0  ;;  %v5653_v24 = vmax.f32 %v5563_v19, %v5564_v56  ;;  %v5362_v7 = vpop.f32.mrb[170].mxu1  ;;  %12128 = vmatmul.mubr.msk.f32.gmra.mrb[20].mxu0 %vm387_vm3, %v16003_v32  ;;  %v16300_v51 = vpop.f32.mrb[171].mxu0  ;;  %v18257_v19 = vld [vmem:[#allocation4_spill] sm:$0xff] }
 0x244   : > { %v5575_v20 = vmax.f32 %v16087_v35, %v5362_v7  ;;  %v5364_v11 = vpop.f32.mrb[171].mxu1  ;;  %12158 = vmatmul.mubr.msk.f32.gmra.mrb[20].mxu1 %vm387_vm3, %v16003_v32  ;;  %7769 = vmatprep.mubr.f32.mxu0 %v18216_v46  ;;  %v16319_v35 = vld [vmem:[%s18081_s3 + $0x8] sm:$0xff] }
 0x245   : > { %v16306_v60 = vpack.c.bf16 %v5632_v43, %v5631_v14  ;;  %v5576_v10 = vmax.f32 %v16092_v6, %v5364_v11  ;;  %13018 = vmatpush1.bf16.msra.mxu1 %v18248_v39  ;;  %8214 = vmatprep.mubr.f32.mxu1 %v18216_v46  ;;  %v5657_v8 = vadd.f32 %v5653_v24, %v14854_v29 }
 0x246   : > { %13020 = vmatprep.subr.bf16.mxu1 %v18257_v19  ;;  %v16314_v53 = vpop.f32.mrb[172].mxu0  ;;  %v12998_v43 = vpack.c.bf16 %v7077_v26, %v7053_v37 }
 0x247   : > { %18256 = vst [vmem:[#allocation10_spill] sm:$0xff] %v16306_v60  ;;  %v5654_v56 = vmax.f32 %v5575_v20, %v5576_v10  ;;  %v5368_v1 = vpop.f32.mrb[172].mxu1  ;;  %12129 = vmatmul.mubr.msk.f32.gmra.mrb[22].mxu0 %vm387_vm3, %v16028_v4  ;;  %v16324_v6 = vpop.f32.mrb[173].mxu0  ;;  %v18258_v20 = vld [vmem:[#allocation8_spill] sm:$0xff] }
 0x248   : > { %v5587_v39 = vmax.f32 %v16105_v33, %v5368_v1  ;;  %v5370_v14 = vpop.f32.mrb[173].mxu1  ;;  %12159 = vmatmul.mubr.msk.f32.gmra.mrb[22].mxu1 %vm387_vm3, %v16028_v4  ;;  %7929 = vmatprep.mubr.f32.mxu0 %v18216_v46  ;;  %v5661_v33 = vmax.f32 %v5657_v8, 0.0 }
 0x249   : > { %v5658_v7 = vadd.f32 %v5654_v56, %v14874_v49  ;;  %v5588_v24 = vmax.f32 %v16113_v62, %v5370_v14  ;;  %13022 = vmatpush1.bf16.msra.mxu1 %v18253_v27  ;;  %8558 = vmatprep.mubr.f32.mxu1 %v16319_v35  ;;  %v18260_v56 = vld [vmem:[#allocation9_spill] sm:$0xff] }
 0x24a   : > { %13024 = vmatprep.subr.bf16.mxu1 %v18258_v20  ;;  %v16335_v11 = vpop.f32.mrb[174].mxu0 }
 0x24b   : > { %v5662_v10 = vmax.f32 %v5658_v7, 0.0  ;;  %v5655_v1 = vmax.f32 %v5587_v39, %v5588_v24  ;;  %v5374_v60 = vpop.f32.mrb[174].mxu1  ;;  %12138 = vmatmul.mubr.msk.f32.vlgmr.msra.gmra.mrb[24].mxu0 %vm387_vm3, %v16051_v12  ;;  %v16339_v37 = vpop.f32.mrb[175].mxu0 }
 0x24c   : > { %v5599_v26 = vmax.f32 %v16123_v22, %v5374_v60  ;;  %v5376_v62 = vpop.f32.mrb[175].mxu1  ;;  %13000 = vmatpush1.bf16.msk.msra.mxu0 %vm14090_vm2, %v12998_v43  ;;  %7935 = vmatprep.mubr.f32.mxu0 %v18216_v46 }
 0x24d   : > { %v16345_v27 = vpack.c.bf16 %v5662_v10, %v5661_v33  ;;  %v5600_v8 = vmax.f32 %v16128_v21, %v5376_v62  ;;  %13026 = vmatpush1.bf16.msra.mxu1 %v18255_v3  ;;  %13072 = vmatprep.subr.bf16.mxu0 %v15897_v16  ;;  %v5659_v14 = vadd.f32 %v5655_v1, %v14898_v9 }
 0x24e   : > { %13028 = vmatprep.subr.bf16.mxu1 %v18260_v56  ;;  %v5089_v39 = vpop.f32.mrb[176].mxu0 }
 0x24f   : > { %18259 = vst [vmem:[#allocation6_spill] sm:$0xff] %v16345_v27  ;;  %v5656_v22 = vmax.f32 %v5599_v26, %v5600_v8  ;;  %v5557_v60 = vmax.f32 %v16144_v13, %v5089_v39  ;;  %v5534_v2 = vpop.f32.mrb[176].mxu1  ;;  %v5091_v43 = vpop.f32.mrb[177].mxu0  ;;  %12139 = vmatmul.mubr.msk.f32.gmra.mrb[26].mxu0 %vm387_vm3, %v15989_v30  ;;  %v18261_v13 = vld [vmem:[#allocation18_spill] sm:$0xff]  ;;  %v5663_v62 = vmax.f32 %v5659_v14, 0.0 }
 0x250   : > { %v5567_v7 = vmax.f32 %v16146_v18, %v5534_v2  ;;  %v5558_v21 = vmax.f32 %v16150_v36, %v5091_v43  ;;  %v5536_v24 = vpop.f32.mrb[177].mxu1  ;;  %7941 = vmatprep.mubr.f32.mxu0 %v18216_v46 }
 0x251   : > { %v5660_v33 = vadd.f32 %v5656_v22, %v14921_v58  ;;  %v5568_v10 = vmax.f32 %v16154_v41, %v5536_v24  ;;  %13030 = vmatpush1.bf16.msra.mxu1 %v18257_v19  ;;  %v18264_v24 = vld [vmem:[#allocation19_spill] sm:$0xff] }
 0x252   : > { %v5605_v1 = vmax.f32 %v5557_v60, %v5558_v21  ;;  %13032 = vmatprep.subr.bf16.mxu1 %v18261_v13  ;;  %v5095_v26 = vpop.f32.mrb[178].mxu0  ;;  %v18263_v21 = vld [vmem:[#allocation22_spill] sm:$0xff] }
 0x253   : > { %v5664_v8 = vmax.f32 %v5660_v33, 0.0  ;;  %v5685_v39 = vmax.f32 %v5567_v7, %v5568_v10  ;;  %v5569_v18 = vmax.f32 %v16161_v50, %v5095_v26  ;;  %v5540_v2 = vpop.f32.mrb[178].mxu1  ;;  %v5097_v36 = vpop.f32.mrb[179].mxu0  ;;  %12140 = vmatmul.mubr.msk.f32.gmra.mrb[28].mxu0 %vm387_vm3, %v16003_v32 }
 0x254   : > { %v5579_v22 = vmax.f32 %v16163_v57, %v5540_v2  ;;  %v5570_v41 = vmax.f32 %v16167_v61, %v5097_v36  ;;  %v5542_v43 = vpop.f32.mrb[179].mxu1  ;;  %7947 = vmatprep.mubr.f32.mxu0 %v18216_v46  ;;  %v5609_v50 = vadd.f32 %v5605_v1, %v14854_v29  ;;  %v18265_v36 = vld [vmem:[#allocation15_spill] sm:$0xff] }
 0x255   : > { %v16368_v60 = vpack.c.bf16 %v5664_v8, %v5663_v62  ;;  %v5580_v14 = vmax.f32 %v16169_v0, %v5542_v43  ;;  %13034 = vmatpush1.bf16.msra.mxu1 %v18263_v21  ;;  %v5689_v10 = vadd.f32 %v5685_v39, %v14854_v29  ;;  %v18266_v43 = vld [vmem:[#allocation16_spill] sm:$0xff] }
 0x256   : > { %v5606_v7 = vmax.f32 %v5569_v18, %v5570_v41  ;;  %13036 = vmatprep.subr.bf16.mxu1 %v18264_v24  ;;  %v5101_v33 = vpop.f32.mrb[180].mxu0 }
 0x257   : > { %18262 = vst [vmem:[#allocation12_spill] sm:$0xff] %v16368_v60  ;;  %v5686_v57 = vmax.f32 %v5579_v22, %v5580_v14  ;;  %v5581_v61 = vmax.f32 %v16179_v52, %v5101_v33  ;;  %v5546_v26 = vpop.f32.mrb[180].mxu1  ;;  %v5103_v2 = vpop.f32.mrb[181].mxu0  ;;  %12141 = vmatmul.mubr.msk.f32.gmra.mrb[30].mxu0 %vm387_vm3, %v16028_v4  ;;  %v5613_v52 = vmax.f32 %v5609_v50, 0.0 }
 0x258   : > { %v5610_v0 = vadd.f32 %v5606_v7, %v14874_v49  ;;  %v5591_v62 = vmax.f32 %v16181_v38, %v5546_v26  ;;  %v5582_v1 = vmax.f32 %v16187_v47, %v5103_v2  ;;  %v5548_v8 = vpop.f32.mrb[181].mxu1  ;;  %8107 = vmatprep.mubr.f32.mxu0 %v18216_v46  ;;  %v5693_v7 = vmax.f32 %v5689_v10, 0.0 }
 0x259   : > { %v5690_v18 = vadd.f32 %v5686_v57, %v14874_v49  ;;  %v5592_v39 = vmax.f32 %v16189_v44, %v5548_v8  ;;  %13038 = vmatpush1.bf16.msra.mxu1 %v18265_v36 }
 0x25a   : > { %v5614_v22 = vmax.f32 %v5610_v0, 0.0  ;;  %v5607_v41 = vmax.f32 %v5581_v61, %v5582_v1  ;;  %13040 = vmatprep.subr.bf16.mxu1 %v18266_v43  ;;  %v5107_v14 = vpop.f32.mrb[182].mxu0 }
 0x25b   : > { %v5694_v33 = vmax.f32 %v5690_v18, 0.0  ;;  %v5687_v38 = vmax.f32 %v5591_v62, %v5592_v39  ;;  %v5593_v47 = vmax.f32 %v16197_v17, %v5107_v14  ;;  %v5552_v26 = vpop.f32.mrb[182].mxu1  ;;  %v5109_v2 = vpop.f32.mrb[183].mxu0  ;;  %12150 = vmatmul.mubr.msk.f32.vlgmr.msra.gmra.mrb[32].mxu0 %vm387_vm3, %v16051_v12  ;;  %v18269_v62 = vld [vmem:[#allocation17_spill] sm:$0xff] }
 0x25c   : > { %v16389_v57 = vpack.c.bf16 %v5614_v22, %v5613_v52  ;;  %v5603_v44 = vmax.f32 %v16199_v28, %v5552_v26  ;;  %v5594_v50 = vmax.f32 %v16203_v15, %v5109_v2  ;;  %v5554_v61 = vpop.f32.mrb[183].mxu1  ;;  %13074 = vmatpush1.bf16.msra.mxu0 %v16061_v55  ;;  %v5611_v0 = vadd.f32 %v5607_v41, %v14898_v9 }
 0x25d   : > { %v5604_v10 = vmax.f32 %v16205_v45, %v5554_v61  ;;  %13042 = vmatpush1.bf16.msra.mxu1 %v18261_v13  ;;  %13076 = vmatprep.subr.bf16.mxu0 %v15930_v48  ;;  %v16397_v17 = vpack.c.bf16 %v5694_v33, %v5693_v7  ;;  %v5691_v28 = vadd.f32 %v5687_v38, %v14898_v9 }
 0x25e   : > { %18267 = vst [vmem:[#allocation3_spill] sm:$0xff] %v16389_v57  ;;  %v5608_v12 = vmax.f32 %v5593_v47, %v5594_v50  ;;  %13044 = vmatprep.subr.bf16.mxu1 %v18269_v62  ;;  %v5267_v1 = vpop.f32.mrb[184].mxu0  ;;  %8113 = vmatprep.mubr.f32.mxu0 %v18216_v46  ;;  %v18272_v50 = vld [vmem:[#allocation5_spill] sm:$0xff] }
 0x25f   : > { %18268 = vst [vmem:[#allocation4_spill] sm:$0xff] %v16397_v17  ;;  %v5688_v15 = vmax.f32 %v5603_v44, %v5604_v10  ;;  %v5561_v8 = vmax.f32 %v16216_v5, %v5267_v1  ;;  %v16404_v45 = vpop.f32.mrb[184].mxu1  ;;  %v5269_v18 = vpop.f32.mrb[185].mxu0  ;;  %12151 = vmatmul.mubr.msk.f32.gmra.mrb[34].mxu0 %vm387_vm3, %v15989_v30  ;;  %v5615_v5 = vmax.f32 %v5611_v0, 0.0  ;;  %v18270_v30 = vld [vmem:[#allocation20_spill] sm:$0xff]  ;;  %v5695_v38 = vmax.f32 %v5691_v28, 0.0 }
 0x260   : > { %v5612_v39 = vadd.f32 %v5608_v12, %v14921_v58  ;;  %v5562_v52 = vmax.f32 %v16220_v59, %v5269_v18  ;;  %v16410_v22 = vpop.f32.mrb[185].mxu1  ;;  %13078 = vmatpush1.bf16.msra.mxu0 %v16097_v23  ;;  %8119 = vmatprep.mubr.f32.mxu0 %v18216_v46  ;;  %v18274_v1 = vld [vmem:[#allocation21_spill] sm:$0xff] }
 0x261   : > { %v5692_v41 = vadd.f32 %v5688_v15, %v14921_v58  ;;  %13046 = vmatpush1.bf16.msra.mxu1 %v18264_v24  ;;  %13152 = vmatprep.subr.bf16.mxu0 %v18261_v13  ;;  %v18275_v15 = vld [vmem:[#allocation37_spill] sm:$0xff] }
 0x262   : > { %v5616_v14 = vmax.f32 %v5612_v39, 0.0  ;;  %v5637_v7 = vmax.f32 %v5561_v8, %v5562_v52  ;;  %13048 = vmatprep.subr.bf16.mxu1 %v18270_v30  ;;  %v5273_v33 = vpop.f32.mrb[186].mxu0  ;;  %v18276_v52 = vld [vmem:[#allocation38_spill] sm:$0xff] }
 0x263   : > { %v5696_v59 = vmax.f32 %v5692_v41, 0.0  ;;  %v5573_v47 = vmax.f32 %v16230_v25, %v5273_v33  ;;  %v16419_v26 = vpop.f32.mrb[186].mxu1  ;;  %v5275_v2 = vpop.f32.mrb[187].mxu0  ;;  %12152 = vmatmul.mubr.msk.f32.gmra.mrb[36].mxu0 %vm387_vm3, %v16003_v32 }
 0x264   : > { %v16423_v44 = vpack.c.bf16 %v5616_v14, %v5615_v5  ;;  %v5574_v61 = vmax.f32 %v18272_v50, %v5275_v2  ;;  %v16426_v10 = vpop.f32.mrb[187].mxu1  ;;  %8125 = vmatprep.mubr.f32.mxu0 %v18216_v46  ;;  %v5641_v25 = vadd.f32 %v5637_v7, %v14854_v29  ;;  %v16447_v14 = vld [vmem:[%s18081_s3 + $0x10] sm:$0xff] }
 0x265   : > { %13050 = vmatpush1.bf16.msra.mxu1 %v18266_v43  ;;  %v16430_v0 = vpack.c.bf16 %v5696_v59, %v5695_v38  ;;  %18277 = vst [vmem:[#allocation18_spill] sm:$0xff] %v16447_v14 }
 0x266   : > { %18271 = vst [vmem:[#allocation8_spill] sm:$0xff] %v16423_v44  ;;  %v5638_v12 = vmax.f32 %v5573_v47, %v5574_v61  ;;  %13052 = vmatprep.subr.bf16.mxu1 %v18274_v1  ;;  %v5279_v28 = vpop.f32.mrb[188].mxu0  ;;  %v5645_v7 = vmax.f32 %v5641_v25, 0.0  ;;  %v18280_v25 = vld [vmem:[#allocation32_spill] sm:$0xff] }
 0x267   : > { %18273 = vst [vmem:[#allocation9_spill] sm:$0xff] %v16430_v0  ;;  %v5585_v32 = vmax.f32 %v18275_v15, %v5279_v28  ;;  %v16435_v8 = vpop.f32.mrb[188].mxu1  ;;  %v5281_v18 = vpop.f32.mrb[189].mxu0  ;;  %12153 = vmatmul.mubr.msk.f32.gmra.mrb[38].mxu0 %vm387_vm3, %v16028_v4  ;;  %v18278_v4 = vld [vmem:[#allocation30_spill] sm:$0xff] }
 0x268   : > { %v5642_v39 = vadd.f32 %v5638_v12, %v14874_v49  ;;  %v5586_v41 = vmax.f32 %v18276_v52, %v5281_v18  ;;  %v16441_v5 = vpop.f32.mrb[189].mxu1  ;;  %8671 = vmatprep.mubr.f32.mxu0 %v18216_v46  ;;  %v18281_v18 = vld [vmem:[#allocation31_spill] sm:$0xff] }
 0x269   : > { %13054 = vmatpush1.bf16.msra.mxu1 %v18269_v62 }
 0x26a   : > { %v5646_v33 = vmax.f32 %v5642_v39, 0.0  ;;  %v5639_v38 = vmax.f32 %v5585_v32, %v5586_v41  ;;  %13056 = vmatprep.subr.bf16.mxu1 %v18278_v4  ;;  %v5285_v59 = vpop.f32.mrb[190].mxu0 }
 0x26b   : > { %v5597_v47 = vmax.f32 %v16260_v40, %v5285_v59  ;;  %v16452_v2 = vpop.f32.mrb[190].mxu1  ;;  %v5287_v50 = vpop.f32.mrb[191].mxu0  ;;  %12160 = vmatmul.mubr.msk.f32.vlgmr.msra.gmra.mrb[40].mxu0 %vm8469_vm4, %v16447_v14  ;;  %v16466_v40 = vld [vmem:[%s18081_s3 + $0x28] sm:$0xff] }
 0x26c   : > { %v16456_v61 = vpack.c.bf16 %v5646_v33, %v5645_v7  ;;  %v5598_v12 = vmax.f32 %v16264_v54, %v5287_v50  ;;  %v16459_v28 = vpop.f32.mrb[191].mxu1  ;;  %13154 = vmatpush1.bf16.msra.mxu0 %v18263_v21  ;;  %8677 = vmatprep.mubr.f32.mxu0 %v18216_v46  ;;  %18279 = vst [vmem:[#allocation22_spill] sm:$0xff] %v16466_v40 }
 0x26d   : > { %13058 = vmatpush1.bf16.msra.mxu1 %v18280_v25  ;;  %13156 = vmatprep.subr.bf16.mxu0 %v18264_v24  ;;  %v5643_v15 = vadd.f32 %v5639_v38, %v14898_v9  ;;  %v18283_v38 = vld [vmem:[#allocation27_spill] sm:$0xff] }
 0x26e   : > { %v5640_v32 = vmax.f32 %v5597_v47, %v5598_v12  ;;  %13060 = vmatprep.subr.bf16.mxu1 %v18281_v18  ;;  %v5445_v54 = vpop.f32.mrb[192].mxu0 }
 0x26f   : > { %v5565_v39 = vmax.f32 %v16276_v34, %v5445_v54  ;;  %v16473_v21 = vpop.f32.mrb[192].mxu1  ;;  %v5447_v52 = vpop.f32.mrb[193].mxu0  ;;  %12161 = vmatmul.mubr.msk.f32.gmra.mrb[42].mxu0 %vm8469_vm4, %v16466_v40  ;;  %v16486_v34 = vld [vmem:[%s18081_s3 + $0x40] sm:$0xff]  ;;  %v5647_v59 = vmax.f32 %v5643_v15, 0.0 }
 0x270   : > { %v5644_v41 = vadd.f32 %v5640_v32, %v14921_v58  ;;  %v5566_v7 = vmax.f32 %v16283_v31, %v5447_v52  ;;  %v16479_v33 = vpop.f32.mrb[193].mxu1  ;;  %13158 = vmatpush1.bf16.msra.mxu0 %v18265_v36  ;;  %8683 = vmatprep.mubr.f32.mxu0 %v18216_v46  ;;  %18282 = vst [vmem:[#allocation19_spill] sm:$0xff] %v16486_v34 }
 0x271   : > { %13062 = vmatpush1.bf16.msra.mxu1 %v18283_v38  ;;  %13160 = vmatprep.subr.bf16.mxu0 %v18266_v43 }
 0x272   : > { %v5648_v47 = vmax.f32 %v5644_v41, 0.0  ;;  %v5669_v50 = vmax.f32 %v5565_v39, %v5566_v7  ;;  %13064 = vmatprep.subr.bf16.mxu1 %v16061_v55  ;;  %v5451_v31 = vpop.f32.mrb[194].mxu0 }
 0x273   : > { %v5577_v12 = vmax.f32 %v16296_v63, %v5451_v31  ;;  %v16492_v36 = vpop.f32.mrb[194].mxu1  ;;  %v5453_v32 = vpop.f32.mrb[195].mxu0  ;;  %12162 = vmatmul.mubr.msk.f32.gmra.mrb[44].mxu0 %vm8469_vm4, %v16486_v34  ;;  %v16506_v63 = vld [vmem:[%s18081_s3 + $0x58] sm:$0xff] }
 0x274   : > { %v16496_v54 = vpack.c.bf16 %v5648_v47, %v5647_v59  ;;  %v5578_v52 = vmax.f32 %v16300_v51, %v5453_v32  ;;  %v16499_v0 = vpop.f32.mrb[195].mxu1  ;;  %13162 = vmatpush1.bf16.msra.mxu0 %v18261_v13  ;;  %8689 = vmatprep.mubr.f32.mxu0 %v18216_v46  ;;  %18285 = vst [vmem:[#allocation20_spill] sm:$0xff] %v16506_v63 }
 0x275   : > { %13066 = vmatpush1.bf16.msra.mxu1 %v18278_v4  ;;  %13164 = vmatprep.subr.bf16.mxu0 %v18269_v62  ;;  %v5673_v15 = vadd.f32 %v5669_v50, %v14854_v29  ;;  %v16533_v50 = vld [vmem:[%s18081_s3] sm:$0xff] }
 0x276   : > { %18284 = vst [vmem:[#allocation15_spill] sm:$0xff] %v16496_v54  ;;  %v5670_v39 = vmax.f32 %v5577_v12, %v5578_v52  ;;  %13068 = vmatprep.subr.bf16.mxu1 %v16097_v23  ;;  %v5457_v51 = vpop.f32.mrb[196].mxu0 }
 0x277   : > { %v5589_v41 = vmax.f32 %v16314_v53, %v5457_v51  ;;  %v16513_v13 = vpop.f32.mrb[196].mxu1  ;;  %v5459_v7 = vpop.f32.mrb[197].mxu0  ;;  %12163 = vmatmul.mubr.msk.f32.gmra.mrb[46].mxu0 %vm8469_vm4, %v16506_v63  ;;  %v16526_v53 = vld [vmem:[%s18081_s3 + $0x70] sm:$0xff] }
 0x278   : > { %v5674_v59 = vadd.f32 %v5670_v39, %v14874_v49  ;;  %v5590_v47 = vmax.f32 %v16324_v6, %v5459_v7  ;;  %v16519_v31 = vpop.f32.mrb[197].mxu1  ;;  %13166 = vmatpush1.bf16.msra.mxu0 %v18264_v24  ;;  %8695 = vmatprep.mubr.f32.mxu0 %v18216_v46  ;;  %18286 = vst [vmem:[#allocation5_spill] sm:$0xff] %v16526_v53  ;;  %v5677_v6 = vmax.f32 %v5673_v15, 0.0  ;;  %v16544_v7 = vld [vmem:[%s18081_s3 + $0x20] sm:$0xff] }
 0x279   : > { %13070 = vmatpush1.bf16.msra.mxu1 %v18281_v18  ;;  %13168 = vmatprep.subr.bf16.mxu0 %v18270_v30 }
 0x27a   : > { %v5678_v12 = vmax.f32 %v5674_v59, 0.0  ;;  %v5671_v32 = vmax.f32 %v5589_v41, %v5590_v47  ;;  %13080 = vmatprep.subr.bf16.mxu1 %v18258_v20  ;;  %v5463_v24 = vpop.f32.mrb[198].mxu0 }
 0x27b   : > { %v5601_v52 = vmax.f32 %v16335_v11, %v5463_v24  ;;  %v16537_v39 = vpop.f32.mrb[198].mxu1  ;;  %v5465_v51 = vpop.f32.mrb[199].mxu0  ;;  %12164 = vmatmul.mubr.msk.f32.gmra.mrb[48].mxu0 %vm8469_vm4, %v16526_v53  ;;  %v16558_v11 = vld [vmem:[%s18081_s3 + $0x18] sm:$0xff] }
 0x27c   : > { %v16546_v17 = vpack.c.bf16 %v5678_v12, %v5677_v6  ;;  %8559 = vmatmul.mubr.f32.vlgmr.msra.gmra.mrb[24].mxu1 %v16533_v50  ;;  %v5602_v15 = vmax.f32 %v16339_v37, %v5465_v51  ;;  %v16550_v41 = vpop.f32.mrb[199].mxu1  ;;  %13170 = vmatpush1.bf16.msra.mxu0 %v18266_v43  ;;  %v5675_v59 = vadd.f32 %v5671_v32, %v14898_v9  ;;  %v16590_v51 = vld [vmem:[%s18081_s3 + $0x30] sm:$0xff] }
 0x27d   : > { %13082 = vmatpush1.bf16.msra.mxu1 %v18255_v3  ;;  %13172 = vmatprep.subr.bf16.mxu0 %v18274_v1  ;;  %v16573_v3 = vld [vmem:[%s18081_s3 + $0x88] sm:$0xff] }
 0x27e   : > { %18287 = vst [vmem:[#allocation21_spill] sm:$0xff] %v16546_v17  ;;  %v5672_v47 = vmax.f32 %v5601_v52, %v5602_v15  ;;  %13084 = vmatprep.subr.bf16.mxu1 %v18260_v56  ;;  %v16562_v6 = vpop.f32.mrb[200].mxu0  ;;  %8564 = vmatprep.mubr.f32.mxu1 %v16544_v7  ;;  %18288 = vst [vmem:[#allocation37_spill] sm:$0xff] %v16573_v3  ;;  %v16583_v52 = vld [vmem:[%s18081_s3 + $0x38] sm:$0xff]  ;;  %v5679_v15 = vmax.f32 %v5675_v59, 0.0  ;;  %v18289_v17 = vld [vmem:[#allocation7_spill] sm:$0xff] }
 0x27f   : > { %v16565_v37 = vpop.f32.mrb[200].mxu1  ;;  %v16567_v12 = vpop.f32.mrb[201].mxu0  ;;  %8701 = vmatprep.mubr.f32.mxu0 %v18216_v46 }
 0x280   : > { %v5676_v32 = vadd.f32 %v5672_v47, %v14921_v58  ;;  %v16576_v24 = vpop.f32.mrb[201].mxu1  ;;  %13174 = vmatpush1.bf16.msra.mxu0 %v18269_v62  ;;  %8565 = vmatmul.mubr.f32.gmra.mrb[26].mxu1 %v16558_v11 }
 0x281   : > { %13086 = vmatpush1.bf16.msra.mxu1 %v18257_v19  ;;  %13176 = vmatprep.subr.bf16.mxu0 %v18278_v4  ;;  %v16606_v19 = vld [vmem:[%s18081_s3 + $0xa0] sm:$0xff] }
 0x282   : > { %v5680_v47 = vmax.f32 %v5676_v32, 0.0  ;;  %13088 = vmatprep.subr.bf16.mxu1 %v18289_v17  ;;  %v16593_v53 = vpop.f32.mrb[202].mxu0  ;;  %12165 = vmatmul.mubr.msk.f32.gmra.mrb[50].mxu0 %vm8469_vm4, %v16573_v3  ;;  %18290 = vst [vmem:[#allocation38_spill] sm:$0xff] %v16606_v19  ;;  %v16617_v3 = vld [vmem:[%s18081_s3 + $0x50] sm:$0xff] }
 0x283   : > { %v16597_v63 = vpop.f32.mrb[202].mxu1  ;;  %v16599_v34 = vpop.f32.mrb[203].mxu0  ;;  %8570 = vmatprep.mubr.f32.mxu1 %v16583_v52  ;;  %8707 = vmatprep.mubr.f32.mxu0 %v18216_v46 }
 0x284   : > { %v16608_v59 = vpack.c.bf16 %v5680_v47, %v5679_v15  ;;  %v16610_v32 = vpop.f32.mrb[203].mxu1  ;;  %13178 = vmatpush1.bf16.msra.mxu0 %v18280_v25  ;;  %8571 = vmatmul.mubr.f32.gmra.mrb[28].mxu1 %v16590_v51  ;;  %v16624_v15 = vld [vmem:[%s18081_s3 + $0x48] sm:$0xff]  ;;  %v18293_v47 = vld [vmem:[#allocation14_spill] sm:$0xff] }
 0x285   : > { %13090 = vmatpush1.bf16.msra.mxu1 %v18258_v20  ;;  %13180 = vmatprep.subr.bf16.mxu0 %v18281_v18  ;;  %18292 = vst [vmem:[#allocation7_spill] sm:$0xff] %v16624_v15  ;;  %v16640_v20 = vld [vmem:[%s18081_s3 + $0xb8] sm:$0xff] }
 0x286   : > { %18291 = vst [vmem:[#allocation30_spill] sm:$0xff] %v16608_v59  ;;  %13092 = vmatprep.subr.bf16.mxu1 %v18293_v47  ;;  %v16627_v59 = vpop.f32.mrb[204].mxu0  ;;  %12166 = vmatmul.mubr.msk.f32.gmra.mrb[52].mxu0 %vm8469_vm4, %v16606_v19  ;;  %18296 = vst [vmem:[#allocation40_spill] sm:$0xff] %v16640_v20  ;;  %v16649_v19 = vld [vmem:[%s18081_s3 + $0x68] sm:$0xff] }
 0x287   : > { %v16631_v40 = vpop.f32.mrb[204].mxu1  ;;  %v16633_v25 = vpop.f32.mrb[205].mxu0  ;;  %8576 = vmatprep.mubr.f32.mxu1 %v16617_v3  ;;  %8713 = vmatprep.mubr.f32.mxu0 %v18216_v46  ;;  %v16656_v46 = vld [vmem:[%s18081_s3 + $0x60] sm:$0xff] }
 0x288   : > { %18294 = vst [vmem:[#allocation14_spill] sm:$0xff] %v16631_v40  ;;  %18295 = vst [vmem:[#allocation39_spill] sm:$0xff] %v16633_v25  ;;  %v16642_v14 = vpop.f32.mrb[205].mxu1  ;;  %13182 = vmatpush1.bf16.msra.mxu0 %v18283_v38  ;;  %8577 = vmatmul.mubr.f32.gmra.mrb[30].mxu1 %v16624_v15  ;;  %v18299_v25 = vld [vmem:[#allocation11_spill] sm:$0xff] }
 0x289   : > { %18297 = vst [vmem:[#allocation41_spill] sm:$0xff] %v16642_v14  ;;  %13094 = vmatpush1.bf16.msra.mxu1 %v18260_v56  ;;  %13184 = vmatprep.subr.bf16.mxu0 %v16061_v55  ;;  %18298 = vst [vmem:[#allocation42_spill] sm:$0xff] %v16656_v46  ;;  %v16672_v56 = vld [vmem:[%s18081_s3 + $0x80] sm:$0xff] }
 0x28a   : > { %13096 = vmatprep.subr.bf16.mxu1 %v18299_v25  ;;  %v16659_v14 = vpop.f32.mrb[206].mxu0  ;;  %12167 = vmatmul.mubr.msk.f32.gmra.mrb[54].mxu0 %vm8469_vm4, %v16640_v20  ;;  %v16683_v25 = vld [vmem:[%s18081_s3 + $0x78] sm:$0xff]  ;;  %v18304_v20 = vld [vmem:[#allocation13_spill] sm:$0xff] }
 0x28b   : > { %18300 = vst [vmem:[#allocation11_spill] sm:$0xff] %v16659_v14  ;;  %v16663_v38 = vpop.f32.mrb[206].mxu1  ;;  %v16665_v40 = vpop.f32.mrb[207].mxu0  ;;  %8582 = vmatprep.mubr.f32.mxu1 %v16649_v19  ;;  %9034 = vmatprep.mubr.f32.mxu0 %v16319_v35 }
 0x28c   : > { %18301 = vst [vmem:[#allocation43_spill] sm:$0xff] %v16663_v38  ;;  %18302 = vst [vmem:[#allocation44_spill] sm:$0xff] %v16665_v40  ;;  %v16674_v15 = vpop.f32.mrb[207].mxu1  ;;  %13186 = vmatpush1.bf16.msra.mxu0 %v18278_v4  ;;  %8583 = vmatmul.mubr.f32.gmra.mrb[32].mxu1 %v16656_v46 }
 0x28d   : > { %18303 = vst [vmem:[#allocation45_spill] sm:$0xff] %v16674_v15  ;;  %13098 = vmatpush1.bf16.msra.mxu1 %v18289_v17  ;;  %13188 = vmatprep.subr.bf16.mxu0 %v16097_v23  ;;  %v16694_v17 = vld [vmem:[%s18081_s3 + $0x98] sm:$0xff] }
 0x28e   : > { %13100 = vmatprep.subr.bf16.mxu1 %v18304_v20  ;;  %v16686_v40 = vpop.f32.mrb[208].mxu0  ;;  %8588 = vmatprep.mubr.f32.mxu1 %v16672_v56  ;;  %18307 = vst [vmem:[#allocation47_spill] sm:$0xff] %v16694_v17 }
 0x28f   : > { %18305 = vst [vmem:[#allocation13_spill] sm:$0xff] %v16686_v40  ;;  %v6510_v15 = vpop.f32.mrb[208].mxu1  ;;  %v16689_v38 = vpop.f32.mrb[209].mxu0 }
 0x290   : > { %18306 = vst [vmem:[#allocation46_spill] sm:$0xff] %v16689_v38  ;;  %v6891_v46 = vmax.f32 %v16404_v45, %v6510_v15  ;;  %v6512_v14 = vpop.f32.mrb[209].mxu1  ;;  %13190 = vmatpush1.bf16.msra.mxu0 %v18281_v18  ;;  %8589 = vmatmul.mubr.f32.gmra.mrb[34].mxu1 %v16683_v25  ;;  %v16705_v38 = vld [vmem:[%s18081_s3 + $0x90] sm:$0xff] }
 0x291   : > { %v6892_v20 = vmax.f32 %v16410_v22, %v6512_v14  ;;  %13102 = vmatpush1.bf16.msra.mxu1 %v18293_v47  ;;  %13192 = vmatprep.subr.bf16.mxu0 %v15897_v16  ;;  %18308 = vst [vmem:[#allocation48_spill] sm:$0xff] %v16705_v38  ;;  %v16716_v22 = vld [vmem:[%s18081_s3 + $0xb0] sm:$0xff] }
 0x292   : > { %13104 = vmatprep.subr.bf16.mxu1 %v18270_v30  ;;  %v16708_v40 = vpop.f32.mrb[210].mxu0  ;;  %8594 = vmatprep.mubr.f32.mxu1 %v16694_v17 }
 0x293   : > { %18309 = vst [vmem:[#allocation49_spill] sm:$0xff] %v16708_v40  ;;  %v6953_v45 = vmax.f32 %v6891_v46, %v6892_v20  ;;  %v6516_v15 = vpop.f32.mrb[210].mxu1  ;;  %v16711_v18 = vpop.f32.mrb[211].mxu0  ;;  %v16727_v46 = vld [vmem:[%s18081_s3 + $0xa8] sm:$0xff] }
 0x294   : > { %18310 = vst [vmem:[#allocation50_spill] sm:$0xff] %v16711_v18  ;;  %v6903_v14 = vmax.f32 %v16419_v26, %v6516_v15  ;;  %v6518_v47 = vpop.f32.mrb[211].mxu1  ;;  %13194 = vmatpush1.bf16.msra.mxu0 %v16061_v55  ;;  %8595 = vmatmul.mubr.f32.gmra.mrb[36].mxu1 %v16705_v38  ;;  %18311 = vst [vmem:[#allocation51_spill] sm:$0xff] %v16727_v46 }
 0x295   : > { %v6904_v40 = vmax.f32 %v16426_v10, %v6518_v47  ;;  %13106 = vmatpush1.bf16.msra.mxu1 %v18266_v43  ;;  %13196 = vmatprep.subr.bf16.mxu0 %v15930_v48  ;;  %v6957_v26 = vadd.f32 %v6953_v45, %v14854_v29  ;;  %v18314_v45 = vld [vmem:[#allocation25_spill] sm:$0xff] }
 0x296   : > { %13108 = vmatprep.subr.bf16.mxu1 %v18274_v1  ;;  %v16730_v20 = vpop.f32.mrb[212].mxu0  ;;  %8600 = vmatprep.mubr.f32.mxu1 %v16716_v22 }
 0x297   : > { %18312 = vst [vmem:[#allocation52_spill] sm:$0xff] %v16730_v20  ;;  %v6954_v15 = vmax.f32 %v6903_v14, %v6904_v40  ;;  %v6522_v18 = vpop.f32.mrb[212].mxu1  ;;  %v16734_v10 = vpop.f32.mrb[213].mxu0 }
 0x298   : > { %18313 = vst [vmem:[#allocation53_spill] sm:$0xff] %v16734_v10  ;;  %v6915_v47 = vmax.f32 %v16435_v8, %v6522_v18  ;;  %v6524_v43 = vpop.f32.mrb[213].mxu1  ;;  %13198 = vmatpush1.bf16.msra.mxu0 %v16097_v23  ;;  %8601 = vmatmul.mubr.f32.gmra.mrb[38].mxu1 %v16727_v46  ;;  %v6961_v8 = vmax.f32 %v6957_v26, 0.0 }
 0x299   : > { %v6958_v38 = vadd.f32 %v6954_v15, %v14874_v49  ;;  %v6916_v17 = vmax.f32 %v16441_v5, %v6524_v43  ;;  %13110 = vmatpush1.bf16.msra.mxu1 %v18269_v62  ;;  %13200 = vmatprep.subr.bf16.mxu0 %v16270_v42  ;;  %v18316_v62 = vld [vmem:[#allocation10_spill] sm:$0xff] }
 0x29a   : > { %13112 = vmatprep.subr.bf16.mxu1 %v18314_v45  ;;  %v16744_v40 = vpop.f32.mrb[214].mxu0  ;;  %8784 = vmatprep.mubr.f32.mxu1 %v16319_v35  ;;  %v18317_v35 = vld [vmem:[#allocation26_spill] sm:$0xff] }
 0x29b   : > { %v6962_v18 = vmax.f32 %v6958_v38, 0.0  ;;  %v6955_v14 = vmax.f32 %v6915_v47, %v6916_v17  ;;  %v6528_v10 = vpop.f32.mrb[214].mxu1  ;;  %v16747_v20 = vpop.f32.mrb[215].mxu0 }
 0x29c   : > { %v6927_v15 = vmax.f32 %v16452_v2, %v6528_v10  ;;  %v6530_v46 = vpop.f32.mrb[215].mxu1  ;;  %13202 = vmatpush1.bf16.msra.mxu0 %v16389_v57 }
 0x29d   : > { %v16751_v43 = vpack.c.bf16 %v6962_v18, %v6961_v8  ;;  %v6928_v5 = vmax.f32 %v16459_v28, %v6530_v46  ;;  %13114 = vmatpush1.bf16.msra.mxu1 %v18270_v30  ;;  %13204 = vmatprep.subr.bf16.mxu0 %v18316_v62  ;;  %v6959_v17 = vadd.f32 %v6955_v14, %v14898_v9  ;;  %v18318_v18 = vld [vmem:[#allocation23_spill] sm:$0xff] }
 0x29e   : > { %13116 = vmatprep.subr.bf16.mxu1 %v18317_v35  ;;  %v16757_v38 = vpop.f32.mrb[216].mxu0 }
 0x29f   : > { %18315 = vst [vmem:[#allocation25_spill] sm:$0xff] %v16751_v43  ;;  %v6956_v26 = vmax.f32 %v6927_v15, %v6928_v5  ;;  %v6688_v47 = vpop.f32.mrb[216].mxu1  ;;  %v16760_v2 = vpop.f32.mrb[217].mxu0  ;;  %v6963_v15 = vmax.f32 %v6959_v17, 0.0 }
 0x2a0   : > { %v6895_v10 = vmax.f32 %v16473_v21, %v6688_v47  ;;  %v6690_v8 = vpop.f32.mrb[217].mxu1  ;;  %13206 = vmatpush1.bf16.msra.mxu0 %v16423_v44 }
 0x2a1   : > { %v6960_v28 = vadd.f32 %v6956_v26, %v14921_v58  ;;  %v6896_v46 = vmax.f32 %v16479_v33, %v6690_v8  ;;  %13118 = vmatpush1.bf16.msra.mxu1 %v18274_v1  ;;  %13208 = vmatprep.subr.bf16.mxu0 %v16456_v61  ;;  %v18320_v8 = vld [vmem:[#allocation24_spill] sm:$0xff] }
 0x2a2   : > { %13120 = vmatprep.subr.bf16.mxu1 %v18318_v18  ;;  %v16769_v14 = vpop.f32.mrb[218].mxu0 }
 0x2a3   : > { %v6964_v5 = vmax.f32 %v6960_v28, 0.0  ;;  %v6985_v43 = vmax.f32 %v6895_v10, %v6896_v46  ;;  %v6694_v57 = vpop.f32.mrb[218].mxu1  ;;  %v16771_v21 = vpop.f32.mrb[219].mxu0 }
 0x2a4   : > { %v6907_v47 = vmax.f32 %v16492_v36, %v6694_v57  ;;  %v6696_v44 = vpop.f32.mrb[219].mxu1  ;;  %13210 = vmatpush1.bf16.msra.mxu0 %v16270_v42 }
 0x2a5   : > { %v16775_v33 = vpack.c.bf16 %v6964_v5, %v6963_v15  ;;  %v6908_v26 = vmax.f32 %v16499_v0, %v6696_v44  ;;  %13122 = vmatpush1.bf16.msra.mxu1 %v18314_v45  ;;  %13212 = vmatprep.subr.bf16.mxu0 %v16496_v54  ;;  %v6989_v10 = vadd.f32 %v6985_v43, %v14854_v29 }
 0x2a6   : > { %13124 = vmatprep.subr.bf16.mxu1 %v18320_v8  ;;  %v16781_v17 = vpop.f32.mrb[220].mxu0 }
 0x2a7   : > { %18319 = vst [vmem:[#allocation26_spill] sm:$0xff] %v16775_v33  ;;  %v6986_v28 = vmax.f32 %v6907_v47, %v6908_v26  ;;  %v6700_v46 = vpop.f32.mrb[220].mxu1  ;;  %v16784_v57 = vpop.f32.mrb[221].mxu0  ;;  %v6993_v5 = vmax.f32 %v6989_v10, 0.0 }
 0x2a8   : > { %v6919_v36 = vmax.f32 %v16513_v13, %v6700_v46  ;;  %v6702_v15 = vpop.f32.mrb[221].mxu1  ;;  %13214 = vmatpush1.bf16.msra.mxu0 %v18316_v62 }
 0x2a9   : > { %v6990_v44 = vadd.f32 %v6986_v28, %v14874_v49  ;;  %v6920_v0 = vmax.f32 %v16519_v31, %v6702_v15  ;;  %13126 = vmatpush1.bf16.msra.mxu1 %v18317_v35  ;;  %13216 = vmatprep.subr.bf16.mxu0 %v16345_v27 }
 0x2aa   : > { %13128 = vmatprep.subr.bf16.mxu1 %v15897_v16  ;;  %v16793_v43 = vpop.f32.mrb[222].mxu0 }
 0x2ab   : > { %v6994_v47 = vmax.f32 %v6990_v44, 0.0  ;;  %v6987_v26 = vmax.f32 %v6919_v36, %v6920_v0  ;;  %v6706_v33 = vpop.f32.mrb[222].mxu1  ;;  %9035 = vmatmul.mubr.f32.vlgmr.msra.gmra.mrb[56].mxu0 %v16533_v50  ;;  %v16796_v13 = vpop.f32.mrb[223].mxu0 }
 0x2ac   : > { %v6931_v28 = vmax.f32 %v16537_v39, %v6706_v33  ;;  %v6708_v46 = vpop.f32.mrb[223].mxu1  ;;  %13218 = vmatpush1.bf16.msra.mxu0 %v16456_v61  ;;  %9040 = vmatprep.mubr.f32.mxu0 %v16544_v7 }
 0x2ad   : > { %v16801_v31 = vpack.c.bf16 %v6994_v47, %v6993_v5  ;;  %v6932_v15 = vmax.f32 %v16550_v41, %v6708_v46  ;;  %13130 = vmatpush1.bf16.msra.mxu1 %v16061_v55  ;;  %13220 = vmatprep.subr.bf16.mxu0 %v16368_v60  ;;  %v6991_v36 = vadd.f32 %v6987_v26, %v14898_v9 }
 0x2ae   : > { %13132 = vmatprep.subr.bf16.mxu1 %v15930_v48  ;;  %v6421_v10 = vpop.f32.mrb[224].mxu0 }
 0x2af   : > { %18321 = vst [vmem:[#allocation23_spill] sm:$0xff] %v16801_v31  ;;  %v6988_v44 = vmax.f32 %v6931_v28, %v6932_v15  ;;  %v6889_v39 = vmax.f32 %v16562_v6, %v6421_v10  ;;  %v6866_v33 = vpop.f32.mrb[224].mxu1  ;;  %9041 = vmatmul.mubr.f32.gmra.mrb[58].mxu0 %v16558_v11  ;;  %v6423_v0 = vpop.f32.mrb[225].mxu0  ;;  %v18322_v28 = vld [vmem:[#allocation35_spill] sm:$0xff] }
 0x2b0   : > { %v6899_v5 = vmax.f32 %v16565_v37, %v6866_v33  ;;  %v6890_v41 = vmax.f32 %v16567_v12, %v6423_v0  ;;  %v6868_v47 = vpop.f32.mrb[225].mxu1  ;;  %13222 = vmatpush1.bf16.msra.mxu0 %v16496_v54  ;;  %9046 = vmatprep.mubr.f32.mxu0 %v16583_v52  ;;  %v6995_v37 = vmax.f32 %v6991_v36, 0.0  ;;  %v18331_v54 = vld [vmem:[#allocation42_spill] sm:$0xff] }
 0x2b1   : > { %v6992_v46 = vadd.f32 %v6988_v44, %v14921_v58  ;;  %v6900_v26 = vmax.f32 %v16576_v24, %v6868_v47  ;;  %13134 = vmatpush1.bf16.msra.mxu1 %v16097_v23  ;;  %13296 = vmatprep.subr.bf16.mxu0 %v18278_v4 }
 0x2b2   : > { %v6937_v6 = vmax.f32 %v6889_v39, %v6890_v41  ;;  %13136 = vmatprep.subr.bf16.mxu1 %v18322_v28  ;;  %v6427_v15 = vpop.f32.mrb[226].mxu0 }
 0x2b3   : > { %v6996_v10 = vmax.f32 %v6992_v46, 0.0  ;;  %v7017_v12 = vmax.f32 %v6899_v5, %v6900_v26  ;;  %v6901_v33 = vmax.f32 %v16593_v53, %v6427_v15  ;;  %v6872_v0 = vpop.f32.mrb[226].mxu1  ;;  %9047 = vmatmul.mubr.f32.gmra.mrb[60].mxu0 %v16590_v51  ;;  %v6429_v31 = vpop.f32.mrb[227].mxu0  ;;  %v18324_v5 = vld [vmem:[#allocation36_spill] sm:$0xff]  ;;  %v18325_v15 = vld [vmem:[#allocation7_spill] sm:$0xff] }
 0x2b4   : > { %v6911_v44 = vmax.f32 %v16597_v63, %v6872_v0  ;;  %v6902_v24 = vmax.f32 %v16599_v34, %v6429_v31  ;;  %v6874_v47 = vpop.f32.mrb[227].mxu1  ;;  %9052 = vmatprep.mubr.f32.mxu0 %v16617_v3  ;;  %v6941_v36 = vadd.f32 %v6937_v6, %v14854_v29 }
 0x2b5   : > { %v16824_v39 = vpack.c.bf16 %v6996_v10, %v6995_v37  ;;  %v6912_v41 = vmax.f32 %v16610_v32, %v6874_v47  ;;  %13138 = vmatpush1.bf16.msra.mxu1 %v15897_v16  ;;  %v7021_v26 = vadd.f32 %v7017_v12, %v14854_v29  ;;  %v18326_v32 = vld [vmem:[#allocation14_spill] sm:$0xff]  ;;  %v18327_v47 = vld [vmem:[#allocation39_spill] sm:$0xff] }
 0x2b6   : > { %v6938_v53 = vmax.f32 %v6901_v33, %v6902_v24  ;;  %13140 = vmatprep.subr.bf16.mxu1 %v18324_v5  ;;  %v6433_v46 = vpop.f32.mrb[228].mxu0  ;;  %v18328_v24 = vld [vmem:[#allocation41_spill] sm:$0xff] }
 0x2b7   : > { %18323 = vst [vmem:[#allocation35_spill] sm:$0xff] %v16824_v39  ;;  %v7018_v63 = vmax.f32 %v6911_v44, %v6912_v41  ;;  %v6913_v34 = vmax.f32 %v16627_v59, %v6433_v46  ;;  %v6878_v31 = vpop.f32.mrb[228].mxu1  ;;  %9053 = vmatmul.mubr.f32.gmra.mrb[62].mxu0 %v18325_v15  ;;  %v6435_v37 = vpop.f32.mrb[229].mxu0  ;;  %v6945_v59 = vmax.f32 %v6941_v36, 0.0  ;;  %v18329_v46 = vld [vmem:[#allocation33_spill] sm:$0xff]  ;;  %v18334_v36 = vld [vmem:[#allocation44_spill] sm:$0xff] }
 0x2b8   : > { %v6942_v10 = vadd.f32 %v6938_v53, %v14874_v49  ;;  %v6923_v0 = vmax.f32 %v18326_v32, %v6878_v31  ;;  %v6914_v39 = vmax.f32 %v18327_v47, %v6435_v37  ;;  %v6880_v6 = vpop.f32.mrb[229].mxu1  ;;  %9058 = vmatprep.mubr.f32.mxu0 %v16649_v19  ;;  %v7025_v53 = vmax.f32 %v7021_v26, 0.0  ;;  %v18330_v32 = vld [vmem:[#allocation11_spill] sm:$0xff] }
 0x2b9   : > { %v7022_v33 = vadd.f32 %v7018_v63, %v14874_v49  ;;  %v6924_v12 = vmax.f32 %v18328_v24, %v6880_v6  ;;  %13142 = vmatpush1.bf16.msra.mxu1 %v15930_v48  ;;  %v18333_v6 = vld [vmem:[#allocation43_spill] sm:$0xff] }
 0x2ba   : > { %v6946_v44 = vmax.f32 %v6942_v10, 0.0  ;;  %v6939_v41 = vmax.f32 %v6913_v34, %v6914_v39  ;;  %13144 = vmatprep.subr.bf16.mxu1 %v18329_v46  ;;  %v6439_v60 = vpop.f32.mrb[230].mxu0  ;;  %v18335_v10 = vld [vmem:[#allocation45_spill] sm:$0xff] }
 0x2bb   : > { %v7026_v27 = vmax.f32 %v7022_v33, 0.0  ;;  %v7019_v31 = vmax.f32 %v6923_v0, %v6924_v12  ;;  %v6925_v37 = vmax.f32 %v18330_v32, %v6439_v60  ;;  %v6884_v47 = vpop.f32.mrb[230].mxu1  ;;  %9059 = vmatmul.mubr.f32.gmra.mrb[64].mxu0 %v18331_v54  ;;  %v6441_v8 = vpop.f32.mrb[231].mxu0  ;;  %v18337_v33 = vld [vmem:[#allocation34_spill] sm:$0xff] }
 0x2bc   : > { %v16843_v63 = vpack.c.bf16 %v6946_v44, %v6945_v59  ;;  %v6935_v24 = vmax.f32 %v18333_v6, %v6884_v47  ;;  %8785 = vmatmul.mubr.f32.vlgmr.msra.gmra.mrb[40].mxu1 %v16533_v50  ;;  %v6926_v39 = vmax.f32 %v18334_v36, %v6441_v8  ;;  %v6886_v34 = vpop.f32.mrb[231].mxu1  ;;  %v6943_v26 = vadd.f32 %v6939_v41, %v14898_v9  ;;  %v18338_v59 = vld [vmem:[#allocation13_spill] sm:$0xff]  ;;  %v18339_v41 = vld [vmem:[#allocation46_spill] sm:$0xff]  ;;  %v18340_v47 = vld [vmem:[#allocation47_spill] sm:$0xff] }
 0x2bd   : > { %v6936_v46 = vmax.f32 %v18335_v10, %v6886_v34  ;;  %13146 = vmatpush1.bf16.msra.mxu1 %v18322_v28  ;;  %8790 = vmatprep.mubr.f32.mxu1 %v16544_v7  ;;  %v16851_v60 = vpack.c.bf16 %v7026_v27, %v7025_v53  ;;  %v7023_v50 = vadd.f32 %v7019_v31, %v14898_v9  ;;  %v18341_v34 = vld [vmem:[#allocation49_spill] sm:$0xff] }
 0x2be   : > { %18332 = vst [vmem:[#allocation36_spill] sm:$0xff] %v16843_v63  ;;  %v6940_v0 = vmax.f32 %v6925_v37, %v6926_v39  ;;  %13148 = vmatprep.subr.bf16.mxu1 %v18337_v33  ;;  %9064 = vmatprep.mubr.f32.mxu0 %v16672_v56  ;;  %v6599_v12 = vpop.f32.mrb[232].mxu0 }
 0x2bf   : > { %18336 = vst [vmem:[#allocation7_spill] sm:$0xff] %v16851_v60  ;;  %v7020_v8 = vmax.f32 %v6935_v24, %v6936_v46  ;;  %v6893_v44 = vmax.f32 %v18338_v59, %v6599_v12  ;;  %v16858_v32 = vpop.f32.mrb[232].mxu1  ;;  %9065 = vmatmul.mubr.f32.gmra.mrb[66].mxu0 %v16683_v25  ;;  %v6601_v7 = vpop.f32.mrb[233].mxu0  ;;  %v6947_v46 = vmax.f32 %v6943_v26, 0.0  ;;  %v7027_v39 = vmax.f32 %v7023_v50, 0.0  ;;  %v18342_v12 = vld [vmem:[#allocation48_spill] sm:$0xff] }
 0x2c0   : > { %v6944_v27 = vadd.f32 %v6940_v0, %v14921_v58  ;;  %8791 = vmatmul.mubr.f32.gmra.mrb[42].mxu1 %v16558_v11  ;;  %v6894_v53 = vmax.f32 %v18339_v41, %v6601_v7  ;;  %v16864_v37 = vpop.f32.mrb[233].mxu1  ;;  %9070 = vmatprep.mubr.f32.mxu0 %v18340_v47  ;;  %v18370_v60 = vld [vmem:[#allocation15_spill] sm:$0xff] }
 0x2c1   : > { %v7024_v31 = vadd.f32 %v7020_v8, %v14921_v58  ;;  %13150 = vmatpush1.bf16.msra.mxu1 %v18324_v5  ;;  %8796 = vmatprep.mubr.f32.mxu1 %v16583_v52  ;;  %v18343_v52 = vld [vmem:[#allocation50_spill] sm:$0xff] }
 0x2c2   : > { %v6948_v6 = vmax.f32 %v6944_v27, 0.0  ;;  %v6969_v24 = vmax.f32 %v6893_v44, %v6894_v53  ;;  %13224 = vmatprep.subr.bf16.mxu1 %v18270_v30  ;;  %v6605_v36 = vpop.f32.mrb[234].mxu0  ;;  %v18345_v53 = vld [vmem:[#allocation52_spill] sm:$0xff] }
 0x2c3   : > { %v7028_v11 = vmax.f32 %v7024_v31, 0.0  ;;  %v6905_v10 = vmax.f32 %v18341_v34, %v6605_v36  ;;  %v16872_v0 = vpop.f32.mrb[234].mxu1  ;;  %9071 = vmatmul.mubr.f32.gmra.mrb[68].mxu0 %v18342_v12  ;;  %v6607_v59 = vpop.f32.mrb[235].mxu0  ;;  %v18347_v34 = vld [vmem:[#allocation53_spill] sm:$0xff] }
 0x2c4   : > { %v16875_v8 = vpack.c.bf16 %v6948_v6, %v6947_v46  ;;  %8797 = vmatmul.mubr.f32.gmra.mrb[44].mxu1 %v16590_v51  ;;  %v6906_v26 = vmax.f32 %v18343_v52, %v6607_v59  ;;  %v16879_v7 = vpop.f32.mrb[235].mxu1  ;;  %9076 = vmatprep.mubr.f32.mxu0 %v16716_v22  ;;  %v6973_v44 = vadd.f32 %v6969_v24, %v14854_v29  ;;  %v18346_v6 = vld [vmem:[#allocation51_spill] sm:$0xff] }
 0x2c5   : > { %8802 = vmatprep.mubr.f32.mxu1 %v16617_v3  ;;  %v16883_v50 = vpack.c.bf16 %v7028_v11, %v7027_v39  ;;  %v18348_v39 = vmov 0.0  }
 0x2c6   : > { %v6970_v27 = vmax.f32 %v6905_v10, %v6906_v26  ;;  %v6611_v41 = vpop.f32.mrb[236].mxu0  ;;  %v6977_v24 = vmax.f32 %v6973_v44, 0.0 }
 0x2c7   : > { %18344 = vst [vmem:[#allocation14_spill] sm:$0xff] %v16883_v50  ;;  %v6917_v31 = vmax.f32 %v18345_v53, %v6611_v41  ;;  %v16887_v46 = vpop.f32.mrb[236].mxu1  ;;  %9077 = vmatmul.mubr.f32.gmra.mrb[70].mxu0 %v18346_v6  ;;  %v6613_v51 = vpop.f32.mrb[237].mxu0  ;;  %v18349_v53 = vld [vmem:[#allocation18_spill] sm:$0xff]  ;;  %v17041_v50 = vld [vmem:[%s18081_s3 + $0x8] sm:$0xff] }
 0x2c8   : > { %v6974_v36 = vadd.f32 %v6970_v27, %v14874_v49  ;;  %8803 = vmatmul.mubr.f32.gmra.mrb[46].mxu1 %v18325_v15  ;;  %v6918_v59 = vmax.f32 %v18347_v34, %v6613_v51  ;;  %v16893_v3 = vpop.f32.mrb[237].mxu1  ;;  %9147 = vmatprep.mubr.f32.mxu0 %v18348_v39  ;;  %v18350_v51 = vld [vmem:[#allocation32_spill] sm:$0xff]  ;;  %18367 = vst [vmem:[#allocation42_spill] sm:$0xff] %v17041_v50 }
 0x2c9   : > { %8808 = vmatprep.mubr.f32.mxu1 %v16649_v19 }
 0x2ca   : > { %v6978_v11 = vmax.f32 %v6974_v36, 0.0  ;;  %v6971_v10 = vmax.f32 %v6917_v31, %v6918_v59  ;;  %v6617_v52 = vpop.f32.mrb[238].mxu0  ;;  %v18351_v31 = vld [vmem:[#allocation31_spill] sm:$0xff] }
 0x2cb   : > { %v6929_v26 = vmax.f32 %v16744_v40, %v6617_v52  ;;  %v16898_v41 = vpop.f32.mrb[238].mxu1  ;;  %12176 = vmatmul.mubr.msk.f32.vlgmr.msra.gmra.mrb[56].mxu0 %vm8469_vm4, %v18349_v53  ;;  %v6619_v15 = vpop.f32.mrb[239].mxu0  ;;  %v18353_v52 = vld [vmem:[#allocation27_spill] sm:$0xff] }
 0x2cc   : > { %v16902_v27 = vpack.c.bf16 %v6978_v11, %v6977_v24  ;;  %8809 = vmatmul.mubr.f32.gmra.mrb[48].mxu1 %v18331_v54  ;;  %13298 = vmatpush1.bf16.msra.mxu0 %v18350_v51  ;;  %v6930_v19 = vmax.f32 %v16747_v20, %v6619_v15  ;;  %v16907_v44 = vpop.f32.mrb[239].mxu1  ;;  %v6975_v40 = vadd.f32 %v6971_v10, %v14898_v9  ;;  %v18352_v54 = vld [vmem:[#allocation22_spill] sm:$0xff] }
 0x2cd   : > { %13300 = vmatprep.subr.bf16.mxu0 %v18351_v31  ;;  %8814 = vmatprep.mubr.f32.mxu1 %v16672_v56 }
 0x2ce   : > { %v6972_v36 = vmax.f32 %v6929_v26, %v6930_v19  ;;  %9153 = vmatprep.mubr.f32.mxu0 %v18348_v39  ;;  %v6777_v34 = vpop.f32.mrb[240].mxu0 }
 0x2cf   : > { %v6897_v59 = vmax.f32 %v16757_v38, %v6777_v34  ;;  %v16914_v24 = vpop.f32.mrb[240].mxu1  ;;  %12177 = vmatmul.mubr.msk.f32.gmra.mrb[58].mxu0 %vm8469_vm4, %v18352_v54  ;;  %v6779_v20 = vpop.f32.mrb[241].mxu0  ;;  %v6979_v38 = vmax.f32 %v6975_v40, 0.0 }
 0x2d0   : > { %v6976_v11 = vadd.f32 %v6972_v36, %v14921_v58  ;;  %8815 = vmatmul.mubr.f32.gmra.mrb[50].mxu1 %v16683_v25  ;;  %13302 = vmatpush1.bf16.msra.mxu0 %v18353_v52  ;;  %v6898_v56 = vmax.f32 %v16760_v2, %v6779_v20  ;;  %v16922_v10 = vpop.f32.mrb[241].mxu1  ;;  %v18354_v25 = vld [vmem:[#allocation19_spill] sm:$0xff] }
 0x2d1   : > { %13304 = vmatprep.subr.bf16.mxu0 %v16061_v55  ;;  %8820 = vmatprep.mubr.f32.mxu1 %v18340_v47 }
 0x2d2   : > { %v6980_v26 = vmax.f32 %v6976_v11, 0.0  ;;  %v7001_v15 = vmax.f32 %v6897_v59, %v6898_v56  ;;  %9159 = vmatprep.mubr.f32.mxu0 %v18348_v39  ;;  %v6783_v51 = vpop.f32.mrb[242].mxu0 }
 0x2d3   : > { %v6909_v19 = vmax.f32 %v16769_v14, %v6783_v51  ;;  %v16928_v36 = vpop.f32.mrb[242].mxu1  ;;  %12178 = vmatmul.mubr.msk.f32.gmra.mrb[60].mxu0 %vm8469_vm4, %v18354_v25  ;;  %v6785_v2 = vpop.f32.mrb[243].mxu0 }
 0x2d4   : > { %v16932_v34 = vpack.c.bf16 %v6980_v26, %v6979_v38  ;;  %8821 = vmatmul.mubr.f32.gmra.mrb[52].mxu1 %v18342_v12  ;;  %13306 = vmatpush1.bf16.msra.mxu0 %v18278_v4  ;;  %v6910_v47 = vmax.f32 %v16771_v21, %v6785_v2  ;;  %v16937_v40 = vpop.f32.mrb[243].mxu1  ;;  %v7005_v14 = vadd.f32 %v7001_v15, %v14854_v29  ;;  %v18356_v12 = vld [vmem:[#allocation20_spill] sm:$0xff] }
 0x2d5   : > { %13308 = vmatprep.subr.bf16.mxu0 %v16097_v23  ;;  %8826 = vmatprep.mubr.f32.mxu1 %v16716_v22 }
 0x2d6   : > { %18355 = vst [vmem:[#allocation39_spill] sm:$0xff] %v16932_v34  ;;  %v7002_v59 = vmax.f32 %v6909_v19, %v6910_v47  ;;  %9165 = vmatprep.mubr.f32.mxu0 %v18348_v39  ;;  %v6789_v20 = vpop.f32.mrb[244].mxu0 }
 0x2d7   : > { %v6921_v11 = vmax.f32 %v16781_v17, %v6789_v20  ;;  %v16944_v52 = vpop.f32.mrb[244].mxu1  ;;  %12179 = vmatmul.mubr.msk.f32.gmra.mrb[62].mxu0 %vm8469_vm4, %v18356_v12  ;;  %v6791_v4 = vpop.f32.mrb[245].mxu0  ;;  %v7009_v17 = vmax.f32 %v7005_v14, 0.0  ;;  %v18359_v14 = vld [vmem:[#allocation16_spill] sm:$0xff] }
 0x2d8   : > { %v7006_v21 = vadd.f32 %v7002_v59, %v14874_v49  ;;  %8827 = vmatmul.mubr.f32.gmra.mrb[54].mxu1 %v18346_v6  ;;  %13310 = vmatpush1.bf16.msra.mxu0 %v18351_v31  ;;  %v6922_v22 = vmax.f32 %v16784_v57, %v6791_v4  ;;  %v16952_v56 = vpop.f32.mrb[245].mxu1  ;;  %v18357_v6 = vld [vmem:[#allocation5_spill] sm:$0xff] }
 0x2d9   : > { %13312 = vmatprep.subr.bf16.mxu0 %v15897_v16  ;;  %8897 = vmatprep.mubr.f32.mxu1 %v18348_v39  ;;  %v18360_v4 = vld [vmem:[#allocation37_spill] sm:$0xff] }
 0x2da   : > { %v7010_v38 = vmax.f32 %v7006_v21, 0.0  ;;  %v7003_v26 = vmax.f32 %v6921_v11, %v6922_v22  ;;  %9171 = vmatprep.mubr.f32.mxu0 %v18348_v39  ;;  %v6795_v15 = vpop.f32.mrb[246].mxu0  ;;  %v18361_v22 = vld [vmem:[#allocation17_spill] sm:$0xff] }
 0x2db   : > { %v6933_v51 = vmax.f32 %v16793_v43, %v6795_v15  ;;  %v16958_v19 = vpop.f32.mrb[246].mxu1  ;;  %12180 = vmatmul.mubr.msk.f32.gmra.mrb[64].mxu0 %vm8469_vm4, %v18357_v6  ;;  %v6797_v57 = vpop.f32.mrb[247].mxu0 }
 0x2dc   : > { %v16962_v31 = vpack.c.bf16 %v7010_v38, %v7009_v17  ;;  %12168 = vmatmul.mubr.msk.f32.vlgmr.msra.gmra.mrb[40].mxu1 %vm8469_vm4, %v18349_v53  ;;  %13314 = vmatpush1.bf16.msra.mxu0 %v16061_v55  ;;  %v6934_v2 = vmax.f32 %v16796_v13, %v6797_v57  ;;  %v16968_v47 = vpop.f32.mrb[247].mxu1  ;;  %v7007_v43 = vadd.f32 %v7003_v26, %v14898_v9  ;;  %v18363_v57 = vld [vmem:[#allocation38_spill] sm:$0xff] }
 0x2dd   : > { %13226 = vmatpush1.bf16.msra.mxu1 %v18359_v14  ;;  %13316 = vmatprep.subr.bf16.mxu0 %v15930_v48  ;;  %v18364_v14 = vld [vmem:[#allocation3_spill] sm:$0xff] }
 0x2de   : > { %18358 = vst [vmem:[#allocation41_spill] sm:$0xff] %v16962_v31  ;;  %v7004_v59 = vmax.f32 %v6933_v51, %v6934_v2  ;;  %13228 = vmatprep.subr.bf16.mxu1 %v18274_v1  ;;  %8903 = vmatprep.mubr.f32.mxu1 %v18348_v39  ;;  %v16975_v20 = vpop.f32.mrb[248].mxu0  ;;  %v7011_v17 = vmax.f32 %v7007_v43, 0.0 }
 0x2df   : > { %9177 = vmatprep.mubr.f32.mxu0 %v18348_v39  ;;  %v16978_v53 = vpop.f32.mrb[248].mxu1  ;;  %v16980_v13 = vpop.f32.mrb[249].mxu0 }
 0x2e0   : > { %v7008_v11 = vadd.f32 %v7004_v59, %v14921_v58  ;;  %12169 = vmatmul.mubr.msk.f32.gmra.mrb[42].mxu1 %vm8469_vm4, %v18352_v54  ;;  %12181 = vmatmul.mubr.msk.f32.gmra.mrb[66].mxu0 %vm8469_vm4, %v18360_v4  ;;  %v16987_v21 = vpop.f32.mrb[249].mxu1 }
 0x2e1   : > { %13230 = vmatpush1.bf16.msra.mxu1 %v18361_v22  ;;  %13318 = vmatpush1.bf16.msra.mxu0 %v16097_v23  ;;  %v18366_v22 = vld [vmem:[#allocation8_spill] sm:$0xff] }
 0x2e2   : > { %v7012_v38 = vmax.f32 %v7008_v11, 0.0  ;;  %13232 = vmatprep.subr.bf16.mxu1 %v18314_v45  ;;  %13320 = vmatprep.subr.bf16.mxu0 %v16270_v42  ;;  %v16993_v26 = vpop.f32.mrb[250].mxu0 }
 0x2e3   : > { %8909 = vmatprep.mubr.f32.mxu1 %v18348_v39  ;;  %9183 = vmatprep.mubr.f32.mxu0 %v18348_v39  ;;  %v16997_v54 = vpop.f32.mrb[250].mxu1  ;;  %v16999_v15 = vpop.f32.mrb[251].mxu0 }
 0x2e4   : > { %v17001_v51 = vpack.c.bf16 %v7012_v38, %v7011_v17  ;;  %12170 = vmatmul.mubr.msk.f32.gmra.mrb[44].mxu1 %vm8469_vm4, %v18354_v25  ;;  %12182 = vmatmul.mubr.msk.f32.gmra.mrb[68].mxu0 %vm8469_vm4, %v18363_v57  ;;  %v17007_v2 = vpop.f32.mrb[251].mxu1 }
 0x2e5   : > { %13234 = vmatpush1.bf16.msra.mxu1 %v18270_v30  ;;  %13322 = vmatpush1.bf16.msra.mxu0 %v18364_v14  ;;  %v18365_v30 = vld [vmem:[#allocation40_spill] sm:$0xff] }
 0x2e6   : > { %18362 = vst [vmem:[#allocation11_spill] sm:$0xff] %v17001_v51  ;;  %13236 = vmatprep.subr.bf16.mxu1 %v18317_v35  ;;  %13324 = vmatprep.subr.bf16.mxu0 %v18316_v62  ;;  %v17013_v43 = vpop.f32.mrb[252].mxu0 }
 0x2e7   : > { %8915 = vmatprep.mubr.f32.mxu1 %v18348_v39  ;;  %9189 = vmatprep.mubr.f32.mxu0 %v18348_v39  ;;  %v17017_v25 = vpop.f32.mrb[252].mxu1  ;;  %v17019_v59 = vpop.f32.mrb[253].mxu0 }
 0x2e8   : > { %12171 = vmatmul.mubr.msk.f32.gmra.mrb[46].mxu1 %vm8469_vm4, %v18356_v12  ;;  %12183 = vmatmul.mubr.msk.f32.gmra.mrb[70].mxu0 %vm8469_vm4, %v18365_v30  ;;  %v17025_v11 = vpop.f32.mrb[253].mxu1 }
 0x2e9   : > { %13238 = vmatpush1.bf16.msra.mxu1 %v18274_v1  ;;  %13326 = vmatpush1.bf16.msra.mxu0 %v18366_v22 }
 0x2ea   : > { %13240 = vmatprep.subr.bf16.mxu1 %v18318_v18  ;;  %13328 = vmatprep.subr.bf16.mxu0 %v16456_v61  ;;  %v17031_v17 = vpop.f32.mrb[254].mxu0  ;;  %v18369_v18 = vld [vmem:[#allocation24_spill] sm:$0xff] }
 0x2eb   : > { %8921 = vmatprep.mubr.f32.mxu1 %v18348_v39  ;;  %v17034_v38 = vpop.f32.mrb[254].mxu1  ;;  %v17036_v12 = vpop.f32.mrb[255].mxu0  ;;  %9630 = vmatprep.mubr.f32.mxu0 %v17041_v50 }
 0x2ec   : > { %12172 = vmatmul.mubr.msk.f32.gmra.mrb[48].mxu1 %vm8469_vm4, %v18357_v6  ;;  %v17046_v1 = vpop.f32.mrb[255].mxu1 }
 0x2ed   : > { %18368 = vst [vmem:[#allocation43_spill] sm:$0xff] %v17046_v1  ;;  %13242 = vmatpush1.bf16.msra.mxu1 %v18314_v45  ;;  %13330 = vmatpush1.bf16.msra.mxu0 %v16270_v42 }
 0x2ee   : > { %13244 = vmatprep.subr.bf16.mxu1 %v18369_v18  ;;  %13332 = vmatprep.subr.bf16.mxu0 %v18370_v60  ;;  %v17052_v51 = vpop.f32.mrb[0].mxu0  ;;  %v18372_v18 = vld [vmem:[#allocation6_spill] sm:$0xff] }
 0x2ef   : > { %18371 = vst [vmem:[#allocation44_spill] sm:$0xff] %v17052_v51  ;;  %8927 = vmatprep.mubr.f32.mxu1 %v18348_v39  ;;  %v7842_v31 = vpop.f32.mrb[0].mxu1  ;;  %v17055_v22 = vpop.f32.mrb[1].mxu0 }
 0x2f0   : > { %v8223_v14 = vmax.f32 %v16858_v32, %v7842_v31  ;;  %12173 = vmatmul.mubr.msk.f32.gmra.mrb[50].mxu1 %vm8469_vm4, %v18360_v4  ;;  %v7844_v6 = vpop.f32.mrb[1].mxu1 }
 0x2f1   : > { %13246 = vmatpush1.bf16.msra.mxu1 %v18317_v35  ;;  %13334 = vmatpush1.bf16.msra.mxu0 %v18316_v62  ;;  %v8224_v45 = vmax.f32 %v16864_v37, %v7844_v6 }
 0x2f2   : > { %13248 = vmatprep.subr.bf16.mxu1 %v15897_v16  ;;  %13336 = vmatprep.subr.bf16.mxu0 %v18372_v18  ;;  %v17065_v51 = vpop.f32.mrb[2].mxu0 }
 0x2f3   : > { %v8285_v1 = vmax.f32 %v8223_v14, %v8224_v45  ;;  %8933 = vmatprep.mubr.f32.mxu1 %v18348_v39  ;;  %v7848_v32 = vpop.f32.mrb[2].mxu1  ;;  %v17068_v31 = vpop.f32.mrb[3].mxu0  ;;  %v18373_v14 = vld [vmem:[#allocation12_spill] sm:$0xff] }
 0x2f4   : > { %v8235_v4 = vmax.f32 %v16872_v0, %v7848_v32  ;;  %12174 = vmatmul.mubr.msk.f32.gmra.mrb[52].mxu1 %vm8469_vm4, %v18363_v57  ;;  %v7850_v35 = vpop.f32.mrb[3].mxu1 }
 0x2f5   : > { %13250 = vmatpush1.bf16.msra.mxu1 %v16061_v55  ;;  %13338 = vmatpush1.bf16.msra.mxu0 %v16456_v61  ;;  %v8236_v37 = vmax.f32 %v16879_v7, %v7850_v35  ;;  %v8289_v45 = vadd.f32 %v8285_v1, %v14854_v29 }
 0x2f6   : > { %13252 = vmatprep.subr.bf16.mxu1 %v15930_v48  ;;  %13340 = vmatprep.subr.bf16.mxu0 %v18373_v14  ;;  %v17078_v6 = vpop.f32.mrb[4].mxu0 }
 0x2f7   : > { %v8286_v62 = vmax.f32 %v8235_v4, %v8236_v37  ;;  %8939 = vmatprep.mubr.f32.mxu1 %v18348_v39  ;;  %v7854_v0 = vpop.f32.mrb[4].mxu1  ;;  %v17082_v57 = vpop.f32.mrb[5].mxu0  ;;  %v18374_v4 = vld [vmem:[#allocation25_spill] sm:$0xff]  ;;  %v8293_v55 = vmax.f32 %v8289_v45, 0.0  ;;  %v18377_v45 = vld [vmem:[#allocation26_spill] sm:$0xff] }
 0x2f8   : > { %v8247_v32 = vmax.f32 %v16887_v46, %v7854_v0  ;;  %12175 = vmatmul.mubr.msk.f32.gmra.mrb[54].mxu1 %vm8469_vm4, %v18365_v30  ;;  %v7856_v7 = vpop.f32.mrb[5].mxu1 }
 0x2f9   : > { %v8290_v35 = vadd.f32 %v8286_v62, %v14874_v49  ;;  %13254 = vmatpush1.bf16.msra.mxu1 %v16097_v23  ;;  %13342 = vmatpush1.bf16.msra.mxu0 %v18370_v60  ;;  %v8248_v1 = vmax.f32 %v16893_v3, %v7856_v7 }
 0x2fa   : > { %13256 = vmatprep.subr.bf16.mxu1 %v18322_v28  ;;  %13344 = vmatprep.subr.bf16.mxu0 %v18374_v4  ;;  %v17093_v37 = vpop.f32.mrb[6].mxu0 }
 0x2fb   : > { %v8294_v46 = vmax.f32 %v8290_v35, 0.0  ;;  %v8287_v0 = vmax.f32 %v8247_v32, %v8248_v1  ;;  %v7860_v39 = vpop.f32.mrb[6].mxu1  ;;  %v17095_v30 = vpop.f32.mrb[7].mxu0  ;;  %9260 = vmatprep.mubr.f32.mxu1 %v17041_v50 }
 0x2fc   : > { %18375 = vst [vmem:[#allocation45_spill] sm:$0xff] %v17095_v30  ;;  %v8259_v62 = vmax.f32 %v16898_v41, %v7860_v39  ;;  %v7862_v23 = vpop.f32.mrb[7].mxu1 }
 0x2fd   : > { %13258 = vmatpush1.bf16.msra.mxu1 %v15897_v16  ;;  %13346 = vmatpush1.bf16.msra.mxu0 %v16843_v63  ;;  %v8260_v3 = vmax.f32 %v16907_v44, %v7862_v23  ;;  %v17102_v7 = vpack.c.bf16 %v8294_v46, %v8293_v55  ;;  %v8291_v35 = vadd.f32 %v8287_v0, %v14898_v9  ;;  %v18378_v23 = vld [vmem:[#allocation33_spill] sm:$0xff] }
 0x2fe   : > { %13260 = vmatprep.subr.bf16.mxu1 %v18324_v5  ;;  %13348 = vmatprep.subr.bf16.mxu0 %v18377_v45  ;;  %v17106_v32 = vpop.f32.mrb[8].mxu0 }
 0x2ff   : > { %18376 = vst [vmem:[#allocation13_spill] sm:$0xff] %v17102_v7  ;;  %v8288_v1 = vmax.f32 %v8259_v62, %v8260_v3  ;;  %v8020_v50 = vpop.f32.mrb[8].mxu1  ;;  %v17109_v39 = vpop.f32.mrb[9].mxu0  ;;  %v8295_v46 = vmax.f32 %v8291_v35, 0.0 }
 0x300   : > { %v8227_v41 = vmax.f32 %v16914_v24, %v8020_v50  ;;  %v8022_v30 = vpop.f32.mrb[9].mxu1 }
 0x301   : > { %v8292_v63 = vadd.f32 %v8288_v1, %v14921_v58  ;;  %13262 = vmatpush1.bf16.msra.mxu1 %v15930_v48  ;;  %13350 = vmatpush1.bf16.msra.mxu0 %v16875_v8  ;;  %v8228_v55 = vmax.f32 %v16922_v10, %v8022_v30 }
 0x302   : > { %13264 = vmatprep.subr.bf16.mxu1 %v18378_v23  ;;  %13352 = vmatprep.subr.bf16.mxu0 %v16902_v27  ;;  %v17118_v44 = vpop.f32.mrb[10].mxu0 }
 0x303   : > { %v8296_v0 = vmax.f32 %v8292_v63, 0.0  ;;  %v8317_v62 = vmax.f32 %v8227_v41, %v8228_v55  ;;  %v8026_v3 = vpop.f32.mrb[10].mxu1  ;;  %v17120_v50 = vpop.f32.mrb[11].mxu0 }
 0x304   : > { %v8239_v24 = vmax.f32 %v16928_v36, %v8026_v3  ;;  %v8028_v1 = vpop.f32.mrb[11].mxu1 }
 0x305   : > { %13266 = vmatpush1.bf16.msra.mxu1 %v18322_v28  ;;  %13354 = vmatpush1.bf16.msra.mxu0 %v18374_v4  ;;  %v8240_v10 = vmax.f32 %v16937_v40, %v8028_v1  ;;  %v17126_v30 = vpack.c.bf16 %v8296_v0, %v8295_v46  ;;  %v8321_v35 = vadd.f32 %v8317_v62, %v14854_v29  ;;  %v18380_v46 = vld [vmem:[#allocation23_spill] sm:$0xff] }
 0x306   : > { %13268 = vmatprep.subr.bf16.mxu1 %v18337_v33  ;;  %13356 = vmatprep.subr.bf16.mxu0 %v16932_v34  ;;  %v17130_v63 = vpop.f32.mrb[12].mxu0 }
 0x307   : > { %18379 = vst [vmem:[#allocation46_spill] sm:$0xff] %v17126_v30  ;;  %v8318_v41 = vmax.f32 %v8239_v24, %v8240_v10  ;;  %v8032_v55 = vpop.f32.mrb[12].mxu1  ;;  %v17133_v36 = vpop.f32.mrb[13].mxu0  ;;  %v8325_v62 = vmax.f32 %v8321_v35, 0.0 }
 0x308   : > { %v8251_v3 = vmax.f32 %v16944_v52, %v8032_v55  ;;  %v8034_v7 = vpop.f32.mrb[13].mxu1  ;;  %v18382_v55 = vld [vmem:[#allocation35_spill] sm:$0xff] }
 0x309   : > { %v8322_v23 = vadd.f32 %v8318_v41, %v14874_v49  ;;  %13270 = vmatpush1.bf16.msra.mxu1 %v18324_v5  ;;  %13358 = vmatpush1.bf16.msra.mxu0 %v18377_v45  ;;  %v8252_v40 = vmax.f32 %v16952_v56, %v8034_v7  ;;  %v17149_v41 = vld [vmem:[%s18081_s3] sm:$0xff] }
 0x30a   : > { %13272 = vmatprep.subr.bf16.mxu1 %v18372_v18  ;;  %13360 = vmatprep.subr.bf16.mxu0 %v18380_v46  ;;  %v17142_v0 = vpop.f32.mrb[14].mxu0 }
 0x30b   : > { %v8326_v24 = vmax.f32 %v8322_v23, 0.0  ;;  %v8319_v1 = vmax.f32 %v8251_v3, %v8252_v40  ;;  %v8038_v10 = vpop.f32.mrb[14].mxu1  ;;  %v17144_v52 = vpop.f32.mrb[15].mxu0 }
 0x30c   : > { %9631 = vmatmul.mubr.f32.vlgmr.msra.gmra.mrb[72].mxu0 %v17149_v41  ;;  %v8263_v56 = vmax.f32 %v16958_v19, %v8038_v10  ;;  %v8040_v7 = vpop.f32.mrb[15].mxu1  ;;  %v17164_v19 = vld [vmem:[%s18081_s3 + $0x20] sm:$0xff] }
 0x30d   : > { %13274 = vmatpush1.bf16.msra.mxu1 %v16456_v61  ;;  %13362 = vmatpush1.bf16.msra.mxu0 %v16902_v27  ;;  %v8264_v23 = vmax.f32 %v16968_v47, %v8040_v7  ;;  %v17156_v35 = vpack.c.bf16 %v8326_v24, %v8325_v62  ;;  %v8323_v40 = vadd.f32 %v8319_v1, %v14898_v9  ;;  %v17171_v24 = vld [vmem:[%s18081_s3 + $0x18] sm:$0xff] }
 0x30e   : > { %13276 = vmatprep.subr.bf16.mxu1 %v18373_v14  ;;  %13364 = vmatprep.subr.bf16.mxu0 %v18382_v55  ;;  %v7753_v3 = vpop.f32.mrb[16].mxu0 }
 0x30f   : > { %18381 = vst [vmem:[#allocation47_spill] sm:$0xff] %v17156_v35  ;;  %v8320_v30 = vmax.f32 %v8263_v56, %v8264_v23  ;;  %9636 = vmatprep.mubr.f32.mxu0 %v17164_v19  ;;  %v8221_v10 = vmax.f32 %v16975_v20, %v7753_v3  ;;  %v8198_v47 = vpop.f32.mrb[16].mxu1  ;;  %v7755_v62 = vpop.f32.mrb[17].mxu0  ;;  %v18383_v35 = vld [vmem:[#allocation21_spill] sm:$0xff]  ;;  %v8327_v46 = vmax.f32 %v8323_v40, 0.0 }
 0x310   : > { %9637 = vmatmul.mubr.f32.gmra.mrb[74].mxu0 %v17171_v24  ;;  %v8231_v1 = vmax.f32 %v16978_v53, %v8198_v47  ;;  %v8222_v56 = vmax.f32 %v16980_v13, %v7755_v62  ;;  %v8200_v7 = vpop.f32.mrb[17].mxu1  ;;  %v17185_v13 = vld [vmem:[%s18081_s3 + $0x38] sm:$0xff] }
 0x311   : > { %v8324_v23 = vadd.f32 %v8320_v30, %v14921_v58  ;;  %13278 = vmatpush1.bf16.msra.mxu1 %v18370_v60  ;;  %13366 = vmatpush1.bf16.msra.mxu0 %v16932_v34  ;;  %v8232_v20 = vmax.f32 %v16987_v21, %v8200_v7 }
 0x312   : > { %v8269_v3 = vmax.f32 %v8221_v10, %v8222_v56  ;;  %13280 = vmatprep.subr.bf16.mxu1 %v18383_v35  ;;  %13440 = vmatprep.subr.bf16.mxu0 %v16270_v42  ;;  %v7759_v55 = vpop.f32.mrb[18].mxu0  ;;  %v17192_v10 = vld [vmem:[%s18081_s3 + $0x30] sm:$0xff] }
 0x313   : > { %v8328_v33 = vmax.f32 %v8324_v23, 0.0  ;;  %v8349_v53 = vmax.f32 %v8231_v1, %v8232_v20  ;;  %9642 = vmatprep.mubr.f32.mxu0 %v17185_v13  ;;  %v8233_v30 = vmax.f32 %v16993_v26, %v7759_v55  ;;  %v8204_v47 = vpop.f32.mrb[18].mxu1  ;;  %v7761_v21 = vpop.f32.mrb[19].mxu0  ;;  %v17202_v26 = vld [vmem:[%s18081_s3 + $0x50] sm:$0xff] }
 0x314   : > { %9643 = vmatmul.mubr.f32.gmra.mrb[76].mxu0 %v17192_v10  ;;  %v8243_v40 = vmax.f32 %v16997_v54, %v8204_v47  ;;  %v8234_v62 = vmax.f32 %v16999_v15, %v7761_v21  ;;  %v8206_v1 = vpop.f32.mrb[19].mxu1  ;;  %v8273_v7 = vadd.f32 %v8269_v3, %v14854_v29  ;;  %v18385_v54 = vld [vmem:[#allocation30_spill] sm:$0xff] }
 0x315   : > { %13282 = vmatpush1.bf16.msra.mxu1 %v18372_v18  ;;  %v8244_v56 = vmax.f32 %v17007_v2, %v8206_v1  ;;  %9648 = vmatprep.mubr.f32.mxu0 %v17202_v26  ;;  %v17205_v55 = vpack.c.bf16 %v8328_v33, %v8327_v46  ;;  %v8353_v1 = vadd.f32 %v8349_v53, %v14854_v29  ;;  %v17215_v33 = vld [vmem:[%s18081_s3 + $0x48] sm:$0xff] }
 0x316   : > { %v8270_v23 = vmax.f32 %v8233_v30, %v8234_v62  ;;  %13284 = vmatprep.subr.bf16.mxu1 %v18385_v54  ;;  %v7765_v15 = vpop.f32.mrb[20].mxu0  ;;  %v8277_v62 = vmax.f32 %v8273_v7, 0.0  ;;  %v17237_v7 = vld [vmem:[%s18081_s3 + $0x60] sm:$0xff] }
 0x317   : > { %18384 = vst [vmem:[#allocation49_spill] sm:$0xff] %v17205_v55  ;;  %v8350_v20 = vmax.f32 %v8243_v40, %v8244_v56  ;;  %v8245_v47 = vmax.f32 %v17013_v43, %v7765_v15  ;;  %v8210_v21 = vpop.f32.mrb[20].mxu1  ;;  %v7767_v2 = vpop.f32.mrb[21].mxu0  ;;  %v17226_v40 = vld [vmem:[%s18081_s3 + $0x68] sm:$0xff] }
 0x318   : > { %v8274_v34 = vadd.f32 %v8270_v23, %v14874_v49  ;;  %9649 = vmatmul.mubr.f32.gmra.mrb[78].mxu0 %v17215_v33  ;;  %v8255_v46 = vmax.f32 %v17017_v25, %v8210_v21  ;;  %v8246_v3 = vmax.f32 %v17019_v59, %v7767_v2  ;;  %v8212_v30 = vpop.f32.mrb[21].mxu1  ;;  %v18386_v25 = vld [vmem:[#allocation4_spill] sm:$0xff] }
 0x319   : > { %v8354_v43 = vadd.f32 %v8350_v20, %v14874_v49  ;;  %13286 = vmatpush1.bf16.msra.mxu1 %v18373_v14  ;;  %v8256_v53 = vmax.f32 %v17025_v11, %v8212_v30  ;;  %9654 = vmatprep.mubr.f32.mxu0 %v17226_v40  ;;  %v8357_v11 = vmax.f32 %v8353_v1, 0.0 }
 0x31a   : > { %v8278_v56 = vmax.f32 %v8274_v34, 0.0  ;;  %v8271_v23 = vmax.f32 %v8245_v47, %v8246_v3  ;;  %13288 = vmatprep.subr.bf16.mxu1 %v18386_v25  ;;  %v7771_v59 = vpop.f32.mrb[22].mxu0 }
 0x31b   : > { %v8358_v15 = vmax.f32 %v8354_v43, 0.0  ;;  %v8351_v21 = vmax.f32 %v8255_v46, %v8256_v53  ;;  %v8257_v20 = vmax.f32 %v17031_v17, %v7771_v59  ;;  %v8216_v2 = vpop.f32.mrb[22].mxu1  ;;  %v7773_v55 = vpop.f32.mrb[23].mxu0  ;;  %v18387_v46 = vld [vmem:[#allocation43_spill] sm:$0xff]  ;;  %v18388_v43 = vld [vmem:[#allocation9_spill] sm:$0xff]  ;;  %v18390_v59 = vld [vmem:[#allocation44_spill] sm:$0xff] }
 0x31c   : > { %v17231_v30 = vpack.c.bf16 %v8278_v56, %v8277_v62  ;;  %9261 = vmatmul.mubr.f32.vlgmr.msra.gmra.mrb[56].mxu1 %v17149_v41  ;;  %9655 = vmatmul.mubr.f32.gmra.mrb[80].mxu0 %v17237_v7  ;;  %v8267_v34 = vmax.f32 %v17034_v38, %v8216_v2  ;;  %v8218_v47 = vpop.f32.mrb[23].mxu1  ;;  %v8258_v17 = vmax.f32 %v17036_v12, %v7773_v55  ;;  %v17250_v53 = vld [vmem:[%s18081_s3 + $0x80] sm:$0xff] }
 0x31d   : > { %13290 = vmatpush1.bf16.msra.mxu1 %v18383_v35  ;;  %v8268_v1 = vmax.f32 %v18387_v46, %v8218_v47  ;;  %9266 = vmatprep.mubr.f32.mxu1 %v17164_v19  ;;  %v8275_v3 = vadd.f32 %v8271_v23, %v14898_v9  ;;  %v17253_v62 = vpack.c.bf16 %v8358_v15, %v8357_v11  ;;  %v17261_v23 = vld [vmem:[%s18081_s3 + $0x78] sm:$0xff] }
 0x31e   : > { %13292 = vmatprep.subr.bf16.mxu1 %v18388_v43  ;;  %9660 = vmatprep.mubr.f32.mxu0 %v17250_v53  ;;  %v7931_v38 = vpop.f32.mrb[24].mxu0  ;;  %v8355_v12 = vadd.f32 %v8351_v21, %v14898_v9  ;;  %v8272_v55 = vmax.f32 %v8257_v20, %v8258_v17 }
 0x31f   : > { %18389 = vst [vmem:[#allocation48_spill] sm:$0xff] %v17253_v62  ;;  %v8352_v56 = vmax.f32 %v8267_v34, %v8268_v1  ;;  %v8225_v2 = vmax.f32 %v18390_v59, %v7931_v38  ;;  %v7933_v47 = vpop.f32.mrb[25].mxu0  ;;  %v8279_v20 = vmax.f32 %v8275_v3, 0.0  ;;  %v17273_v34 = vld [vmem:[%s18081_s3 + $0x98] sm:$0xff]  ;;  %v17281_v3 = vld [vmem:[%s18081_s3 + $0x90] sm:$0xff] }
 0x320   : > { %9267 = vmatmul.mubr.f32.gmra.mrb[58].mxu1 %v17171_v24  ;;  %9661 = vmatmul.mubr.f32.gmra.mrb[82].mxu0 %v17261_v23  ;;  %v8226_v46 = vmax.f32 %v17055_v22, %v7933_v47  ;;  %v8276_v15 = vadd.f32 %v8272_v55, %v14921_v58  ;;  %v8359_v17 = vmax.f32 %v8355_v12, 0.0 }
 0x321   : > { %v8356_v21 = vadd.f32 %v8352_v56, %v14921_v58  ;;  %13294 = vmatpush1.bf16.msra.mxu1 %v18385_v54  ;;  %9272 = vmatprep.mubr.f32.mxu1 %v17185_v13 }
 0x322   : > { %v8301_v11 = vmax.f32 %v8225_v2, %v8226_v46  ;;  %13368 = vmatprep.subr.bf16.mxu1 %v15897_v16  ;;  %9666 = vmatprep.mubr.f32.mxu0 %v17273_v34  ;;  %v7937_v22 = vpop.f32.mrb[26].mxu0  ;;  %v8280_v1 = vmax.f32 %v8276_v15, 0.0 }
 0x323   : > { %v8360_v38 = vmax.f32 %v8356_v21, 0.0  ;;  %v8237_v55 = vmax.f32 %v17065_v51, %v7937_v22  ;;  %v7939_v56 = vpop.f32.mrb[27].mxu0  ;;  %v17291_v51 = vld [vmem:[%s18081_s3 + $0xb0] sm:$0xff]  ;;  %v17303_v22 = vld [vmem:[%s18081_s3 + $0xa8] sm:$0xff] }
 0x324   : > { %9273 = vmatmul.mubr.f32.gmra.mrb[60].mxu1 %v17192_v10  ;;  %9667 = vmatmul.mubr.f32.gmra.mrb[84].mxu0 %v17281_v3  ;;  %v8238_v59 = vmax.f32 %v17068_v31, %v7939_v56  ;;  %v17285_v2 = vpack.c.bf16 %v8280_v1, %v8279_v20  ;;  %v8305_v47 = vadd.f32 %v8301_v11, %v14854_v29  ;;  %v18392_v11 = vmov 0.0  }
 0x325   : > { %9278 = vmatprep.mubr.f32.mxu1 %v17202_v26  ;;  %9672 = vmatprep.mubr.f32.mxu0 %v17291_v51  ;;  %v17294_v12 = vpack.c.bf16 %v8360_v38, %v8359_v17 }
 0x326   : > { %v8302_v46 = vmax.f32 %v8237_v55, %v8238_v59  ;;  %v7943_v15 = vpop.f32.mrb[28].mxu0  ;;  %v8309_v1 = vmax.f32 %v8305_v47, 0.0  ;;  %v18394_v47 = vld [vmem:[#allocation3_spill] sm:$0xff] }
 0x327   : > { %18391 = vst [vmem:[#allocation50_spill] sm:$0xff] %v17294_v12  ;;  %v8249_v21 = vmax.f32 %v17078_v6, %v7943_v15  ;;  %v7945_v31 = vpop.f32.mrb[29].mxu0 }
 0x328   : > { %v8306_v20 = vadd.f32 %v8302_v46, %v14874_v49  ;;  %9279 = vmatmul.mubr.f32.gmra.mrb[62].mxu1 %v17215_v33  ;;  %9673 = vmatmul.mubr.f32.gmra.mrb[86].mxu0 %v17303_v22  ;;  %v8250_v17 = vmax.f32 %v17082_v57, %v7945_v31  ;;  %v17314_v46 = vld [vmem:[%s18081_s3 + $0x10] sm:$0xff] }
 0x329   : > { %9284 = vmatprep.mubr.f32.mxu1 %v17226_v40  ;;  %9743 = vmatprep.mubr.f32.mxu0 %v18392_v11  ;;  %v18393_v57 = vld [vmem:[#allocation45_spill] sm:$0xff] }
 0x32a   : > { %v8310_v6 = vmax.f32 %v8306_v20, 0.0  ;;  %v8303_v38 = vmax.f32 %v8249_v21, %v8250_v17  ;;  %v7949_v55 = vpop.f32.mrb[30].mxu0  ;;  %v18395_v21 = vld [vmem:[#allocation10_spill] sm:$0xff] }
 0x32b   : > { %v8261_v56 = vmax.f32 %v17093_v37, %v7949_v55  ;;  %v7951_v59 = vpop.f32.mrb[31].mxu0 }
 0x32c   : > { %9285 = vmatmul.mubr.f32.gmra.mrb[64].mxu1 %v17237_v7  ;;  %12192 = vmatmul.mubr.msk.f32.vlgmr.msra.gmra.mrb[72].mxu0 %vm8469_vm4, %v17314_v46  ;;  %v8262_v15 = vmax.f32 %v18393_v57, %v7951_v59  ;;  %v17319_v31 = vpack.c.bf16 %v8310_v6, %v8309_v1  ;;  %v8307_v37 = vadd.f32 %v8303_v38, %v14898_v9  ;;  %v17333_v6 = vld [vmem:[%s18081_s3 + $0x28] sm:$0xff] }
 0x32d   : > { %13442 = vmatpush1.bf16.msra.mxu0 %v18394_v47  ;;  %9290 = vmatprep.mubr.f32.mxu1 %v17250_v53  ;;  %v18396_v38 = vld [vmem:[#allocation8_spill] sm:$0xff]  ;;  %v17347_v47 = vld [vmem:[%s18081_s3 + $0x40] sm:$0xff] }
 0x32e   : > { %13444 = vmatprep.subr.bf16.mxu0 %v18395_v21  ;;  %v8304_v20 = vmax.f32 %v8261_v56, %v8262_v15  ;;  %v8109_v17 = vpop.f32.mrb[32].mxu0  ;;  %9749 = vmatprep.mubr.f32.mxu0 %v18392_v11 }
 0x32f   : > { %v8229_v55 = vmax.f32 %v17106_v32, %v8109_v17  ;;  %v8111_v12 = vpop.f32.mrb[33].mxu0  ;;  %v8311_v32 = vmax.f32 %v8307_v37, 0.0 }
 0x330   : > { %v8308_v62 = vadd.f32 %v8304_v20, %v14921_v58  ;;  %9291 = vmatmul.mubr.f32.gmra.mrb[66].mxu1 %v17261_v23  ;;  %v8230_v1 = vmax.f32 %v17109_v39, %v8111_v12  ;;  %12193 = vmatmul.mubr.msk.f32.gmra.mrb[74].mxu0 %vm8469_vm4, %v17333_v6 }
 0x331   : > { %13446 = vmatpush1.bf16.msra.mxu0 %v18396_v38  ;;  %9296 = vmatprep.mubr.f32.mxu1 %v17273_v34 }
 0x332   : > { %v8312_v56 = vmax.f32 %v8308_v62, 0.0  ;;  %13448 = vmatprep.subr.bf16.mxu0 %v16456_v61  ;;  %v8333_v59 = vmax.f32 %v8229_v55, %v8230_v1  ;;  %v8115_v57 = vpop.f32.mrb[34].mxu0  ;;  %9755 = vmatprep.mubr.f32.mxu0 %v18392_v11 }
 0x333   : > { %v8241_v39 = vmax.f32 %v17118_v44, %v8115_v57  ;;  %v8117_v12 = vpop.f32.mrb[35].mxu0  ;;  %v18398_v57 = vld [vmem:[#allocation28_spill] sm:$0xff] }
 0x334   : > { %9297 = vmatmul.mubr.f32.gmra.mrb[68].mxu1 %v17281_v3  ;;  %v8242_v15 = vmax.f32 %v17120_v50, %v8117_v12  ;;  %12194 = vmatmul.mubr.msk.f32.gmra.mrb[76].mxu0 %vm8469_vm4, %v17347_v47  ;;  %v17351_v62 = vpack.c.bf16 %v8312_v56, %v8311_v32  ;;  %v8337_v44 = vadd.f32 %v8333_v59, %v14854_v29 }
 0x335   : > { %13450 = vmatpush1.bf16.msra.mxu0 %v16270_v42  ;;  %9302 = vmatprep.mubr.f32.mxu1 %v17291_v51  ;;  %v17365_v42 = vld [vmem:[%s18081_s3 + $0x58] sm:$0xff] }
 0x336   : > { %13452 = vmatprep.subr.bf16.mxu0 %v18370_v60  ;;  %v8334_v37 = vmax.f32 %v8241_v39, %v8242_v15  ;;  %v8121_v50 = vpop.f32.mrb[36].mxu0  ;;  %9761 = vmatprep.mubr.f32.mxu0 %v18392_v11  ;;  %v8341_v29 = vmax.f32 %v8337_v44, 0.0  ;;  %v18399_v44 = vld [vmem:[#allocation29_spill] sm:$0xff] }
 0x337   : > { %v8253_v20 = vmax.f32 %v17130_v63, %v8121_v50  ;;  %v8123_v17 = vpop.f32.mrb[37].mxu0 }
 0x338   : > { %v8338_v55 = vadd.f32 %v8334_v37, %v14874_v49  ;;  %9303 = vmatmul.mubr.f32.gmra.mrb[70].mxu1 %v17303_v22  ;;  %v8254_v1 = vmax.f32 %v17133_v36, %v8123_v17  ;;  %12195 = vmatmul.mubr.msk.f32.gmra.mrb[78].mxu0 %vm8469_vm4, %v17365_v42  ;;  %v17414_v17 = vld [vmem:[%s18081_s3 + $0xa0] sm:$0xff] }
 0x339   : > { %13454 = vmatpush1.bf16.msra.mxu0 %v18395_v21  ;;  %9373 = vmatprep.mubr.f32.mxu1 %v18392_v11  ;;  %v17380_v21 = vld [vmem:[%s18081_s3 + $0x70] sm:$0xff] }
 0x33a   : > { %v8342_v63 = vmax.f32 %v8338_v55, 0.0  ;;  %13456 = vmatprep.subr.bf16.mxu0 %v18372_v18  ;;  %v8335_v49 = vmax.f32 %v8253_v20, %v8254_v1  ;;  %v8127_v38 = vpop.f32.mrb[38].mxu0  ;;  %9767 = vmatprep.mubr.f32.mxu0 %v18392_v11  ;;  %v18401_v1 = vld [vmem:[#allocation36_spill] sm:$0xff] }
 0x33b   : > { %v8265_v36 = vmax.f32 %v17142_v0, %v8127_v38  ;;  %v8129_v32 = vpop.f32.mrb[39].mxu0 }
 0x33c   : > { %12184 = vmatmul.mubr.msk.f32.vlgmr.msra.gmra.mrb[56].mxu1 %vm8469_vm4, %v17314_v46  ;;  %v8266_v56 = vmax.f32 %v17144_v52, %v8129_v32  ;;  %12196 = vmatmul.mubr.msk.f32.gmra.mrb[80].mxu0 %vm8469_vm4, %v17380_v21  ;;  %v17384_v59 = vpack.c.bf16 %v8342_v63, %v8341_v29  ;;  %v8339_v0 = vadd.f32 %v8335_v49, %v14898_v9  ;;  %v17399_v9 = vld [vmem:[%s18081_s3 + $0x88] sm:$0xff]  ;;  %v17431_v49 = vld [vmem:[%s18081_s3 + $0xb8] sm:$0xff] }
 0x33d   : > { %13370 = vmatpush1.bf16.msra.mxu1 %v18398_v57  ;;  %13458 = vmatpush1.bf16.msra.mxu0 %v16456_v61 }
 0x33e   : > { %18397 = vst [vmem:[#allocation52_spill] sm:$0xff] %v17384_v59  ;;  %13372 = vmatprep.subr.bf16.mxu1 %v15930_v48  ;;  %13460 = vmatprep.subr.bf16.mxu0 %v18373_v14  ;;  %v8336_v52 = vmax.f32 %v8265_v36, %v8266_v56  ;;  %v8673_v39 = vpop.f32.mrb[40].mxu0  ;;  %v8343_v37 = vmax.f32 %v8339_v0, 0.0  ;;  %v18403_v36 = vld [vmem:[#allocation42_spill] sm:$0xff] }
 0x33f   : > { %9379 = vmatprep.mubr.f32.mxu1 %v18392_v11  ;;  %v8675_v12 = vpop.f32.mrb[41].mxu0  ;;  %9773 = vmatprep.mubr.f32.mxu0 %v18392_v11 }
 0x340   : > { %v8340_v15 = vadd.f32 %v8336_v52, %v14921_v58  ;;  %12185 = vmatmul.mubr.msk.f32.gmra.mrb[58].mxu1 %vm8469_vm4, %v17333_v6  ;;  %12197 = vmatmul.mubr.msk.f32.gmra.mrb[82].mxu0 %vm8469_vm4, %v17399_v9 }
 0x341   : > { %13374 = vmatpush1.bf16.msra.mxu1 %v18399_v44  ;;  %13462 = vmatpush1.bf16.msra.mxu0 %v18370_v60 }
 0x342   : > { %v8344_v50 = vmax.f32 %v8340_v15, 0.0  ;;  %13376 = vmatprep.subr.bf16.mxu1 %v18322_v28  ;;  %13464 = vmatprep.subr.bf16.mxu0 %v18374_v4  ;;  %v8679_v58 = vpop.f32.mrb[42].mxu0 }
 0x343   : > { %9385 = vmatprep.mubr.f32.mxu1 %v18392_v11  ;;  %9779 = vmatprep.mubr.f32.mxu0 %v18392_v11  ;;  %v8681_v20 = vpop.f32.mrb[43].mxu0 }
 0x344   : > { %12186 = vmatmul.mubr.msk.f32.gmra.mrb[60].mxu1 %vm8469_vm4, %v17347_v47  ;;  %12198 = vmatmul.mubr.msk.f32.gmra.mrb[84].mxu0 %vm8469_vm4, %v17414_v17  ;;  %v17418_v55 = vpack.c.bf16 %v8344_v50, %v8343_v37 }
 0x345   : > { %13378 = vmatpush1.bf16.msra.mxu1 %v15897_v16  ;;  %13466 = vmatpush1.bf16.msra.mxu0 %v18401_v1  ;;  %v18402_v16 = vld [vmem:[#allocation33_spill] sm:$0xff] }
 0x346   : > { %18400 = vst [vmem:[#allocation51_spill] sm:$0xff] %v17418_v55  ;;  %13380 = vmatprep.subr.bf16.mxu1 %v18324_v5  ;;  %13468 = vmatprep.subr.bf16.mxu0 %v18377_v45  ;;  %v8685_v29 = vpop.f32.mrb[44].mxu0 }
 0x347   : > { %9391 = vmatprep.mubr.f32.mxu1 %v18392_v11  ;;  %9785 = vmatprep.mubr.f32.mxu0 %v18392_v11  ;;  %v8687_v63 = vpop.f32.mrb[45].mxu0 }
 0x348   : > { %12187 = vmatmul.mubr.msk.f32.gmra.mrb[62].mxu1 %vm8469_vm4, %v17365_v42  ;;  %12199 = vmatmul.mubr.msk.f32.gmra.mrb[86].mxu0 %vm8469_vm4, %v17431_v49 }
 0x349   : > { %13382 = vmatpush1.bf16.msra.mxu1 %v15930_v48  ;;  %13470 = vmatpush1.bf16.msra.mxu0 %v16875_v8  ;;  %v18404_v48 = vld [vmem:[#allocation34_spill] sm:$0xff]  ;;  %v18405_v8 = vld [vmem:[#allocation39_spill] sm:$0xff] }
 0x34a   : > { %13384 = vmatprep.subr.bf16.mxu1 %v18402_v16  ;;  %13472 = vmatprep.subr.bf16.mxu0 %v16902_v27  ;;  %v8691_v38 = vpop.f32.mrb[46].mxu0 }
 0x34b   : > { %9397 = vmatprep.mubr.f32.mxu1 %v18392_v11  ;;  %10118 = vmatprep.mubr.f32.mxu0 %v18403_v36  ;;  %v8693_v32 = vpop.f32.mrb[47].mxu0 }
 0x34c   : > { %12188 = vmatmul.mubr.msk.f32.gmra.mrb[64].mxu1 %vm8469_vm4, %v17380_v21 }
 0x34d   : > { %13386 = vmatpush1.bf16.msra.mxu1 %v18322_v28  ;;  %13474 = vmatpush1.bf16.msra.mxu0 %v18374_v4  ;;  %v18406_v4 = vld [vmem:[#allocation23_spill] sm:$0xff] }
 0x34e   : > { %13388 = vmatprep.subr.bf16.mxu1 %v18404_v48  ;;  %13476 = vmatprep.subr.bf16.mxu0 %v18405_v8  ;;  %v8697_v56 = vpop.f32.mrb[48].mxu0 }
 0x34f   : > { %9403 = vmatprep.mubr.f32.mxu1 %v18392_v11  ;;  %v8560_v57 = vpop.f32.mrb[24].mxu1  ;;  %v8699_v0 = vpop.f32.mrb[49].mxu0 }
 0x350   : > { %v17448_v52 = vadd.f32 %v8673_v39, %v8560_v57  ;;  %12189 = vmatmul.mubr.msk.f32.gmra.mrb[66].mxu1 %vm8469_vm4, %v17399_v9  ;;  %v8562_v15 = vpop.f32.mrb[25].mxu1  ;;  %v18409_v57 = vld [vmem:[#allocation13_spill] sm:$0xff] }
 0x351   : > { %13390 = vmatpush1.bf16.msra.mxu1 %v18324_v5  ;;  %13478 = vmatpush1.bf16.msra.mxu0 %v18377_v45  ;;  %v17454_v28 = vadd.f32 %v8675_v12, %v8562_v15  ;;  %v18407_v12 = vld [vmem:[#allocation35_spill] sm:$0xff] }
 0x352   : > { %13392 = vmatprep.subr.bf16.mxu1 %v18372_v18  ;;  %13480 = vmatprep.subr.bf16.mxu0 %v18406_v4 }
 0x353   : > { %9409 = vmatprep.mubr.f32.mxu1 %v18392_v11  ;;  %v8566_v44 = vpop.f32.mrb[26].mxu1 }
 0x354   : > { %12190 = vmatmul.mubr.msk.f32.gmra.mrb[68].mxu1 %vm8469_vm4, %v17414_v17  ;;  %v17461_v39 = vadd.f32 %v8679_v58, %v8566_v44  ;;  %v8568_v37 = vpop.f32.mrb[27].mxu1 }
 0x355   : > { %13394 = vmatpush1.bf16.msra.mxu1 %v16456_v61  ;;  %13482 = vmatpush1.bf16.msra.mxu0 %v16902_v27  ;;  %v17465_v5 = vadd.f32 %v8681_v20, %v8568_v37  ;;  %v8703_v45 = vpop.f32.mrb[50].mxu0 }
 0x356   : > { %13396 = vmatprep.subr.bf16.mxu1 %v18373_v14  ;;  %13484 = vmatprep.subr.bf16.mxu0 %v18407_v12  ;;  %v8705_v50 = vpop.f32.mrb[51].mxu0 }
 0x357   : > { %9415 = vmatprep.mubr.f32.mxu1 %v18392_v11  ;;  %v8572_v1 = vpop.f32.mrb[28].mxu1 }
 0x358   : > { %12191 = vmatmul.mubr.msk.f32.gmra.mrb[70].mxu1 %vm8469_vm4, %v17431_v49  ;;  %v17472_v58 = vadd.f32 %v8685_v29, %v8572_v1  ;;  %v8574_v16 = vpop.f32.mrb[29].mxu1 }
 0x359   : > { %13398 = vmatpush1.bf16.msra.mxu1 %v18370_v60  ;;  %13486 = vmatpush1.bf16.msra.mxu0 %v18405_v8  ;;  %v17476_v20 = vadd.f32 %v8687_v63, %v8574_v16  ;;  %v8709_v48 = vpop.f32.mrb[52].mxu0  ;;  %v18410_v16 = vld [vmem:[#allocation46_spill] sm:$0xff] }
 0x35a   : > { %13400 = vmatprep.subr.bf16.mxu1 %v18383_v35  ;;  %13488 = vmatprep.subr.bf16.mxu0 %v18409_v57  ;;  %v8711_v15 = vpop.f32.mrb[53].mxu0 }
 0x35b   : > { %18408 = vst [vmem:[#allocation53_spill] sm:$0xff] %v17476_v20  ;;  %9856 = vmatprep.mubr.f32.mxu1 %v18403_v36  ;;  %v8578_v44 = vpop.f32.mrb[30].mxu1 }
 0x35c   : > { %v17481_v37 = vadd.f32 %v8691_v38, %v8578_v44  ;;  %v8580_v29 = vpop.f32.mrb[31].mxu1 }
 0x35d   : > { %13402 = vmatpush1.bf16.msra.mxu1 %v18372_v18  ;;  %13490 = vmatpush1.bf16.msra.mxu0 %v17231_v30  ;;  %v17485_v1 = vadd.f32 %v8693_v32, %v8580_v29  ;;  %v8715_v63 = vpop.f32.mrb[54].mxu0  ;;  %v18411_v29 = vld [vmem:[#allocation47_spill] sm:$0xff] }
 0x35e   : > { %13404 = vmatprep.subr.bf16.mxu1 %v18385_v54  ;;  %13492 = vmatprep.subr.bf16.mxu0 %v18410_v16  ;;  %v8717_v55 = vpop.f32.mrb[55].mxu0 }
 0x35f   : > { %v8584_v59 = vpop.f32.mrb[32].mxu1 }
 0x360   : > { %v17489_v20 = vadd.f32 %v8697_v56, %v8584_v59  ;;  %v8586_v36 = vpop.f32.mrb[33].mxu1 }
 0x361   : > { %13406 = vmatpush1.bf16.msra.mxu1 %v18373_v14  ;;  %13494 = vmatpush1.bf16.msra.mxu0 %v17285_v2  ;;  %v17493_v38 = vadd.f32 %v8699_v0, %v8586_v36 }
 0x362   : > { %13408 = vmatprep.subr.bf16.mxu1 %v18386_v25  ;;  %13496 = vmatprep.subr.bf16.mxu0 %v17319_v31 }
 0x363   : > { %v8590_v30 = vpop.f32.mrb[34].mxu1 }
 0x364   : > { %v17497_v32 = vadd.f32 %v8703_v45, %v8590_v30  ;;  %v8592_v44 = vpop.f32.mrb[35].mxu1  ;;  %v18416_v30 = vld [vmem:[#allocation14_spill] sm:$0xff] }
 0x365   : > { %13410 = vmatpush1.bf16.msra.mxu1 %v18383_v35  ;;  %13498 = vmatpush1.bf16.msra.mxu0 %v18409_v57  ;;  %v17501_v59 = vadd.f32 %v8705_v50, %v8592_v44 }
 0x366   : > { %13412 = vmatprep.subr.bf16.mxu1 %v18388_v43  ;;  %13500 = vmatprep.subr.bf16.mxu0 %v17351_v62 }
 0x367   : > { %v8596_v2 = vpop.f32.mrb[36].mxu1 }
 0x368   : > { %v17505_v56 = vadd.f32 %v8709_v48, %v8596_v2  ;;  %v8598_v0 = vpop.f32.mrb[37].mxu1 }
 0x369   : > { %13414 = vmatpush1.bf16.msra.mxu1 %v18385_v54  ;;  %13502 = vmatpush1.bf16.msra.mxu0 %v18410_v16  ;;  %v17509_v45 = vadd.f32 %v8711_v15, %v8598_v0  ;;  %v18412_v15 = vld [vmem:[#allocation49_spill] sm:$0xff]  ;;  %v18415_v16 = vld [vmem:[#allocation7_spill] sm:$0xff] }
 0x36a   : > { %13416 = vmatprep.subr.bf16.mxu1 %v18406_v4  ;;  %13504 = vmatprep.subr.bf16.mxu0 %v18411_v29 }
 0x36b   : > { %v8602_v50 = vpop.f32.mrb[38].mxu1 }
 0x36c   : > { %10119 = vmatmul.mubr.f32.vlgmr.msra.gmra.mrb[88].mxu0 %v17149_v41  ;;  %v17514_v57 = vadd.f32 %v8715_v63, %v8602_v50  ;;  %v8604_v36 = vpop.f32.mrb[39].mxu1  ;;  %v18413_v63 = vld [vmem:[#allocation41_spill] sm:$0xff] }
 0x36d   : > { %13418 = vmatpush1.bf16.msra.mxu1 %v16902_v27  ;;  %13506 = vmatpush1.bf16.msra.mxu0 %v17319_v31  ;;  %v17518_v48 = vadd.f32 %v8717_v55, %v8604_v36  ;;  %v18414_v55 = vld [vmem:[#allocation11_spill] sm:$0xff] }
 0x36e   : > { %13420 = vmatprep.subr.bf16.mxu1 %v18407_v12  ;;  %13508 = vmatprep.subr.bf16.mxu0 %v18412_v15 }
 0x36f   : > { %10124 = vmatprep.mubr.f32.mxu0 %v17164_v19 }
 0x370   : > { %10125 = vmatmul.mubr.f32.gmra.mrb[90].mxu0 %v17171_v24 }
 0x371   : > { %13422 = vmatpush1.bf16.msra.mxu1 %v18405_v8  ;;  %13510 = vmatpush1.bf16.msra.mxu0 %v17351_v62 }
 0x372   : > { %13424 = vmatprep.subr.bf16.mxu1 %v18413_v63  ;;  %10130 = vmatprep.mubr.f32.mxu0 %v17185_v13 }
 0x374   : > { %10131 = vmatmul.mubr.f32.gmra.mrb[92].mxu0 %v17192_v10 }
 0x375   : > { %13426 = vmatpush1.bf16.msra.mxu1 %v18406_v4  ;;  %10136 = vmatprep.mubr.f32.mxu0 %v17202_v26 }
 0x376   : > { %13428 = vmatprep.subr.bf16.mxu1 %v18414_v55 }
 0x378   : > { %10137 = vmatmul.mubr.f32.gmra.mrb[94].mxu0 %v17215_v33 }
 0x379   : > { %13430 = vmatpush1.bf16.msra.mxu1 %v18407_v12  ;;  %10142 = vmatprep.mubr.f32.mxu0 %v17226_v40 }
 0x37a   : > { %13432 = vmatprep.subr.bf16.mxu1 %v18415_v16 }
 0x37c   : > { %9857 = vmatmul.mubr.f32.vlgmr.msra.gmra.mrb[72].mxu1 %v17149_v41  ;;  %10143 = vmatmul.mubr.f32.gmra.mrb[96].mxu0 %v17237_v7 }
 0x37d   : > { %13434 = vmatpush1.bf16.msra.mxu1 %v18413_v63  ;;  %9862 = vmatprep.mubr.f32.mxu1 %v17164_v19 }
 0x37e   : > { %13436 = vmatprep.subr.bf16.mxu1 %v18416_v30  ;;  %10148 = vmatprep.mubr.f32.mxu0 %v17250_v53 }
 0x380   : > { %9863 = vmatmul.mubr.f32.gmra.mrb[74].mxu1 %v17171_v24  ;;  %10149 = vmatmul.mubr.f32.gmra.mrb[98].mxu0 %v17261_v23 }
 0x381   : > { %13438 = vmatpush1.bf16.msra.mxu1 %v18414_v55  ;;  %9868 = vmatprep.mubr.f32.mxu1 %v17185_v13 }
 0x382   : > { %13512 = vmatprep.subr.bf16.mxu1 %v18372_v18  ;;  %10154 = vmatprep.mubr.f32.mxu0 %v17273_v34 }
 0x384   : > { %9869 = vmatmul.mubr.f32.gmra.mrb[76].mxu1 %v17192_v10  ;;  %10155 = vmatmul.mubr.f32.gmra.mrb[100].mxu0 %v17281_v3 }
 0x385   : > { %9874 = vmatprep.mubr.f32.mxu1 %v17202_v26  ;;  %10160 = vmatprep.mubr.f32.mxu0 %v17291_v51 }
 0x388   : > { %9875 = vmatmul.mubr.f32.gmra.mrb[78].mxu1 %v17215_v33  ;;  %10161 = vmatmul.mubr.f32.gmra.mrb[102].mxu0 %v17303_v22 }
 0x389   : > { %9880 = vmatprep.mubr.f32.mxu1 %v17226_v40  ;;  %10231 = vmatprep.mubr.f32.mxu0 %v18392_v11 }
 0x38c   : > { %9881 = vmatmul.mubr.f32.gmra.mrb[80].mxu1 %v17237_v7  ;;  %12208 = vmatmul.mubr.msk.f32.vlgmr.msra.gmra.mrb[88].mxu0 %vm8469_vm4, %v17314_v46 }
 0x38d   : > { %9886 = vmatprep.mubr.f32.mxu1 %v17250_v53  ;;  %10237 = vmatprep.mubr.f32.mxu0 %v18392_v11 }
 0x390   : > { %9887 = vmatmul.mubr.f32.gmra.mrb[82].mxu1 %v17261_v23  ;;  %12209 = vmatmul.mubr.msk.f32.gmra.mrb[90].mxu0 %vm8469_vm4, %v17333_v6 }
 0x391   : > { %9892 = vmatprep.mubr.f32.mxu1 %v17273_v34  ;;  %10243 = vmatprep.mubr.f32.mxu0 %v18392_v11 }
 0x394   : > { %9893 = vmatmul.mubr.f32.gmra.mrb[84].mxu1 %v17281_v3  ;;  %12210 = vmatmul.mubr.msk.f32.gmra.mrb[92].mxu0 %vm8469_vm4, %v17347_v47 }
 0x395   : > { %9898 = vmatprep.mubr.f32.mxu1 %v17291_v51  ;;  %10249 = vmatprep.mubr.f32.mxu0 %v18392_v11 }
 0x398   : > { %9899 = vmatmul.mubr.f32.gmra.mrb[86].mxu1 %v17303_v22  ;;  %12211 = vmatmul.mubr.msk.f32.gmra.mrb[94].mxu0 %vm8469_vm4, %v17365_v42 }
 0x399   : > { %9969 = vmatprep.mubr.f32.mxu1 %v18392_v11  ;;  %10255 = vmatprep.mubr.f32.mxu0 %v18392_v11 }
 0x39c   : > { %12200 = vmatmul.mubr.msk.f32.vlgmr.msra.gmra.mrb[72].mxu1 %vm8469_vm4, %v17314_v46  ;;  %12212 = vmatmul.mubr.msk.f32.gmra.mrb[96].mxu0 %vm8469_vm4, %v17380_v21 }
 0x39d   : > { %13514 = vmatpush1.bf16.msra.mxu1 %v16456_v61  ;;  %9975 = vmatprep.mubr.f32.mxu1 %v18392_v11 }
 0x39e   : > { %13516 = vmatprep.subr.bf16.mxu1 %v18373_v14  ;;  %10261 = vmatprep.mubr.f32.mxu0 %v18392_v11  ;;  %v9149_v41 = vpop.f32.mrb[56].mxu0 }
 0x39f   : > { %v9422_v44 = vmax.f32 %v17448_v52, %v9149_v41  ;;  %v9151_v2 = vpop.f32.mrb[57].mxu0 }
 0x3a0   : > { %12201 = vmatmul.mubr.msk.f32.gmra.mrb[74].mxu1 %vm8469_vm4, %v17333_v6  ;;  %12213 = vmatmul.mubr.msk.f32.gmra.mrb[98].mxu0 %vm8469_vm4, %v17399_v9  ;;  %v9423_v0 = vmax.f32 %v17454_v28, %v9151_v2  ;;  %v17607_v2 = vpop.permute.xlu1 %9469 }
 0x3a1   : > { %13518 = vmatpush1.bf16.msra.mxu1 %v18370_v60  ;;  %9981 = vmatprep.mubr.f32.mxu1 %v18392_v11  ;;  %v17600_v60 = vpop.permute.xlu0 %9464  ;;  %18418 = vst [vmem:[#allocation32_spill] sm:$0xff] %v17607_v2 }
 0x3a2   : > { %13520 = vmatprep.subr.bf16.mxu1 %v18383_v35  ;;  %v9454_v61 = vmax.f32 %v9422_v44, %v9423_v0  ;;  %10267 = vmatprep.mubr.f32.mxu0 %v18392_v11  ;;  %v9155_v50 = vpop.f32.mrb[58].mxu0  ;;  %18417 = vst [vmem:[#allocation18_spill] sm:$0xff] %v17600_v60 }
 0x3a3   : > { %v9426_v52 = vmax.f32 %v17461_v39, %v9155_v50  ;;  %v9157_v36 = vpop.f32.mrb[59].mxu0 }
 0x3a4   : > { %12202 = vmatmul.mubr.msk.f32.gmra.mrb[76].mxu1 %vm8469_vm4, %v17347_v47  ;;  %12214 = vmatmul.mubr.msk.f32.gmra.mrb[100].mxu0 %vm8469_vm4, %v17414_v17  ;;  %v9427_v28 = vmax.f32 %v17465_v5, %v9157_v36  ;;  %v9502_v41 = vadd.f32 %v17600_v60, %v9454_v61 }
 0x3a5   : > { %13522 = vmatpush1.bf16.msra.mxu1 %v18372_v18  ;;  %9987 = vmatprep.mubr.f32.mxu1 %v18392_v11  ;;  %v18419_v18 = vld [vmem:[#allocation53_spill] sm:$0xff] }
 0x3a6   : > { %13524 = vmatprep.subr.bf16.mxu1 %v18385_v54  ;;  %v9455_v39 = vmax.f32 %v9426_v52, %v9427_v28  ;;  %10273 = vmatprep.mubr.f32.mxu0 %v18392_v11  ;;  %v9161_v44 = vpop.f32.mrb[60].mxu0  ;;  %v9510_v52 = vmax.f32 %v9502_v41, 0.0 }
 0x3a7   : > { %v9430_v0 = vmax.f32 %v17472_v58, %v9161_v44  ;;  %v9163_v50 = vpop.f32.mrb[61].mxu0 }
 0x3a8   : > { %v9503_v5 = vadd.f32 %v17607_v2, %v9455_v39  ;;  %12203 = vmatmul.mubr.msk.f32.gmra.mrb[78].mxu1 %vm8469_vm4, %v17365_v42  ;;  %12215 = vmatmul.mubr.msk.f32.gmra.mrb[102].mxu0 %vm8469_vm4, %v17431_v49  ;;  %v9431_v61 = vmax.f32 %v18419_v18, %v9163_v50 }
 0x3a9   : > { %13526 = vmatpush1.bf16.msra.mxu1 %v18373_v14  ;;  %9993 = vmatprep.mubr.f32.mxu1 %v18392_v11  ;;  %v17625_v14 = vpop.permute.xlu0 %9474 }
 0x3aa   : > { %v9511_v36 = vmax.f32 %v9503_v5, 0.0  ;;  %13528 = vmatprep.subr.bf16.mxu1 %v18386_v25  ;;  %v9456_v58 = vmax.f32 %v9430_v0, %v9431_v61  ;;  %v9167_v28 = vpop.f32.mrb[62].mxu0  ;;  %v17629_v25 = vpop.permute.xlu1 %9479 }
 0x3ab   : > { %v9434_v39 = vmax.f32 %v17481_v37, %v9167_v28  ;;  %v9169_v44 = vpop.f32.mrb[63].mxu0 }
 0x3ac   : > { %12204 = vmatmul.mubr.msk.f32.gmra.mrb[80].mxu1 %vm8469_vm4, %v17380_v21  ;;  %v9435_v2 = vmax.f32 %v17485_v1, %v9169_v44  ;;  %v13890_v60 = vpack.i.bf16 %v9511_v36, %v9510_v52  ;;  %v17623_v50 = vpack.c.bf16 %v9511_v36, %v9510_v52  ;;  %v9504_v41 = vadd.f32 %v17625_v14, %v9456_v58 }
 0x3ad   : > { %13530 = vmatpush1.bf16.msra.mxu1 %v18383_v35  ;;  %9999 = vmatprep.mubr.f32.mxu1 %v18392_v11 }
 0x3ae   : > { %13532 = vmatprep.subr.bf16.mxu1 %v18388_v43  ;;  %v9457_v37 = vmax.f32 %v9434_v39, %v9435_v2  ;;  %v9173_v0 = vpop.f32.mrb[64].mxu0  ;;  %13891 = vrot.lane.b32.xlu0 %v13890_v60, %s14019_s18  ;;  %v9512_v43 = vmax.f32 %v9504_v41, 0.0  ;;  %v17658_v41 = vpop.permute.xlu0 %9484 }
 0x3af   : > { %v9438_v1 = vmax.f32 %v17489_v20, %v9173_v0  ;;  %v17635_v5 = vpop.f32.mrb[40].mxu1  ;;  %v9175_v18 = vpop.f32.mrb[65].mxu0 }
 0x3b0   : > { %v9505_v35 = vadd.f32 %v17629_v25, %v9457_v37  ;;  %12205 = vmatmul.mubr.msk.f32.gmra.mrb[82].mxu1 %vm8469_vm4, %v17399_v9  ;;  %v17640_v61 = vpop.f32.mrb[41].mxu1  ;;  %v9439_v52 = vmax.f32 %v17493_v38, %v9175_v18  ;;  %v17660_v37 = vpop.permute.xlu1 %9489 }
 0x3b1   : > { %13534 = vmatpush1.bf16.msra.mxu1 %v18385_v54  ;;  %10005 = vmatprep.mubr.f32.mxu1 %v18392_v11 }
 0x3b2   : > { %v9513_v60 = vmax.f32 %v9505_v35, 0.0  ;;  %13536 = vmatprep.subr.bf16.mxu1 %v18406_v4  ;;  %v9458_v20 = vmax.f32 %v9438_v1, %v9439_v52 }
 0x3b3   : > { %v17646_v2 = vpop.f32.mrb[42].mxu1  ;;  %v9179_v36 = vpop.f32.mrb[66].mxu0 }
 0x3b4   : > { %12206 = vmatmul.mubr.msk.f32.gmra.mrb[84].mxu1 %vm8469_vm4, %v17414_v17  ;;  %v9442_v58 = vmax.f32 %v17497_v32, %v9179_v36  ;;  %v17651_v28 = vpop.f32.mrb[43].mxu1  ;;  %v9181_v38 = vpop.f32.mrb[67].mxu0  ;;  %v13895_v39 = vpack.i.bf16 %v9513_v60, %v9512_v43  ;;  %v17653_v54 = vpack.c.bf16 %v9513_v60, %v9512_v43  ;;  %v9506_v32 = vadd.f32 %v17658_v41, %v9458_v20  ;;  %v14006_v60 = vld [vmem:[%s18081_s3 + $0x8] sm:$0xff] }
 0x3b5   : > { %13538 = vmatpush1.bf16.msra.mxu1 %v16902_v27  ;;  %v9443_v44 = vmax.f32 %v17501_v59, %v9181_v38  ;;  %10011 = vmatprep.mubr.f32.mxu1 %v18392_v11 }
 0x3b6   : > { %13540 = vmatprep.subr.bf16.mxu1 %v18407_v12  ;;  %13896 = vrot.lane.b32.xlu1 %v13895_v39, %s14019_s18  ;;  %v9514_v20 = vmax.f32 %v9506_v32, 0.0 }
 0x3b7   : > { %v9459_v0 = vmax.f32 %v9442_v58, %v9443_v44  ;;  %v9185_v1 = vpop.f32.mrb[68].mxu0  ;;  %v17665_v18 = vpop.f32.mrb[44].mxu1 }
 0x3b8   : > { %12207 = vmatmul.mubr.msk.f32.gmra.mrb[86].mxu1 %vm8469_vm4, %v17431_v49  ;;  %v9446_v27 = vmax.f32 %v17505_v56, %v9185_v1  ;;  %v17670_v59 = vpop.f32.mrb[45].mxu1  ;;  %v9187_v35 = vpop.f32.mrb[69].mxu0 }
 0x3b9   : > { %v9507_v52 = vadd.f32 %v17660_v37, %v9459_v0  ;;  %13542 = vmatpush1.bf16.msra.mxu1 %v18405_v8  ;;  %v9447_v43 = vmax.f32 %v17509_v45, %v9187_v35  ;;  %10344 = vmatprep.mubr.f32.mxu1 %v14006_v60  ;;  %v12224_v45 = vld [vmem:[%s18083_s5 + $0x20] sm:$0xff]  ;;  %v17690_v1 = vpop.permute.xlu0 %9494 }
 0x3ba   : > { %13544 = vmatprep.subr.bf16.mxu1 %v18413_v63  ;;  %12404 = vmatprep.mubr.msk.f32.mxu0 %vm10595_vm5, %v12224_v45 }
 0x3bb   : > { %v9515_v36 = vmax.f32 %v9507_v52, 0.0  ;;  %v9460_v58 = vmax.f32 %v9446_v27, %v9447_v43  ;;  %v17679_v56 = vpop.f32.mrb[46].mxu1  ;;  %v9191_v38 = vpop.f32.mrb[70].mxu0 }
 0x3bc   : > { %v9450_v39 = vmax.f32 %v17514_v57, %v9191_v38  ;;  %v17682_v44 = vpop.f32.mrb[47].mxu1  ;;  %v9193_v8 = vpop.f32.mrb[71].mxu0 }
 0x3bd   : > { %13546 = vmatpush1.bf16.msra.mxu1 %v18406_v4  ;;  %v9451_v0 = vmax.f32 %v17518_v48, %v9193_v8  ;;  %v13900_v32 = vpack.i.bf16 %v9515_v36, %v9514_v20  ;;  %v17693_v57 = vpack.c.bf16 %v9515_v36, %v9514_v20  ;;  %v9508_v27 = vadd.f32 %v17690_v1, %v9460_v58  ;;  %v17699_v43 = vpop.permute.xlu1 %9499 }
 0x3be   : > { %13548 = vmatprep.subr.bf16.mxu1 %v18414_v55 }
 0x3bf   : > { %v9461_v35 = vmax.f32 %v9450_v39, %v9451_v0  ;;  %13901 = vrot.lane.b32.xlu0 %v13900_v32, %s14019_s18  ;;  %v17697_v52 = vpop.f32.mrb[48].mxu1  ;;  %v9516_v60 = vmax.f32 %v9508_v27, 0.0  ;;  %v14007_v0 = vld [vmem:[%s18081_s3] sm:$0xff] }
 0x3c0   : > { %v17701_v4 = vpop.f32.mrb[49].mxu1 }
 0x3c1   : > { %v9509_v48 = vadd.f32 %v17699_v43, %v9461_v35  ;;  %13550 = vmatpush1.bf16.msra.mxu1 %v18407_v12  ;;  %v18425_v35 = vld [vmem:[#allocation32_spill] sm:$0xff] }
 0x3c2   : > { %13552 = vmatprep.subr.bf16.mxu1 %v18415_v16 }
 0x3c3   : > { %v9517_v20 = vmax.f32 %v9509_v48, 0.0  ;;  %v17706_v36 = vpop.f32.mrb[50].mxu1 }
 0x3c4   : > { %v17708_v58 = vpop.f32.mrb[51].mxu1 }
 0x3c5   : > { %13554 = vmatpush1.bf16.msra.mxu1 %v18413_v63  ;;  %v13905_v38 = vpack.i.bf16 %v9517_v20, %v9516_v60  ;;  %v17711_v39 = vpack.c.bf16 %v9517_v20, %v9516_v60  ;;  %v18420_v63 = vld [vmem:[#allocation52_spill] sm:$0xff] }
 0x3c6   : > { %13556 = vmatprep.subr.bf16.mxu1 %v18416_v30  ;;  %v18421_v30 = vld [vmem:[#allocation51_spill] sm:$0xff] }
 0x3c7   : > { %13906 = vrot.lane.b32.xlu1 %v13905_v38, %s14019_s18  ;;  %v17715_v8 = vpop.f32.mrb[52].mxu1 }
 0x3c8   : > { %v17717_v12 = vpop.f32.mrb[53].mxu1 }
 0x3c9   : > { %13558 = vmatpush1.bf16.msra.mxu1 %v18414_v55  ;;  %v18422_v55 = vld [vmem:[#allocation48_spill] sm:$0xff] }
 0x3ca   : > { %13560 = vmatprep.subr.bf16.mxu1 %v18411_v29 }
 0x3cb   : > { %v17721_v16 = vpop.f32.mrb[54].mxu1 }
 0x3cc   : > { %v17723_v45 = vpop.f32.mrb[55].mxu1 }
 0x3cd   : > { %13562 = vmatpush1.bf16.msra.mxu1 %v17319_v31  ;;  %v18423_v31 = vld [vmem:[#allocation50_spill] sm:$0xff] }
 0x3ce   : > { %13564 = vmatprep.subr.bf16.mxu1 %v18412_v15 }
 0x3d1   : > { %13566 = vmatpush1.bf16.msra.mxu1 %v17351_v62 }
 0x3d2   : > { %13568 = vmatprep.subr.bf16.mxu1 %v18420_v63 }
 0x3d5   : > { %13570 = vmatpush1.bf16.msra.mxu1 %v18411_v29  ;;  %v18424_v29 = vld [vmem:[#allocation18_spill] sm:$0xff] }
 0x3d6   : > { %13572 = vmatprep.subr.bf16.mxu1 %v18421_v30 }
 0x3d9   : > { %13574 = vmatpush1.bf16.msra.mxu1 %v18412_v15 }
 0x3da   : > { %13576 = vmatprep.subr.bf16.mxu1 %v18422_v55 }
 0x3dc   : > { %10345 = vmatmul.mubr.f32.vlgmr.msra.gmra.mrb[88].mxu1 %v14007_v0 }
 0x3dd   : > { %13578 = vmatpush1.bf16.msra.mxu1 %v18420_v63  ;;  %10350 = vmatprep.mubr.f32.mxu1 %v17164_v19 }
 0x3de   : > { %13580 = vmatprep.subr.bf16.mxu1 %v18423_v31 }
 0x3e0   : > { %10351 = vmatmul.mubr.f32.gmra.mrb[90].mxu1 %v17171_v24 }
 0x3e1   : > { %13582 = vmatpush1.bf16.msra.mxu1 %v18421_v30  ;;  %10356 = vmatprep.mubr.f32.mxu1 %v17185_v13 }
 0x3e4   : > { %10357 = vmatmul.mubr.f32.gmra.mrb[92].mxu1 %v17192_v10 }
 0x3e5   : > { %10362 = vmatprep.mubr.f32.mxu1 %v17202_v26 }
 0x3e8   : > { %10363 = vmatmul.mubr.f32.gmra.mrb[94].mxu1 %v17215_v33 }
 0x3e9   : > { %10368 = vmatprep.mubr.f32.mxu1 %v17226_v40 }
 0x3ec   : > { %10369 = vmatmul.mubr.f32.gmra.mrb[96].mxu1 %v17237_v7 }
 0x3ed   : > { %10374 = vmatprep.mubr.f32.mxu1 %v17250_v53 }
 0x3f0   : > { %10375 = vmatmul.mubr.f32.gmra.mrb[98].mxu1 %v17261_v23 }
 0x3f1   : > { %10380 = vmatprep.mubr.f32.mxu1 %v17273_v34 }
 0x3f4   : > { %10381 = vmatmul.mubr.f32.gmra.mrb[100].mxu1 %v17281_v3 }
 0x3f5   : > { %10386 = vmatprep.mubr.f32.mxu1 %v17291_v51 }
 0x3f8   : > { %10387 = vmatmul.mubr.f32.gmra.mrb[102].mxu1 %v17303_v22 }
 0x3f9   : > { %10457 = vmatprep.mubr.f32.mxu1 %v18392_v11 }
 0x3fc   : > { %12216 = vmatmul.mubr.msk.f32.vlgmr.msra.gmra.mrb[88].mxu1 %vm8469_vm4, %v17314_v46 }
 0x3fd   : > { %10463 = vmatprep.mubr.f32.mxu1 %v18392_v11 }
 0x3ff   : > { %v17757_v19 = vpop.f32.mrb[72].mxu0 }
 0x400   : > { %12217 = vmatmul.mubr.msk.f32.gmra.mrb[90].mxu1 %vm8469_vm4, %v17333_v6  ;;  %v17761_v24 = vpop.f32.mrb[73].mxu0 }
 0x401   : > { %10469 = vmatprep.mubr.f32.mxu1 %v18392_v11 }
 0x403   : > { %v17764_v13 = vpop.f32.mrb[74].mxu0 }
 0x404   : > { %12218 = vmatmul.mubr.msk.f32.gmra.mrb[92].mxu1 %vm8469_vm4, %v17347_v47  ;;  %v17768_v10 = vpop.f32.mrb[75].mxu0 }
 0x405   : > { %10475 = vmatprep.mubr.f32.mxu1 %v18392_v11 }
 0x407   : > { %v17771_v26 = vpop.f32.mrb[76].mxu0 }
 0x408   : > { %12219 = vmatmul.mubr.msk.f32.gmra.mrb[94].mxu1 %vm8469_vm4, %v17365_v42  ;;  %v17775_v33 = vpop.f32.mrb[77].mxu0 }
 0x409   : > { %10481 = vmatprep.mubr.f32.mxu1 %v18392_v11 }
 0x40b   : > { %v17778_v40 = vpop.f32.mrb[78].mxu0 }
 0x40c   : > { %12220 = vmatmul.mubr.msk.f32.gmra.mrb[96].mxu1 %vm8469_vm4, %v17380_v21  ;;  %v17782_v7 = vpop.f32.mrb[79].mxu0 }
 0x40d   : > { %10487 = vmatprep.mubr.f32.mxu1 %v18392_v11 }
 0x40f   : > { %v9375_v53 = vpop.f32.mrb[56].mxu1  ;;  %v17785_v23 = vpop.f32.mrb[80].mxu0 }
 0x410   : > { %12221 = vmatmul.mubr.msk.f32.gmra.mrb[98].mxu1 %vm8469_vm4, %v17399_v9  ;;  %v9424_v34 = vmax.f32 %v17635_v5, %v9375_v53  ;;  %v9377_v3 = vpop.f32.mrb[57].mxu1  ;;  %v17790_v51 = vpop.f32.mrb[81].mxu0 }
 0x411   : > { %v9425_v22 = vmax.f32 %v17640_v61, %v9377_v3  ;;  %10493 = vmatprep.mubr.f32.mxu1 %v18392_v11 }
 0x413   : > { %v9518_v46 = vmax.f32 %v9424_v34, %v9425_v22  ;;  %v9381_v6 = vpop.f32.mrb[58].mxu1  ;;  %v17794_v47 = vpop.f32.mrb[82].mxu0 }
 0x414   : > { %12222 = vmatmul.mubr.msk.f32.gmra.mrb[100].mxu1 %vm8469_vm4, %v17414_v17  ;;  %v9428_v62 = vmax.f32 %v17646_v2, %v9381_v6  ;;  %v9383_v42 = vpop.f32.mrb[59].mxu1  ;;  %v17799_v21 = vpop.f32.mrb[83].mxu0 }
 0x415   : > { %v9429_v9 = vmax.f32 %v17651_v28, %v9383_v42  ;;  %10499 = vmatprep.mubr.f32.mxu1 %v18392_v11  ;;  %v9526_v15 = vadd.f32 %v9518_v46, %v18424_v29 }
 0x417   : > { %v9519_v5 = vmax.f32 %v9428_v62, %v9429_v9  ;;  %v9387_v61 = vpop.f32.mrb[60].mxu1  ;;  %v17804_v32 = vpop.f32.mrb[84].mxu0  ;;  %v9534_v60 = vmax.f32 %v9526_v15, 0.0 }
 0x418   : > { %12223 = vmatmul.mubr.msk.f32.gmra.mrb[102].mxu1 %vm8469_vm4, %v17431_v49  ;;  %v9432_v17 = vmax.f32 %v17665_v18, %v9387_v61  ;;  %v9389_v27 = vpop.f32.mrb[61].mxu1  ;;  %v17809_v2 = vpop.f32.mrb[85].mxu0 }
 0x419   : > { %v9527_v48 = vadd.f32 %v9519_v5, %v18425_v35  ;;  %v9433_v28 = vmax.f32 %v17670_v59, %v9389_v27  ;;  %12572 = vmatprep.mubr.msk.f32.mxu1 %vm14021_vm6, %v18392_v11 }
 0x41b   : > { %v9535_v20 = vmax.f32 %v9527_v48, 0.0  ;;  %v9520_v38 = vmax.f32 %v9432_v17, %v9433_v28  ;;  %v9393_v63 = vpop.f32.mrb[62].mxu1  ;;  %v17813_v30 = vpop.f32.mrb[86].mxu0 }
 0x41c   : > { %v9436_v55 = vmax.f32 %v17679_v56, %v9393_v63  ;;  %v9395_v0 = vpop.f32.mrb[63].mxu1  ;;  %v17816_v31 = vpop.f32.mrb[87].mxu0 }
 0x41d   : > { %v9437_v49 = vmax.f32 %v17682_v44, %v9395_v0  ;;  %v13910_v18 = vpack.i.bf16 %v9535_v20, %v9534_v60  ;;  %v13583_v53 = vpack.c.bf16 %v9535_v20, %v9534_v60  ;;  %v9528_v34 = vadd.f32 %v9520_v38, %v17625_v14 }
 0x41f   : > { %v9521_v3 = vmax.f32 %v9436_v55, %v9437_v49  ;;  %13911 = vrot.lane.b32.xlu0 %v13910_v18, %s14019_s18  ;;  %v9399_v59 = vpop.f32.mrb[64].mxu1  ;;  %13584 = vmatprep.subr.bf16.mxu0 %v13583_v53  ;;  %v9536_v62 = vmax.f32 %v9528_v34, 0.0 }
 0x420   : > { %v9440_v22 = vmax.f32 %v17697_v52, %v9399_v59  ;;  %v9401_v46 = vpop.f32.mrb[65].mxu1  ;;  %13586 = vmatpush3.bf16.msra.mxu0 %v13583_v53 }
 0x421   : > { %v9529_v56 = vadd.f32 %v9521_v3, %v17629_v25  ;;  %v9441_v6 = vmax.f32 %v17701_v4, %v9401_v46 }
 0x423   : > { %v9537_v42 = vmax.f32 %v9529_v56, 0.0  ;;  %v9522_v44 = vmax.f32 %v9440_v22, %v9441_v6  ;;  %v9405_v9 = vpop.f32.mrb[66].mxu1  ;;  %v12227_v6 = vld [vmem:[%s18083_s5 + $0x38] sm:$0xff] }
 0x424   : > { %v9444_v15 = vmax.f32 %v17706_v36, %v9405_v9  ;;  %v9407_v5 = vpop.f32.mrb[67].mxu1 }
 0x425   : > { %v9445_v61 = vmax.f32 %v17708_v58, %v9407_v5  ;;  %v13915_v17 = vpack.i.bf16 %v9537_v42, %v9536_v62  ;;  %v13587_v27 = vpack.c.bf16 %v9537_v42, %v9536_v62  ;;  %v9530_v48 = vadd.f32 %v9522_v44, %v17658_v41  ;;  %v10586_v62 = vld [vmem:[%s18083_s5] sm:$0xff] }
 0x427   : > { %v9523_v52 = vmax.f32 %v9444_v15, %v9445_v61  ;;  %13916 = vrot.lane.b32.xlu1 %v13915_v17, %s14019_s18  ;;  %v9411_v28 = vpop.f32.mrb[68].mxu1  ;;  %13588 = vmatprep.subr.bf16.mxu0 %v13587_v27  ;;  %v9538_v38 = vmax.f32 %v9530_v48, 0.0 }
 0x428   : > { %v9448_v4 = vmax.f32 %v17715_v8, %v9411_v28  ;;  %v9413_v60 = vpop.f32.mrb[69].mxu1  ;;  %13590 = vmatpush3.bf16.msra.mxu0 %v13587_v27 }
 0x429   : > { %v9531_v20 = vadd.f32 %v9523_v52, %v17660_v37  ;;  %v9449_v36 = vmax.f32 %v17717_v12, %v9413_v60 }
 0x42b   : > { %v9539_v63 = vmax.f32 %v9531_v20, 0.0  ;;  %v9524_v58 = vmax.f32 %v9448_v4, %v9449_v36  ;;  %v9417_v55 = vpop.f32.mrb[70].mxu1 }
 0x42c   : > { %v9452_v0 = vmax.f32 %v17721_v16, %v9417_v55  ;;  %v9419_v49 = vpop.f32.mrb[71].mxu1  ;;  %v12225_v16 = vld [vmem:[%s18083_s5 + $0x28] sm:$0xff] }
 0x42d   : > { %v9453_v18 = vmax.f32 %v17723_v45, %v9419_v49  ;;  %v13920_v53 = vpack.i.bf16 %v9539_v63, %v9538_v38  ;;  %v13591_v34 = vpack.c.bf16 %v9539_v63, %v9538_v38  ;;  %v9532_v3 = vadd.f32 %v9524_v58, %v17690_v1  ;;  %v12226_v45 = vld [vmem:[%s18083_s5 + $0x30] sm:$0xff] }
 0x42f   : > { %v9525_v8 = vmax.f32 %v9452_v0, %v9453_v18  ;;  %13921 = vrot.lane.b32.xlu0 %v13920_v53, %s14019_s18  ;;  %13592 = vmatprep.subr.bf16.mxu0 %v13591_v34  ;;  %v9540_v59 = vmax.f32 %v9532_v3, 0.0 }
 0x430   : > { %13594 = vmatpush3.bf16.msra.mxu0 %v13591_v34 }
 0x431   : > { %v9533_v12 = vadd.f32 %v9525_v8, %v17699_v43 }
 0x433   : > { %v9541_v22 = vmax.f32 %v9533_v12, 0.0 }
 0x435   : > { %v13925_v46 = vpack.i.bf16 %v9541_v22, %v9540_v59  ;;  %v13595_v56 = vpack.c.bf16 %v9541_v22, %v9540_v59 }
 0x437   : > { %13926 = vrot.lane.b32.xlu1 %v13925_v46, %s14019_s18  ;;  %13596 = vmatprep.subr.bf16.mxu0 %v13595_v56 }
 0x438   : > { %13598 = vmatpush3.bf16.msra.mxu0 %v13595_v56 }
 0x439   : > { %13600 = vmatprep.subr.bf16.mxu0 %v17623_v50 }
 0x43b   : > { %12405 = vmatmul.mubr.msk.f32.vlgmr.msra.gmra.mrb[104].mxu0 %vm10595_vm5, %v12225_v16 }
 0x43c   : > { %13602 = vmatpush3.bf16.msra.mxu0 %v17623_v50  ;;  %12407 = vmatprep.mubr.msk.f32.mxu0 %vm10595_vm5, %v12226_v45  ;;  %v10587_v50 = vld [vmem:[%s18083_s5 + $0x8] sm:$0xff] }
 0x43d   : > { %13604 = vmatprep.subr.bf16.mxu0 %v17653_v54 }
 0x43f   : > { %12408 = vmatmul.mubr.msk.f32.gmra.mrb[106].mxu0 %vm10595_vm5, %v12227_v6 }
 0x440   : > { %13606 = vmatpush3.bf16.msra.mxu0 %v17653_v54  ;;  %12426 = vmatprep.mubr.msk.f32.mxu0 %vm10595_vm5, %v10586_v62  ;;  %v10588_v54 = vld [vmem:[%s18083_s5 + $0x10] sm:$0xff] }
 0x441   : > { %13608 = vmatprep.subr.bf16.mxu0 %v17693_v57 }
 0x444   : > { %13610 = vmatpush3.bf16.msra.mxu0 %v17693_v57  ;;  %v10589_v57 = vld [vmem:[%s18083_s5 + $0x18] sm:$0xff] }
 0x445   : > { %13612 = vmatprep.subr.bf16.mxu0 %v17711_v39 }
 0x448   : > { %13614 = vmatpush3.bf16.msra.mxu0 %v17711_v39  ;;  %v12236_v39 = vld [vmem:[%s18083_s5 + $0x40] sm:$0xff] }
 0x44b   : > { %12427 = vmatmul.mubr.msk.f32.vlgmr.msra.gmra.mrb[104].mxu0 %vm10595_vm5, %v10587_v50 }
 0x44c   : > { %12429 = vmatprep.mubr.msk.f32.mxu0 %vm10595_vm5, %v10588_v54 }
 0x44f   : > { %12430 = vmatmul.mubr.msk.f32.gmra.mrb[106].mxu0 %vm10595_vm5, %v10589_v57 }
 0x450   : > { %12448 = vmatprep.mubr.msk.f32.mxu0 %vm10595_vm5, %v12236_v39 }
 0x45f   : > { %v10233_v42 = vpop.f32.mrb[88].mxu0 }
 0x460   : > { %v10506_v44 = vmax.f32 %v17757_v19, %v10233_v42  ;;  %v10235_v9 = vpop.f32.mrb[89].mxu0 }
 0x461   : > { %v10507_v15 = vmax.f32 %v17761_v24, %v10235_v9 }
 0x463   : > { %v10538_v5 = vmax.f32 %v10506_v44, %v10507_v15  ;;  %v10239_v61 = vpop.f32.mrb[90].mxu0 }
 0x464   : > { %v10510_v17 = vmax.f32 %v17764_v13, %v10239_v61  ;;  %v10241_v27 = vpop.f32.mrb[91].mxu0 }
 0x465   : > { %v10511_v48 = vmax.f32 %v17768_v10, %v10241_v27  ;;  %v10546_v52 = vadd.f32 %v10538_v5, %v18424_v29 }
 0x467   : > { %v10539_v28 = vmax.f32 %v10510_v17, %v10511_v48  ;;  %v10245_v4 = vpop.f32.mrb[92].mxu0  ;;  %v10554_v38 = vmax.f32 %v10546_v52, 0.0 }
 0x468   : > { %v10514_v60 = vmax.f32 %v17771_v26, %v10245_v4  ;;  %v10247_v20 = vpop.f32.mrb[93].mxu0 }
 0x469   : > { %v10547_v36 = vadd.f32 %v10539_v28, %v18425_v35  ;;  %v10515_v19 = vmax.f32 %v17775_v33, %v10247_v20 }
 0x46b   : > { %v10555_v24 = vmax.f32 %v10547_v36, 0.0  ;;  %v10540_v63 = vmax.f32 %v10514_v60, %v10515_v19  ;;  %v10251_v58 = vpop.f32.mrb[94].mxu0 }
 0x46c   : > { %v10518_v13 = vmax.f32 %v17778_v40, %v10251_v58  ;;  %v10253_v55 = vpop.f32.mrb[95].mxu0 }
 0x46d   : > { %v10519_v10 = vmax.f32 %v17782_v7, %v10253_v55  ;;  %v13930_v0 = vpack.i.bf16 %v10555_v24, %v10554_v38  ;;  %v13615_v49 = vpack.c.bf16 %v10555_v24, %v10554_v38  ;;  %v10548_v18 = vadd.f32 %v10540_v63, %v17625_v14 }
 0x46f   : > { %v10541_v53 = vmax.f32 %v10518_v13, %v10519_v10  ;;  %v10257_v26 = vpop.f32.mrb[96].mxu0  ;;  %13931 = vrot.lane.b32.xlu0 %v13930_v0, %s14019_s18  ;;  %v17889_v34 = vpop.f32.mrb[72].mxu1  ;;  %13616 = vmatprep.subr.bf16.mxu0 %v13615_v49  ;;  %v10556_v12 = vmax.f32 %v10548_v18, 0.0  ;;  %v12237_v0 = vld [vmem:[%s18083_s5 + $0x48] sm:$0xff] }
 0x470   : > { %v10522_v33 = vmax.f32 %v17785_v23, %v10257_v26  ;;  %v17892_v3 = vpop.f32.mrb[73].mxu1  ;;  %v10259_v8 = vpop.f32.mrb[97].mxu0  ;;  %13618 = vmatpush3.bf16.msra.mxu0 %v13615_v49  ;;  %v12238_v49 = vld [vmem:[%s18083_s5 + $0x50] sm:$0xff]  ;;  %v12239_v26 = vld [vmem:[%s18083_s5 + $0x58] sm:$0xff] }
 0x471   : > { %v10549_v40 = vadd.f32 %v10541_v53, %v17629_v25  ;;  %v10523_v7 = vmax.f32 %v17790_v51, %v10259_v8 }
 0x473   : > { %v10557_v59 = vmax.f32 %v10549_v40, 0.0  ;;  %v10542_v22 = vmax.f32 %v10522_v33, %v10523_v7  ;;  %v17896_v46 = vpop.f32.mrb[74].mxu1  ;;  %v10263_v56 = vpop.f32.mrb[98].mxu0  ;;  %v12244_v33 = vld [vmem:[%s18083_s5 + $0x60] sm:$0xff] }
 0x474   : > { %v10526_v16 = vmax.f32 %v17794_v47, %v10263_v56  ;;  %v17899_v45 = vpop.f32.mrb[75].mxu1  ;;  %v10265_v6 = vpop.f32.mrb[99].mxu0 }
 0x475   : > { %v10527_v23 = vmax.f32 %v17799_v21, %v10265_v6  ;;  %v13935_v62 = vpack.i.bf16 %v10557_v59, %v10556_v12  ;;  %v13619_v50 = vpack.c.bf16 %v10557_v59, %v10556_v12  ;;  %v10550_v54 = vadd.f32 %v10542_v22, %v17658_v41 }
 0x477   : > { %v10543_v57 = vmax.f32 %v10526_v16, %v10527_v23  ;;  %v17903_v39 = vpop.f32.mrb[76].mxu1  ;;  %v10269_v51 = vpop.f32.mrb[100].mxu0  ;;  %13936 = vrot.lane.b32.xlu1 %v13935_v62, %s14019_s18  ;;  %13620 = vmatprep.subr.bf16.mxu0 %v13619_v50  ;;  %v10558_v15 = vmax.f32 %v10550_v54, 0.0 }
 0x478   : > { %v10530_v42 = vmax.f32 %v17804_v32, %v10269_v51  ;;  %v17907_v44 = vpop.f32.mrb[77].mxu1  ;;  %v10271_v47 = vpop.f32.mrb[101].mxu0  ;;  %13622 = vmatpush3.bf16.msra.mxu0 %v13619_v50 }
 0x479   : > { %v10551_v9 = vadd.f32 %v10543_v57, %v17660_v37  ;;  %v10531_v21 = vmax.f32 %v17809_v2, %v10271_v47 }
 0x47b   : > { %v10559_v5 = vmax.f32 %v10551_v9, 0.0  ;;  %v10544_v61 = vmax.f32 %v10530_v42, %v10531_v21  ;;  %v17911_v17 = vpop.f32.mrb[78].mxu1  ;;  %v10275_v27 = vpop.f32.mrb[102].mxu0 }
 0x47c   : > { %v10534_v48 = vmax.f32 %v17813_v30, %v10275_v27  ;;  %v9991_v52 = vpop.f32.mrb[79].mxu1  ;;  %v10277_v28 = vpop.f32.mrb[103].mxu0 }
 0x47d   : > { %v10535_v32 = vmax.f32 %v17816_v31, %v10277_v28  ;;  %v13940_v4 = vpack.i.bf16 %v10559_v5, %v10558_v15  ;;  %v13623_v60 = vpack.c.bf16 %v10559_v5, %v10558_v15  ;;  %v10552_v20 = vadd.f32 %v10544_v61, %v17690_v1 }
 0x47f   : > { %v10545_v36 = vmax.f32 %v10534_v48, %v10535_v32  ;;  %13941 = vrot.lane.b32.xlu0 %v13940_v4, %s14019_s18  ;;  %v17917_v2 = vpop.f32.mrb[80].mxu1  ;;  %13624 = vmatprep.subr.bf16.mxu0 %v13623_v60  ;;  %v10560_v24 = vmax.f32 %v10552_v20, 0.0 }
 0x480   : > { %v9997_v19 = vpop.f32.mrb[81].mxu1  ;;  %13626 = vmatpush3.bf16.msra.mxu0 %v13623_v60 }
 0x481   : > { %v10553_v38 = vadd.f32 %v10545_v36, %v17699_v43 }
 0x483   : > { %v10561_v30 = vmax.f32 %v10553_v38, 0.0  ;;  %v17920_v63 = vpop.f32.mrb[82].mxu1 }
 0x484   : > { %v17922_v58 = vpop.f32.mrb[83].mxu1 }
 0x485   : > { %v13945_v31 = vpack.i.bf16 %v10561_v30, %v10560_v24  ;;  %v13627_v13 = vpack.c.bf16 %v10561_v30, %v10560_v24 }
 0x487   : > { %v17924_v55 = vpop.f32.mrb[84].mxu1  ;;  %13946 = vrot.lane.b32.xlu1 %v13945_v31, %s14019_s18  ;;  %13628 = vmatprep.subr.bf16.mxu0 %v13627_v13 }
 0x488   : > { %v17927_v10 = vpop.f32.mrb[85].mxu1  ;;  %13630 = vmatpush3.bf16.msra.mxu0 %v13627_v13 }
 0x48b   : > { %v17935_v18 = vpop.f32.mrb[86].mxu1  ;;  %12449 = vmatmul.mubr.msk.f32.vlgmr.msra.gmra.mrb[104].mxu0 %vm10595_vm5, %v12237_v0 }
 0x48c   : > { %v17938_v53 = vpop.f32.mrb[87].mxu1  ;;  %12451 = vmatprep.mubr.msk.f32.mxu0 %vm10595_vm5, %v12238_v49 }
 0x48f   : > { %12452 = vmatmul.mubr.msk.f32.gmra.mrb[106].mxu0 %vm10595_vm5, %v12239_v26 }
 0x490   : > { %12470 = vmatprep.mubr.msk.f32.mxu0 %vm10595_vm5, %v12244_v33 }
 0x4cf   : > { %v10459_v8 = vpop.f32.mrb[88].mxu1 }
 0x4d0   : > { %v10508_v40 = vmax.f32 %v17889_v34, %v10459_v8  ;;  %v10461_v7 = vpop.f32.mrb[89].mxu1 }
 0x4d1   : > { %v10509_v12 = vmax.f32 %v17892_v3, %v10461_v7 }
 0x4d3   : > { %v10562_v59 = vmax.f32 %v10508_v40, %v10509_v12  ;;  %v10465_v22 = vpop.f32.mrb[90].mxu1 }
 0x4d4   : > { %v10512_v56 = vmax.f32 %v17896_v46, %v10465_v22  ;;  %v10467_v16 = vpop.f32.mrb[91].mxu1  ;;  %v13897_v22 = vpop.permute.xlu1 %13896 }
 0x4d5   : > { %v10513_v6 = vmax.f32 %v17899_v45, %v10467_v16  ;;  %v10570_v23 = vadd.f32 %v10562_v59, %v18424_v29 }
 0x4d7   : > { %v10563_v62 = vmax.f32 %v10512_v56, %v10513_v6  ;;  %v10471_v50 = vpop.f32.mrb[92].mxu1  ;;  %v10578_v42 = vmax.f32 %v10570_v23, 0.0  ;;  %v13899_v23 = vunpack.i.h.bf16 %v13897_v22 }
 0x4d8   : > { %v10516_v54 = vmax.f32 %v17903_v39, %v10471_v50  ;;  %v10473_v57 = vpop.f32.mrb[93].mxu1  ;;  %v11555_v50 = vld [vmem:[%s18084_s6 + $0x8] sm:$0xff] }
 0x4d9   : > { %v10571_v51 = vadd.f32 %v10563_v62, %v18425_v35  ;;  %v10517_v34 = vmax.f32 %v17907_v44, %v10473_v57  ;;  %v13898_v62 = vunpack.i.l.bf16 %v13897_v22  ;;  %v12245_v57 = vld [vmem:[%s18083_s5 + $0x68] sm:$0xff]  ;;  %v12270_v22 = vld [vmem:[%s18083_s5 + $0xd0] sm:$0xff] }
 0x4db   : > { %v10579_v3 = vmax.f32 %v10571_v51, 0.0  ;;  %v10564_v47 = vmax.f32 %v10516_v54, %v10517_v34  ;;  %v10477_v9 = vpop.f32.mrb[94].mxu1  ;;  %v12246_v51 = vld [vmem:[%s18083_s5 + $0x70] sm:$0xff]  ;;  %v13651_v34 = vpack.c.bf16 %v13899_v23, %v13898_v62 }
 0x4dc   : > { %v10520_v46 = vmax.f32 %v17911_v17, %v10477_v9  ;;  %v10479_v21 = vpop.f32.mrb[95].mxu1  ;;  %v13907_v9 = vpop.permute.xlu1 %13906 }
 0x4dd   : > { %v10521_v15 = vmax.f32 %v9991_v52, %v10479_v21  ;;  %v13950_v45 = vpack.i.bf16 %v10579_v3, %v10578_v42  ;;  %v13631_v5 = vpack.c.bf16 %v10579_v3, %v10578_v42  ;;  %v10572_v29 = vadd.f32 %v10564_v47, %v17625_v14  ;;  %v11557_v47 = vld [vmem:[%s18084_s6 + $0x18] sm:$0xff]  ;;  %v12252_v21 = vld [vmem:[%s18083_s5 + $0x80] sm:$0xff] }
 0x4df   : > { %v10565_v61 = vmax.f32 %v10520_v46, %v10521_v15  ;;  %13951 = vrot.lane.b32.xlu0 %v13950_v45, %s14019_s18  ;;  %v10483_v39 = vpop.f32.mrb[96].mxu1  ;;  %13632 = vmatprep.subr.bf16.mxu0 %v13631_v5  ;;  %v10580_v28 = vmax.f32 %v10572_v29, 0.0  ;;  %v12247_v46 = vld [vmem:[%s18083_s5 + $0x78] sm:$0xff]  ;;  %v13909_v45 = vunpack.i.h.bf16 %v13907_v9 }
 0x4e0   : > { %v10524_v35 = vmax.f32 %v17917_v2, %v10483_v39  ;;  %v10485_v44 = vpop.f32.mrb[97].mxu1  ;;  %13634 = vmatpush3.bf16.msra.mxu0 %v13631_v5  ;;  %v13908_v5 = vunpack.i.l.bf16 %v13907_v9 }
 0x4e1   : > { %v10573_v27 = vadd.f32 %v10565_v61, %v17629_v25  ;;  %v10525_v48 = vmax.f32 %v9997_v19, %v10485_v44  ;;  %v13917_v44 = vpop.permute.xlu1 %13916 }
 0x4e2   : > { %v13659_v61 = vpack.c.bf16 %v13909_v45, %v13908_v5  ;;  %v12277_v45 = vld [vmem:[%s18083_s5 + $0xe8] sm:$0xff]  ;;  %v12278_v5 = vld [vmem:[%s18083_s5 + $0xf0] sm:$0xff] }
 0x4e3   : > { %v10581_v17 = vmax.f32 %v10573_v27, 0.0  ;;  %v10566_v32 = vmax.f32 %v10524_v35, %v10525_v48  ;;  %v10489_v52 = vpop.f32.mrb[98].mxu1  ;;  %v13919_v48 = vunpack.i.h.bf16 %v13917_v44 }
 0x4e4   : > { %v10528_v4 = vmax.f32 %v17920_v63, %v10489_v52  ;;  %v10491_v60 = vpop.f32.mrb[99].mxu1  ;;  %v12254_v52 = vld [vmem:[%s18083_s5 + $0x90] sm:$0xff] }
 0x4e5   : > { %v10529_v14 = vmax.f32 %v17922_v58, %v10491_v60  ;;  %v13955_v20 = vpack.i.bf16 %v10581_v17, %v10580_v28  ;;  %v13635_v36 = vpack.c.bf16 %v10581_v17, %v10580_v28  ;;  %v10574_v38 = vadd.f32 %v10566_v32, %v17658_v41  ;;  %v12253_v32 = vld [vmem:[%s18083_s5 + $0x88] sm:$0xff] }
 0x4e6   : > { %v13918_v28 = vunpack.i.l.bf16 %v13917_v44 }
 0x4e7   : > { %v10567_v24 = vmax.f32 %v10528_v4, %v10529_v14  ;;  %v10495_v2 = vpop.f32.mrb[100].mxu1  ;;  %13956 = vrot.lane.b32.xlu1 %v13955_v20, %s14019_s18  ;;  %13636 = vmatprep.subr.bf16.mxu0 %v13635_v36  ;;  %v10582_v31 = vmax.f32 %v10574_v38, 0.0  ;;  %v13927_v20 = vpop.permute.xlu1 %13926  ;;  %v12260_v38 = vld [vmem:[%s18083_s5 + $0xa0] sm:$0xff] }
 0x4e8   : > { %v10532_v25 = vmax.f32 %v17924_v55, %v10495_v2  ;;  %v10497_v19 = vpop.f32.mrb[101].mxu1  ;;  %13638 = vmatpush3.bf16.msra.mxu0 %v13635_v36  ;;  %v13667_v4 = vpack.c.bf16 %v13919_v48, %v13918_v28  ;;  %v12255_v36 = vld [vmem:[%s18083_s5 + $0x98] sm:$0xff]  ;;  %v13929_v2 = vunpack.i.h.bf16 %v13927_v20 }
 0x4e9   : > { %v10575_v30 = vadd.f32 %v10567_v24, %v17660_v37  ;;  %v10533_v63 = vmax.f32 %v17927_v10, %v10497_v19  ;;  %v11554_v37 = vld [vmem:[%s18084_s6] sm:$0xff]  ;;  %v13892_v10 = vpop.permute.xlu0 %13891 }
 0x4ea   : > { %v13893_v59 = vunpack.i.l.bf16 %v13892_v10 }
 0x4eb   : > { %v10583_v13 = vmax.f32 %v10575_v30, 0.0  ;;  %v10568_v58 = vmax.f32 %v10532_v25, %v10533_v63  ;;  %v10501_v0 = vpop.f32.mrb[102].mxu1  ;;  %v13928_v25 = vunpack.i.l.bf16 %v13927_v20 }
 0x4ec   : > { %v10536_v49 = vmax.f32 %v17935_v18, %v10501_v0  ;;  %v10503_v41 = vpop.f32.mrb[103].mxu1 }
 0x4ed   : > { %v10537_v26 = vmax.f32 %v17938_v53, %v10503_v41  ;;  %v13960_v33 = vpack.i.bf16 %v10583_v13, %v10582_v31  ;;  %v13639_v8 = vpack.c.bf16 %v10583_v13, %v10582_v31  ;;  %v10576_v40 = vadd.f32 %v10568_v58, %v17690_v1  ;;  %v11556_v1 = vld [vmem:[%s18084_s6 + $0x10] sm:$0xff]  ;;  %v13902_v54 = vpop.permute.xlu0 %13901  ;;  %v13937_v13 = vpop.permute.xlu1 %13936 }
 0x4ee   : > { %v13894_v53 = vunpack.i.h.bf16 %v13892_v10  ;;  %v13904_v42 = vunpack.i.h.bf16 %v13902_v54  ;;  %v13903_v3 = vunpack.i.l.bf16 %v13902_v54  ;;  %v13675_v30 = vpack.c.bf16 %v13929_v2, %v13928_v25  ;;  %v12263_v10 = vld [vmem:[%s18083_s5 + $0xb8] sm:$0xff]  ;;  %v11586_v25 = vld [vmem:[%s18085_s7] sm:$0x3] }
 0x4ef   : > { %v10569_v55 = vmax.f32 %v10536_v49, %v10537_v26  ;;  %13961 = vrot.lane.b32.xlu0 %v13960_v33, %s14019_s18  ;;  %13640 = vmatprep.subr.bf16.mxu0 %v13639_v8  ;;  %v10584_v18 = vmax.f32 %v10576_v40, 0.0  ;;  %v13939_v0 = vunpack.i.h.bf16 %v13937_v13  ;;  %v13938_v49 = vunpack.i.l.bf16 %v13937_v13  ;;  %v12261_v26 = vld [vmem:[%s18083_s5 + $0xa8] sm:$0xff]  ;;  %v12262_v33 = vld [vmem:[%s18083_s5 + $0xb0] sm:$0xff] }
 0x4f0   : > { %13642 = vmatpush3.bf16.msra.mxu0 %v13639_v8  ;;  %v13647_v6 = vpack.c.bf16 %v13894_v53, %v13893_v59  ;;  %v13655_v15 = vpack.c.bf16 %v13904_v42, %v13903_v3 }
 0x4f1   : > { %v10577_v7 = vadd.f32 %v10569_v55, %v17699_v43  ;;  %v11587_v43 = vld [vmem:[%s18086_s8] sm:$0x3]  ;;  %v13912_v29 = vpop.permute.xlu0 %13911  ;;  %v13683_v8 = vpack.c.bf16 %v13939_v0, %v13938_v49 }
 0x4f2   : > { %v13914_v39 = vunpack.i.h.bf16 %v13912_v29  ;;  %v13913_v35 = vunpack.i.l.bf16 %v13912_v29  ;;  %v12279_v29 = vld [vmem:[%s18083_s5 + $0xf8] sm:$0xff] }
 0x4f3   : > { %v10585_v12 = vmax.f32 %v10577_v7, 0.0  ;;  %11560 = vperm.xlu0 %13888, %v11554_v37   ;;  %v12268_v7 = vld [vmem:[%s18083_s5 + $0xc0] sm:$0xff] }
 0x4f4   : > { %v13663_v27 = vpack.c.bf16 %v13914_v39, %v13913_v35 }
 0x4f5   : > { %v13965_v56 = vpack.i.bf16 %v10585_v12, %v10584_v18  ;;  %v13643_v16 = vpack.c.bf16 %v10585_v12, %v10584_v18  ;;  %v13922_v17 = vpop.permute.xlu0 %13921 }
 0x4f6   : > { %v13924_v60 = vunpack.i.h.bf16 %v13922_v17  ;;  %v13923_v14 = vunpack.i.l.bf16 %v13922_v17 }
 0x4f7   : > { %11570 = vperm.xlu0 %13888, %v11556_v1   ;;  %13966 = vrot.lane.b32.xlu1 %v13965_v56, %s14019_s18  ;;  %v12269_v1 = vld [vmem:[%s18083_s5 + $0xc8] sm:$0xff]  ;;  %v12271_v56 = vld [vmem:[%s18083_s5 + $0xd8] sm:$0xff] }
 0x4f8   : > { %13644 = vmatprep.subr.bf16.mxu0 %v13643_v16  ;;  %v13671_v24 = vpack.c.bf16 %v13924_v60, %v13923_v14 }
 0x4f9   : > { %13646 = vmatpush3.bf16.msra.mxu0 %v13643_v16  ;;  %v13932_v19 = vpop.permute.xlu0 %13931  ;;  %v13947_v37 = vpop.permute.xlu1 %13946  ;;  %v12276_v16 = vld [vmem:[%s18083_s5 + $0xe0] sm:$0xff] }
 0x4fa   : > { %13648 = vmatprep.subr.bf16.mxu0 %v13647_v6  ;;  %v13934_v63 = vunpack.i.h.bf16 %v13932_v19  ;;  %v13933_v31 = vunpack.i.l.bf16 %v13932_v19  ;;  %v13949_v12 = vunpack.i.h.bf16 %v13947_v37  ;;  %v13948_v53 = vunpack.i.l.bf16 %v13947_v37 }
 0x4fb   : > { %11590 = vperm.xlu0 %13888, %v11587_v43   ;;  %11565 = vperm.xlu1 %13889, %v11555_v50  }
 0x4fc   : > { %12471 = vmatmul.mubr.msk.f32.vlgmr.msra.gmra.mrb[104].mxu0 %vm10595_vm5, %v12245_v57  ;;  %v13679_v58 = vpack.c.bf16 %v13934_v63, %v13933_v31  ;;  %v13691_v59 = vpack.c.bf16 %v13949_v12, %v13948_v53 }
 0x4fd   : > { %13650 = vmatpush3.bf16.msra.mxu0 %v13647_v6  ;;  %12473 = vmatprep.mubr.msk.f32.mxu0 %vm10595_vm5, %v12246_v51  ;;  %v13942_v41 = vpop.permute.xlu0 %13941 }
 0x4fe   : > { %13652 = vmatprep.subr.bf16.mxu0 %v13651_v34  ;;  %v13944_v40 = vunpack.i.h.bf16 %v13942_v41  ;;  %v13943_v55 = vunpack.i.l.bf16 %v13942_v41 }
 0x4ff   : > { %11575 = vperm.xlu1 %13889, %v11557_v47  }
 0x500   : > { %12474 = vmatmul.mubr.msk.f32.gmra.mrb[106].mxu0 %vm10595_vm5, %v12247_v46  ;;  %v13687_v18 = vpack.c.bf16 %v13944_v40, %v13943_v55 }
 0x501   : > { %13654 = vmatpush3.bf16.msra.mxu0 %v13651_v34  ;;  %12492 = vmatprep.mubr.msk.f32.mxu0 %vm10595_vm5, %v12252_v21 }
 0x502   : > { %13656 = vmatprep.subr.bf16.mxu0 %v13655_v15 }
 0x505   : > { %13658 = vmatpush3.bf16.msra.mxu0 %v13655_v15 }
 0x506   : > { %13660 = vmatprep.subr.bf16.mxu0 %v13659_v61 }
 0x509   : > { %13662 = vmatpush3.bf16.msra.mxu0 %v13659_v61  ;;  %v14020_v61 = vmov 0.0|0.0  }
 0x50a   : > { %13664 = vmatprep.subr.bf16.mxu0 %v13663_v27  ;;  %13711 = vmatprep.subr.bf16.mxu1 %v14020_v61 }
 0x50c   : > { %12493 = vmatmul.mubr.msk.f32.vlgmr.msra.gmra.mrb[104].mxu0 %vm10595_vm5, %v12253_v32 }
 0x50d   : > { %13666 = vmatpush3.bf16.msra.mxu0 %v13663_v27  ;;  %12495 = vmatprep.mubr.msk.f32.mxu0 %vm10595_vm5, %v12254_v52 }
 0x50e   : > { %13668 = vmatprep.subr.bf16.mxu0 %v13667_v4 }
 0x510   : > { %12496 = vmatmul.mubr.msk.f32.gmra.mrb[106].mxu0 %vm10595_vm5, %v12255_v36 }
 0x511   : > { %13670 = vmatpush3.bf16.msra.mxu0 %v13667_v4  ;;  %12514 = vmatprep.mubr.msk.f32.mxu0 %vm10595_vm5, %v12260_v38 }
 0x512   : > { %13672 = vmatprep.subr.bf16.mxu0 %v13671_v24 }
 0x515   : > { %13674 = vmatpush3.bf16.msra.mxu0 %v13671_v24 }
 0x516   : > { %13676 = vmatprep.subr.bf16.mxu0 %v13675_v30 }
 0x519   : > { %13678 = vmatpush3.bf16.msra.mxu0 %v13675_v30 }
 0x51a   : > { %13680 = vmatprep.subr.bf16.mxu0 %v13679_v58 }
 0x51c   : > { %12515 = vmatmul.mubr.msk.f32.vlgmr.msra.gmra.mrb[104].mxu0 %vm10595_vm5, %v12261_v26 }
 0x51d   : > { %13682 = vmatpush3.bf16.msra.mxu0 %v13679_v58  ;;  %12517 = vmatprep.mubr.msk.f32.mxu0 %vm10595_vm5, %v12262_v33 }
 0x51e   : > { %13684 = vmatprep.subr.bf16.mxu0 %v13683_v8 }
 0x520   : > { %12518 = vmatmul.mubr.msk.f32.gmra.mrb[106].mxu0 %vm10595_vm5, %v12263_v10 }
 0x521   : > { %13686 = vmatpush3.bf16.msra.mxu0 %v13683_v8  ;;  %12536 = vmatprep.mubr.msk.f32.mxu0 %vm10595_vm5, %v12268_v7 }
 0x522   : > { %13688 = vmatprep.subr.bf16.mxu0 %v13687_v18 }
 0x525   : > { %13690 = vmatpush3.bf16.msra.mxu0 %v13687_v18 }
 0x526   : > { %13692 = vmatprep.subr.bf16.mxu0 %v13691_v59 }
 0x529   : > { %13694 = vmatpush3.bf16.msra.mxu0 %v13691_v59 }
 0x52c   : > { %12537 = vmatmul.mubr.msk.f32.vlgmr.msra.gmra.mrb[104].mxu0 %vm10595_vm5, %v12269_v1 }
 0x52d   : > { %12539 = vmatprep.mubr.msk.f32.mxu0 %vm10595_vm5, %v12270_v22 }
 0x530   : > { %12540 = vmatmul.mubr.msk.f32.gmra.mrb[106].mxu0 %vm10595_vm5, %v12271_v56 }
 0x531   : > { %12558 = vmatprep.mubr.msk.f32.mxu0 %vm10595_vm5, %v12276_v16 }
 0x551   : > { %v13952_v6 = vpop.permute.xlu0 %13951 }
 0x552   : > { %v13954_v23 = vunpack.i.h.bf16 %v13952_v6  ;;  %v13953_v62 = vunpack.i.l.bf16 %v13952_v6 }
 0x554   : > { %v13695_v43 = vpack.c.bf16 %v13954_v23, %v13953_v62 }
 0x556   : > { %13696 = vmatprep.subr.bf16.mxu0 %v13695_v43 }
 0x557   : > { %13698 = vmatpush3.bf16.msra.mxu0 %v13695_v43 }
 0x559   : > { %v13957_v50 = vpop.permute.xlu1 %13956 }
 0x55a   : > { %v13959_v54 = vunpack.i.h.bf16 %v13957_v50  ;;  %v13958_v57 = vunpack.i.l.bf16 %v13957_v50 }
 0x55c   : > { %v13699_v51 = vpack.c.bf16 %v13959_v54, %v13958_v57 }
 0x55e   : > { %13700 = vmatprep.subr.bf16.mxu0 %v13699_v51 }
 0x55f   : > { %13702 = vmatpush3.bf16.msra.mxu0 %v13699_v51 }
 0x561   : > { %v13962_v34 = vpop.permute.xlu0 %13961 }
 0x562   : > { %v13964_v42 = vunpack.i.h.bf16 %v13962_v34  ;;  %v13963_v3 = vunpack.i.l.bf16 %v13962_v34 }
 0x564   : > { %v13703_v47 = vpack.c.bf16 %v13964_v42, %v13963_v3 }
 0x566   : > { %13704 = vmatprep.subr.bf16.mxu0 %v13703_v47 }
 0x567   : > { %13706 = vmatpush3.bf16.msra.mxu0 %v13703_v47 }
 0x569   : > { %v13967_v9 = vpop.permute.xlu1 %13966 }
 0x56a   : > { %v13969_v46 = vunpack.i.h.bf16 %v13967_v9  ;;  %v13968_v21 = vunpack.i.l.bf16 %v13967_v9 }
 0x56c   : > { %v13707_v15 = vpack.c.bf16 %v13969_v46, %v13968_v21 }
 0x56e   : > { %13708 = vmatprep.subr.bf16.mxu0 %v13707_v15 }
 0x56f   : > { %13710 = vmatpush3.bf16.msra.mxu0 %v13707_v15 }
 0x572   : > { %12559 = vmatmul.mubr.msk.f32.vlgmr.msra.gmra.mrb[104].mxu0 %vm10595_vm5, %v12277_v45  ;;  %v11561_v35 = vpop.permute.xlu0 %11560 }
 0x573   : > { %12561 = vmatprep.mubr.msk.f32.mxu0 %vm10595_vm5, %v12278_v5 }
 0x576   : > { %12562 = vmatmul.mubr.msk.f32.gmra.mrb[106].mxu0 %vm10595_vm5, %v12279_v29  ;;  %v11571_v60 = vpop.permute.xlu0 %11570 }
 0x57a   : > { %v11566_v39 = vpop.permute.xlu1 %11565  ;;  %v11591_v19 = vpop.permute.xlu0 %11590 }
 0x57e   : > { %v11576_v32 = vpop.permute.xlu1 %11575 }
 0x645   : > { %v12560_v44 = vpop.f32.mrb[104].mxu0 }
 0x646   : > { %v11579_v27 = vadd.f32 %v12560_v44, %v11566_v39  ;;  %v11531_v48 = vpop.f32.mrb[105].mxu0 }
 0x647   : > { %v11578_v28 = vadd.f32 %v11561_v35, %v11531_v48 }
 0x648   : > { %v11583_v17 = vmax.f32 %v11579_v27, 0.0 }
 0x649   : > { %v11582_v52 = vmax.f32 %v11578_v28, 0.0  ;;  %v12563_v4 = vpop.f32.mrb[106].mxu0 }
 0x64a   : > { %v11581_v14 = vadd.f32 %v12563_v4, %v11576_v32  ;;  %v11541_v20 = vpop.f32.mrb[107].mxu0 }
 0x64b   : > { %v13712_v36 = vpack.c.bf16 %v11583_v17, %v11582_v52  ;;  %v11580_v38 = vadd.f32 %v11571_v60, %v11541_v20 }
 0x64c   : > { %v11585_v24 = vmax.f32 %v11581_v14, 0.0 }
 0x64d   : > { %v11584_v2 = vmax.f32 %v11580_v38, 0.0  ;;  %13713 = vmatpush3.bf16.msra.mxu1 %v13712_v36 }
 0x64e   : > { %13714 = vmatprep.subr.bf16.mxu1 %v14020_v61 }
 0x64f   : > { %v13715_v11 = vpack.c.bf16 %v11585_v24, %v11584_v2 }
 0x651   : > { %13716 = vmatpush3.bf16.msra.mxu1 %v13715_v11 }
 0x654   : > { %12573 = vmatmul.mubr.msk.f32.vlgmr.msra.gmra.mrb[104].mxu1 %vm8469_vm4, %v11586_v25 }
 0x727   : > { %v11662_v30 = vpop.f32.mrb[104].mxu1 }
 0x728   : > { %v11663_v63 = vadd.f32 %v11662_v30, %v11591_v19  ;;  %v12574_v31 = vpop.f32.mrb[105].mxu1 }
 0x72a   : > { %11667 = vst.msk [vmem:[%s330_s26] sm:$0x3] %vm11666_vm7, %v11663_v63 }
 0x72b PF: > { %s19_s30 = sadd.s32 1, %s14014_s30  }
 0x72c   : > { %p16_p4 = scmp.ge.s32.totalorder %s19_s30, 4  }
 0x72e   :  { %18 = sbr.rel (!%p16_p4) target bundleno = 1 (0x1), region = 93 }

</bundles_post_ra>
